<compile_context>
chip_gen: v6e
topology: v6e:2x2x1
jax: 0.10.0
libtpu: 0.0.40
codegen_flags: <defaults>
</compile_context>

<pallas_src>
import functools

import jax
import jax.numpy as jnp
from jax import lax
from jax.experimental import pallas as pl
from jax.experimental.pallas import tpu as pltpu

C = 64      # internal channel width (first-layer input channels padded to C)
WPAD = 8    # left W-halo width: interior starts at sublane offset 8 (aligned)


def _pick_strip_rows(H, W, itemsize, budget_bytes=4 << 20):
    """Largest divisor of H whose im2col strip (rows*W, 9*C) fits the budget."""
    for d in range(H, 0, -1):
        if H % d == 0 and d * W * 9 * C * itemsize <= budget_bytes:
            return d
    return 1


# ----------------------------------------------------------------------------
# Fused Pallas kernel: full conv stack for one frame, activations VMEM-resident
# ----------------------------------------------------------------------------
def _fused_stack_kernel(x_ref, w_ref, b_ref, wl_ref, bl_ref, out_ref,
                        abuf, bbuf, col_ref, *, n_layers, H, W, strip_rows):
    # x_ref  : (1, H, W, cin_pad)  input frame (channels padded to cin_pad)
    # w_ref  : (L, 9*C, C)         im2col conv weights (first + mid layers)
    # b_ref  : (L, 1, C)           biases (BN folded), f32
    # wl_ref : (9, 1, C)           last-layer (64 -> 1) weights, f32
    # bl_ref : (1, 1)              last-layer bias, f32
    # out_ref: (1, H, W)           lane-dense output of the final conv
    # abuf/bbuf : VMEM (H+2, W+9, C) ping-pong activations ('same' halo = 0)
    # col_ref   : VMEM (strip_rows*W, 9*C) im2col scratch (compute dtype)
    act_dtype = abuf.dtype
    cin_pad = x_ref.shape[-1]
    n_strips = H // strip_rows
    M = strip_rows * W
    WB = W + WPAD + 1

    # ---- Halo-only zeroing, every frame (cheap; interiors are overwritten
    #      every layer; per-frame keeps it correct under megacore sharding).
    for buf in (abuf, bbuf):
        buf[0:1, :, :] = jnp.zeros((1, WB, C), act_dtype)
        buf[H + 1:H + 2, :, :] = jnp.zeros((1, WB, C), act_dtype)
        buf[1:H + 1, 0:WPAD, :] = jnp.zeros((H, WPAD, C), act_dtype)
        buf[1:H + 1, W + WPAD:W + WPAD + 1, :] = jnp.zeros((H, 1, C), act_dtype)

    # ---- Place the input into abuf's interior; channels cin_pad..C-1 are
    #      zero so layer 0 sees a clean 64-channel tensor every frame.
    abuf[1:H + 1, WPAD:WPAD + W, :] = jnp.zeros((H, W, C), act_dtype)
    abuf[1:H + 1, WPAD:WPAD + W, 0:cin_pad] = x_ref[0].astype(act_dtype)

    # ---- One 3x3 'same' conv layer: strip-tiled im2col + single K=576 MXU
    #      contraction per strip (f32 accumulation), bias + ReLU epilogue.
    def conv_layer(layer_idx, src, dst):
        w = w_ref[layer_idx]                       # (9C, C)  compute dtype
        bvec = b_ref[layer_idx]                    # (1, C)   f32
        for s in range(n_strips):
            rs = s * strip_rows
            # im2col: taps written as 128-lane PAIRS -> aligned, unmasked vst.
            for p in range(4):
                t0, t1 = 2 * p, 2 * p + 1
                a0 = src[t0 // 3 + rs:t0 // 3 + rs + strip_rows,
                         t0 % 3 + WPAD - 1:t0 % 3 + WPAD - 1 + W, :]
                a1 = src[t1 // 3 + rs:t1 // 3 + rs + strip_rows,
                         t1 % 3 + WPAD - 1:t1 % 3 + WPAD - 1 + W, :]
                col_ref[:, 2 * C * p:2 * C * (p + 1)] = (
                    jnp.concatenate([a0, a1], axis=-1).reshape(M, 2 * C))
            a8 = src[2 + rs:2 + rs + strip_rows,
                     2 + WPAD - 1:2 + WPAD - 1 + W, :]
            col_ref[:, 8 * C:9 * C] = a8.reshape(M, C)     # 128-aligned start
            # One clean 2-D (M, 576) x (576, 64) MXU matmul, f32 accumulation.
            acc = jnp.dot(col_ref[...], w, preferred_element_type=jnp.float32)
            acc = jnp.maximum(acc + bvec, 0.0)
            dst[1 + rs:1 + rs + strip_rows, WPAD:WPAD + W, :] = (
                acc.reshape(strip_rows, W, C).astype(act_dtype))

    # ---- Layer stack: fori_loop over layer PAIRS (static ping-pong roles,
    #      bounded live ranges, weights indexed dynamically by layer).
    n_pairs = n_layers // 2
    if n_pairs > 0:
        def pair_body(i, carry):
            conv_layer(2 * i, abuf, bbuf)
            conv_layer(2 * i + 1, bbuf, abuf)
            return carry
        lax.fori_loop(0, n_pairs, pair_body, 0)
    if n_layers % 2 == 1:
        conv_layer(n_layers - 1, abuf, bbuf)
    final = bbuf if n_layers % 2 == 1 else abuf

    # ---- Last layer (64 -> 1): VPU multiply + lane reduction; lane-dense
    #      (strip_rows, W) stores into the (1, H, W) output block.
    for s in range(n_strips):
        rs = s * strip_rows
        wacc = jnp.zeros((strip_rows, W, C), jnp.float32)
        for t in range(9):
            dy, dx = t // 3, t % 3
            tap = final[dy + rs:dy + rs + strip_rows,
                        dx + WPAD - 1:dx + WPAD - 1 + W, :]
            wacc = wacc + tap * wl_ref[t]                    # (1, C) f32 weights
        res = jnp.sum(wacc, axis=-1) + bl_ref[...]           # (strip_rows, W)
        out_ref[0, rs:rs + strip_rows, :] = res.astype(out_ref.dtype)


# ----------------------------------------------------------------------------
# Parameter packing for the fused kernel layout
# ----------------------------------------------------------------------------
def _pack_params(params, compute_dtype):
    ws, bs = [], []
    for p in params[:-1]:                            # first + mid layers
        w = p['w']                                   # (3, 3, cin, C)
        cin = w.shape[2]
        w = jnp.reshape(w, (9, cin, C))
        if cin < C:                                  # first layer: pad Cin -> C
            w = jnp.pad(w, ((0, 0), (0, C - cin), (0, 0)))
        ws.append(jnp.reshape(w, (9 * C, C)))        # k = tap*C + cin
        bs.append(jnp.reshape(p['b'], (1, C)))
    w_stack = jnp.stack(ws).astype(compute_dtype)    # (L, 9C, C)
    b_stack = jnp.stack(bs).astype(jnp.float32)      # (L, 1, C)
    w_last = jnp.reshape(params[-1]['w'], (9, C))[:, None, :]        # (9, 1, C)
    w_last = w_last.astype(jnp.float32)
    b_last = jnp.reshape(params[-1]['b'], (1, 1)).astype(jnp.float32)
    return w_stack, b_stack, w_last, b_last


# ----------------------------------------------------------------------------
# Forward pass (matches VideoPrint.forward)
# ----------------------------------------------------------------------------
def videoprint_forward(params, x1_nchw, x2_nchw, *, compute_dtype=jnp.bfloat16):
    """Returns (out1, out2), each (N, 1, H, W)."""
    n_layers = len(params) - 1                       # layers before the 64->1 head
    N = x1_nchw.shape[0]

    # Process both inputs in a single pass (one kernel launch, 2N grid steps).
    x = jnp.concatenate([x1_nchw, x2_nchw], axis=0)               # (2N, Cin, H, W)
    x = jnp.transpose(x, (0, 2, 3, 1)).astype(jnp.float32)        # NHWC
    B, H, W, Cin = x.shape
    assert Cin <= C
    cin_pad = min(C, ((Cin + 7) // 8) * 8)           # pad only to 8, not 64
    x = jnp.pad(x, ((0, 0), (0, 0), (0, 0), (0, cin_pad - Cin)))

    w_stack, b_stack, w_last, b_last = _pack_params(params, compute_dtype)
    L = n_layers
    itemsize = jnp.dtype(compute_dtype).itemsize
    strip_rows = _pick_strip_rows(H, W, itemsize)

    flops = 2 * B * H * W * (9 * C) * C * L + 2 * B * H * W * 9 * C
    bytes_accessed = (x.size * 4 + w_stack.size * itemsize + b_stack.size * 4
                      + w_last.size * 4 + b_last.size * 4 + B * H * W * 4)

    kern = functools.partial(_fused_stack_kernel, n_layers=L, H=H, W=W,
                             strip_rows=strip_rows)
    out = pl.pallas_call(
        kern,
        out_shape=jax.ShapeDtypeStruct((B, H, W), jnp.float32),
        grid=(B,),
        in_specs=[
            pl.BlockSpec((1, H, W, cin_pad), lambda n: (n, 0, 0, 0)),
            pl.BlockSpec((L, 9 * C, C), lambda n: (0, 0, 0)),     # weights resident
            pl.BlockSpec((L, 1, C), lambda n: (0, 0, 0)),
            pl.BlockSpec((9, 1, C), lambda n: (0, 0, 0)),
            pl.BlockSpec((1, 1), lambda n: (0, 0)),
        ],
        out_specs=pl.BlockSpec((1, H, W), lambda n: (n, 0, 0)),
        scratch_shapes=[
            pltpu.VMEM((H + 2, W + WPAD + 1, C), compute_dtype),  # ping
            pltpu.VMEM((H + 2, W + WPAD + 1, C), compute_dtype),  # pong
            pltpu.VMEM((strip_rows * W, 9 * C), compute_dtype),   # im2col strip
        ],
        compiler_params=pltpu.CompilerParams(dimension_semantics=("parallel",)),
        cost_estimate=pl.CostEstimate(flops=flops, transcendentals=0,
                                      bytes_accessed=bytes_accessed),
    )(x, w_stack, b_stack, w_last, b_last)

    out = out[:, None, :, :]                          # (2N, 1, H, W)
    return out[:N], out[N:]


# ----------------------------------------------------------------------------
# Deterministic parameter init (PyTorch-like conv init, eval-mode BN folded)
# ----------------------------------------------------------------------------
def init_videoprint_params(key, inch: int = 3, depth: int = 20):
    incoordch = inch + 2
    layer_dims = [(incoordch, 64)] + [(64, 64)] * depth + [(64, 1)]
    params = []
    for li, (cin, cout) in enumerate(layer_dims):
        key, kw, kb, kg, kbe, km, kv = jax.random.split(key, 7)
        bound = 1.0 / jnp.sqrt(jnp.float32(cin * 9))
        w = jax.random.uniform(kw, (3, 3, cin, cout), jnp.float32, -bound, bound)
        b = jax.random.uniform(kb, (cout,), jnp.float32, -bound, bound)
        is_first = (li == 0)
        is_last = (li == len(layer_dims) - 1)
        if not is_first and not is_last:
            # mid layer: fold eval-mode BatchNorm2d into the conv (exact).
            gamma = jax.random.uniform(kg, (cout,), jnp.float32, 0.5, 1.5)
            beta = jax.random.uniform(kbe, (cout,), jnp.float32, -0.1, 0.1)
            rmean = jax.random.uniform(km, (cout,), jnp.float32, -0.1, 0.1)
            rvar = jax.random.uniform(kv, (cout,), jnp.float32, 0.5, 1.5)
            scale = gamma / jnp.sqrt(rvar + 1e-5)
            w = w * scale[None, None, None, :]
            b = (b - rmean) * scale + beta
        params.append({'w': w, 'b': b, 'relu': not is_last})
    return params


# ----------------------------------------------------------------------------
# Pure-JAX reference (for correctness check)
# ----------------------------------------------------------------------------
def _conv_ref(x, w, b, relu):
    y = lax.conv_general_dilated(
        x, w, window_strides=(1, 1), padding='SAME',
        dimension_numbers=('NHWC', 'HWIO', 'NHWC')) + b
    return jnp.maximum(y, 0.0) if relu else y


def videoprint_ref(params, x1_nchw, x2_nchw):
    def run(x):
        y = jnp.transpose(x, (0, 2, 3, 1)).astype(jnp.float32)
        for p in params:
            y = _conv_ref(y, p['w'], p['b'], p['relu'])
        return jnp.transpose(y, (0, 3, 1, 2))
    return run(x1_nchw), run(x2_nchw)


# ----------------------------------------------------------------------------
if __name__ == "__main__":
    INCH, DEPTH = 3, 4          # small depth for the demo (module default is 20)
    N, H, W = 2, 16, 16
    CIN = INCH + 2              # forward consumes inputs with inch+2 channels

    key = jax.random.PRNGKey(0)
    kp, k1, k2 = jax.random.split(key, 3)
    params = init_videoprint_params(kp, inch=INCH, depth=DEPTH)

    x1 = jax.random.normal(k1, (N, CIN, H, W), jnp.float32)   # NCHW, like PyTorch
    x2 = jax.random.normal(k2, (N, CIN, H, W), jnp.float32)

    ref1, ref2 = videoprint_ref(params, x1, x2)

    # f32 matmul operands and f32 resident activations: tight check.
    fwd32 = jax.jit(lambda a, b: videoprint_forward(params, a, b,
                                                    compute_dtype=jnp.float32))
    o1, o2 = fwd32(x1, x2)
    jax.block_until_ready((o1, o2))
    assert o1.shape == (N, 1, H, W) and o2.shape == (N, 1, H, W)
    assert jnp.allclose(o1, ref1, rtol=1e-3, atol=1e-3)
    assert jnp.allclose(o2, ref2, rtol=1e-3, atol=1e-3)

    # bf16 operands + bf16 resident activations (default fast path): loose check.
    fwd16 = jax.jit(lambda a, b: videoprint_forward(params, a, b,
                                                    compute_dtype=jnp.bfloat16))
    p1, p2 = fwd16(x1, x2)
    jax.block_until_ready((p1, p2))
    assert p1.shape == (N, 1, H, W) and p2.shape == (N, 1, H, W)
    assert jnp.allclose(p1, ref1, rtol=5e-2, atol=5e-2)
    assert jnp.allclose(p2, ref2, rtol=5e-2, atol=5e-2)

    print("KERNEL_OK")
</pallas_src>

<mosaic_0001>
module attributes {stable_mosaic.version = 11 : i64} {
  func.func @_fused_stack_kernel(%arg0: i32, %arg1: memref<1x16x16x8xf32, #tpu.memory_space<vmem>>, %arg2: memref<5x576x64xf32, #tpu.memory_space<vmem>>, %arg3: memref<5x1x64xf32, #tpu.memory_space<vmem>>, %arg4: memref<9x1x64xf32, #tpu.memory_space<vmem>>, %arg5: memref<1x1xf32, #tpu.memory_space<vmem>>, %arg6: memref<1x16x16xf32, #tpu.memory_space<vmem>>, %arg7: memref<18x25x64xf32, #tpu.memory_space<vmem>>, %arg8: memref<18x25x64xf32, #tpu.memory_space<vmem>>, %arg9: memref<256x576xf32, #tpu.memory_space<vmem>>) attributes {dimension_semantics = [#tpu.dimension_semantics<parallel>], iteration_bounds = array<i64: 4>, scalar_prefetch = 0 : i64, scratch_operands = 3 : i64, tpu.core_type = #tpu.core_type<tc>, window_params = [{transform_indices = @transform_0, window_bounds = array<i64: 1, 16, 16, 8>}, {pipeline_mode = #tpu.pipeline_mode<synchronous>, transform_indices = @transform_1, window_bounds = array<i64: 5, 576, 64>}, {pipeline_mode = #tpu.pipeline_mode<synchronous>, transform_indices = @transform_2, window_bounds = array<i64: 5, 1, 64>}, {pipeline_mode = #tpu.pipeline_mode<synchronous>, transform_indices = @transform_3, window_bounds = array<i64: 9, 1, 64>}, {pipeline_mode = #tpu.pipeline_mode<synchronous>, transform_indices = @transform_4, window_bounds = array<i64: 1, 1>}, {transform_indices = @transform_5, window_bounds = array<i64: 1, 16, 16>}]} {
    %cst = arith.constant 0.000000e+00 : f32
    %0 = vector.broadcast %cst : f32 to vector<1x25x64xf32>
    %c0 = arith.constant 0 : index
    %c0_0 = arith.constant 0 : index
    %c0_1 = arith.constant 0 : index
    %1 = vector.load %arg7[%c0, %c0_0, %c0_1] : memref<18x25x64xf32, #tpu.memory_space<vmem>>, vector<1x25x64xf32>
    tpu.vector_store %arg7[%c0, %c0_0, %c0_1], %0 {strides = array<i32>} : memref<18x25x64xf32, #tpu.memory_space<vmem>>, vector<1x25x64xf32>,
    %cst_2 = arith.constant 0.000000e+00 : f32
    %2 = vector.broadcast %cst_2 : f32 to vector<1x25x64xf32>
    %c17 = arith.constant 17 : index
    %c0_3 = arith.constant 0 : index
    %c0_4 = arith.constant 0 : index
    %3 = vector.load %arg7[%c17, %c0_3, %c0_4] : memref<18x25x64xf32, #tpu.memory_space<vmem>>, vector<1x25x64xf32>
    tpu.vector_store %arg7[%c17, %c0_3, %c0_4], %2 {strides = array<i32>} : memref<18x25x64xf32, #tpu.memory_space<vmem>>, vector<1x25x64xf32>,
    %cst_5 = arith.constant 0.000000e+00 : f32
    %4 = vector.broadcast %cst_5 : f32 to vector<16x8x64xf32>
    %c1 = arith.constant 1 : index
    %c0_6 = arith.constant 0 : index
    %c0_7 = arith.constant 0 : index
    %5 = vector.load %arg7[%c1, %c0_6, %c0_7] : memref<18x25x64xf32, #tpu.memory_space<vmem>>, vector<16x8x64xf32>
    tpu.vector_store %arg7[%c1, %c0_6, %c0_7], %4 {strides = array<i32>} : memref<18x25x64xf32, #tpu.memory_space<vmem>>, vector<16x8x64xf32>,
    %cst_8 = arith.constant 0.000000e+00 : f32
    %6 = vector.broadcast %cst_8 : f32 to vector<16x1x64xf32>
    %c1_9 = arith.constant 1 : index
    %c24 = arith.constant 24 : index
    %c0_10 = arith.constant 0 : index
    %7 = vector.load %arg7[%c1_9, %c24, %c0_10] : memref<18x25x64xf32, #tpu.memory_space<vmem>>, vector<16x1x64xf32>
    tpu.vector_store %arg7[%c1_9, %c24, %c0_10], %6 {strides = array<i32>} : memref<18x25x64xf32, #tpu.memory_space<vmem>>, vector<16x1x64xf32>,
    %cst_11 = arith.constant 0.000000e+00 : f32
    %8 = vector.broadcast %cst_11 : f32 to vector<1x25x64xf32>
    %c0_12 = arith.constant 0 : index
    %c0_13 = arith.constant 0 : index
    %c0_14 = arith.constant 0 : index
    %9 = vector.load %arg8[%c0_12, %c0_13, %c0_14] : memref<18x25x64xf32, #tpu.memory_space<vmem>>, vector<1x25x64xf32>
    tpu.vector_store %arg8[%c0_12, %c0_13, %c0_14], %8 {strides = array<i32>} : memref<18x25x64xf32, #tpu.memory_space<vmem>>, vector<1x25x64xf32>,
    %cst_15 = arith.constant 0.000000e+00 : f32
    %10 = vector.broadcast %cst_15 : f32 to vector<1x25x64xf32>
    %c17_16 = arith.constant 17 : index
    %c0_17 = arith.constant 0 : index
    %c0_18 = arith.constant 0 : index
    %11 = vector.load %arg8[%c17_16, %c0_17, %c0_18] : memref<18x25x64xf32, #tpu.memory_space<vmem>>, vector<1x25x64xf32>
    tpu.vector_store %arg8[%c17_16, %c0_17, %c0_18], %10 {strides = array<i32>} : memref<18x25x64xf32, #tpu.memory_space<vmem>>, vector<1x25x64xf32>,
    %cst_19 = arith.constant 0.000000e+00 : f32
    %12 = vector.broadcast %cst_19 : f32 to vector<16x8x64xf32>
    %c1_20 = arith.constant 1 : index
    %c0_21 = arith.constant 0 : index
    %c0_22 = arith.constant 0 : index
    %13 = vector.load %arg8[%c1_20, %c0_21, %c0_22] : memref<18x25x64xf32, #tpu.memory_space<vmem>>, vector<16x8x64xf32>
    tpu.vector_store %arg8[%c1_20, %c0_21, %c0_22], %12 {strides = array<i32>} : memref<18x25x64xf32, #tpu.memory_space<vmem>>, vector<16x8x64xf32>,
    %cst_23 = arith.constant 0.000000e+00 : f32
    %14 = vector.broadcast %cst_23 : f32 to vector<16x1x64xf32>
    %c1_24 = arith.constant 1 : index
    %c24_25 = arith.constant 24 : index
    %c0_26 = arith.constant 0 : index
    %15 = vector.load %arg8[%c1_24, %c24_25, %c0_26] : memref<18x25x64xf32, #tpu.memory_space<vmem>>, vector<16x1x64xf32>
    tpu.vector_store %arg8[%c1_24, %c24_25, %c0_26], %14 {strides = array<i32>} : memref<18x25x64xf32, #tpu.memory_space<vmem>>, vector<16x1x64xf32>,
    %cst_27 = arith.constant 0.000000e+00 : f32
    %16 = vector.broadcast %cst_27 : f32 to vector<16x16x64xf32>
    %c1_28 = arith.constant 1 : index
    %c8 = arith.constant 8 : index
    %c0_29 = arith.constant 0 : index
    %17 = vector.load %arg7[%c1_28, %c8, %c0_29] : memref<18x25x64xf32, #tpu.memory_space<vmem>>, vector<16x16x64xf32>
    tpu.vector_store %arg7[%c1_28, %c8, %c0_29], %16 {strides = array<i32>} : memref<18x25x64xf32, #tpu.memory_space<vmem>>, vector<16x16x64xf32>,
    %c0_30 = arith.constant 0 : index
    %c0_31 = arith.constant 0 : index
    %c0_32 = arith.constant 0 : index
    %c0_33 = arith.constant 0 : index
    %18 = vector.load %arg1[%c0_30, %c0_31, %c0_32, %c0_33] : memref<1x16x16x8xf32, #tpu.memory_space<vmem>>, vector<1x16x16x8xf32>
    %19 = vector.shape_cast %18 : vector<1x16x16x8xf32> to vector<16x16x8xf32>
    %c1_34 = arith.constant 1 : index
    %c8_35 = arith.constant 8 : index
    %c0_36 = arith.constant 0 : index
    %20 = vector.load %arg7[%c1_34, %c8_35, %c0_36] : memref<18x25x64xf32, #tpu.memory_space<vmem>>, vector<16x16x8xf32>
    tpu.vector_store %arg7[%c1_34, %c8_35, %c0_36], %19 {strides = array<i32>} : memref<18x25x64xf32, #tpu.memory_space<vmem>>, vector<16x16x8xf32>,
    %c0_i32 = arith.constant 0 : i32
    %c2_i32 = arith.constant 2 : i32
    %21 = arith.addi %c0_i32, %c2_i32 : i32
    %c1_i32 = arith.constant 1 : i32
    scf.for %arg10 = %c0_i32 to %21 step %c1_i32  : i32 {
      %c2_i32_138 = arith.constant 2 : i32
      %128 = arith.muli %c2_i32_138, %arg10 : i32
      %129 = arith.index_cast %128 : i32 to index
      %c0_139 = arith.constant 0 : index
      %c0_140 = arith.constant 0 : index
      %130 = vector.load %arg2[%129, %c0_139, %c0_140] : memref<5x576x64xf32, #tpu.memory_space<vmem>>, vector<1x576x64xf32>
      %131 = vector.shape_cast %130 : vector<1x576x64xf32> to vector<576x64xf32>
      %132 = arith.index_cast %128 : i32 to index
      %c0_141 = arith.constant 0 : index
      %c0_142 = arith.constant 0 : index
      %133 = vector.load %arg3[%132, %c0_141, %c0_142] : memref<5x1x64xf32, #tpu.memory_space<vmem>>, vector<1x1x64xf32>
      %134 = vector.shape_cast %133 : vector<1x1x64xf32> to vector<1x64xf32>
      %c0_143 = arith.constant 0 : index
      %c7_144 = arith.constant 7 : index
      %c0_145 = arith.constant 0 : index
      %135 = vector.load %arg7[%c0_143, %c7_144, %c0_145] : memref<18x25x64xf32, #tpu.memory_space<vmem>>, vector<16x16x64xf32>
      %c0_146 = arith.constant 0 : index
      %c8_147 = arith.constant 8 : index
      %c0_148 = arith.constant 0 : index
      %136 = vector.load %arg7[%c0_146, %c8_147, %c0_148] : memref<18x25x64xf32, #tpu.memory_space<vmem>>, vector<16x16x64xf32>
      %137 = tpu.concatenate %135, %136 in 2 : vector<16x16x64xf32>, vector<16x16x64xf32> -> vector<16x16x128xf32>
      %138 = vector.shape_cast %137 : vector<16x16x128xf32> to vector<256x128xf32>
      %c0_149 = arith.constant 0 : index
      %c0_150 = arith.constant 0 : index
      %139 = vector.load %arg9[%c0_149, %c0_150] : memref<256x576xf32, #tpu.memory_space<vmem>>, vector<256x128xf32>
      tpu.vector_store %arg9[%c0_149, %c0_150], %138 {strides = array<i32>} : memref<256x576xf32, #tpu.memory_space<vmem>>, vector<256x128xf32>,
      %c0_151 = arith.constant 0 : index
      %c9_152 = arith.constant 9 : index
      %c0_153 = arith.constant 0 : index
      %140 = vector.load %arg7[%c0_151, %c9_152, %c0_153] : memref<18x25x64xf32, #tpu.memory_space<vmem>>, vector<16x16x64xf32>
      %c1_154 = arith.constant 1 : index
      %c7_155 = arith.constant 7 : index
      %c0_156 = arith.constant 0 : index
      %141 = vector.load %arg7[%c1_154, %c7_155, %c0_156] : memref<18x25x64xf32, #tpu.memory_space<vmem>>, vector<16x16x64xf32>
      %142 = tpu.concatenate %140, %141 in 2 : vector<16x16x64xf32>, vector<16x16x64xf32> -> vector<16x16x128xf32>
      %143 = vector.shape_cast %142 : vector<16x16x128xf32> to vector<256x128xf32>
      %c0_157 = arith.constant 0 : index
      %c128_158 = arith.constant 128 : index
      %144 = vector.load %arg9[%c0_157, %c128_158] : memref<256x576xf32, #tpu.memory_space<vmem>>, vector<256x128xf32>
      tpu.vector_store %arg9[%c0_157, %c128_158], %143 {strides = array<i32>} : memref<256x576xf32, #tpu.memory_space<vmem>>, vector<256x128xf32>,
      %c1_159 = arith.constant 1 : index
      %c8_160 = arith.constant 8 : index
      %c0_161 = arith.constant 0 : index
      %145 = vector.load %arg7[%c1_159, %c8_160, %c0_161] : memref<18x25x64xf32, #tpu.memory_space<vmem>>, vector<16x16x64xf32>
      %c1_162 = arith.constant 1 : index
      %c9_163 = arith.constant 9 : index
      %c0_164 = arith.constant 0 : index
      %146 = vector.load %arg7[%c1_162, %c9_163, %c0_164] : memref<18x25x64xf32, #tpu.memory_space<vmem>>, vector<16x16x64xf32>
      %147 = tpu.concatenate %145, %146 in 2 : vector<16x16x64xf32>, vector<16x16x64xf32> -> vector<16x16x128xf32>
      %148 = vector.shape_cast %147 : vector<16x16x128xf32> to vector<256x128xf32>
      %c0_165 = arith.constant 0 : index
      %c256_166 = arith.constant 256 : index
      %149 = vector.load %arg9[%c0_165, %c256_166] : memref<256x576xf32, #tpu.memory_space<vmem>>, vector<256x128xf32>
      tpu.vector_store %arg9[%c0_165, %c256_166], %148 {strides = array<i32>} : memref<256x576xf32, #tpu.memory_space<vmem>>, vector<256x128xf32>,
      %c2_167 = arith.constant 2 : index
      %c7_168 = arith.constant 7 : index
      %c0_169 = arith.constant 0 : index
      %150 = vector.load %arg7[%c2_167, %c7_168, %c0_169] : memref<18x25x64xf32, #tpu.memory_space<vmem>>, vector<16x16x64xf32>
      %c2_170 = arith.constant 2 : index
      %c8_171 = arith.constant 8 : index
      %c0_172 = arith.constant 0 : index
      %151 = vector.load %arg7[%c2_170, %c8_171, %c0_172] : memref<18x25x64xf32, #tpu.memory_space<vmem>>, vector<16x16x64xf32>
      %152 = tpu.concatenate %150, %151 in 2 : vector<16x16x64xf32>, vector<16x16x64xf32> -> vector<16x16x128xf32>
      %153 = vector.shape_cast %152 : vector<16x16x128xf32> to vector<256x128xf32>
      %c0_173 = arith.constant 0 : index
      %c384_174 = arith.constant 384 : index
      %154 = vector.load %arg9[%c0_173, %c384_174] : memref<256x576xf32, #tpu.memory_space<vmem>>, vector<256x128xf32>
      tpu.vector_store %arg9[%c0_173, %c384_174], %153 {strides = array<i32>} : memref<256x576xf32, #tpu.memory_space<vmem>>, vector<256x128xf32>,
      %c2_175 = arith.constant 2 : index
      %c9_176 = arith.constant 9 : index
      %c0_177 = arith.constant 0 : index
      %155 = vector.load %arg7[%c2_175, %c9_176, %c0_177] : memref<18x25x64xf32, #tpu.memory_space<vmem>>, vector<16x16x64xf32>
      %156 = vector.shape_cast %155 : vector<16x16x64xf32> to vector<256x64xf32>
      %c0_178 = arith.constant 0 : index
      %c512_179 = arith.constant 512 : index
      %157 = vector.load %arg9[%c0_178, %c512_179] : memref<256x576xf32, #tpu.memory_space<vmem>>, vector<256x64xf32>
      tpu.vector_store %arg9[%c0_178, %c512_179], %156 {strides = array<i32>} : memref<256x576xf32, #tpu.memory_space<vmem>>, vector<256x64xf32>,
      %c0_180 = arith.constant 0 : index
      %c0_181 = arith.constant 0 : index
      %158 = vector.load %arg9[%c0_180, %c0_181] : memref<256x576xf32, #tpu.memory_space<vmem>>, vector<256x576xf32>
      %cst_182 = arith.constant dense<0.000000e+00> : vector<256x64xf32>
      %159 = tpu.matmul %158, %131, %cst_182 {dimension_numbers = #tpu.dot_dimension_numbers<[1], [0], [0], [1], [0, 0, 1, 1], [], []>} : vector<256x576xf32>, vector<576x64xf32>, vector<256x64xf32> -> vector<256x64xf32>
      %160 = vector.broadcast %134 : vector<1x64xf32> to vector<256x64xf32>
      %161 = arith.addf %159, %160 : vector<256x64xf32>
      %cst_183 = arith.constant 0.000000e+00 : f32
      %162 = vector.broadcast %cst_183 : f32 to vector<256x64xf32>
      %163 = arith.maximumf %161, %162 : vector<256x64xf32>
      %164 = vector.shape_cast %163 : vector<256x64xf32> to vector<16x16x64xf32>
      %c1_184 = arith.constant 1 : index
      %c8_185 = arith.constant 8 : index
      %c0_186 = arith.constant 0 : index
      %165 = vector.load %arg8[%c1_184, %c8_185, %c0_186] : memref<18x25x64xf32, #tpu.memory_space<vmem>>, vector<16x16x64xf32>
      tpu.vector_store %arg8[%c1_184, %c8_185, %c0_186], %164 {strides = array<i32>} : memref<18x25x64xf32, #tpu.memory_space<vmem>>, vector<16x16x64xf32>,
      %c2_i32_187 = arith.constant 2 : i32
      %166 = arith.muli %c2_i32_187, %arg10 : i32
      %c1_i32_188 = arith.constant 1 : i32
      %167 = arith.addi %166, %c1_i32_188 : i32
      %168 = arith.index_cast %167 : i32 to index
      %c0_189 = arith.constant 0 : index
      %c0_190 = arith.constant 0 : index
      %169 = vector.load %arg2[%168, %c0_189, %c0_190] : memref<5x576x64xf32, #tpu.memory_space<vmem>>, vector<1x576x64xf32>
      %170 = vector.shape_cast %169 : vector<1x576x64xf32> to vector<576x64xf32>
      %171 = arith.index_cast %167 : i32 to index
      %c0_191 = arith.constant 0 : index
      %c0_192 = arith.constant 0 : index
      %172 = vector.load %arg3[%171, %c0_191, %c0_192] : memref<5x1x64xf32, #tpu.memory_space<vmem>>, vector<1x1x64xf32>
      %173 = vector.shape_cast %172 : vector<1x1x64xf32> to vector<1x64xf32>
      %c0_193 = arith.constant 0 : index
      %c7_194 = arith.constant 7 : index
      %c0_195 = arith.constant 0 : index
      %174 = vector.load %arg8[%c0_193, %c7_194, %c0_195] : memref<18x25x64xf32, #tpu.memory_space<vmem>>, vector<16x16x64xf32>
      %c0_196 = arith.constant 0 : index
      %c8_197 = arith.constant 8 : index
      %c0_198 = arith.constant 0 : index
      %175 = vector.load %arg8[%c0_196, %c8_197, %c0_198] : memref<18x25x64xf32, #tpu.memory_space<vmem>>, vector<16x16x64xf32>
      %176 = tpu.concatenate %174, %175 in 2 : vector<16x16x64xf32>, vector<16x16x64xf32> -> vector<16x16x128xf32>
      %177 = vector.shape_cast %176 : vector<16x16x128xf32> to vector<256x128xf32>
      %c0_199 = arith.constant 0 : index
      %c0_200 = arith.constant 0 : index
      %178 = vector.load %arg9[%c0_199, %c0_200] : memref<256x576xf32, #tpu.memory_space<vmem>>, vector<256x128xf32>
      tpu.vector_store %arg9[%c0_199, %c0_200], %177 {strides = array<i32>} : memref<256x576xf32, #tpu.memory_space<vmem>>, vector<256x128xf32>,
      %c0_201 = arith.constant 0 : index
      %c9_202 = arith.constant 9 : index
      %c0_203 = arith.constant 0 : index
      %179 = vector.load %arg8[%c0_201, %c9_202, %c0_203] : memref<18x25x64xf32, #tpu.memory_space<vmem>>, vector<16x16x64xf32>
      %c1_204 = arith.constant 1 : index
      %c7_205 = arith.constant 7 : index
      %c0_206 = arith.constant 0 : index
      %180 = vector.load %arg8[%c1_204, %c7_205, %c0_206] : memref<18x25x64xf32, #tpu.memory_space<vmem>>, vector<16x16x64xf32>
      %181 = tpu.concatenate %179, %180 in 2 : vector<16x16x64xf32>, vector<16x16x64xf32> -> vector<16x16x128xf32>
      %182 = vector.shape_cast %181 : vector<16x16x128xf32> to vector<256x128xf32>
      %c0_207 = arith.constant 0 : index
      %c128_208 = arith.constant 128 : index
      %183 = vector.load %arg9[%c0_207, %c128_208] : memref<256x576xf32, #tpu.memory_space<vmem>>, vector<256x128xf32>
      tpu.vector_store %arg9[%c0_207, %c128_208], %182 {strides = array<i32>} : memref<256x576xf32, #tpu.memory_space<vmem>>, vector<256x128xf32>,
      %c1_209 = arith.constant 1 : index
      %c8_210 = arith.constant 8 : index
      %c0_211 = arith.constant 0 : index
      %184 = vector.load %arg8[%c1_209, %c8_210, %c0_211] : memref<18x25x64xf32, #tpu.memory_space<vmem>>, vector<16x16x64xf32>
      %c1_212 = arith.constant 1 : index
      %c9_213 = arith.constant 9 : index
      %c0_214 = arith.constant 0 : index
      %185 = vector.load %arg8[%c1_212, %c9_213, %c0_214] : memref<18x25x64xf32, #tpu.memory_space<vmem>>, vector<16x16x64xf32>
      %186 = tpu.concatenate %184, %185 in 2 : vector<16x16x64xf32>, vector<16x16x64xf32> -> vector<16x16x128xf32>
      %187 = vector.shape_cast %186 : vector<16x16x128xf32> to vector<256x128xf32>
      %c0_215 = arith.constant 0 : index
      %c256_216 = arith.constant 256 : index
      %188 = vector.load %arg9[%c0_215, %c256_216] : memref<256x576xf32, #tpu.memory_space<vmem>>, vector<256x128xf32>
      tpu.vector_store %arg9[%c0_215, %c256_216], %187 {strides = array<i32>} : memref<256x576xf32, #tpu.memory_space<vmem>>, vector<256x128xf32>,
      %c2_217 = arith.constant 2 : index
      %c7_218 = arith.constant 7 : index
      %c0_219 = arith.constant 0 : index
      %189 = vector.load %arg8[%c2_217, %c7_218, %c0_219] : memref<18x25x64xf32, #tpu.memory_space<vmem>>, vector<16x16x64xf32>
      %c2_220 = arith.constant 2 : index
      %c8_221 = arith.constant 8 : index
      %c0_222 = arith.constant 0 : index
      %190 = vector.load %arg8[%c2_220, %c8_221, %c0_222] : memref<18x25x64xf32, #tpu.memory_space<vmem>>, vector<16x16x64xf32>
      %191 = tpu.concatenate %189, %190 in 2 : vector<16x16x64xf32>, vector<16x16x64xf32> -> vector<16x16x128xf32>
      %192 = vector.shape_cast %191 : vector<16x16x128xf32> to vector<256x128xf32>
      %c0_223 = arith.constant 0 : index
      %c384_224 = arith.constant 384 : index
      %193 = vector.load %arg9[%c0_223, %c384_224] : memref<256x576xf32, #tpu.memory_space<vmem>>, vector<256x128xf32>
      tpu.vector_store %arg9[%c0_223, %c384_224], %192 {strides = array<i32>} : memref<256x576xf32, #tpu.memory_space<vmem>>, vector<256x128xf32>,
      %c2_225 = arith.constant 2 : index
      %c9_226 = arith.constant 9 : index
      %c0_227 = arith.constant 0 : index
      %194 = vector.load %arg8[%c2_225, %c9_226, %c0_227] : memref<18x25x64xf32, #tpu.memory_space<vmem>>, vector<16x16x64xf32>
      %195 = vector.shape_cast %194 : vector<16x16x64xf32> to vector<256x64xf32>
      %c0_228 = arith.constant 0 : index
      %c512_229 = arith.constant 512 : index
      %196 = vector.load %arg9[%c0_228, %c512_229] : memref<256x576xf32, #tpu.memory_space<vmem>>, vector<256x64xf32>
      tpu.vector_store %arg9[%c0_228, %c512_229], %195 {strides = array<i32>} : memref<256x576xf32, #tpu.memory_space<vmem>>, vector<256x64xf32>,
      %c0_230 = arith.constant 0 : index
      %c0_231 = arith.constant 0 : index
      %197 = vector.load %arg9[%c0_230, %c0_231] : memref<256x576xf32, #tpu.memory_space<vmem>>, vector<256x576xf32>
      %cst_232 = arith.constant dense<0.000000e+00> : vector<256x64xf32>
      %198 = tpu.matmul %197, %170, %cst_232 {dimension_numbers = #tpu.dot_dimension_numbers<[1], [0], [0], [1], [0, 0, 1, 1], [], []>} : vector<256x576xf32>, vector<576x64xf32>, vector<256x64xf32> -> vector<256x64xf32>
      %199 = vector.broadcast %173 : vector<1x64xf32> to vector<256x64xf32>
      %200 = arith.addf %198, %199 : vector<256x64xf32>
      %cst_233 = arith.constant 0.000000e+00 : f32
      %201 = vector.broadcast %cst_233 : f32 to vector<256x64xf32>
      %202 = arith.maximumf %200, %201 : vector<256x64xf32>
      %203 = vector.shape_cast %202 : vector<256x64xf32> to vector<16x16x64xf32>
      %c1_234 = arith.constant 1 : index
      %c8_235 = arith.constant 8 : index
      %c0_236 = arith.constant 0 : index
      %204 = vector.load %arg7[%c1_234, %c8_235, %c0_236] : memref<18x25x64xf32, #tpu.memory_space<vmem>>, vector<16x16x64xf32>
      tpu.vector_store %arg7[%c1_234, %c8_235, %c0_236], %203 {strides = array<i32>} : memref<18x25x64xf32, #tpu.memory_space<vmem>>, vector<16x16x64xf32>,
    }
    %c2_i32_37 = arith.constant 2 : i32
    %c4 = arith.constant 4 : index
    %c0_38 = arith.constant 0 : index
    %c0_39 = arith.constant 0 : index
    %22 = vector.load %arg2[%c4, %c0_38, %c0_39] : memref<5x576x64xf32, #tpu.memory_space<vmem>>, vector<1x576x64xf32>
    %23 = vector.shape_cast %22 : vector<1x576x64xf32> to vector<576x64xf32>
    %c4_40 = arith.constant 4 : index
    %c0_41 = arith.constant 0 : index
    %c0_42 = arith.constant 0 : index
    %24 = vector.load %arg3[%c4_40, %c0_41, %c0_42] : memref<5x1x64xf32, #tpu.memory_space<vmem>>, vector<1x1x64xf32>
    %25 = vector.shape_cast %24 : vector<1x1x64xf32> to vector<1x64xf32>
    %c0_43 = arith.constant 0 : index
    %c7 = arith.constant 7 : index
    %c0_44 = arith.constant 0 : index
    %26 = vector.load %arg7[%c0_43, %c7, %c0_44] : memref<18x25x64xf32, #tpu.memory_space<vmem>>, vector<16x16x64xf32>
    %c0_45 = arith.constant 0 : index
    %c8_46 = arith.constant 8 : index
    %c0_47 = arith.constant 0 : index
    %27 = vector.load %arg7[%c0_45, %c8_46, %c0_47] : memref<18x25x64xf32, #tpu.memory_space<vmem>>, vector<16x16x64xf32>
    %28 = tpu.concatenate %26, %27 in 2 : vector<16x16x64xf32>, vector<16x16x64xf32> -> vector<16x16x128xf32>
    %29 = vector.shape_cast %28 : vector<16x16x128xf32> to vector<256x128xf32>
    %c0_48 = arith.constant 0 : index
    %c0_49 = arith.constant 0 : index
    %30 = vector.load %arg9[%c0_48, %c0_49] : memref<256x576xf32, #tpu.memory_space<vmem>>, vector<256x128xf32>
    tpu.vector_store %arg9[%c0_48, %c0_49], %29 {strides = array<i32>} : memref<256x576xf32, #tpu.memory_space<vmem>>, vector<256x128xf32>,
    %c0_50 = arith.constant 0 : index
    %c9 = arith.constant 9 : index
    %c0_51 = arith.constant 0 : index
    %31 = vector.load %arg7[%c0_50, %c9, %c0_51] : memref<18x25x64xf32, #tpu.memory_space<vmem>>, vector<16x16x64xf32>
    %c1_52 = arith.constant 1 : index
    %c7_53 = arith.constant 7 : index
    %c0_54 = arith.constant 0 : index
    %32 = vector.load %arg7[%c1_52, %c7_53, %c0_54] : memref<18x25x64xf32, #tpu.memory_space<vmem>>, vector<16x16x64xf32>
    %33 = tpu.concatenate %31, %32 in 2 : vector<16x16x64xf32>, vector<16x16x64xf32> -> vector<16x16x128xf32>
    %34 = vector.shape_cast %33 : vector<16x16x128xf32> to vector<256x128xf32>
    %c0_55 = arith.constant 0 : index
    %c128 = arith.constant 128 : index
    %35 = vector.load %arg9[%c0_55, %c128] : memref<256x576xf32, #tpu.memory_space<vmem>>, vector<256x128xf32>
    tpu.vector_store %arg9[%c0_55, %c128], %34 {strides = array<i32>} : memref<256x576xf32, #tpu.memory_space<vmem>>, vector<256x128xf32>,
    %c1_56 = arith.constant 1 : index
    %c8_57 = arith.constant 8 : index
    %c0_58 = arith.constant 0 : index
    %36 = vector.load %arg7[%c1_56, %c8_57, %c0_58] : memref<18x25x64xf32, #tpu.memory_space<vmem>>, vector<16x16x64xf32>
    %c1_59 = arith.constant 1 : index
    %c9_60 = arith.constant 9 : index
    %c0_61 = arith.constant 0 : index
    %37 = vector.load %arg7[%c1_59, %c9_60, %c0_61] : memref<18x25x64xf32, #tpu.memory_space<vmem>>, vector<16x16x64xf32>
    %38 = tpu.concatenate %36, %37 in 2 : vector<16x16x64xf32>, vector<16x16x64xf32> -> vector<16x16x128xf32>
    %39 = vector.shape_cast %38 : vector<16x16x128xf32> to vector<256x128xf32>
    %c0_62 = arith.constant 0 : index
    %c256 = arith.constant 256 : index
    %40 = vector.load %arg9[%c0_62, %c256] : memref<256x576xf32, #tpu.memory_space<vmem>>, vector<256x128xf32>
    tpu.vector_store %arg9[%c0_62, %c256], %39 {strides = array<i32>} : memref<256x576xf32, #tpu.memory_space<vmem>>, vector<256x128xf32>,
    %c2 = arith.constant 2 : index
    %c7_63 = arith.constant 7 : index
    %c0_64 = arith.constant 0 : index
    %41 = vector.load %arg7[%c2, %c7_63, %c0_64] : memref<18x25x64xf32, #tpu.memory_space<vmem>>, vector<16x16x64xf32>
    %c2_65 = arith.constant 2 : index
    %c8_66 = arith.constant 8 : index
    %c0_67 = arith.constant 0 : index
    %42 = vector.load %arg7[%c2_65, %c8_66, %c0_67] : memref<18x25x64xf32, #tpu.memory_space<vmem>>, vector<16x16x64xf32>
    %43 = tpu.concatenate %41, %42 in 2 : vector<16x16x64xf32>, vector<16x16x64xf32> -> vector<16x16x128xf32>
    %44 = vector.shape_cast %43 : vector<16x16x128xf32> to vector<256x128xf32>
    %c0_68 = arith.constant 0 : index
    %c384 = arith.constant 384 : index
    %45 = vector.load %arg9[%c0_68, %c384] : memref<256x576xf32, #tpu.memory_space<vmem>>, vector<256x128xf32>
    tpu.vector_store %arg9[%c0_68, %c384], %44 {strides = array<i32>} : memref<256x576xf32, #tpu.memory_space<vmem>>, vector<256x128xf32>,
    %c2_69 = arith.constant 2 : index
    %c9_70 = arith.constant 9 : index
    %c0_71 = arith.constant 0 : index
    %46 = vector.load %arg7[%c2_69, %c9_70, %c0_71] : memref<18x25x64xf32, #tpu.memory_space<vmem>>, vector<16x16x64xf32>
    %47 = vector.shape_cast %46 : vector<16x16x64xf32> to vector<256x64xf32>
    %c0_72 = arith.constant 0 : index
    %c512 = arith.constant 512 : index
    %48 = vector.load %arg9[%c0_72, %c512] : memref<256x576xf32, #tpu.memory_space<vmem>>, vector<256x64xf32>
    tpu.vector_store %arg9[%c0_72, %c512], %47 {strides = array<i32>} : memref<256x576xf32, #tpu.memory_space<vmem>>, vector<256x64xf32>,
    %c0_73 = arith.constant 0 : index
    %c0_74 = arith.constant 0 : index
    %49 = vector.load %arg9[%c0_73, %c0_74] : memref<256x576xf32, #tpu.memory_space<vmem>>, vector<256x576xf32>
    %cst_75 = arith.constant dense<0.000000e+00> : vector<256x64xf32>
    %50 = tpu.matmul %49, %23, %cst_75 {dimension_numbers = #tpu.dot_dimension_numbers<[1], [0], [0], [1], [0, 0, 1, 1], [], []>} : vector<256x576xf32>, vector<576x64xf32>, vector<256x64xf32> -> vector<256x64xf32>
    %51 = vector.broadcast %25 : vector<1x64xf32> to vector<256x64xf32>
    %52 = arith.addf %50, %51 : vector<256x64xf32>
    %cst_76 = arith.constant 0.000000e+00 : f32
    %53 = vector.broadcast %cst_76 : f32 to vector<256x64xf32>
    %54 = arith.maximumf %52, %53 : vector<256x64xf32>
    %55 = vector.shape_cast %54 : vector<256x64xf32> to vector<16x16x64xf32>
    %c1_77 = arith.constant 1 : index
    %c8_78 = arith.constant 8 : index
    %c0_79 = arith.constant 0 : index
    %56 = vector.load %arg8[%c1_77, %c8_78, %c0_79] : memref<18x25x64xf32, #tpu.memory_space<vmem>>, vector<16x16x64xf32>
    tpu.vector_store %arg8[%c1_77, %c8_78, %c0_79], %55 {strides = array<i32>} : memref<18x25x64xf32, #tpu.memory_space<vmem>>, vector<16x16x64xf32>,
    %cst_80 = arith.constant 0.000000e+00 : f32
    %57 = vector.broadcast %cst_80 : f32 to vector<16x16x64xf32>
    %c0_81 = arith.constant 0 : index
    %c7_82 = arith.constant 7 : index
    %c0_83 = arith.constant 0 : index
    %58 = vector.load %arg8[%c0_81, %c7_82, %c0_83] : memref<18x25x64xf32, #tpu.memory_space<vmem>>, vector<16x16x64xf32>
    %c0_84 = arith.constant 0 : index
    %c0_85 = arith.constant 0 : index
    %c0_86 = arith.constant 0 : index
    %59 = vector.load %arg4[%c0_84, %c0_85, %c0_86] : memref<9x1x64xf32, #tpu.memory_space<vmem>>, vector<1x1x64xf32>
    %60 = vector.shape_cast %59 : vector<1x1x64xf32> to vector<1x64xf32>
    %61 = vector.shape_cast %60 : vector<1x64xf32> to vector<1x1x64xf32>
    %62 = vector.broadcast %61 : vector<1x1x64xf32> to vector<16x16x64xf32>
    %63 = arith.mulf %58, %62 : vector<16x16x64xf32>
    %64 = arith.addf %57, %63 : vector<16x16x64xf32>
    %c0_87 = arith.constant 0 : index
    %c8_88 = arith.constant 8 : index
    %c0_89 = arith.constant 0 : index
    %65 = vector.load %arg8[%c0_87, %c8_88, %c0_89] : memref<18x25x64xf32, #tpu.memory_space<vmem>>, vector<16x16x64xf32>
    %c1_90 = arith.constant 1 : index
    %c0_91 = arith.constant 0 : index
    %c0_92 = arith.constant 0 : index
    %66 = vector.load %arg4[%c1_90, %c0_91, %c0_92] : memref<9x1x64xf32, #tpu.memory_space<vmem>>, vector<1x1x64xf32>
    %67 = vector.shape_cast %66 : vector<1x1x64xf32> to vector<1x64xf32>
    %68 = vector.shape_cast %67 : vector<1x64xf32> to vector<1x1x64xf32>
    %69 = vector.broadcast %68 : vector<1x1x64xf32> to vector<16x16x64xf32>
    %70 = arith.mulf %65, %69 : vector<16x16x64xf32>
    %71 = arith.addf %64, %70 : vector<16x16x64xf32>
    %c0_93 = arith.constant 0 : index
    %c9_94 = arith.constant 9 : index
    %c0_95 = arith.constant 0 : index
    %72 = vector.load %arg8[%c0_93, %c9_94, %c0_95] : memref<18x25x64xf32, #tpu.memory_space<vmem>>, vector<16x16x64xf32>
    %c2_96 = arith.constant 2 : index
    %c0_97 = arith.constant 0 : index
    %c0_98 = arith.constant 0 : index
    %73 = vector.load %arg4[%c2_96, %c0_97, %c0_98] : memref<9x1x64xf32, #tpu.memory_space<vmem>>, vector<1x1x64xf32>
    %74 = vector.shape_cast %73 : vector<1x1x64xf32> to vector<1x64xf32>
    %75 = vector.shape_cast %74 : vector<1x64xf32> to vector<1x1x64xf32>
    %76 = vector.broadcast %75 : vector<1x1x64xf32> to vector<16x16x64xf32>
    %77 = arith.mulf %72, %76 : vector<16x16x64xf32>
    %78 = arith.addf %71, %77 : vector<16x16x64xf32>
    %c1_99 = arith.constant 1 : index
    %c7_100 = arith.constant 7 : index
    %c0_101 = arith.constant 0 : index
    %79 = vector.load %arg8[%c1_99, %c7_100, %c0_101] : memref<18x25x64xf32, #tpu.memory_space<vmem>>, vector<16x16x64xf32>
    %c3 = arith.constant 3 : index
    %c0_102 = arith.constant 0 : index
    %c0_103 = arith.constant 0 : index
    %80 = vector.load %arg4[%c3, %c0_102, %c0_103] : memref<9x1x64xf32, #tpu.memory_space<vmem>>, vector<1x1x64xf32>
    %81 = vector.shape_cast %80 : vector<1x1x64xf32> to vector<1x64xf32>
    %82 = vector.shape_cast %81 : vector<1x64xf32> to vector<1x1x64xf32>
    %83 = vector.broadcast %82 : vector<1x1x64xf32> to vector<16x16x64xf32>
    %84 = arith.mulf %79, %83 : vector<16x16x64xf32>
    %85 = arith.addf %78, %84 : vector<16x16x64xf32>
    %c1_104 = arith.constant 1 : index
    %c8_105 = arith.constant 8 : index
    %c0_106 = arith.constant 0 : index
    %86 = vector.load %arg8[%c1_104, %c8_105, %c0_106] : memref<18x25x64xf32, #tpu.memory_space<vmem>>, vector<16x16x64xf32>
    %c4_107 = arith.constant 4 : index
    %c0_108 = arith.constant 0 : index
    %c0_109 = arith.constant 0 : index
    %87 = vector.load %arg4[%c4_107, %c0_108, %c0_109] : memref<9x1x64xf32, #tpu.memory_space<vmem>>, vector<1x1x64xf32>
    %88 = vector.shape_cast %87 : vector<1x1x64xf32> to vector<1x64xf32>
    %89 = vector.shape_cast %88 : vector<1x64xf32> to vector<1x1x64xf32>
    %90 = vector.broadcast %89 : vector<1x1x64xf32> to vector<16x16x64xf32>
    %91 = arith.mulf %86, %90 : vector<16x16x64xf32>
    %92 = arith.addf %85, %91 : vector<16x16x64xf32>
    %c1_110 = arith.constant 1 : index
    %c9_111 = arith.constant 9 : index
    %c0_112 = arith.constant 0 : index
    %93 = vector.load %arg8[%c1_110, %c9_111, %c0_112] : memref<18x25x64xf32, #tpu.memory_space<vmem>>, vector<16x16x64xf32>
    %c5 = arith.constant 5 : index
    %c0_113 = arith.constant 0 : index
    %c0_114 = arith.constant 0 : index
    %94 = vector.load %arg4[%c5, %c0_113, %c0_114] : memref<9x1x64xf32, #tpu.memory_space<vmem>>, vector<1x1x64xf32>
    %95 = vector.shape_cast %94 : vector<1x1x64xf32> to vector<1x64xf32>
    %96 = vector.shape_cast %95 : vector<1x64xf32> to vector<1x1x64xf32>
    %97 = vector.broadcast %96 : vector<1x1x64xf32> to vector<16x16x64xf32>
    %98 = arith.mulf %93, %97 : vector<16x16x64xf32>
    %99 = arith.addf %92, %98 : vector<16x16x64xf32>
    %c2_115 = arith.constant 2 : index
    %c7_116 = arith.constant 7 : index
    %c0_117 = arith.constant 0 : index
    %100 = vector.load %arg8[%c2_115, %c7_116, %c0_117] : memref<18x25x64xf32, #tpu.memory_space<vmem>>, vector<16x16x64xf32>
    %c6 = arith.constant 6 : index
    %c0_118 = arith.constant 0 : index
    %c0_119 = arith.constant 0 : index
    %101 = vector.load %arg4[%c6, %c0_118, %c0_119] : memref<9x1x64xf32, #tpu.memory_space<vmem>>, vector<1x1x64xf32>
    %102 = vector.shape_cast %101 : vector<1x1x64xf32> to vector<1x64xf32>
    %103 = vector.shape_cast %102 : vector<1x64xf32> to vector<1x1x64xf32>
    %104 = vector.broadcast %103 : vector<1x1x64xf32> to vector<16x16x64xf32>
    %105 = arith.mulf %100, %104 : vector<16x16x64xf32>
    %106 = arith.addf %99, %105 : vector<16x16x64xf32>
    %c2_120 = arith.constant 2 : index
    %c8_121 = arith.constant 8 : index
    %c0_122 = arith.constant 0 : index
    %107 = vector.load %arg8[%c2_120, %c8_121, %c0_122] : memref<18x25x64xf32, #tpu.memory_space<vmem>>, vector<16x16x64xf32>
    %c7_123 = arith.constant 7 : index
    %c0_124 = arith.constant 0 : index
    %c0_125 = arith.constant 0 : index
    %108 = vector.load %arg4[%c7_123, %c0_124, %c0_125] : memref<9x1x64xf32, #tpu.memory_space<vmem>>, vector<1x1x64xf32>
    %109 = vector.shape_cast %108 : vector<1x1x64xf32> to vector<1x64xf32>
    %110 = vector.shape_cast %109 : vector<1x64xf32> to vector<1x1x64xf32>
    %111 = vector.broadcast %110 : vector<1x1x64xf32> to vector<16x16x64xf32>
    %112 = arith.mulf %107, %111 : vector<16x16x64xf32>
    %113 = arith.addf %106, %112 : vector<16x16x64xf32>
    %c2_126 = arith.constant 2 : index
    %c9_127 = arith.constant 9 : index
    %c0_128 = arith.constant 0 : index
    %114 = vector.load %arg8[%c2_126, %c9_127, %c0_128] : memref<18x25x64xf32, #tpu.memory_space<vmem>>, vector<16x16x64xf32>
    %c8_129 = arith.constant 8 : index
    %c0_130 = arith.constant 0 : index
    %c0_131 = arith.constant 0 : index
    %115 = vector.load %arg4[%c8_129, %c0_130, %c0_131] : memref<9x1x64xf32, #tpu.memory_space<vmem>>, vector<1x1x64xf32>
    %116 = vector.shape_cast %115 : vector<1x1x64xf32> to vector<1x64xf32>
    %117 = vector.shape_cast %116 : vector<1x64xf32> to vector<1x1x64xf32>
    %118 = vector.broadcast %117 : vector<1x1x64xf32> to vector<16x16x64xf32>
    %119 = arith.mulf %114, %118 : vector<16x16x64xf32>
    %120 = arith.addf %113, %119 : vector<16x16x64xf32>
    %cst_132 = arith.constant dense<0.000000e+00> : vector<16x16xf32>
    %121 = vector.multi_reduction <add>, %120, %cst_132 [2] : vector<16x16x64xf32> to vector<16x16xf32>
    %c0_133 = arith.constant 0 : index
    %c0_134 = arith.constant 0 : index
    %122 = vector.load %arg5[%c0_133, %c0_134] : memref<1x1xf32, #tpu.memory_space<vmem>>, vector<1x1xf32>
    %123 = vector.broadcast %122 : vector<1x1xf32> to vector<16x16xf32>
    %124 = arith.addf %121, %123 : vector<16x16xf32>
    %c0_135 = arith.constant 0 : index
    %c0_136 = arith.constant 0 : index
    %c0_137 = arith.constant 0 : index
    %125 = vector.load %arg6[%c0_135, %c0_136, %c0_137] : memref<1x16x16xf32, #tpu.memory_space<vmem>>, vector<1x16x16xf32>
    %126 = vector.shape_cast %125 : vector<1x16x16xf32> to vector<16x16xf32>
    %127 = vector.shape_cast %124 : vector<16x16xf32> to vector<1x16x16xf32>
    tpu.vector_store %arg6[%c0_135, %c0_136, %c0_137], %127 {strides = array<i32>} : memref<1x16x16xf32, #tpu.memory_space<vmem>>, vector<1x16x16xf32>,
    return
  }
  func.func @transform_0(%arg0: i32) -> (i32, i32, i32, i32) {
    %c0_i32 = arith.constant 0 : i32
    %c0_i32_0 = arith.constant 0 : i32
    %c0_i32_1 = arith.constant 0 : i32
    %c0_i32_2 = arith.constant 0 : i32
    return %arg0, %c0_i32, %c0_i32_0, %c0_i32_1 : i32, i32, i32, i32
  }
  func.func @transform_1(%arg0: i32) -> (i32, i32, i32) {
    %c0_i32 = arith.constant 0 : i32
    %c0_i32_0 = arith.constant 0 : i32
    %c0_i32_1 = arith.constant 0 : i32
    %c0_i32_2 = arith.constant 0 : i32
    return %c0_i32, %c0_i32_0, %c0_i32_1 : i32, i32, i32
  }
  func.func @transform_2(%arg0: i32) -> (i32, i32, i32) {
    %c0_i32 = arith.constant 0 : i32
    %c0_i32_0 = arith.constant 0 : i32
    %c0_i32_1 = arith.constant 0 : i32
    %c0_i32_2 = arith.constant 0 : i32
    return %c0_i32, %c0_i32_0, %c0_i32_1 : i32, i32, i32
  }
  func.func @transform_3(%arg0: i32) -> (i32, i32, i32) {
    %c0_i32 = arith.constant 0 : i32
    %c0_i32_0 = arith.constant 0 : i32
    %c0_i32_1 = arith.constant 0 : i32
    %c0_i32_2 = arith.constant 0 : i32
    return %c0_i32, %c0_i32_0, %c0_i32_1 : i32, i32, i32
  }
  func.func @transform_4(%arg0: i32) -> (i32, i32) {
    %c0_i32 = arith.constant 0 : i32
    %c0_i32_0 = arith.constant 0 : i32
    %c0_i32_1 = arith.constant 0 : i32
    return %c0_i32, %c0_i32_0 : i32, i32
  }
  func.func @transform_5(%arg0: i32) -> (i32, i32, i32) {
    %c0_i32 = arith.constant 0 : i32
    %c0_i32_0 = arith.constant 0 : i32
    %c0_i32_1 = arith.constant 0 : i32
    return %arg0, %c0_i32, %c0_i32_0 : i32, i32, i32
  }
}

</mosaic_0001>

<bundles_post_ra>
// kernel: _lambda_.1
= control target key start
LH: loop header
LB: loop body
LE: loop exit
PB: predicated region body
PF: predicated region fallthrough
CT: control target
= control target key end

     0   :  { %s8962_s20 = smov 0   ;;  %s13257_s0 = inlined_call_operand.vmem [shape: f32[4,16,16,8], index: 0, kind: input, shape index: {}]   ;;  %s13258_s1 = inlined_call_operand.vmem [shape: f32[5,576,64], index: 1, kind: input, shape index: {}]   ;;  %s13259_s2 = inlined_call_operand.vmem [shape: f32[5,1,64], index: 2, kind: input, shape index: {}]   ;;  %s13260_s3 = inlined_call_operand.vmem [shape: f32[9,1,64], index: 3, kind: input, shape index: {}]   ;;  %s13261_s4 = inlined_call_operand.<no memory space> [shape: f32[1,1], index: 4, kind: input, shape index: {}]   ;;  %s13262_s5 = inlined_call_operand.vmem [shape: f32[4,16,16], index: 5, kind: output, shape index: {}]  }
   0x1   :  { %v10_v0 = vstv %s13261_s4 }
   0x2   :  { %11 = vst [vmem:[#allocation5] sm:$0x1] %v10_v0 }
   0x3 LB: > { %s8266_s21 = sadd.s32 4294967295, %s8918_s20   ;;  %p8270_p0 = scmp.ge.s32.totalorder %s8918_s20, 1  ;;  %s8918_s20 = sphi %s8962_s20, %s17_s20  }
   0x4   : > { %p189_p1 = scmp.lt.s32.totalorder %s8918_s20, 5 }
   0x6   : > { %p190_p2 = pnand %p8270_p0, %p189_p1 }
   0x8   : > { %193 = sbr.rel (%p190_p2) target bundleno = 1982 (0x7be), region = 40 }
   0xd   : > { %vm227_vm0 = vcmask 523264   ;;  %vm231_vm1 = vcmask 516096   ;;  %p8972_p3 = scmp.lt.s32.totalorder %s8266_s21, 3  ;;  %v13263_v1 = vmov 0.0   ;;  %vm377_vm2 = vcmask 64512   ;;  %s9278_s30 = smov 0  }
   0xe   : > { %313 = vst.msk [vmem:[#allocation2 + $0x28] sm:$0xff] %vm227_vm0, %v13263_v1  ;;  %228 = vst.msk [vmem:[#allocation2] sm:$0xff] %vm227_vm0, %v13263_v1 }
   0xf   : > { %229 = vst.msk [vmem:[#allocation2 + $0x8] sm:$0xff] %vm227_vm0, %v13263_v1  ;;  %230 = vst.msk [vmem:[#allocation2 + $0x10] sm:$0xff] %vm227_vm0, %v13263_v1  ;;  %s13283_s21 = smov (!%p8972_p3, %s8266_s21), 3 }
  0x10   : > { %234 = vst.msk [vmem:[#allocation2 + $0x220] sm:$0xff] %vm227_vm0, %v13263_v1  ;;  %235 = vst.msk [vmem:[#allocation2 + $0x228] sm:$0xff] %vm227_vm0, %v13263_v1  ;;  %s8545_s22 = sshll.u32 %s13283_s21, 8  ;;  %s8546_s23 = sshll.u32 %s13283_s21, 4 }
  0x11   : > { %236 = vst.msk [vmem:[#allocation2 + $0x230] sm:$0xff] %vm227_vm0, %v13263_v1  ;;  %239 = vst.msk [vmem:[#allocation2 + $0x20] sm:$0xff] %vm227_vm0, %v13263_v1  ;;  %s9207_s26 = scalar_lea.vmem %s13257_s0, %s8545_s22  ;;  %s9212_s29 = scalar_lea.vmem %s13262_s5, %s8546_s23 }
  0x12   : > { %240 = vst.msk [vmem:[#allocation2 + $0x40] sm:$0xff] %vm227_vm0, %v13263_v1  ;;  %241 = vst.msk [vmem:[#allocation2 + $0x60] sm:$0xff] %vm227_vm0, %v13263_v1  ;;  %v345_v2 = vld [vmem:[%s9207_s26] sm:$0xff]  ;;  %v346_v3 = vld [vmem:[%s9207_s26 + $0x8] sm:$0xff] }
  0x13   : > { %242 = vst.msk [vmem:[#allocation2 + $0x80] sm:$0xff] %vm227_vm0, %v13263_v1  ;;  %243 = vst.msk [vmem:[#allocation2 + $0xa0] sm:$0xff] %vm227_vm0, %v13263_v1  ;;  %v347_v4 = vld [vmem:[%s9207_s26 + $0x10] sm:$0xff]  ;;  %v348_v5 = vld [vmem:[%s9207_s26 + $0x18] sm:$0xff] }
  0x14   : > { %244 = vst.msk [vmem:[#allocation2 + $0xc0] sm:$0xff] %vm227_vm0, %v13263_v1  ;;  %245 = vst.msk [vmem:[#allocation2 + $0xe0] sm:$0xff] %vm227_vm0, %v13263_v1  ;;  %v349_v6 = vld [vmem:[%s9207_s26 + $0x20] sm:$0xff]  ;;  %v350_v7 = vld [vmem:[%s9207_s26 + $0x28] sm:$0xff] }
  0x15   : > { %246 = vst.msk [vmem:[#allocation2 + $0x100] sm:$0xff] %vm227_vm0, %v13263_v1  ;;  %247 = vst.msk [vmem:[#allocation2 + $0x120] sm:$0xff] %vm227_vm0, %v13263_v1  ;;  %v351_v8 = vld [vmem:[%s9207_s26 + $0x30] sm:$0xff]  ;;  %v352_v9 = vld [vmem:[%s9207_s26 + $0x38] sm:$0xff] }
  0x16   : > { %248 = vst.msk [vmem:[#allocation2 + $0x140] sm:$0xff] %vm227_vm0, %v13263_v1  ;;  %249 = vst.msk [vmem:[#allocation2 + $0x160] sm:$0xff] %vm227_vm0, %v13263_v1  ;;  %v353_v10 = vld [vmem:[%s9207_s26 + $0x40] sm:$0xff]  ;;  %v354_v11 = vld [vmem:[%s9207_s26 + $0x48] sm:$0xff] }
  0x17   : > { %250 = vst.msk [vmem:[#allocation2 + $0x180] sm:$0xff] %vm227_vm0, %v13263_v1  ;;  %251 = vst.msk [vmem:[#allocation2 + $0x1a0] sm:$0xff] %vm227_vm0, %v13263_v1  ;;  %v355_v12 = vld [vmem:[%s9207_s26 + $0x50] sm:$0xff]  ;;  %v356_v13 = vld [vmem:[%s9207_s26 + $0x58] sm:$0xff] }
  0x18   : > { %252 = vst.msk [vmem:[#allocation2 + $0x1c0] sm:$0xff] %vm227_vm0, %v13263_v1  ;;  %253 = vst.msk [vmem:[#allocation2 + $0x1e0] sm:$0xff] %vm227_vm0, %v13263_v1  ;;  %v357_v14 = vld [vmem:[%s9207_s26 + $0x60] sm:$0xff]  ;;  %v358_v15 = vld [vmem:[%s9207_s26 + $0x68] sm:$0xff] }
  0x19   : > { %254 = vst.msk [vmem:[#allocation2 + $0x200] sm:$0xff] %vm227_vm0, %v13263_v1  ;;  %271 = vst.msk [vmem:[#allocation3] sm:$0xff] %vm227_vm0, %v13263_v1  ;;  %v359_v16 = vld [vmem:[%s9207_s26 + $0x70] sm:$0xff]  ;;  %v360_v17 = vld [vmem:[%s9207_s26 + $0x78] sm:$0xff] }
  0x1a   : > { %272 = vst.msk [vmem:[#allocation3 + $0x8] sm:$0xff] %vm227_vm0, %v13263_v1  ;;  %273 = vst.msk [vmem:[#allocation3 + $0x10] sm:$0xff] %vm227_vm0, %v13263_v1  ;;  %v361_v18 = vld [vmem:[%s9207_s26 + $0x80] sm:$0xff]  ;;  %v362_v19 = vld [vmem:[%s9207_s26 + $0x88] sm:$0xff] }
  0x1b   : > { %276 = vst.msk [vmem:[#allocation3 + $0x220] sm:$0xff] %vm227_vm0, %v13263_v1  ;;  %277 = vst.msk [vmem:[#allocation3 + $0x228] sm:$0xff] %vm227_vm0, %v13263_v1  ;;  %v363_v20 = vld [vmem:[%s9207_s26 + $0x90] sm:$0xff]  ;;  %v364_v21 = vld [vmem:[%s9207_s26 + $0x98] sm:$0xff] }
  0x1c   : > { %278 = vst.msk [vmem:[#allocation3 + $0x230] sm:$0xff] %vm227_vm0, %v13263_v1  ;;  %281 = vst.msk [vmem:[#allocation3 + $0x20] sm:$0xff] %vm227_vm0, %v13263_v1  ;;  %v365_v22 = vld [vmem:[%s9207_s26 + $0xa0] sm:$0xff]  ;;  %v366_v23 = vld [vmem:[%s9207_s26 + $0xa8] sm:$0xff] }
  0x1d   : > { %282 = vst.msk [vmem:[#allocation3 + $0x40] sm:$0xff] %vm227_vm0, %v13263_v1  ;;  %283 = vst.msk [vmem:[#allocation3 + $0x60] sm:$0xff] %vm227_vm0, %v13263_v1  ;;  %v367_v24 = vld [vmem:[%s9207_s26 + $0xb0] sm:$0xff]  ;;  %v368_v25 = vld [vmem:[%s9207_s26 + $0xb8] sm:$0xff] }
  0x1e   : > { %284 = vst.msk [vmem:[#allocation3 + $0x80] sm:$0xff] %vm227_vm0, %v13263_v1  ;;  %285 = vst.msk [vmem:[#allocation3 + $0xa0] sm:$0xff] %vm227_vm0, %v13263_v1  ;;  %v369_v26 = vld [vmem:[%s9207_s26 + $0xc0] sm:$0xff]  ;;  %v370_v27 = vld [vmem:[%s9207_s26 + $0xc8] sm:$0xff] }
  0x1f   : > { %286 = vst.msk [vmem:[#allocation3 + $0xc0] sm:$0xff] %vm227_vm0, %v13263_v1  ;;  %287 = vst.msk [vmem:[#allocation3 + $0xe0] sm:$0xff] %vm227_vm0, %v13263_v1  ;;  %v371_v28 = vld [vmem:[%s9207_s26 + $0xd0] sm:$0xff]  ;;  %v372_v29 = vld [vmem:[%s9207_s26 + $0xd8] sm:$0xff] }
  0x20   : > { %288 = vst.msk [vmem:[#allocation3 + $0x100] sm:$0xff] %vm227_vm0, %v13263_v1  ;;  %289 = vst.msk [vmem:[#allocation3 + $0x120] sm:$0xff] %vm227_vm0, %v13263_v1  ;;  %v373_v30 = vld [vmem:[%s9207_s26 + $0xe0] sm:$0xff]  ;;  %v374_v31 = vld [vmem:[%s9207_s26 + $0xe8] sm:$0xff] }
  0x21   : > { %290 = vst.msk [vmem:[#allocation3 + $0x140] sm:$0xff] %vm227_vm0, %v13263_v1  ;;  %291 = vst.msk [vmem:[#allocation3 + $0x160] sm:$0xff] %vm227_vm0, %v13263_v1  ;;  %v375_v32 = vld [vmem:[%s9207_s26 + $0xf0] sm:$0xff]  ;;  %v376_v33 = vld [vmem:[%s9207_s26 + $0xf8] sm:$0xff] }
  0x22   : > { %292 = vst.msk [vmem:[#allocation3 + $0x180] sm:$0xff] %vm227_vm0, %v13263_v1  ;;  %293 = vst.msk [vmem:[#allocation3 + $0x1a0] sm:$0xff] %vm227_vm0, %v13263_v1 }
  0x23   : > { %294 = vst.msk [vmem:[#allocation3 + $0x1c0] sm:$0xff] %vm227_vm0, %v13263_v1  ;;  %295 = vst.msk [vmem:[#allocation3 + $0x1e0] sm:$0xff] %vm227_vm0, %v13263_v1 }
  0x24   : > { %296 = vst.msk [vmem:[#allocation3 + $0x200] sm:$0xff] %vm227_vm0, %v13263_v1  ;;  %314 = vst.msk [vmem:[#allocation2 + $0x30] sm:$0xff] %vm227_vm0, %v13263_v1 }
  0x25   : > { %315 = vst.msk [vmem:[#allocation2 + $0x48] sm:$0xff] %vm227_vm0, %v13263_v1  ;;  %316 = vst.msk [vmem:[#allocation2 + $0x50] sm:$0xff] %vm227_vm0, %v13263_v1 }
  0x26   : > { %317 = vst.msk [vmem:[#allocation2 + $0x68] sm:$0xff] %vm227_vm0, %v13263_v1  ;;  %318 = vst.msk [vmem:[#allocation2 + $0x70] sm:$0xff] %vm227_vm0, %v13263_v1 }
  0x27   : > { %319 = vst.msk [vmem:[#allocation2 + $0x88] sm:$0xff] %vm227_vm0, %v13263_v1  ;;  %320 = vst.msk [vmem:[#allocation2 + $0x90] sm:$0xff] %vm227_vm0, %v13263_v1 }
  0x28   : > { %321 = vst.msk [vmem:[#allocation2 + $0xa8] sm:$0xff] %vm227_vm0, %v13263_v1  ;;  %322 = vst.msk [vmem:[#allocation2 + $0xb0] sm:$0xff] %vm227_vm0, %v13263_v1 }
  0x29   : > { %323 = vst.msk [vmem:[#allocation2 + $0xc8] sm:$0xff] %vm227_vm0, %v13263_v1  ;;  %324 = vst.msk [vmem:[#allocation2 + $0xd0] sm:$0xff] %vm227_vm0, %v13263_v1 }
  0x2a   : > { %325 = vst.msk [vmem:[#allocation2 + $0xe8] sm:$0xff] %vm227_vm0, %v13263_v1  ;;  %326 = vst.msk [vmem:[#allocation2 + $0xf0] sm:$0xff] %vm227_vm0, %v13263_v1 }
  0x2b   : > { %327 = vst.msk [vmem:[#allocation2 + $0x108] sm:$0xff] %vm227_vm0, %v13263_v1  ;;  %328 = vst.msk [vmem:[#allocation2 + $0x110] sm:$0xff] %vm227_vm0, %v13263_v1 }
  0x2c   : > { %329 = vst.msk [vmem:[#allocation2 + $0x128] sm:$0xff] %vm227_vm0, %v13263_v1  ;;  %330 = vst.msk [vmem:[#allocation2 + $0x130] sm:$0xff] %vm227_vm0, %v13263_v1 }
  0x2d   : > { %331 = vst.msk [vmem:[#allocation2 + $0x148] sm:$0xff] %vm227_vm0, %v13263_v1  ;;  %332 = vst.msk [vmem:[#allocation2 + $0x150] sm:$0xff] %vm227_vm0, %v13263_v1 }
  0x2e   : > { %333 = vst.msk [vmem:[#allocation2 + $0x168] sm:$0xff] %vm227_vm0, %v13263_v1  ;;  %334 = vst.msk [vmem:[#allocation2 + $0x170] sm:$0xff] %vm227_vm0, %v13263_v1 }
  0x2f   : > { %335 = vst.msk [vmem:[#allocation2 + $0x188] sm:$0xff] %vm227_vm0, %v13263_v1  ;;  %336 = vst.msk [vmem:[#allocation2 + $0x190] sm:$0xff] %vm227_vm0, %v13263_v1 }
  0x30   : > { %337 = vst.msk [vmem:[#allocation2 + $0x1a8] sm:$0xff] %vm227_vm0, %v13263_v1  ;;  %338 = vst.msk [vmem:[#allocation2 + $0x1b0] sm:$0xff] %vm227_vm0, %v13263_v1 }
  0x31   : > { %339 = vst.msk [vmem:[#allocation2 + $0x1c8] sm:$0xff] %vm227_vm0, %v13263_v1  ;;  %340 = vst.msk [vmem:[#allocation2 + $0x1d0] sm:$0xff] %vm227_vm0, %v13263_v1 }
  0x32   : > { %341 = vst.msk [vmem:[#allocation2 + $0x1e8] sm:$0xff] %vm227_vm0, %v13263_v1  ;;  %342 = vst.msk [vmem:[#allocation2 + $0x1f0] sm:$0xff] %vm227_vm0, %v13263_v1 }
  0x33   : > { %343 = vst.msk [vmem:[#allocation2 + $0x208] sm:$0xff] %vm227_vm0, %v13263_v1  ;;  %344 = vst.msk [vmem:[#allocation2 + $0x210] sm:$0xff] %vm227_vm0, %v13263_v1 }
  0x34   : > { %232 = vst.msk [vmem:[#allocation2 + $0x18] sm:$0x1] %vm231_vm1, %v13263_v1  ;;  %237 = vst.msk [vmem:[#allocation2 + $0x238] sm:$0x1] %vm231_vm1, %v13263_v1 }
  0x35   : > { %255 = vst.msk [vmem:[#allocation2 + $0x38] sm:$0x1] %vm231_vm1, %v13263_v1  ;;  %256 = vst.msk [vmem:[#allocation2 + $0x58] sm:$0x1] %vm231_vm1, %v13263_v1 }
  0x36   : > { %257 = vst.msk [vmem:[#allocation2 + $0x78] sm:$0x1] %vm231_vm1, %v13263_v1  ;;  %258 = vst.msk [vmem:[#allocation2 + $0x98] sm:$0x1] %vm231_vm1, %v13263_v1 }
  0x37   : > { %259 = vst.msk [vmem:[#allocation2 + $0xb8] sm:$0x1] %vm231_vm1, %v13263_v1  ;;  %260 = vst.msk [vmem:[#allocation2 + $0xd8] sm:$0x1] %vm231_vm1, %v13263_v1 }
  0x38   : > { %261 = vst.msk [vmem:[#allocation2 + $0xf8] sm:$0x1] %vm231_vm1, %v13263_v1  ;;  %262 = vst.msk [vmem:[#allocation2 + $0x118] sm:$0x1] %vm231_vm1, %v13263_v1 }
  0x39   : > { %263 = vst.msk [vmem:[#allocation2 + $0x138] sm:$0x1] %vm231_vm1, %v13263_v1  ;;  %264 = vst.msk [vmem:[#allocation2 + $0x158] sm:$0x1] %vm231_vm1, %v13263_v1 }
  0x3a   : > { %265 = vst.msk [vmem:[#allocation2 + $0x178] sm:$0x1] %vm231_vm1, %v13263_v1  ;;  %266 = vst.msk [vmem:[#allocation2 + $0x198] sm:$0x1] %vm231_vm1, %v13263_v1 }
  0x3b   : > { %267 = vst.msk [vmem:[#allocation2 + $0x1b8] sm:$0x1] %vm231_vm1, %v13263_v1  ;;  %268 = vst.msk [vmem:[#allocation2 + $0x1d8] sm:$0x1] %vm231_vm1, %v13263_v1 }
  0x3c   : > { %269 = vst.msk [vmem:[#allocation2 + $0x1f8] sm:$0x1] %vm231_vm1, %v13263_v1  ;;  %270 = vst.msk [vmem:[#allocation2 + $0x218] sm:$0x1] %vm231_vm1, %v13263_v1 }
  0x3d   : > { %274 = vst.msk [vmem:[#allocation3 + $0x18] sm:$0x1] %vm231_vm1, %v13263_v1  ;;  %279 = vst.msk [vmem:[#allocation3 + $0x238] sm:$0x1] %vm231_vm1, %v13263_v1 }
  0x3e   : > { %297 = vst.msk [vmem:[#allocation3 + $0x38] sm:$0x1] %vm231_vm1, %v13263_v1  ;;  %298 = vst.msk [vmem:[#allocation3 + $0x58] sm:$0x1] %vm231_vm1, %v13263_v1 }
  0x3f   : > { %299 = vst.msk [vmem:[#allocation3 + $0x78] sm:$0x1] %vm231_vm1, %v13263_v1  ;;  %300 = vst.msk [vmem:[#allocation3 + $0x98] sm:$0x1] %vm231_vm1, %v13263_v1 }
  0x40   : > { %301 = vst.msk [vmem:[#allocation3 + $0xb8] sm:$0x1] %vm231_vm1, %v13263_v1  ;;  %302 = vst.msk [vmem:[#allocation3 + $0xd8] sm:$0x1] %vm231_vm1, %v13263_v1 }
  0x41   : > { %303 = vst.msk [vmem:[#allocation3 + $0xf8] sm:$0x1] %vm231_vm1, %v13263_v1  ;;  %304 = vst.msk [vmem:[#allocation3 + $0x118] sm:$0x1] %vm231_vm1, %v13263_v1 }
  0x42   : > { %305 = vst.msk [vmem:[#allocation3 + $0x138] sm:$0x1] %vm231_vm1, %v13263_v1  ;;  %306 = vst.msk [vmem:[#allocation3 + $0x158] sm:$0x1] %vm231_vm1, %v13263_v1 }
  0x43   : > { %307 = vst.msk [vmem:[#allocation3 + $0x178] sm:$0x1] %vm231_vm1, %v13263_v1  ;;  %308 = vst.msk [vmem:[#allocation3 + $0x198] sm:$0x1] %vm231_vm1, %v13263_v1 }
  0x44   : > { %309 = vst.msk [vmem:[#allocation3 + $0x1b8] sm:$0x1] %vm231_vm1, %v13263_v1  ;;  %310 = vst.msk [vmem:[#allocation3 + $0x1d8] sm:$0x1] %vm231_vm1, %v13263_v1 }
  0x45   : > { %311 = vst.msk [vmem:[#allocation3 + $0x1f8] sm:$0x1] %vm231_vm1, %v13263_v1  ;;  %312 = vst.msk [vmem:[#allocation3 + $0x218] sm:$0x1] %vm231_vm1, %v13263_v1 }
  0x46   : > { %378 = vst.msk [vmem:[#allocation2 + $0x28] sm:$0xff] %vm377_vm2, %v345_v2  ;;  %379 = vst.msk [vmem:[#allocation2 + $0x30] sm:$0xff] %vm377_vm2, %v346_v3 }
  0x47   : > { %380 = vst.msk [vmem:[#allocation2 + $0x48] sm:$0xff] %vm377_vm2, %v347_v4  ;;  %381 = vst.msk [vmem:[#allocation2 + $0x50] sm:$0xff] %vm377_vm2, %v348_v5 }
  0x48   : > { %382 = vst.msk [vmem:[#allocation2 + $0x68] sm:$0xff] %vm377_vm2, %v349_v6  ;;  %383 = vst.msk [vmem:[#allocation2 + $0x70] sm:$0xff] %vm377_vm2, %v350_v7 }
  0x49   : > { %384 = vst.msk [vmem:[#allocation2 + $0x88] sm:$0xff] %vm377_vm2, %v351_v8  ;;  %385 = vst.msk [vmem:[#allocation2 + $0x90] sm:$0xff] %vm377_vm2, %v352_v9 }
  0x4a   : > { %386 = vst.msk [vmem:[#allocation2 + $0xa8] sm:$0xff] %vm377_vm2, %v353_v10  ;;  %387 = vst.msk [vmem:[#allocation2 + $0xb0] sm:$0xff] %vm377_vm2, %v354_v11 }
  0x4b   : > { %388 = vst.msk [vmem:[#allocation2 + $0xc8] sm:$0xff] %vm377_vm2, %v355_v12  ;;  %389 = vst.msk [vmem:[#allocation2 + $0xd0] sm:$0xff] %vm377_vm2, %v356_v13 }
  0x4c   : > { %390 = vst.msk [vmem:[#allocation2 + $0xe8] sm:$0xff] %vm377_vm2, %v357_v14  ;;  %391 = vst.msk [vmem:[#allocation2 + $0xf0] sm:$0xff] %vm377_vm2, %v358_v15 }
  0x4d   : > { %392 = vst.msk [vmem:[#allocation2 + $0x108] sm:$0xff] %vm377_vm2, %v359_v16  ;;  %393 = vst.msk [vmem:[#allocation2 + $0x110] sm:$0xff] %vm377_vm2, %v360_v17 }
  0x4e   : > { %394 = vst.msk [vmem:[#allocation2 + $0x128] sm:$0xff] %vm377_vm2, %v361_v18  ;;  %395 = vst.msk [vmem:[#allocation2 + $0x130] sm:$0xff] %vm377_vm2, %v362_v19 }
  0x4f   : > { %396 = vst.msk [vmem:[#allocation2 + $0x148] sm:$0xff] %vm377_vm2, %v363_v20  ;;  %397 = vst.msk [vmem:[#allocation2 + $0x150] sm:$0xff] %vm377_vm2, %v364_v21 }
  0x50   : > { %398 = vst.msk [vmem:[#allocation2 + $0x168] sm:$0xff] %vm377_vm2, %v365_v22  ;;  %399 = vst.msk [vmem:[#allocation2 + $0x170] sm:$0xff] %vm377_vm2, %v366_v23 }
  0x51   : > { %400 = vst.msk [vmem:[#allocation2 + $0x188] sm:$0xff] %vm377_vm2, %v367_v24  ;;  %401 = vst.msk [vmem:[#allocation2 + $0x190] sm:$0xff] %vm377_vm2, %v368_v25 }
  0x52   : > { %402 = vst.msk [vmem:[#allocation2 + $0x1a8] sm:$0xff] %vm377_vm2, %v369_v26  ;;  %403 = vst.msk [vmem:[#allocation2 + $0x1b0] sm:$0xff] %vm377_vm2, %v370_v27 }
  0x53   : > { %404 = vst.msk [vmem:[#allocation2 + $0x1c8] sm:$0xff] %vm377_vm2, %v371_v28  ;;  %405 = vst.msk [vmem:[#allocation2 + $0x1d0] sm:$0xff] %vm377_vm2, %v372_v29 }
  0x54   : > { %406 = vst.msk [vmem:[#allocation2 + $0x1e8] sm:$0xff] %vm377_vm2, %v373_v30  ;;  %407 = vst.msk [vmem:[#allocation2 + $0x1f0] sm:$0xff] %vm377_vm2, %v374_v31 }
  0x55   : > { %408 = vst.msk [vmem:[#allocation2 + $0x208] sm:$0xff] %vm377_vm2, %v375_v32  ;;  %409 = vst.msk [vmem:[#allocation2 + $0x210] sm:$0xff] %vm377_vm2, %v376_v33 }
  0x56 LB: >> { %v9283_v34 = vld [vmem:[#allocation2 + $0x27] sm:$0xff]  ;;  %v9285_v35 = vld [vmem:[#allocation2 + $0x2f] sm:$0xff]  ;;  %s8925_s6 = smov 64   ;;  %v13265_v38 = vmov 0.0   ;;  %s8276_s7 = smul.u32 1152, %s8922_s30  ;;  %s8922_s30 = sphi %s9278_s30, %s415_s30  }
  0x57   : >> { %845 = vrot.lane.b32.xlu0 %v9283_v34, %s8925_s6  ;;  %847 = vrot.lane.b32.xlu1 %v9285_v35, %s8925_s6  ;;  %v525_v36 = vld [vmem:[#allocation2 + $0x8] sm:$0xff]  ;;  %v526_v37 = vld [vmem:[#allocation2 + $0x10] sm:$0xff]  ;;  %s8275_s11 = sshll.u32 %s8922_s30, 1  ;;  %s415_s30 = sadd.s32 1, %s8922_s30  }
  0x58   : >> { %1844 = vmatprep.subr.mxu0 %v13265_v38  ;;  %2069 = vmatprep.subr.mxu1 %v13265_v38  ;;  %v9296_v39 = vld [vmem:[#allocation2 + $0x47] sm:$0xff]  ;;  %s9301_s10 = scalar_lea.vmem %s13258_s1, %s8276_s7  ;;  %v9306_v41 = vld [vmem:[#allocation2 + $0x4f] sm:$0xff]  ;;  %s10101_s14 = scalar_lea.vmem %s13259_s2, %s8275_s11 }
  0x59   : >> { %v527_v40 = vld [vmem:[#allocation2 + $0x28] sm:$0xff]  ;;  %v528_v42 = vld [vmem:[#allocation2 + $0x30] sm:$0xff]  ;;  %v434_v43 = vld [vmem:[%s9301_s10 + $0x78] sm:$0xff]  ;;  %p412_p4 = scmp.ge.s32.totalorder %s415_s30, 2  }
  0x5a   : >> { %1845 = vmatpush1.msra.mxu0 %v434_v43  ;;  %v433_v44 = vld [vmem:[%s9301_s10 + $0x70] sm:$0xff]  ;;  %v9313_v45 = vld [vmem:[#allocation2 + $0x67] sm:$0xff]  ;;  %v430_v51 = vld [vmem:[%s9301_s10 + $0x58] sm:$0xff]  ;;  %s8927_s15 = smov (%p412_p4), 64   ;;  %vm8032_vm3 = vcmask (%p412_p4), 130112   ;;  %vm8169_vm4 = vcmask (%p412_p4), 1041409  }
  0x5b   : >> { %589 = vrot.lane.b32.xlu0 %v525_v36, %s8925_s6  ;;  %591 = vrot.lane.b32.xlu1 %v526_v37, %s8925_s6  ;;  %v9315_v46 = vld [vmem:[#allocation2 + $0x48] sm:$0xff]  ;;  %v431_v48 = vld [vmem:[%s9301_s10 + $0x60] sm:$0xff]  ;;  %v9327_v50 = vld [vmem:[#allocation2 + $0x50] sm:$0xff]  ;;  %vm8171_vm5 = vcmask (%p412_p4), 1042434   ;;  %vm8173_vm6 = vcmask (%p412_p4), 1043459   ;;  %vm8175_vm7 = vcmask (%p412_p4), 1044484  }
  0x5c   : >> { %1846 = vmatprep.subr.mxu0 %v13265_v38  ;;  %v432_v47 = vld [vmem:[%s9301_s10 + $0x68] sm:$0xff]  ;;  %v429_v54 = vld [vmem:[%s9301_s10 + $0x50] sm:$0xff]  ;;  %v427_v58 = vld [vmem:[%s9301_s10 + $0x40] sm:$0xff]  ;;  %vm8177_vm8 = vcmask (%p412_p4), 1045509   ;;  %vm8179_vm9 = vcmask (%p412_p4), 1046534   ;;  %vm8181_vm10 = vcmask (%p412_p4), 1047559  }
  0x5d   : >> { %1847 = vmatpush1.msra.mxu0 %v433_v44  ;;  %v9325_v49 = vld [vmem:[#allocation2 + $0x6f] sm:$0xff]  ;;  %v9335_v52 = vld [vmem:[#allocation2 + $0x87] sm:$0xff]  ;;  %v426_v61 = vld [vmem:[%s9301_s10 + $0x38] sm:$0xff]  ;;  %vm8192_vm11 = vcmask (%p412_p4), 130048  }
  0x5e   : >> { %1848 = vmatprep.subr.mxu0 %v13265_v38  ;;  %v9337_v53 = vld [vmem:[#allocation2 + $0x68] sm:$0xff]  ;;  %v9349_v57 = vld [vmem:[#allocation2 + $0x70] sm:$0xff]  ;;  %v423_v5 = vld [vmem:[%s9301_s10 + $0x20] sm:$0xff] }
  0x5f   : >> { %849 = vrot.lane.b32.xlu0 %v9296_v39, %s8925_s6  ;;  %593 = vrot.lane.b32.xlu1 %v527_v40, %s8925_s6  ;;  %v428_v55 = vld [vmem:[%s9301_s10 + $0x48] sm:$0xff]  ;;  %v425_v62 = vld [vmem:[%s9301_s10 + $0x30] sm:$0xff] }
  0x60   : >> { %1849 = vmatpush1.msra.mxu0 %v432_v47  ;;  %v9347_v56 = vld [vmem:[#allocation2 + $0x8f] sm:$0xff]  ;;  %v9357_v59 = vld [vmem:[#allocation2 + $0xa7] sm:$0xff]  ;;  %v422_v6 = vld [vmem:[%s9301_s10 + $0x18] sm:$0xff] }
  0x61   : >> { %1850 = vmatprep.subr.mxu0 %v13265_v38  ;;  %v9359_v60 = vld [vmem:[#allocation2 + $0x88] sm:$0xff]  ;;  %v9371_v0 = vld [vmem:[#allocation2 + $0x90] sm:$0xff]  ;;  %v419_v13 = vld [vmem:[%s9301_s10] sm:$0xff] }
  0x62   : >> { %1851 = vmatpush1.msra.mxu0 %v431_v48  ;;  %v9369_v63 = vld [vmem:[#allocation2 + $0xaf] sm:$0xff]  ;;  %v9379_v3 = vld [vmem:[#allocation2 + $0xc7] sm:$0xff]  ;;  %v450_v16 = vld [vmem:[%s9301_s10 + $0xf8] sm:$0xff] }
  0x63   : >> { %851 = vrot.lane.b32.xlu0 %v9306_v41, %s8925_s6  ;;  %595 = vrot.lane.b32.xlu1 %v528_v42, %s8925_s6  ;;  %v424_v2 = vld [vmem:[%s9301_s10 + $0x28] sm:$0xff]  ;;  %v9393_v8 = vld [vmem:[#allocation2 + $0xb0] sm:$0xff]  ;;  %v466_v20 = vld [vmem:[%s9301_s10 + $0x178] sm:$0xff] }
  0x64   : >> { %1852 = vmatprep.subr.mxu0 %v13265_v38  ;;  %v9381_v4 = vld [vmem:[#allocation2 + $0xa8] sm:$0xff]  ;;  %v421_v9 = vld [vmem:[%s9301_s10 + $0x10] sm:$0xff]  ;;  %2070 = vmatpush1.msra.mxu1 %v466_v20  ;;  %v447_v26 = vld [vmem:[%s9301_s10 + $0xe0] sm:$0xff] }
  0x65   : >> { %1853 = vmatpush1.msra.mxu0 %v430_v51  ;;  %v9391_v7 = vld [vmem:[#allocation2 + $0xcf] sm:$0xff]  ;;  %v9401_v10 = vld [vmem:[#allocation2 + $0xe7] sm:$0xff]  ;;  %2071 = vmatprep.subr.mxu1 %v13265_v38  ;;  %v446_v30 = vld [vmem:[%s9301_s10 + $0xd8] sm:$0xff] }
  0x66   : >> { %1854 = vmatprep.subr.mxu0 %v13265_v38  ;;  %v9403_v11 = vld [vmem:[#allocation2 + $0xc8] sm:$0xff]  ;;  %v9415_v15 = vld [vmem:[#allocation2 + $0xd0] sm:$0xff]  ;;  %v463_v27 = vld [vmem:[%s9301_s10 + $0x160] sm:$0xff] }
  0x67   : >> { %853 = vrot.lane.b32.xlu0 %v9313_v45, %s8925_s6  ;;  %597 = vrot.lane.b32.xlu1 %v9315_v46, %s8925_s6  ;;  %v420_v12 = vld [vmem:[%s9301_s10 + $0x8] sm:$0xff]  ;;  %v449_v19 = vld [vmem:[%s9301_s10 + $0xf0] sm:$0xff] }
  0x68   : >> { %1855 = vmatpush1.msra.mxu0 %v429_v54  ;;  %v9413_v14 = vld [vmem:[#allocation2 + $0xef] sm:$0xff]  ;;  %v9423_v17 = vld [vmem:[#allocation2 + $0x107] sm:$0xff]  ;;  %v462_v31 = vld [vmem:[%s9301_s10 + $0x158] sm:$0xff] }
  0x69   : >> { %1856 = vmatprep.subr.mxu0 %v13265_v38  ;;  %v9425_v18 = vld [vmem:[#allocation2 + $0xe8] sm:$0xff]  ;;  %v465_v22 = vld [vmem:[%s9301_s10 + $0x170] sm:$0xff]  ;;  %v443_v47 = vld [vmem:[%s9301_s10 + $0xc0] sm:$0xff] }
  0x6a   : >> { %1857 = vmatpush1.msra.mxu0 %v428_v55  ;;  %v448_v21 = vld [vmem:[%s9301_s10 + $0xe8] sm:$0xff]  ;;  %v9439_v24 = vld [vmem:[#allocation2 + $0xf0] sm:$0xff]  ;;  %2072 = vmatpush1.msra.mxu1 %v465_v22  ;;  %v459_v48 = vld [vmem:[%s9301_s10 + $0x140] sm:$0xff] }
  0x6b   : >> { %855 = vrot.lane.b32.xlu0 %v9325_v49, %s8925_s6  ;;  %599 = vrot.lane.b32.xlu1 %v9327_v50, %s8925_s6  ;;  %v9437_v23 = vld [vmem:[#allocation2 + $0x10f] sm:$0xff]  ;;  %v9451_v28 = vld [vmem:[#allocation2 + $0x127] sm:$0xff]  ;;  %v442_v51 = vld [vmem:[%s9301_s10 + $0xb8] sm:$0xff] }
  0x6c   : >> { %1858 = vmatprep.subr.mxu0 %v13265_v38  ;;  %v464_v25 = vld [vmem:[%s9301_s10 + $0x168] sm:$0xff]  ;;  %2073 = vmatprep.subr.mxu1 %v13265_v38  ;;  %v445_v32 = vld [vmem:[%s9301_s10 + $0xd0] sm:$0xff]  ;;  %v438_v20 = vld [vmem:[%s9301_s10 + $0x98] sm:$0xff] }
  0x6d   : >> { %1859 = vmatpush1.msra.mxu0 %v427_v58  ;;  %v9453_v29 = vld [vmem:[#allocation2 + $0x108] sm:$0xff]  ;;  %2074 = vmatpush1.msra.mxu1 %v464_v25  ;;  %v9467_v36 = vld [vmem:[#allocation2 + $0x110] sm:$0xff]  ;;  %v458_v58 = vld [vmem:[%s9301_s10 + $0x138] sm:$0xff] }
  0x6e   : >> { %1860 = vmatprep.subr.mxu0 %v13265_v38  ;;  %2075 = vmatprep.subr.mxu1 %v13265_v38  ;;  %v9465_v33 = vld [vmem:[#allocation2 + $0x12f] sm:$0xff]  ;;  %v9479_v43 = vld [vmem:[#allocation2 + $0x147] sm:$0xff] }
  0x6f   : >> { %857 = vrot.lane.b32.xlu0 %v9335_v52, %s8925_s6  ;;  %601 = vrot.lane.b32.xlu1 %v9337_v53, %s8925_s6  ;;  %v461_v37 = vld [vmem:[%s9301_s10 + $0x150] sm:$0xff]  ;;  %v444_v40 = vld [vmem:[%s9301_s10 + $0xc8] sm:$0xff] }
  0x70   : >> { %1861 = vmatpush1.msra.mxu0 %v426_v61  ;;  %2076 = vmatpush1.msra.mxu1 %v463_v27  ;;  %v460_v42 = vld [vmem:[%s9301_s10 + $0x148] sm:$0xff]  ;;  %v9495_v55 = vld [vmem:[#allocation2 + $0x130] sm:$0xff] }
  0x71   : >> { %1862 = vmatprep.subr.mxu0 %v13265_v38  ;;  %2077 = vmatprep.subr.mxu1 %v13265_v38  ;;  %v9481_v44 = vld [vmem:[#allocation2 + $0x128] sm:$0xff]  ;;  %v441_v61 = vld [vmem:[%s9301_s10 + $0xb0] sm:$0xff] }
  0x72   : >> { %1863 = vmatpush1.msra.mxu0 %v425_v62  ;;  %2078 = vmatpush1.msra.mxu1 %v462_v31  ;;  %v9493_v54 = vld [vmem:[#allocation2 + $0x14f] sm:$0xff]  ;;  %v803_v22 = vld [vmem:[#allocation2 + $0x187] sm:$0xff] }
  0x73   : >> { %859 = vrot.lane.b32.xlu0 %v9347_v56, %s8925_s6  ;;  %603 = vrot.lane.b32.xlu1 %v9349_v57, %s8925_s6  ;;  %v457_v62 = vld [vmem:[%s9301_s10 + $0x130] sm:$0xff]  ;;  %v9535_v25 = vld [vmem:[#allocation2 + $0x168] sm:$0xff] }
  0x74   : >> { %1864 = vmatprep.subr.mxu0 %v13265_v38  ;;  %2079 = vmatprep.subr.mxu1 %v13265_v38  ;;  %v453_v27 = vld [vmem:[%s9301_s10 + $0x110] sm:$0xff] }
  0x75   : >> { %1865 = vmatpush1.msra.mxu0 %v424_v2  ;;  %2080 = vmatpush1.msra.mxu1 %v461_v37  ;;  %v9507_v2 = vld [vmem:[#allocation2 + $0x167] sm:$0xff]  ;;  %v804_v31 = vld [vmem:[#allocation2 + $0x18f] sm:$0xff] }
  0x76   : >> { %1866 = vmatprep.subr.mxu0 %v13265_v38  ;;  %2081 = vmatprep.subr.mxu1 %v13265_v38  ;;  %v452_v37 = vld [vmem:[%s9301_s10 + $0x108] sm:$0xff] }
  0x77   : >> { %861 = vrot.lane.b32.xlu0 %v9357_v59, %s8925_s6  ;;  %605 = vrot.lane.b32.xlu1 %v9359_v60, %s8925_s6  ;;  %v812_v1 = vld [vmem:[#allocation2 + $0x20f] sm:$0xff] }
  0x78   : >> { %1867 = vmatpush1.msra.mxu0 %v423_v5  ;;  %2082 = vmatpush1.msra.mxu1 %v460_v42  ;;  %v9509_v5 = vld [vmem:[#allocation2 + $0x148] sm:$0xff]  ;;  %v9557_v42 = vld [vmem:[%s9301_s10 + $0x238] sm:$0xff] }
  0x79   : >> { %1868 = vmatprep.subr.mxu0 %v13265_v38  ;;  %2083 = vmatprep.subr.mxu1 %v13265_v38 }
  0x7a   : >> { %1869 = vmatpush1.msra.mxu0 %v422_v6  ;;  %2084 = vmatpush1.msra.mxu1 %v459_v48  ;;  %v440_v6 = vld [vmem:[%s9301_s10 + $0xa8] sm:$0xff] }
  0x7b   : >> { %863 = vrot.lane.b32.xlu0 %v9369_v63, %s8925_s6  ;;  %607 = vrot.lane.b32.xlu1 %v9371_v0, %s8925_s6  ;;  %v805_v48 = vld [vmem:[#allocation2 + $0x1a7] sm:$0xff] }
  0x7c   : >> { %1870 = vmatprep.subr.mxu0 %v13265_v38  ;;  %2085 = vmatprep.subr.mxu1 %v13265_v38 }
  0x7d   : >> { %1871 = vmatpush1.msra.mxu0 %v421_v9  ;;  %2086 = vmatpush1.msra.mxu1 %v458_v58  ;;  %v456_v9 = vld [vmem:[%s9301_s10 + $0x128] sm:$0xff]  ;;  %v482_v58 = vld [vmem:[%s9301_s10 + $0x1f8] sm:$0xff] }
  0x7e   : >> { %1872 = vmatprep.subr.mxu0 %v13265_v38  ;;  %2087 = vmatprep.subr.mxu1 %v13265_v38 }
  0x7f   : >> { %865 = vrot.lane.b32.xlu0 %v9379_v3, %s8925_s6  ;;  %609 = vrot.lane.b32.xlu1 %v9381_v4, %s8925_s6 }
  0x80   : >> { %1873 = vmatpush1.msra.mxu0 %v420_v12  ;;  %2088 = vmatpush1.msra.mxu1 %v457_v62  ;;  %v439_v12 = vld [vmem:[%s9301_s10 + $0xa0] sm:$0xff]  ;;  %v9569_v62 = vld [vmem:[#allocation2 + $0x190] sm:$0xff] }
  0x81   : >> { %1874 = vmatprep.subr.mxu0 %v13265_v38  ;;  %2089 = vmatprep.subr.mxu1 %v13265_v38 }
  0x82   : >> { %1875 = vmatpush1.msra.mxu0 %v419_v13  ;;  %v9521_v13 = vld [vmem:[#allocation2 + $0x16f] sm:$0xff]  ;;  %2090 = vmatpush1.msra.mxu1 %v456_v9 }
  0x83   : >> { %867 = vrot.lane.b32.xlu0 %v9391_v7, %s8925_s6  ;;  %611 = vrot.lane.b32.xlu1 %v9393_v8, %s8925_s6  ;;  %v480_v9 = vld [vmem:[%s9301_s10 + $0x1e8] sm:$0xff] }
  0x84   : >> { %1876 = vmatprep.subr.mxu0 %v13265_v38  ;;  %2091 = vmatprep.subr.mxu1 %v13265_v38 }
  0x85   : >> { %1877 = vmatpush2.msra.mxu0 %v450_v16  ;;  %v9523_v16 = vld [vmem:[#allocation2 + $0x150] sm:$0xff] }
  0x86   : >> { %1878 = vmatprep.subr.mxu0 %v13265_v38 }
  0x87   : >> { %869 = vrot.lane.b32.xlu0 %v9401_v10, %s8925_s6  ;;  %613 = vrot.lane.b32.xlu1 %v9403_v11, %s8925_s6 }
  0x88   : >> { %1879 = vmatpush2.msra.mxu0 %v449_v19  ;;  %v455_v19 = vld [vmem:[%s9301_s10 + $0x120] sm:$0xff] }
  0x89   : >> { %1880 = vmatprep.subr.mxu0 %v13265_v38  ;;  %2092 = vmatpush1.msra.mxu1 %v455_v19  ;;  %v9578_v19 = vld [vmem:[#allocation2 + $0x1a8] sm:$0xff] }
  0x8a   : >> { %1881 = vmatpush2.msra.mxu0 %v448_v21  ;;  %v454_v21 = vld [vmem:[%s9301_s10 + $0x118] sm:$0xff]  ;;  %2093 = vmatprep.subr.mxu1 %v13265_v38 }
  0x8b   : >> { %871 = vrot.lane.b32.xlu0 %v9413_v14, %s8925_s6  ;;  %615 = vrot.lane.b32.xlu1 %v9415_v15, %s8925_s6 }
  0x8c   : >> { %1882 = vmatprep.subr.mxu0 %v13265_v38  ;;  %2094 = vmatpush1.msra.mxu1 %v454_v21  ;;  %v808_v21 = vld [vmem:[#allocation2 + $0x1cf] sm:$0xff] }
  0x8d   : >> { %1883 = vmatpush2.msra.mxu0 %v447_v26  ;;  %v437_v26 = vld [vmem:[%s9301_s10 + $0x90] sm:$0xff]  ;;  %2095 = vmatprep.subr.mxu1 %v13265_v38 }
  0x8e   : >> { %1884 = vmatprep.subr.mxu0 %v13265_v38  ;;  %2096 = vmatpush1.msra.mxu1 %v453_v27  ;;  %v477_v27 = vld [vmem:[%s9301_s10 + $0x1d0] sm:$0xff] }
  0x8f   : >> { %873 = vrot.lane.b32.xlu0 %v9423_v17, %s8925_s6  ;;  %617 = vrot.lane.b32.xlu1 %v9425_v18, %s8925_s6 }
  0x90   : >> { %1885 = vmatpush2.msra.mxu0 %v446_v30  ;;  %v436_v30 = vld [vmem:[%s9301_s10 + $0x88] sm:$0xff]  ;;  %2097 = vmatprep.subr.mxu1 %v13265_v38 }
  0x91   : >> { %1886 = vmatprep.subr.mxu0 %v13265_v38  ;;  %2098 = vmatpush1.msra.mxu1 %v452_v37  ;;  %v476_v37 = vld [vmem:[%s9301_s10 + $0x1c8] sm:$0xff] }
  0x92   : >> { %1887 = vmatpush2.msra.mxu0 %v445_v32  ;;  %v9546_v32 = vld [vmem:[#allocation2 + $0x170] sm:$0xff]  ;;  %2099 = vmatprep.subr.mxu1 %v13265_v38 }
  0x93   : >> { %875 = vrot.lane.b32.xlu0 %v9437_v23, %s8925_s6  ;;  %619 = vrot.lane.b32.xlu1 %v9439_v24, %s8925_s6 }
  0x94   : >> { %1888 = vmatprep.subr.mxu0 %v13265_v38 }
  0x95   : >> { %1889 = vmatpush2.msra.mxu0 %v444_v40  ;;  %v435_v40 = vld [vmem:[%s9301_s10 + $0x80] sm:$0xff] }
  0x96   : >> { %1890 = vmatprep.subr.mxu0 %v13265_v38 }
  0x97   : >> { %877 = vrot.lane.b32.xlu0 %v9451_v28, %s8925_s6  ;;  %621 = vrot.lane.b32.xlu1 %v9453_v29, %s8925_s6 }
  0x98   : >> { %1891 = vmatpush2.msra.mxu0 %v443_v47  ;;  %v451_v47 = vld [vmem:[%s9301_s10 + $0x100] sm:$0xff] }
  0x99   : >> { %1892 = vmatprep.subr.mxu0 %v13265_v38  ;;  %2100 = vmatpush1.msra.mxu1 %v451_v47  ;;  %v749_v47 = vld [vmem:[#allocation2 + $0x9] sm:$0xff] }
  0x9a   : >> { %1893 = vmatpush2.msra.mxu0 %v442_v51  ;;  %v9560_v51 = vld [vmem:[#allocation2 + $0x188] sm:$0xff]  ;;  %2101 = vmatprep.subr.mxu1 %v13265_v38 }
  0x9b   : >> { %879 = vrot.lane.b32.xlu0 %v9465_v33, %s8925_s6  ;;  %623 = vrot.lane.b32.xlu1 %v9467_v36, %s8925_s6 }
  0x9c   : >> { %1894 = vmatprep.subr.mxu0 %v13265_v38  ;;  %2102 = vmatpush2.msra.mxu1 %v482_v58  ;;  %v554_v58 = vld [vmem:[#allocation2 + $0x1d0] sm:$0xff] }
  0x9d   : >> { %1895 = vmatpush2.msra.mxu0 %v441_v61  ;;  %v806_v61 = vld [vmem:[#allocation2 + $0x1af] sm:$0xff]  ;;  %2103 = vmatprep.subr.mxu1 %v13265_v38 }
  0x9e   : >> { %1896 = vmatprep.subr.mxu0 %v13265_v38 }
  0x9f   : >> { %881 = vrot.lane.b32.xlu0 %v9479_v43, %s8925_s6  ;;  %625 = vrot.lane.b32.xlu1 %v9481_v44, %s8925_s6 }
  0xa0   : >> { %1897 = vmatpush2.msra.mxu0 %v440_v6  ;;  %v481_v6 = vld [vmem:[%s9301_s10 + $0x1f0] sm:$0xff] }
  0xa1   : >> { %1898 = vmatprep.subr.mxu0 %v13265_v38  ;;  %2104 = vmatpush2.msra.mxu1 %v481_v6 }
  0xa2   : >> { %1899 = vmatpush2.msra.mxu0 %v439_v12  ;;  %v807_v12 = vld [vmem:[#allocation2 + $0x1c7] sm:$0xff]  ;;  %2105 = vmatprep.subr.mxu1 %v13265_v38 }
  0xa3   : >> { %883 = vrot.lane.b32.xlu0 %v9493_v54, %s8925_s6  ;;  %627 = vrot.lane.b32.xlu1 %v9495_v55, %s8925_s6 }
  0xa4   : >> { %1900 = vmatprep.subr.mxu0 %v13265_v38  ;;  %2106 = vmatpush2.msra.mxu1 %v480_v9 }
  0xa5   : >> { %1901 = vmatpush2.msra.mxu0 %v438_v20  ;;  %v479_v20 = vld [vmem:[%s9301_s10 + $0x1e0] sm:$0xff]  ;;  %2107 = vmatprep.subr.mxu1 %v13265_v38 }
  0xa6   : >> { %1902 = vmatprep.subr.mxu0 %v13265_v38  ;;  %2108 = vmatpush2.msra.mxu1 %v479_v20 }
  0xa7   : >> { %885 = vrot.lane.b32.xlu0 %v9507_v2, %s8925_s6  ;;  %629 = vrot.lane.b32.xlu1 %v9509_v5, %s8925_s6 }
  0xa8   : >> { %1903 = vmatpush2.msra.mxu0 %v437_v26  ;;  %v478_v26 = vld [vmem:[%s9301_s10 + $0x1d8] sm:$0xff]  ;;  %2109 = vmatprep.subr.mxu1 %v13265_v38 }
  0xa9   : >> { %1904 = vmatprep.subr.mxu0 %v13265_v38  ;;  %2110 = vmatpush2.msra.mxu1 %v478_v26  ;;  %v1520_v26 = vld [vmem:[#allocation2 + $0x69] sm:$0xff] }
  0xaa   : >> { %1905 = vmatpush2.msra.mxu0 %v436_v30  ;;  %v809_v30 = vld [vmem:[#allocation2 + $0x1e7] sm:$0xff]  ;;  %2111 = vmatprep.subr.mxu1 %v13265_v38  ;;  %1552 = vst.msk [vmem:[#allocation4 + $0x70] sm:$0xff] %vm227_vm0, %v1520_v26  ;;  %v494_v26 = vld [vmem:[#allocation2 + $0xf] sm:$0xff] }
  0xab   : >> { %887 = vrot.lane.b32.xlu0 %v9521_v13, %s8925_s6  ;;  %631 = vrot.lane.b32.xlu1 %v9523_v16, %s8925_s6 }
  0xac   : >> { %1906 = vmatprep.subr.mxu0 %v13265_v38  ;;  %2112 = vmatpush2.msra.mxu1 %v477_v27  ;;  %v811_v27 = vld [vmem:[#allocation2 + $0x207] sm:$0xff] }
  0xad   : >> { %1907 = vmatpush2.msra.mxu0 %v435_v40  ;;  %v1518_v40 = vld [vmem:[#allocation2 + $0x49] sm:$0xff]  ;;  %2113 = vmatprep.subr.mxu1 %v13265_v38 }
  0xae   : >> { %8667 = vmatprep.subr.mxu0 %v9557_v42  ;;  %1550 = vst.msk [vmem:[#allocation4 + $0x20] sm:$0xff] %vm227_vm0, %v1518_v40  ;;  %2114 = vmatpush2.msra.mxu1 %v476_v37  ;;  %v750_v37 = vld [vmem:[#allocation2 + $0x11] sm:$0xff] }
  0xaf   : >> { %889 = vrot.lane.b32.xlu0 %v803_v22, %s8925_s6  ;;  %633 = vrot.lane.b32.xlu1 %v9535_v25, %s8925_s6  ;;  %v552_v22 = vld [vmem:[#allocation2 + $0x1b0] sm:$0xff] }
  0xb0   : >> { %2115 = vmatprep.subr.mxu1 %v13265_v38 }
  0xb3   : >> { %891 = vrot.lane.b32.xlu0 %v804_v31, %s8925_s6  ;;  %635 = vrot.lane.b32.xlu1 %v9546_v32, %s8925_s6  ;;  %v553_v31 = vld [vmem:[#allocation2 + $0x1c8] sm:$0xff] }
  0xb7   : >> { %893 = vrot.lane.b32.xlu0 %v805_v48, %s8925_s6  ;;  %637 = vrot.lane.b32.xlu1 %v9560_v51, %s8925_s6  ;;  %v810_v48 = vld [vmem:[#allocation2 + $0x1ef] sm:$0xff] }
  0xbb   : >> { %895 = vrot.lane.b32.xlu0 %v806_v61, %s8925_s6  ;;  %639 = vrot.lane.b32.xlu1 %v9569_v62, %s8925_s6  ;;  %v1519_v61 = vld [vmem:[#allocation2 + $0x51] sm:$0xff] }
  0xbc   : >> { %1551 = vst.msk [vmem:[#allocation4 + $0x48] sm:$0xff] %vm227_vm0, %v1519_v61  ;;  %v489_v61 = vld [vmem:[%s9301_s10 + $0x230] sm:$0xff] }
  0xbf   : >> { %897 = vrot.lane.b32.xlu0 %v807_v12, %s8925_s6  ;;  %641 = vrot.lane.b32.xlu1 %v9578_v19, %s8925_s6  ;;  %v475_v12 = vld [vmem:[%s9301_s10 + $0x1c0] sm:$0xff] }
  0xc0   : >> { %2116 = vmatpush2.msra.mxu1 %v475_v12  ;;  %v9612_v12 = vld [vmem:[#allocation2 + $0x209] sm:$0xff] }
  0xc1   : >> { %2117 = vmatprep.subr.mxu1 %v13265_v38  ;;  %v556_v38 = vld [vmem:[#allocation2 + $0x1f0] sm:$0xff]  ;;  %1578 = vst.msk [vmem:[#allocation4 + $0x480] sm:$0xff] %vm227_vm0, %v9612_v12 }
  0xc3   : >> { %899 = vrot.lane.b32.xlu0 %v808_v21, %s8925_s6  ;;  %643 = vrot.lane.b32.xlu1 %v552_v22, %s8925_s6  ;;  %v493_v21 = vld [vmem:[#allocation2 + $0x7] sm:$0xff]  ;;  %v474_v22 = vld [vmem:[%s9301_s10 + $0x1b8] sm:$0xff] }
  0xc4   : >> { %2118 = vmatpush2.msra.mxu1 %v474_v22 }
  0xc7   : >> { %901 = vrot.lane.b32.xlu0 %v809_v30, %s8925_s6  ;;  %645 = vrot.lane.b32.xlu1 %v553_v31, %s8925_s6  ;;  %v555_v30 = vld [vmem:[#allocation2 + $0x1e8] sm:$0xff]  ;;  %v1521_v31 = vld [vmem:[#allocation2 + $0x71] sm:$0xff] }
  0xc8   : >> { %1553 = vst.msk [vmem:[#allocation4 + $0x98] sm:$0xff] %vm227_vm0, %v1521_v31  ;;  %v13272_v31 = vmov 0.0  }
  0xc9   : >> { %v846_v6 = vpop.permute.xlu0 %845  ;;  %v848_v9 = vpop.permute.xlu1 %847  ;;  %2119 = vmatprep.subr.mxu1 %v13272_v31 }
  0xca   : >> { %v941_v20 = vsel %vm227_vm0, %v749_v47, %v846_v6  ;;  %v473_v6 = vld [vmem:[%s9301_s10 + $0x1b0] sm:$0xff] }
  0xcb   : >> { %903 = vrot.lane.b32.xlu0 %v810_v48, %s8925_s6  ;;  %647 = vrot.lane.b32.xlu1 %v554_v58, %s8925_s6  ;;  %v751_v58 = vld [vmem:[#allocation2 + $0x29] sm:$0xff] }
  0xcc   : >> { %1908 = vmatprep.mubr.f32.mxu0 %v941_v20  ;;  %v942_v20 = vsel %vm227_vm0, %v750_v37, %v848_v9  ;;  %2120 = vmatpush2.msra.mxu1 %v473_v6  ;;  %v488_v37 = vld [vmem:[%s9301_s10 + $0x228] sm:$0xff] }
  0xcd   : >> { %v590_v40 = vpop.permute.xlu0 %589  ;;  %v592_v47 = vpop.permute.xlu1 %591  ;;  %2121 = vmatprep.subr.mxu1 %v13272_v31 }
  0xce   : >> { %v685_v48 = vsel %vm227_vm0, %v493_v21, %v590_v40  ;;  %v686_v9 = vsel %vm227_vm0, %v494_v26, %v592_v47  ;;  %v472_v40 = vld [vmem:[%s9301_s10 + $0x1a8] sm:$0xff] }
  0xcf   : >> { %905 = vrot.lane.b32.xlu0 %v811_v27, %s8925_s6  ;;  %649 = vrot.lane.b32.xlu1 %v555_v30, %s8925_s6  ;;  %v752_v30 = vld [vmem:[#allocation2 + $0x31] sm:$0xff]  ;;  %v753_v26 = vld [vmem:[#allocation2 + $0x49] sm:$0xff] }
  0xd0   : >> { %1909 = vmatmul.mubr.f32.vlgmr.msra.gmra.mxu0 %v685_v48  ;;  %v9625_v48 = vld [vmem:[#allocation2 + $0x211] sm:$0xff]  ;;  %2122 = vmatpush2.msra.mxu1 %v472_v40 }
  0xd1   : >> { %v850_v21 = vpop.permute.xlu0 %849  ;;  %v594_v22 = vpop.permute.xlu1 %593  ;;  %1913 = vmatprep.mubr.f32.mxu0 %v942_v20  ;;  %8668 = vmatpush3.msra.mxu0 %v9557_v42  ;;  %v1522_v20 = vld [vmem:[#allocation2 + $0x89] sm:$0xff]  ;;  %v1523_v42 = vld [vmem:[#allocation2 + $0x91] sm:$0xff]  ;;  %1579 = vst.msk [vmem:[#allocation4 + $0x4a8] sm:$0xff] %vm227_vm0, %v9625_v48 }
  0xd2   : >> { %v943_v27 = vsel %vm227_vm0, %v751_v58, %v850_v21  ;;  %8669 = vmatprep.subr.mxu0 %v489_v61  ;;  %1554 = vst.msk [vmem:[#allocation4 + $0xc0] sm:$0xff] %vm227_vm0, %v1522_v20  ;;  %1555 = vst.msk [vmem:[#allocation4 + $0xe8] sm:$0xff] %vm227_vm0, %v1523_v42  ;;  %v487_v21 = vld [vmem:[%s9301_s10 + $0x220] sm:$0xff]  ;;  %2123 = vmatprep.subr.mxu1 %v13272_v31  ;;  %v1524_v20 = vld [vmem:[#allocation2 + $0xa9] sm:$0xff] }
  0xd3   : >> { %907 = vrot.lane.b32.xlu0 %v812_v1, %s8925_s6  ;;  %651 = vrot.lane.b32.xlu1 %v556_v38, %s8925_s6  ;;  %v687_v38 = vsel %vm227_vm0, %v9283_v34, %v594_v22  ;;  %v754_v34 = vld [vmem:[#allocation2 + $0x51] sm:$0xff]  ;;  %1556 = vst.msk [vmem:[#allocation4 + $0x110] sm:$0xff] %vm227_vm0, %v1524_v20  ;;  %v467_v20 = vld [vmem:[%s9301_s10 + $0x180] sm:$0xff] }
  0xd4   : >> { %1914 = vmatmul.mubr.f32.gmra.mxu0 %v686_v9  ;;  %v470_v22 = vld [vmem:[%s9301_s10 + $0x198] sm:$0xff] }
  0xd5   : >> { %v852_v6 = vpop.permute.xlu0 %851  ;;  %v596_v47 = vpop.permute.xlu1 %595  ;;  %1918 = vmatprep.mubr.f32.mxu0 %v943_v27  ;;  %8670 = vmatpush3.msra.mxu0 %v489_v61  ;;  %v471_v61 = vld [vmem:[%s9301_s10 + $0x1a0] sm:$0xff] }
  0xd6   : >> { %v944_v1 = vsel %vm227_vm0, %v752_v30, %v852_v6  ;;  %8671 = vmatprep.subr.mxu0 %v488_v37  ;;  %2124 = vmatpush2.msra.mxu1 %v471_v61 }
  0xd7   : >> { %1358 = vrot.lane.b32.xlu0 %v9315_v46, %s8925_s6  ;;  %1101 = vrot.lane.b32.xlu1 %v751_v58, %s8925_s6  ;;  %v688_v46 = vsel %vm227_vm0, %v9285_v35, %v596_v47  ;;  %v486_v58 = vld [vmem:[%s9301_s10 + $0x218] sm:$0xff]  ;;  %v485_v47 = vld [vmem:[%s9301_s10 + $0x210] sm:$0xff] }
  0xd8   : >> { %1919 = vmatmul.mubr.f32.gmra.mxu0 %v687_v38  ;;  %2125 = vmatprep.subr.mxu1 %v13272_v31 }
  0xd9   : >> { %v854_v27 = vpop.permute.xlu0 %853  ;;  %v598_v9 = vpop.permute.xlu1 %597  ;;  %1923 = vmatprep.mubr.f32.mxu0 %v944_v1  ;;  %8672 = vmatpush3.msra.mxu0 %v488_v37  ;;  %v1525_v37 = vld [vmem:[#allocation2 + $0xb1] sm:$0xff] }
  0xda   : >> { %v945_v40 = vsel %vm227_vm0, %v753_v26, %v854_v27  ;;  %8673 = vmatprep.subr.mxu0 %v487_v21  ;;  %1557 = vst.msk [vmem:[#allocation4 + $0x138] sm:$0xff] %vm227_vm0, %v1525_v37  ;;  %2126 = vmatpush2.msra.mxu1 %v470_v22  ;;  %v469_v1 = vld [vmem:[%s9301_s10 + $0x190] sm:$0xff]  ;;  %v468_v27 = vld [vmem:[%s9301_s10 + $0x188] sm:$0xff]  ;;  %v483_v22 = vld [vmem:[%s9301_s10 + $0x200] sm:$0xff] }
  0xdb   : >> { %1360 = vrot.lane.b32.xlu0 %v9327_v50, %s8925_s6  ;;  %1103 = vrot.lane.b32.xlu1 %v752_v30, %s8925_s6  ;;  %v689_v50 = vsel %vm227_vm0, %v9296_v39, %v598_v9  ;;  %v755_v30 = vld [vmem:[#allocation2 + $0x69] sm:$0xff]  ;;  %v756_v39 = vld [vmem:[#allocation2 + $0x71] sm:$0xff] }
  0xdc   : >> { %1924 = vmatmul.mubr.f32.gmra.mxu0 %v688_v46  ;;  %2127 = vmatprep.subr.mxu1 %v13272_v31  ;;  %v1526_v9 = vld [vmem:[#allocation2 + $0xc9] sm:$0xff] }
  0xdd   : >> { %v856_v42 = vpop.permute.xlu0 %855  ;;  %v600_v6 = vpop.permute.xlu1 %599  ;;  %1928 = vmatprep.mubr.f32.mxu0 %v945_v40  ;;  %8674 = vmatpush3.msra.mxu0 %v487_v21  ;;  %1558 = vst.msk [vmem:[#allocation4 + $0x160] sm:$0xff] %vm227_vm0, %v1526_v9  ;;  %v1527_v40 = vld [vmem:[#allocation2 + $0xd1] sm:$0xff] }
  0xde   : >> { %v946_v35 = vsel %vm227_vm0, %v754_v34, %v856_v42  ;;  %8675 = vmatprep.subr.mxu0 %v486_v58  ;;  %2128 = vmatpush2.msra.mxu1 %v469_v1  ;;  %1559 = vst.msk [vmem:[#allocation4 + $0x188] sm:$0xff] %vm227_vm0, %v1527_v40  ;;  %v759_v1 = vld [vmem:[#allocation2 + $0xa9] sm:$0xff] }
  0xdf   : >> { %1362 = vrot.lane.b32.xlu0 %v9337_v53, %s8925_s6  ;;  %1105 = vrot.lane.b32.xlu1 %v753_v26, %s8925_s6  ;;  %v690_v53 = vsel %vm227_vm0, %v9306_v41, %v600_v6  ;;  %v484_v26 = vld [vmem:[%s9301_s10 + $0x208] sm:$0xff] }
  0xe0   : >> { %1929 = vmatmul.mubr.f32.gmra.mxu0 %v689_v50  ;;  %2129 = vmatprep.subr.mxu1 %v13272_v31  ;;  %v1529_v50 = vld [vmem:[#allocation2 + $0xf1] sm:$0xff] }
  0xe1   : >> { %v858_v38 = vpop.permute.xlu0 %857  ;;  %v602_v21 = vpop.permute.xlu1 %601  ;;  %1933 = vmatprep.mubr.f32.mxu0 %v946_v35  ;;  %8676 = vmatpush3.msra.mxu0 %v486_v58  ;;  %v1528_v35 = vld [vmem:[#allocation2 + $0xe9] sm:$0xff]  ;;  %1561 = vst.msk [vmem:[#allocation4 + $0x1d8] sm:$0xff] %vm227_vm0, %v1529_v50 }
  0xe2   : >> { %v947_v61 = vsel %vm227_vm0, %v755_v30, %v858_v38  ;;  %8677 = vmatprep.subr.mxu0 %v485_v47  ;;  %2130 = vmatpush2.msra.mxu1 %v468_v27  ;;  %1560 = vst.msk [vmem:[#allocation4 + $0x1b0] sm:$0xff] %vm227_vm0, %v1528_v35 }
  0xe3   : >> { %1364 = vrot.lane.b32.xlu0 %v9349_v57, %s8925_s6  ;;  %1107 = vrot.lane.b32.xlu1 %v754_v34, %s8925_s6  ;;  %v691_v57 = vsel %vm227_vm0, %v9313_v45, %v602_v21  ;;  %v757_v34 = vld [vmem:[#allocation2 + $0x89] sm:$0xff] }
  0xe4   : >> { %1934 = vmatmul.mubr.f32.gmra.mxu0 %v690_v53  ;;  %2131 = vmatprep.subr.mxu1 %v13272_v31  ;;  %v1530_v53 = vld [vmem:[#allocation2 + $0x109] sm:$0xff] }
  0xe5   : >> { %v860_v46 = vpop.permute.xlu0 %859  ;;  %v604_v58 = vpop.permute.xlu1 %603  ;;  %1938 = vmatprep.mubr.f32.mxu0 %v947_v61  ;;  %8678 = vmatpush3.msra.mxu0 %v485_v47  ;;  %1562 = vst.msk [vmem:[#allocation4 + $0x200] sm:$0xff] %vm227_vm0, %v1530_v53 }
  0xe6   : >> { %v948_v41 = vsel %vm227_vm0, %v756_v39, %v860_v46  ;;  %8679 = vmatprep.subr.mxu0 %v484_v26  ;;  %2132 = vmatpush2.msra.mxu1 %v467_v20  ;;  %v692_v45 = vsel %vm227_vm0, %v9325_v49, %v604_v58 }
  0xe7   : >> { %1366 = vrot.lane.b32.xlu0 %v9359_v60, %s8925_s6  ;;  %1109 = vrot.lane.b32.xlu1 %v755_v30, %s8925_s6  ;;  %v758_v60 = vld [vmem:[#allocation2 + $0x91] sm:$0xff] }
  0xe8   : >> { %1939 = vmatmul.mubr.f32.gmra.mxu0 %v691_v57  ;;  %4011 = vmatprep.subr.mxu1 %v13272_v31  ;;  %v1532_v57 = vld [vmem:[#allocation2 + $0x129] sm:$0xff] }
  0xe9   : >> { %v862_v37 = vpop.permute.xlu0 %861  ;;  %v606_v42 = vpop.permute.xlu1 %605  ;;  %1943 = vmatprep.mubr.f32.mxu0 %v948_v41  ;;  %8680 = vmatpush3.msra.mxu0 %v484_v26  ;;  %1564 = vst.msk [vmem:[#allocation4 + $0x250] sm:$0xff] %vm227_vm0, %v1532_v57 }
  0xea   : >> { %v949_v6 = vsel %vm227_vm0, %v757_v34, %v862_v37  ;;  %8681 = vmatprep.subr.mxu0 %v483_v22 }
  0xeb   : >> { %1368 = vrot.lane.b32.xlu0 %v9371_v0, %s8925_s6  ;;  %1111 = vrot.lane.b32.xlu1 %v756_v39, %s8925_s6  ;;  %v693_v0 = vsel %vm227_vm0, %v9335_v52, %v606_v42  ;;  %v760_v52 = vld [vmem:[#allocation2 + $0xb1] sm:$0xff] }
  0xec   : >> { %1944 = vmatmul.mubr.f32.gmra.mxu0 %v692_v45 }
  0xed   : >> { %v864_v30 = vpop.permute.xlu0 %863  ;;  %v608_v47 = vpop.permute.xlu1 %607  ;;  %1948 = vmatprep.mubr.f32.mxu0 %v949_v6  ;;  %8682 = vmatpush3.msra.mxu0 %v483_v22 }
  0xee   : >> { %v950_v49 = vsel %vm227_vm0, %v758_v60, %v864_v30  ;;  %4236 = vmatprep.subr.mxu0 %v13272_v31  ;;  %v694_v39 = vsel %vm227_vm0, %v9347_v56, %v608_v47 }
  0xef   : >> { %1370 = vrot.lane.b32.xlu0 %v9381_v4, %s8925_s6  ;;  %1113 = vrot.lane.b32.xlu1 %v757_v34, %s8925_s6  ;;  %v1531_v4 = vld [vmem:[#allocation2 + $0x111] sm:$0xff] }
  0xf0   : >> { %1949 = vmatmul.mubr.f32.gmra.mxu0 %v693_v0  ;;  %1563 = vst.msk [vmem:[#allocation4 + $0x228] sm:$0xff] %vm227_vm0, %v1531_v4 }
  0xf1   : >> { %v866_v38 = vpop.permute.xlu0 %865  ;;  %v610_v21 = vpop.permute.xlu1 %609  ;;  %1953 = vmatprep.mubr.f32.mxu0 %v950_v49 }
  0xf2   : >> { %v951_v61 = vsel %vm227_vm0, %v759_v1, %v866_v38  ;;  %v695_v56 = vsel %vm227_vm0, %v9357_v59, %v610_v21  ;;  %v762_v59 = vld [vmem:[#allocation2 + $0xd1] sm:$0xff]  ;;  %v1536_v38 = vld [vmem:[#allocation2 + $0x169] sm:$0xff] }
  0xf3   : >> { %1372 = vrot.lane.b32.xlu0 %v9393_v8, %s8925_s6  ;;  %1115 = vrot.lane.b32.xlu1 %v758_v60, %s8925_s6  ;;  %v761_v8 = vld [vmem:[#allocation2 + $0xc9] sm:$0xff]  ;;  %1568 = vst.msk [vmem:[#allocation4 + $0x2f0] sm:$0xff] %vm227_vm0, %v1536_v38 }
  0xf4   : >> { %1954 = vmatmul.mubr.f32.gmra.mxu0 %v694_v39  ;;  %v1534_v60 = vld [vmem:[#allocation2 + $0x149] sm:$0xff] }
  0xf5   : >> { %v868_v26 = vpop.permute.xlu0 %867  ;;  %v612_v27 = vpop.permute.xlu1 %611  ;;  %1958 = vmatprep.mubr.f32.mxu0 %v951_v61  ;;  %1566 = vst.msk [vmem:[#allocation4 + $0x2a0] sm:$0xff] %vm227_vm0, %v1534_v60 }
  0xf6   : >> { %v952_v9 = vsel %vm227_vm0, %v760_v52, %v868_v26  ;;  %v696_v41 = vsel %vm227_vm0, %v9369_v63, %v612_v27  ;;  %v1538_v27 = vld [vmem:[#allocation2 + $0x189] sm:$0xff] }
  0xf7   : >> { %1374 = vrot.lane.b32.xlu0 %v9403_v11, %s8925_s6  ;;  %1117 = vrot.lane.b32.xlu1 %v759_v1, %s8925_s6  ;;  %v1533_v11 = vld [vmem:[#allocation2 + $0x131] sm:$0xff]  ;;  %1570 = vst.msk [vmem:[#allocation4 + $0x340] sm:$0xff] %vm227_vm0, %v1538_v27 }
  0xf8   : >> { %1959 = vmatmul.mubr.f32.gmra.mxu0 %v695_v56  ;;  %1565 = vst.msk [vmem:[#allocation4 + $0x278] sm:$0xff] %vm227_vm0, %v1533_v11 }
  0xf9   : >> { %v870_v40 = vpop.permute.xlu0 %869  ;;  %v614_v46 = vpop.permute.xlu1 %613  ;;  %1963 = vmatprep.mubr.f32.mxu0 %v952_v9 }
  0xfa   : >> { %v953_v58 = vsel %vm227_vm0, %v761_v8, %v870_v40  ;;  %v697_v63 = vsel %vm227_vm0, %v9379_v3, %v614_v46  ;;  %v764_v3 = vld [vmem:[#allocation2 + $0xf1] sm:$0xff] }
  0xfb   : >> { %1376 = vrot.lane.b32.xlu0 %v9415_v15, %s8925_s6  ;;  %1119 = vrot.lane.b32.xlu1 %v760_v52, %s8925_s6  ;;  %v763_v15 = vld [vmem:[#allocation2 + $0xe9] sm:$0xff] }
  0xfc   : >> { %1964 = vmatmul.mubr.f32.gmra.mxu0 %v696_v41 }
  0xfd   : >> { %v872_v34 = vpop.permute.xlu0 %871  ;;  %v616_v22 = vpop.permute.xlu1 %615  ;;  %1968 = vmatprep.mubr.f32.mxu0 %v953_v58 }
  0xfe   : >> { %v954_v20 = vsel %vm227_vm0, %v762_v59, %v872_v34  ;;  %v698_v45 = vsel %vm227_vm0, %v9391_v7, %v616_v22 }
  0xff   : >> { %1378 = vrot.lane.b32.xlu0 %v9425_v18, %s8925_s6  ;;  %1121 = vrot.lane.b32.xlu1 %v761_v8, %s8925_s6  ;;  %v1535_v18 = vld [vmem:[#allocation2 + $0x151] sm:$0xff] }
 0x100   : >> { %1969 = vmatmul.mubr.f32.gmra.mxu0 %v697_v63  ;;  %1567 = vst.msk [vmem:[#allocation4 + $0x2c8] sm:$0xff] %vm227_vm0, %v1535_v18 }
 0x101   : >> { %v874_v37 = vpop.permute.xlu0 %873  ;;  %v618_v42 = vpop.permute.xlu1 %617  ;;  %1973 = vmatprep.mubr.f32.mxu0 %v954_v20 }
 0x102   : >> { %v955_v6 = vsel %vm227_vm0, %v763_v15, %v874_v37  ;;  %v699_v7 = vsel %vm227_vm0, %v9401_v10, %v618_v42  ;;  %v766_v10 = vld [vmem:[#allocation2 + $0x111] sm:$0xff]  ;;  %v1542_v37 = vld [vmem:[#allocation2 + $0x1c9] sm:$0xff] }
 0x103   : >> { %1380 = vrot.lane.b32.xlu0 %v9439_v24, %s8925_s6  ;;  %1123 = vrot.lane.b32.xlu1 %v762_v59, %s8925_s6  ;;  %v765_v24 = vld [vmem:[#allocation2 + $0x109] sm:$0xff]  ;;  %1574 = vst.msk [vmem:[#allocation4 + $0x3e0] sm:$0xff] %vm227_vm0, %v1542_v37 }
 0x104   : >> { %1974 = vmatmul.mubr.f32.gmra.mxu0 %v698_v45  ;;  %v1540_v59 = vld [vmem:[#allocation2 + $0x1a9] sm:$0xff] }
 0x105   : >> { %v876_v35 = vpop.permute.xlu0 %875  ;;  %v620_v50 = vpop.permute.xlu1 %619  ;;  %1978 = vmatprep.mubr.f32.mxu0 %v955_v6  ;;  %1572 = vst.msk [vmem:[#allocation4 + $0x390] sm:$0xff] %vm227_vm0, %v1540_v59  ;;  %v779_v59 = vld [vmem:[#allocation2 + $0x1e9] sm:$0xff] }
 0x106   : >> { %v956_v30 = vsel %vm227_vm0, %v764_v3, %v876_v35  ;;  %v700_v1 = vsel %vm227_vm0, %v9413_v14, %v620_v50  ;;  %v1544_v50 = vld [vmem:[#allocation2 + $0x1e9] sm:$0xff] }
 0x107   : >> { %1382 = vrot.lane.b32.xlu0 %v9453_v29, %s8925_s6  ;;  %1125 = vrot.lane.b32.xlu1 %v763_v15, %s8925_s6  ;;  %v1537_v29 = vld [vmem:[#allocation2 + $0x171] sm:$0xff]  ;;  %1576 = vst.msk [vmem:[#allocation4 + $0x430] sm:$0xff] %vm227_vm0, %v1544_v50 }
 0x108   : >> { %1979 = vmatmul.mubr.f32.gmra.mxu0 %v699_v7  ;;  %1569 = vst.msk [vmem:[#allocation4 + $0x318] sm:$0xff] %vm227_vm0, %v1537_v29 }
 0x109   : >> { %v878_v47 = vpop.permute.xlu0 %877  ;;  %v622_v49 = vpop.permute.xlu1 %621  ;;  %1983 = vmatprep.mubr.f32.mxu0 %v956_v30  ;;  %v1545_v30 = vld [vmem:[#allocation2 + $0x1f1] sm:$0xff] }
 0x10a   : >> { %v957_v0 = vsel %vm227_vm0, %v765_v24, %v878_v47  ;;  %v701_v14 = vsel %vm227_vm0, %v9423_v17, %v622_v49  ;;  %v768_v17 = vld [vmem:[#allocation2 + $0x131] sm:$0xff]  ;;  %1577 = vst.msk [vmem:[#allocation4 + $0x458] sm:$0xff] %vm227_vm0, %v1545_v30  ;;  %v1586_v30 = vld [vmem:[#allocation4 + $0x20] sm:$0xff] }
 0x10b   : >> { %1384 = vrot.lane.b32.xlu0 %v9467_v36, %s8925_s6  ;;  %1127 = vrot.lane.b32.xlu1 %v764_v3, %s8925_s6  ;;  %v767_v36 = vld [vmem:[#allocation2 + $0x129] sm:$0xff] }
 0x10c   : >> { %1984 = vmatmul.mubr.f32.gmra.mxu0 %v700_v1  ;;  %v518_v49 = vld [vmem:[#allocation2 + $0x18f] sm:$0xff] }
 0x10d   : >> { %v880_v21 = vpop.permute.xlu0 %879  ;;  %v624_v61 = vpop.permute.xlu1 %623  ;;  %1988 = vmatprep.mubr.f32.mxu0 %v957_v0  ;;  %v1317_v0 = vld [vmem:[#allocation2 + $0x1b0] sm:$0xff] }
 0x10e   : >> { %v958_v39 = vsel %vm227_vm0, %v766_v10, %v880_v21  ;;  %v702_v26 = vsel %vm227_vm0, %v9437_v23, %v624_v61  ;;  %v776_v21 = vld [vmem:[#allocation2 + $0x1b1] sm:$0xff]  ;;  %v519_v61 = vld [vmem:[#allocation2 + $0x1a7] sm:$0xff] }
 0x10f   : >> { %1386 = vrot.lane.b32.xlu0 %v9481_v44, %s8925_s6  ;;  %1129 = vrot.lane.b32.xlu1 %v765_v24, %s8925_s6  ;;  %v1539_v44 = vld [vmem:[#allocation2 + $0x191] sm:$0xff] }
 0x110   : >> { %1989 = vmatmul.mubr.f32.gmra.mxu0 %v701_v14  ;;  %1571 = vst.msk [vmem:[#allocation4 + $0x368] sm:$0xff] %vm227_vm0, %v1539_v44 }
 0x111   : >> { %v882_v52 = vpop.permute.xlu0 %881  ;;  %v626_v53 = vpop.permute.xlu1 %625  ;;  %1993 = vmatprep.mubr.f32.mxu0 %v958_v39 }
 0x112   : >> { %v959_v4 = vsel %vm227_vm0, %v767_v36, %v882_v52  ;;  %v703_v23 = vsel %vm227_vm0, %v9451_v28, %v626_v53  ;;  %v770_v28 = vld [vmem:[#allocation2 + $0x151] sm:$0xff]  ;;  %v777_v53 = vld [vmem:[#allocation2 + $0x1c9] sm:$0xff] }
 0x113   : >> { %1388 = vrot.lane.b32.xlu0 %v9495_v55, %s8925_s6  ;;  %1131 = vrot.lane.b32.xlu1 %v766_v10, %s8925_s6  ;;  %v769_v55 = vld [vmem:[#allocation2 + $0x149] sm:$0xff] }
 0x114   : >> { %1994 = vmatmul.mubr.f32.gmra.mxu0 %v702_v26  ;;  %v1319_v26 = vld [vmem:[#allocation2 + $0x1d0] sm:$0xff] }
 0x115   : >> { %v884_v9 = vpop.permute.xlu0 %883  ;;  %v628_v56 = vpop.permute.xlu1 %627  ;;  %1998 = vmatprep.mubr.f32.mxu0 %v959_v4  ;;  %v520_v4 = vld [vmem:[#allocation2 + $0x1af] sm:$0xff] }
 0x116   : >> { %v960_v8 = vsel %vm227_vm0, %v768_v17, %v884_v9  ;;  %v704_v41 = vsel %vm227_vm0, %v9465_v33, %v628_v56  ;;  %v778_v56 = vld [vmem:[#allocation2 + $0x1d1] sm:$0xff] }
 0x117   : >> { %1390 = vrot.lane.b32.xlu0 %v9509_v5, %s8925_s6  ;;  %1133 = vrot.lane.b32.xlu1 %v767_v36, %s8925_s6  ;;  %v1541_v5 = vld [vmem:[#allocation2 + $0x1b1] sm:$0xff] }
 0x118   : >> { %1999 = vmatmul.mubr.f32.gmra.mxu0 %v703_v23  ;;  %1573 = vst.msk [vmem:[#allocation4 + $0x3b8] sm:$0xff] %vm227_vm0, %v1541_v5  ;;  %v9820_v23 = vld [vmem:[#allocation2 + $0x1c7] sm:$0xff]  ;;  %v9829_v5 = vld [vmem:[#allocation2 + $0x1cf] sm:$0xff] }
 0x119   : >> { %v886_v40 = vpop.permute.xlu0 %885  ;;  %v630_v46 = vpop.permute.xlu1 %629  ;;  %2003 = vmatprep.mubr.f32.mxu0 %v960_v8  ;;  %v1548_v8 = vld [vmem:[#allocation2 + $0x229] sm:$0xff] }
 0x11a   : >> { %v961_v58 = vsel %vm227_vm0, %v769_v55, %v886_v40  ;;  %v705_v33 = vsel %vm227_vm0, %v9479_v43, %v630_v46  ;;  %v772_v43 = vld [vmem:[#allocation2 + $0x171] sm:$0xff]  ;;  %1580 = vst.msk [vmem:[#allocation4 + $0x4d0] sm:$0xff] %vm227_vm0, %v1548_v8  ;;  %v1266_v8 = vld [vmem:[#allocation2 + $0x87] sm:$0xff] }
 0x11b   : >> { %1392 = vrot.lane.b32.xlu0 %v9523_v16, %s8925_s6  ;;  %1135 = vrot.lane.b32.xlu1 %v768_v17, %s8925_s6  ;;  %v771_v16 = vld [vmem:[#allocation2 + $0x169] sm:$0xff]  ;;  %v1549_v40 = vld [vmem:[#allocation2 + $0x231] sm:$0xff] }
 0x11c   : >> { %2004 = vmatmul.mubr.f32.gmra.mxu0 %v704_v41  ;;  %1581 = vst.msk [vmem:[#allocation4 + $0x4f8] sm:$0xff] %vm227_vm0, %v1549_v40 }
 0x11d   : >> { %v888_v57 = vpop.permute.xlu0 %887  ;;  %v632_v11 = vpop.permute.xlu1 %631  ;;  %2008 = vmatprep.mubr.f32.mxu0 %v961_v58 }
 0x11e   : >> { %v962_v34 = vsel %vm227_vm0, %v770_v28, %v888_v57  ;;  %v706_v15 = vsel %vm227_vm0, %v9493_v54, %v632_v11  ;;  %v1321_v57 = vld [vmem:[#allocation2 + $0x1f0] sm:$0xff] }
 0x11f   : >> { %1394 = vrot.lane.b32.xlu0 %v9535_v25, %s8925_s6  ;;  %1137 = vrot.lane.b32.xlu1 %v769_v55, %s8925_s6  ;;  %v1543_v25 = vld [vmem:[#allocation2 + $0x1d1] sm:$0xff]  ;;  %v1320_v55 = vld [vmem:[#allocation2 + $0x1e8] sm:$0xff] }
 0x120   : >> { %2009 = vmatmul.mubr.f32.gmra.mxu0 %v705_v33  ;;  %1575 = vst.msk [vmem:[#allocation4 + $0x408] sm:$0xff] %vm227_vm0, %v1543_v25 }
 0x121   : >> { %v890_v22 = vpop.permute.xlu0 %889  ;;  %v634_v20 = vpop.permute.xlu1 %633  ;;  %2013 = vmatprep.mubr.f32.mxu0 %v962_v34  ;;  %v9838_v37 = vld [vmem:[#allocation4 + $0x4d0] sm:$0xff] }
 0x122   : >> { %v963_v63 = vsel %vm227_vm0, %v771_v16, %v890_v22  ;;  %v707_v54 = vsel %vm227_vm0, %v9507_v2, %v634_v20  ;;  %v774_v2 = vld [vmem:[#allocation2 + $0x191] sm:$0xff]  ;;  %v9836_v20 = vld [vmem:[#allocation2 + $0x1e7] sm:$0xff] }
 0x123   : >> { %1396 = vrot.lane.b32.xlu0 %v9546_v32, %s8925_s6  ;;  %1139 = vrot.lane.b32.xlu1 %v770_v28, %s8925_s6  ;;  %v773_v32 = vld [vmem:[#allocation2 + $0x189] sm:$0xff]  ;;  %v780_v22 = vld [vmem:[#allocation2 + $0x1f1] sm:$0xff] }
 0x124   : >> { %2014 = vmatmul.mubr.f32.gmra.mxu0 %v706_v15 }
 0x125   : >> { %v892_v42 = vpop.permute.xlu0 %891  ;;  %v636_v6 = vpop.permute.xlu1 %635  ;;  %2018 = vmatprep.mubr.f32.mxu0 %v963_v63  ;;  %v1322_v63 = vld [vmem:[#allocation2 + $0x208] sm:$0xff] }
 0x126   : >> { %v964_v45 = vsel %vm227_vm0, %v772_v43, %v892_v42  ;;  %v708_v35 = vsel %vm227_vm0, %v9521_v13, %v636_v6  ;;  %v3715_v42 = vld [vmem:[#allocation3 + $0x229] sm:$0xff]  ;;  %v9841_v6 = vld [vmem:[#allocation4 + $0x4f8] sm:$0xff] }
 0x127   : >> { %1398 = vrot.lane.b32.xlu0 %v9560_v51, %s8925_s6  ;;  %1141 = vrot.lane.b32.xlu1 %v771_v16, %s8925_s6  ;;  %v517_v51 = vld [vmem:[#allocation2 + $0x187] sm:$0xff]  ;;  %3747 = vst.msk [vmem:[#allocation4 + $0x4d0] sm:$0xff] %vm227_vm0, %v3715_v42 }
 0x128   : >> { %2019 = vmatmul.mubr.f32.gmra.mxu0 %v707_v54 }
 0x129   : >> { %v894_v3 = vpop.permute.xlu0 %893  ;;  %v638_v60 = vpop.permute.xlu1 %637  ;;  %2023 = vmatprep.mubr.f32.mxu0 %v964_v45  ;;  %v3716_v45 = vld [vmem:[#allocation3 + $0x231] sm:$0xff] }
 0x12a   : >> { %v965_v18 = vsel %vm227_vm0, %v773_v32, %v894_v3  ;;  %v709_v13 = vsel %vm227_vm0, %v517_v51, %v638_v60  ;;  %v1005_v3 = vld [vmem:[#allocation2 + $0x28] sm:$0xff]  ;;  %3748 = vst.msk [vmem:[#allocation4 + $0x4f8] sm:$0xff] %vm227_vm0, %v3716_v45  ;;  %v1641_v45 = vld [vmem:[#allocation4 + $0x1d8] sm:$0xff] }
 0x12b   : >> { %1400 = vrot.lane.b32.xlu0 %v9569_v62, %s8925_s6  ;;  %1143 = vrot.lane.b32.xlu1 %v772_v43, %s8925_s6  ;;  %v775_v62 = vld [vmem:[#allocation2 + $0x1a9] sm:$0xff] }
 0x12c   : >> { %2024 = vmatmul.mubr.f32.gmra.mxu0 %v708_v35  ;;  %v9849_v60 = vld [vmem:[#allocation2 + $0x1ef] sm:$0xff] }
 0x12d   : >> { %v896_v7 = vpop.permute.xlu0 %895  ;;  %v640_v24 = vpop.permute.xlu1 %639  ;;  %2028 = vmatprep.mubr.f32.mxu0 %v965_v18  ;;  %v1323_v18 = vld [vmem:[#allocation2 + $0x210] sm:$0xff] }
 0x12e   : >> { %v966_v47 = vsel %vm227_vm0, %v774_v2, %v896_v7  ;;  %v710_v29 = vsel %vm227_vm0, %v518_v49, %v640_v24  ;;  %v1263_v24 = vld [vmem:[#allocation2 + $0x4f] sm:$0xff] }
 0x12f   : >> { %1402 = vrot.lane.b32.xlu0 %v9578_v19, %s8925_s6  ;;  %1145 = vrot.lane.b32.xlu1 %v773_v32, %s8925_s6  ;;  %v1318_v19 = vld [vmem:[#allocation2 + $0x1c8] sm:$0xff] }
 0x130   : >> { %2029 = vmatmul.mubr.f32.gmra.mxu0 %v709_v13  ;;  %v1262_v32 = vld [vmem:[#allocation2 + $0x47] sm:$0xff] }
 0x131   : >> { %v898_v1 = vpop.permute.xlu0 %897  ;;  %v642_v10 = vpop.permute.xlu1 %641  ;;  %2033 = vmatprep.mubr.f32.mxu0 %v966_v47  ;;  %v1006_v47 = vld [vmem:[#allocation2 + $0x30] sm:$0xff]  ;;  %v1324_v13 = vld [vmem:[#allocation2 + $0x228] sm:$0xff] }
 0x132   : >> { %v967_v38 = vsel %vm227_vm0, %v775_v62, %v898_v1  ;;  %v711_v52 = vsel %vm227_vm0, %v519_v61, %v642_v10  ;;  %v1325_v61 = vld [vmem:[#allocation2 + $0x230] sm:$0xff] }
 0x133   : >> { %1404 = vrot.lane.b32.xlu0 %v1317_v0, %s8925_s6  ;;  %1147 = vrot.lane.b32.xlu1 %v774_v2, %s8925_s6  ;;  %v1591_v0 = vld [vmem:[#allocation4 + $0x48] sm:$0xff] }
 0x134   : >> { %2034 = vmatmul.mubr.f32.gmra.mxu0 %v710_v29  ;;  %v1264_v29 = vld [vmem:[#allocation2 + $0x67] sm:$0xff] }
 0x135   : >> { %v900_v39 = vpop.permute.xlu0 %899  ;;  %v644_v14 = vpop.permute.xlu1 %643  ;;  %2038 = vmatprep.mubr.f32.mxu0 %v967_v38  ;;  %v1596_v38 = vld [vmem:[#allocation4 + $0x70] sm:$0xff] }
 0x136   : >> { %v968_v36 = vsel %vm227_vm0, %v776_v21, %v900_v39  ;;  %v712_v9 = vsel %vm227_vm0, %v520_v4, %v644_v14  ;;  %v1601_v14 = vld [vmem:[#allocation4 + $0x98] sm:$0xff]  ;;  %v1008_v4 = vld [vmem:[#allocation2 + $0x50] sm:$0xff] }
 0x137   : >> { %1406 = vrot.lane.b32.xlu0 %v1318_v19, %s8925_s6  ;;  %1149 = vrot.lane.b32.xlu1 %v775_v62, %s8925_s6 }
 0x138   : >> { %2039 = vmatmul.mubr.f32.gmra.mxu0 %v711_v52 }
 0x139   : >> { %v902_v17 = vpop.permute.xlu0 %901  ;;  %v646_v27 = vpop.permute.xlu1 %645  ;;  %2043 = vmatprep.mubr.f32.mxu0 %v968_v36 }
 0x13a   : >> { %v969_v44 = vsel %vm227_vm0, %v777_v53, %v902_v17  ;;  %v713_v28 = vsel %vm227_vm0, %v9820_v23, %v646_v27  ;;  %v1611_v27 = vld [vmem:[#allocation4 + $0xe8] sm:$0xff] }
 0x13b   : >> { %1408 = vrot.lane.b32.xlu0 %v1319_v26, %s8925_s6  ;;  %1151 = vrot.lane.b32.xlu1 %v776_v21, %s8925_s6  ;;  %v1007_v21 = vld [vmem:[#allocation2 + $0x48] sm:$0xff] }
 0x13c   : >> { %2044 = vmatmul.mubr.f32.gmra.mxu0 %v712_v9 }
 0x13d   : >> { %v904_v46 = vpop.permute.xlu0 %903  ;;  %v648_v58 = vpop.permute.xlu1 %647  ;;  %2048 = vmatprep.mubr.f32.mxu0 %v969_v44 }
 0x13e   : >> { %v970_v41 = vsel %vm227_vm0, %v778_v56, %v904_v46  ;;  %v714_v16 = vsel %vm227_vm0, %v9829_v5, %v648_v58  ;;  %v1621_v46 = vld [vmem:[#allocation4 + $0x138] sm:$0xff] }
 0x13f   : >> { %1410 = vrot.lane.b32.xlu0 %v1320_v55, %s8925_s6  ;;  %1153 = vrot.lane.b32.xlu1 %v777_v53, %s8925_s6  ;;  %v1606_v53 = vld [vmem:[#allocation4 + $0xc0] sm:$0xff]  ;;  %v1009_v55 = vld [vmem:[#allocation2 + $0x68] sm:$0xff] }
 0x140   : >> { %2049 = vmatmul.mubr.f32.gmra.mxu0 %v713_v28  ;;  %v1626_v28 = vld [vmem:[#allocation4 + $0x160] sm:$0xff] }
 0x141   : >> { %v906_v11 = vpop.permute.xlu0 %905  ;;  %v650_v34 = vpop.permute.xlu1 %649  ;;  %2053 = vmatprep.mubr.f32.mxu0 %v970_v41 }
 0x142   : >> { %v971_v33 = vsel %vm227_vm0, %v779_v59, %v906_v11  ;;  %v715_v54 = vsel %vm227_vm0, %v9836_v20, %v650_v34 }
 0x143   : >> { %1412 = vrot.lane.b32.xlu0 %v1321_v57, %s8925_s6  ;;  %1155 = vrot.lane.b32.xlu1 %v778_v56, %s8925_s6  ;;  %v1616_v56 = vld [vmem:[#allocation4 + $0x110] sm:$0xff] }
 0x144   : >> { %2054 = vmatmul.mubr.f32.gmra.mxu0 %v714_v16  ;;  %v1010_v57 = vld [vmem:[#allocation2 + $0x70] sm:$0xff] }
 0x145   : >> { %v908_v15 = vpop.permute.xlu0 %907  ;;  %v652_v43 = vpop.permute.xlu1 %651  ;;  %2058 = vmatprep.mubr.f32.mxu0 %v971_v33  ;;  %v1631_v33 = vld [vmem:[#allocation4 + $0x188] sm:$0xff] }
 0x146   : >> { %v972_v25 = vsel %vm227_vm0, %v780_v22, %v908_v15  ;;  %v716_v7 = vsel %vm227_vm0, %v9849_v60, %v652_v43  ;;  %v1268_v15 = vld [vmem:[#allocation2 + $0xa7] sm:$0xff] }
 0x147   : >> { %1414 = vrot.lane.b32.xlu0 %v1322_v63, %s8925_s6  ;;  %1157 = vrot.lane.b32.xlu1 %v779_v59, %s8925_s6  ;;  %v1267_v59 = vld [vmem:[#allocation2 + $0x8f] sm:$0xff] }
 0x148   : >> { %2059 = vmatmul.mubr.f32.gmra.mxu0 %v715_v54  ;;  %v1636_v63 = vld [vmem:[#allocation4 + $0x1b0] sm:$0xff]  ;;  %v1011_v43 = vld [vmem:[#allocation2 + $0x88] sm:$0xff] }
 0x149   : >> { %v1359_v35 = vpop.permute.xlu0 %1358  ;;  %v1102_v2 = vpop.permute.xlu1 %1101  ;;  %2063 = vmatprep.mubr.f32.mxu0 %v972_v25 }
 0x14a   : >> { %v1454_v50 = vsel %vm227_vm0, %v1262_v32, %v1359_v35  ;;  %v1197_v51 = vsel %vm227_vm0, %v1005_v3, %v1102_v2  ;;  %v1646_v3 = vld [vmem:[#allocation4 + $0x200] sm:$0xff]  ;;  %v1012_v35 = vld [vmem:[#allocation2 + $0x90] sm:$0xff] }
 0x14b   : >> { %1416 = vrot.lane.b32.xlu0 %v1323_v18, %s8925_s6  ;;  %1159 = vrot.lane.b32.xlu1 %v780_v22, %s8925_s6  ;;  %v1269_v18 = vld [vmem:[#allocation2 + $0xaf] sm:$0xff] }
 0x14c   : >> { %2064 = vmatmul.mubr.f32.gmra.mxu0 %v716_v7  ;;  %2133 = vmatprep.mubr.f32.mxu1 %v1454_v50 }
 0x14d   : >> { %v1361_v62 = vpop.permute.xlu0 %1360  ;;  %v1104_v49 = vpop.permute.xlu1 %1103  ;;  %2134 = vmatmul.mubr.f32.vlgmr.msra.gmra.mxu1 %v1197_v51  ;;  %8683 = vmatprep.mubr.msk.f32.mxu0 %vm227_vm0, %v1586_v30  ;;  %v1651_v51 = vld [vmem:[#allocation4 + $0x228] sm:$0xff] }
 0x14e   : >> { %v1455_v1 = vsel %vm227_vm0, %v1263_v24, %v1361_v62  ;;  %v1198_v10 = vsel %vm227_vm0, %v1006_v47, %v1104_v49  ;;  %v1656_v24 = vld [vmem:[#allocation4 + $0x250] sm:$0xff]  ;;  %v1270_v47 = vld [vmem:[#allocation2 + $0xc7] sm:$0xff] }
 0x14f   : >> { %1418 = vrot.lane.b32.xlu0 %v1324_v13, %s8925_s6  ;;  %1161 = vrot.lane.b32.xlu1 %v9612_v12, %s8925_s6  ;;  %v1265_v12 = vld [vmem:[#allocation2 + $0x6f] sm:$0xff] }
 0x150   : >> { %2138 = vmatprep.mubr.f32.mxu1 %v1455_v1  ;;  %8684 = vmatmul.mubr.msk.f32.vlgmr.msra.gmra.mxu0 %vm227_vm0, %v1591_v0  ;;  %v1013_v13 = vld [vmem:[#allocation2 + $0xa8] sm:$0xff]  ;;  %v1661_v0 = vld [vmem:[#allocation4 + $0x278] sm:$0xff] }
 0x151   : >> { %v1363_v19 = vpop.permute.xlu0 %1362  ;;  %v1106_v39 = vpop.permute.xlu1 %1105  ;;  %2139 = vmatmul.mubr.f32.gmra.mxu1 %v1198_v10  ;;  %8686 = vmatprep.mubr.msk.f32.mxu0 %vm227_vm0, %v1596_v38  ;;  %v1666_v38 = vld [vmem:[#allocation4 + $0x2a0] sm:$0xff] }
 0x152   : >> { %v1456_v36 = vsel %vm227_vm0, %v1264_v29, %v1363_v19  ;;  %v1199_v52 = vsel %vm227_vm0, %v1007_v21, %v1106_v39  ;;  %v1271_v29 = vld [vmem:[#allocation2 + $0xcf] sm:$0xff] }
 0x153   : >> { %1420 = vrot.lane.b32.xlu0 %v1325_v61, %s8925_s6  ;;  %1163 = vrot.lane.b32.xlu1 %v9625_v48, %s8925_s6  ;;  %v1014_v21 = vld [vmem:[#allocation2 + $0xb0] sm:$0xff]  ;;  %v1671_v39 = vld [vmem:[#allocation4 + $0x2c8] sm:$0xff] }
 0x154   : >> { %2143 = vmatprep.mubr.f32.mxu1 %v1456_v36  ;;  %8687 = vmatmul.mubr.msk.f32.gmra.mxu0 %vm227_vm0, %v1601_v14 }
 0x155   : >> { %v1365_v26 = vpop.permute.xlu0 %1364  ;;  %v1108_v17 = vpop.permute.xlu1 %1107  ;;  %2144 = vmatmul.mubr.f32.gmra.mxu1 %v1199_v52  ;;  %8689 = vmatprep.mubr.msk.f32.mxu0 %vm227_vm0, %v1606_v53  ;;  %v1676_v52 = vld [vmem:[#allocation4 + $0x2f0] sm:$0xff]  ;;  %v1272_v53 = vld [vmem:[#allocation2 + $0xe7] sm:$0xff] }
 0x156   : >> { %v1457_v44 = vsel %vm227_vm0, %v1265_v12, %v1365_v26  ;;  %v1200_v9 = vsel %vm227_vm0, %v1008_v4, %v1108_v17  ;;  %v1015_v12 = vld [vmem:[#allocation2 + $0xc8] sm:$0xff]  ;;  %v1681_v17 = vld [vmem:[#allocation4 + $0x318] sm:$0xff] }
 0x157   : >> { %2148 = vmatprep.mubr.f32.mxu1 %v1457_v44 }
 0x158   : >> { %8690 = vmatmul.mubr.msk.f32.gmra.mxu0 %vm227_vm0, %v1611_v27 }
 0x159   : >> { %v1367_v48 = vpop.permute.xlu0 %1366  ;;  %v1110_v40 = vpop.permute.xlu1 %1109  ;;  %2149 = vmatmul.mubr.f32.gmra.mxu1 %v1200_v9  ;;  %8692 = vmatprep.mubr.msk.f32.mxu0 %vm227_vm0, %v1616_v56  ;;  %v1686_v9 = vld [vmem:[#allocation4 + $0x340] sm:$0xff]  ;;  %v1273_v56 = vld [vmem:[#allocation2 + $0xef] sm:$0xff] }
 0x15a   : >> { %v1458_v58 = vsel %vm227_vm0, %v1266_v8, %v1367_v48  ;;  %v1201_v41 = vsel %vm227_vm0, %v1009_v55, %v1110_v40  ;;  %v1016_v8 = vld [vmem:[#allocation2 + $0xd0] sm:$0xff]  ;;  %v1691_v40 = vld [vmem:[#allocation4 + $0x368] sm:$0xff] }
 0x15b   : >> { %2153 = vmatprep.mubr.f32.mxu1 %v1458_v58 }
 0x15c   : >> { %8693 = vmatmul.mubr.msk.f32.gmra.mxu0 %vm227_vm0, %v1621_v46 }
 0x15d   : >> { %v1369_v11 = vpop.permute.xlu0 %1368  ;;  %v1112_v34 = vpop.permute.xlu1 %1111  ;;  %2154 = vmatmul.mubr.f32.gmra.mxu1 %v1201_v41  ;;  %8695 = vmatprep.mubr.msk.f32.mxu0 %vm227_vm0, %v1626_v28  ;;  %v1696_v41 = vld [vmem:[#allocation4 + $0x390] sm:$0xff]  ;;  %v1274_v28 = vld [vmem:[#allocation2 + $0x107] sm:$0xff] }
 0x15e   : >> { %v1459_v16 = vsel %vm227_vm0, %v1267_v59, %v1369_v11  ;;  %v1202_v22 = vsel %vm227_vm0, %v1010_v57, %v1112_v34  ;;  %v1017_v59 = vld [vmem:[#allocation2 + $0xe8] sm:$0xff]  ;;  %v1701_v34 = vld [vmem:[#allocation4 + $0x3b8] sm:$0xff] }
 0x15f   : >> { %2158 = vmatprep.mubr.f32.mxu1 %v1459_v16 }
 0x160   : >> { %8696 = vmatmul.mubr.msk.f32.gmra.mxu0 %vm227_vm0, %v1631_v33 }
 0x161   : >> { %v1371_v25 = vpop.permute.xlu0 %1370  ;;  %v1114_v42 = vpop.permute.xlu1 %1113  ;;  %2159 = vmatmul.mubr.f32.gmra.mxu1 %v1202_v22  ;;  %8698 = vmatprep.mubr.msk.f32.mxu0 %vm227_vm0, %v1636_v63  ;;  %v1706_v22 = vld [vmem:[#allocation4 + $0x3e0] sm:$0xff]  ;;  %v1275_v63 = vld [vmem:[#allocation2 + $0x10f] sm:$0xff] }
 0x162   : >> { %v1460_v54 = vsel %vm227_vm0, %v1268_v15, %v1371_v25  ;;  %v1203_v32 = vsel %vm227_vm0, %v1011_v43, %v1114_v42  ;;  %v1018_v15 = vld [vmem:[#allocation2 + $0xf0] sm:$0xff]  ;;  %v1711_v42 = vld [vmem:[#allocation4 + $0x408] sm:$0xff] }
 0x163   : >> { %2163 = vmatprep.mubr.f32.mxu1 %v1460_v54 }
 0x164   : >> { %8699 = vmatmul.mubr.msk.f32.gmra.mxu0 %vm227_vm0, %v1641_v45 }
 0x165   : >> { %v1373_v2 = vpop.permute.xlu0 %1372  ;;  %v1116_v50 = vpop.permute.xlu1 %1115  ;;  %2164 = vmatmul.mubr.f32.gmra.mxu1 %v1203_v32  ;;  %8701 = vmatprep.mubr.msk.f32.mxu0 %vm227_vm0, %v1646_v3  ;;  %v1716_v32 = vld [vmem:[#allocation4 + $0x430] sm:$0xff]  ;;  %v1276_v3 = vld [vmem:[#allocation2 + $0x127] sm:$0xff] }
 0x166   : >> { %v1461_v30 = vsel %vm227_vm0, %v1269_v18, %v1373_v2  ;;  %v1204_v7 = vsel %vm227_vm0, %v1012_v35, %v1116_v50  ;;  %v1019_v18 = vld [vmem:[#allocation2 + $0x108] sm:$0xff]  ;;  %v1721_v50 = vld [vmem:[#allocation4 + $0x458] sm:$0xff] }
 0x167   : >> { %2168 = vmatprep.mubr.f32.mxu1 %v1461_v30 }
 0x168   : >> { %8702 = vmatmul.mubr.msk.f32.gmra.mxu0 %vm227_vm0, %v1651_v51 }
 0x169   : >> { %v1375_v62 = vpop.permute.xlu0 %1374  ;;  %v1118_v49 = vpop.permute.xlu1 %1117  ;;  %2169 = vmatmul.mubr.f32.gmra.mxu1 %v1204_v7  ;;  %8704 = vmatprep.mubr.msk.f32.mxu0 %vm227_vm0, %v1656_v24  ;;  %v1726_v7 = vld [vmem:[#allocation4 + $0x480] sm:$0xff]  ;;  %v1277_v24 = vld [vmem:[#allocation2 + $0x12f] sm:$0xff] }
 0x16a   : >> { %v1462_v1 = vsel %vm227_vm0, %v1270_v47, %v1375_v62  ;;  %v1205_v10 = vsel %vm227_vm0, %v1013_v13, %v1118_v49  ;;  %v1020_v47 = vld [vmem:[#allocation2 + $0x110] sm:$0xff]  ;;  %v1731_v49 = vld [vmem:[#allocation4 + $0x4a8] sm:$0xff] }
 0x16b   : >> { %2173 = vmatprep.mubr.f32.mxu1 %v1462_v1 }
 0x16c   : >> { %8705 = vmatmul.mubr.msk.f32.gmra.mxu0 %vm227_vm0, %v1661_v0 }
 0x16d   : >> { %v1377_v61 = vpop.permute.xlu0 %1376  ;;  %v1120_v19 = vpop.permute.xlu1 %1119  ;;  %2174 = vmatmul.mubr.f32.gmra.mxu1 %v1205_v10  ;;  %8707 = vmatprep.mubr.msk.f32.mxu0 %vm227_vm0, %v1666_v38  ;;  %v1278_v10 = vld [vmem:[#allocation2 + $0x147] sm:$0xff] }
 0x16e   : >> { %v1463_v14 = vsel %vm227_vm0, %v1271_v29, %v1377_v61  ;;  %v1206_v36 = vsel %vm227_vm0, %v1014_v21, %v1120_v19  ;;  %v1021_v38 = vld [vmem:[#allocation2 + $0x128] sm:$0xff] }
 0x16f   : >> { %2178 = vmatprep.mubr.f32.mxu1 %v1463_v14  ;;  %v1022_v14 = vld [vmem:[#allocation2 + $0x130] sm:$0xff] }
 0x170   : >> { %8708 = vmatmul.mubr.msk.f32.gmra.mxu0 %vm227_vm0, %v1671_v39  ;;  %v1279_v39 = vld [vmem:[#allocation2 + $0x14f] sm:$0xff] }
 0x171   : >> { %v1379_v4 = vpop.permute.xlu0 %1378  ;;  %v1122_v26 = vpop.permute.xlu1 %1121  ;;  %2179 = vmatmul.mubr.f32.gmra.mxu1 %v1206_v36  ;;  %8710 = vmatprep.mubr.msk.f32.mxu0 %vm227_vm0, %v1676_v52 }
 0x172   : >> { %v1464_v27 = vsel %vm227_vm0, %v1272_v53, %v1379_v4  ;;  %v1207_v44 = vsel %vm227_vm0, %v1015_v12, %v1122_v26  ;;  %v1280_v4 = vld [vmem:[#allocation2 + $0x167] sm:$0xff] }
 0x173   : >> { %2183 = vmatprep.mubr.f32.mxu1 %v1464_v27  ;;  %v1023_v26 = vld [vmem:[#allocation2 + $0x148] sm:$0xff] }
 0x174   : >> { %8711 = vmatmul.mubr.msk.f32.gmra.mxu0 %vm227_vm0, %v1681_v17 }
 0x175   : >> { %v1381_v55 = vpop.permute.xlu0 %1380  ;;  %v1124_v48 = vpop.permute.xlu1 %1123  ;;  %2184 = vmatmul.mubr.f32.gmra.mxu1 %v1207_v44  ;;  %8713 = vmatprep.mubr.msk.f32.mxu0 %vm227_vm0, %v1686_v9 }
 0x176   : >> { %v1465_v46 = vsel %vm227_vm0, %v1273_v56, %v1381_v55  ;;  %v1208_v58 = vsel %vm227_vm0, %v1016_v8, %v1124_v48  ;;  %v1281_v56 = vld [vmem:[#allocation2 + $0x16f] sm:$0xff] }
 0x177   : >> { %2188 = vmatprep.mubr.f32.mxu1 %v1465_v46  ;;  %v1024_v8 = vld [vmem:[#allocation2 + $0x150] sm:$0xff] }
 0x178   : >> { %8714 = vmatmul.mubr.msk.f32.gmra.mxu0 %vm227_vm0, %v1691_v40 }
 0x179   : >> { %v1383_v57 = vpop.permute.xlu0 %1382  ;;  %v1126_v11 = vpop.permute.xlu1 %1125  ;;  %2189 = vmatmul.mubr.f32.gmra.mxu1 %v1208_v58  ;;  %8716 = vmatprep.mubr.msk.f32.mxu0 %vm227_vm0, %v1696_v41 }
 0x17a   : >> { %v1466_v33 = vsel %vm227_vm0, %v1274_v28, %v1383_v57  ;;  %v1209_v16 = vsel %vm227_vm0, %v1017_v59, %v1126_v11  ;;  %v1282_v28 = vld [vmem:[#allocation2 + $0x187] sm:$0xff] }
 0x17b   : >> { %2193 = vmatprep.mubr.f32.mxu1 %v1466_v33  ;;  %v1025_v59 = vld [vmem:[#allocation2 + $0x168] sm:$0xff] }
 0x17c   : >> { %8717 = vmatmul.mubr.msk.f32.gmra.mxu0 %vm227_vm0, %v1701_v34  ;;  %v2692_v57 = vld [vmem:[#allocation3 + $0x8] sm:$0xff] }
 0x17d   : >> { %v1385_v43 = vpop.permute.xlu0 %1384  ;;  %v1128_v25 = vpop.permute.xlu1 %1127  ;;  %2194 = vmatmul.mubr.f32.gmra.mxu1 %v1209_v16  ;;  %8719 = vmatprep.mubr.msk.f32.mxu0 %vm227_vm0, %v1706_v22 }
 0x17e   : >> { %v1467_v45 = vsel %vm227_vm0, %v1275_v63, %v1385_v43  ;;  %v1210_v54 = vsel %vm227_vm0, %v1018_v15, %v1128_v25  ;;  %2756 = vrot.lane.b32.xlu1 %v2692_v57, %s8925_s6  ;;  %v1283_v15 = vld [vmem:[#allocation2 + $0x18f] sm:$0xff] }
 0x17f   : >> { %2198 = vmatprep.mubr.f32.mxu1 %v1467_v45  ;;  %v1026_v43 = vld [vmem:[#allocation2 + $0x170] sm:$0xff] }
 0x180   : >> { %8720 = vmatmul.mubr.msk.f32.gmra.mxu0 %vm227_vm0, %v1711_v42  ;;  %v2693_v25 = vld [vmem:[#allocation3 + $0x10] sm:$0xff] }
 0x181   : >> { %v1387_v35 = vpop.permute.xlu0 %1386  ;;  %v1130_v2 = vpop.permute.xlu1 %1129  ;;  %2199 = vmatmul.mubr.f32.gmra.mxu1 %v1210_v54  ;;  %8722 = vmatprep.mubr.msk.f32.mxu0 %vm227_vm0, %v1716_v32 }
 0x182   : >> { %v1468_v51 = vsel %vm227_vm0, %v1276_v3, %v1387_v35  ;;  %v1211_v30 = vsel %vm227_vm0, %v1019_v18, %v1130_v2  ;;  %2758 = vrot.lane.b32.xlu1 %v2693_v25, %s8925_s6  ;;  %v1284_v35 = vld [vmem:[#allocation2 + $0x1a7] sm:$0xff]  ;;  %v1291_v25 = vld [vmem:[#allocation2 + $0x20f] sm:$0xff] }
 0x183   : >> { %2203 = vmatprep.mubr.f32.mxu1 %v1468_v51  ;;  %v1027_v2 = vld [vmem:[#allocation2 + $0x188] sm:$0xff] }
 0x184   : >> { %8723 = vmatmul.mubr.msk.f32.gmra.mxu0 %vm227_vm0, %v1721_v50 }
 0x185   : >> { %v1389_v13 = vpop.permute.xlu0 %1388  ;;  %v1132_v62 = vpop.permute.xlu1 %1131  ;;  %2204 = vmatmul.mubr.f32.gmra.mxu1 %v1211_v30  ;;  %8725 = vmatprep.mubr.msk.f32.mxu0 %vm227_vm0, %v1726_v7 }
 0x186   : >> { %v1469_v0 = vsel %vm227_vm0, %v1277_v24, %v1389_v13  ;;  %v1212_v1 = vsel %vm227_vm0, %v1020_v47, %v1132_v62  ;;  %v1285_v13 = vld [vmem:[#allocation2 + $0x1af] sm:$0xff] }
 0x187   : >> { %2208 = vmatprep.mubr.f32.mxu1 %v1469_v0  ;;  %v1028_v62 = vld [vmem:[#allocation2 + $0x190] sm:$0xff] }
 0x188   : >> { %8726 = vmatmul.mubr.msk.f32.gmra.mxu0 %vm227_vm0, %v1731_v49 }
 0x189   : >> { %v1391_v29 = vpop.permute.xlu0 %1390  ;;  %v1134_v21 = vpop.permute.xlu1 %1133  ;;  %2209 = vmatmul.mubr.f32.gmra.mxu1 %v1212_v1  ;;  %8728 = vmatprep.mubr.msk.f32.mxu0 %vm227_vm0, %v9838_v37 }
 0x18a   : >> { %v1470_v61 = vsel %vm227_vm0, %v1278_v10, %v1391_v29  ;;  %v1213_v19 = vsel %vm227_vm0, %v1021_v38, %v1134_v21  ;;  %v1029_v21 = vld [vmem:[#allocation2 + $0x1a8] sm:$0xff] }
 0x18b   : >> { %2213 = vmatprep.mubr.f32.mxu1 %v1470_v61 }
 0x18c   : >> { %8729 = vmatmul.mubr.msk.f32.gmra.mxu0 %vm227_vm0, %v9841_v6 }
 0x18d   : >> { %v1393_v36 = vpop.permute.xlu0 %1392  ;;  %v1136_v52 = vpop.permute.xlu1 %1135  ;;  %2214 = vmatmul.mubr.f32.gmra.mxu1 %v1213_v19 }
 0x18e   : >> { %v1471_v53 = vsel %vm227_vm0, %v1279_v39, %v1393_v36  ;;  %v1214_v12 = vsel %vm227_vm0, %v1022_v14, %v1136_v52 }
 0x18f   : >> { %2218 = vmatprep.mubr.f32.mxu1 %v1471_v53  ;;  %v1030_v53 = vld [vmem:[#allocation2 + $0x1b0] sm:$0xff] }
 0x190   : >> { %v9931_v37 = vpop.f32.mrf.mxu0 }
 0x191   : >> { %v1395_v17 = vpop.permute.xlu0 %1394  ;;  %v1138_v27 = vpop.permute.xlu1 %1137  ;;  %2219 = vmatmul.mubr.f32.gmra.mxu1 %v1214_v12 }
 0x192   : >> { %v1472_v44 = vsel %vm227_vm0, %v1280_v4, %v1395_v17  ;;  %v1215_v9 = vsel %vm227_vm0, %v1023_v26, %v1138_v27  ;;  %v1912_v6 = vpop.f32.mrf.mxu0 }
 0x193   : >> { %2223 = vmatprep.mubr.f32.mxu1 %v1472_v44 }
 0x194   : >> { %v9935_v55 = vpop.f32.mrf.mxu0 }
 0x195   : >> { %v1397_v48 = vpop.permute.xlu0 %1396  ;;  %v1140_v40 = vpop.permute.xlu1 %1139  ;;  %2224 = vmatmul.mubr.f32.gmra.mxu1 %v1215_v9  ;;  %v1031_v9 = vld [vmem:[#allocation2 + $0x1c8] sm:$0xff] }
 0x196   : >> { %v1473_v46 = vsel %vm227_vm0, %v1281_v56, %v1397_v48  ;;  %v1216_v58 = vsel %vm227_vm0, %v1024_v8, %v1140_v40  ;;  %v1917_v41 = vpop.f32.mrf.mxu0 }
 0x197   : >> { %2228 = vmatprep.mubr.f32.mxu1 %v1473_v46  ;;  %v1032_v46 = vld [vmem:[#allocation2 + $0x1d0] sm:$0xff] }
 0x198   : >> { %v9939_v11 = vpop.f32.mrf.mxu0 }
 0x199   : >> { %v1399_v34 = vpop.permute.xlu0 %1398  ;;  %v1142_v33 = vpop.permute.xlu1 %1141  ;;  %2229 = vmatmul.mubr.f32.gmra.mxu1 %v1216_v58 }
 0x19a   : >> { %v1474_v16 = vsel %vm227_vm0, %v1282_v28, %v1399_v34  ;;  %v1217_v22 = vsel %vm227_vm0, %v1025_v59, %v1142_v33  ;;  %v1922_v63 = vpop.f32.mrf.mxu0  ;;  %v1290_v34 = vld [vmem:[#allocation2 + $0x207] sm:$0xff] }
 0x19b   : >> { %2233 = vmatprep.mubr.f32.mxu1 %v1474_v16  ;;  %v1033_v33 = vld [vmem:[#allocation2 + $0x1e8] sm:$0xff] }
 0x19c   : >> { %v9944_v42 = vpop.f32.mrf.mxu0 }
 0x19d   : >> { %v1401_v45 = vpop.permute.xlu0 %1400  ;;  %v1144_v54 = vpop.permute.xlu1 %1143  ;;  %2234 = vmatmul.mubr.f32.gmra.mxu1 %v1217_v22 }
 0x19e   : >> { %v1475_v32 = vsel %vm227_vm0, %v1283_v15, %v1401_v45  ;;  %v1218_v3 = vsel %vm227_vm0, %v1026_v43, %v1144_v54  ;;  %v1927_v18 = vpop.f32.mrf.mxu0  ;;  %v1034_v45 = vld [vmem:[#allocation2 + $0x1f0] sm:$0xff] }
 0x19f   : >> { %2238 = vmatprep.mubr.f32.mxu1 %v1475_v32 }
 0x1a0   : >> { %v9949_v50 = vpop.f32.mrf.mxu0 }
 0x1a1   : >> { %v1403_v51 = vpop.permute.xlu0 %1402  ;;  %v1146_v30 = vpop.permute.xlu1 %1145  ;;  %2239 = vmatmul.mubr.f32.gmra.mxu1 %v1218_v3 }
 0x1a2   : >> { %v1476_v7 = vsel %vm227_vm0, %v1284_v35, %v1403_v51  ;;  %v1219_v24 = vsel %vm227_vm0, %v1027_v2, %v1146_v30  ;;  %v1932_v47 = vpop.f32.mrf.mxu0  ;;  %v1292_v2 = vld [vmem:[#allocation2 + $0x227] sm:$0xff] }
 0x1a3   : >> { %2243 = vmatprep.mubr.f32.mxu1 %v1476_v7  ;;  %v1035_v51 = vld [vmem:[#allocation2 + $0x208] sm:$0xff] }
 0x1a4   : >> { %v9953_v49 = vpop.f32.mrf.mxu0 }
 0x1a5   : >> { %v1405_v0 = vpop.permute.xlu0 %1404  ;;  %v1148_v1 = vpop.permute.xlu1 %1147  ;;  %2244 = vmatmul.mubr.f32.gmra.mxu1 %v1219_v24 }
 0x1a6   : >> { %v1477_v10 = vsel %vm227_vm0, %v1285_v13, %v1405_v0  ;;  %v1220_v38 = vsel %vm227_vm0, %v1028_v62, %v1148_v1  ;;  %v1937_v29 = vpop.f32.mrf.mxu0  ;;  %v1293_v0 = vld [vmem:[#allocation2 + $0x22f] sm:$0xff] }
 0x1a7   : >> { %2248 = vmatprep.mubr.f32.mxu1 %v1477_v10  ;;  %v1036_v1 = vld [vmem:[#allocation2 + $0x210] sm:$0xff] }
 0x1a8   : >> { %v9957_v61 = vpop.f32.mrf.mxu0 }
 0x1a9   : >> { %v1407_v19 = vpop.permute.xlu0 %1406  ;;  %v1150_v39 = vpop.permute.xlu1 %1149  ;;  %2249 = vmatmul.mubr.f32.gmra.mxu1 %v1220_v38 }
 0x1aa   : >> { %v1478_v14 = vsel %vm227_vm0, %v9820_v23, %v1407_v19  ;;  %v1221_v36 = vsel %vm227_vm0, %v1029_v21, %v1150_v39  ;;  %v1942_v52 = vpop.f32.mrf.mxu0 }
 0x1ab   : >> { %2253 = vmatprep.mubr.f32.mxu1 %v1478_v14 }
 0x1ac   : >> { %v9962_v12 = vpop.f32.mrf.mxu0 }
 0x1ad   : >> { %v1409_v4 = vpop.permute.xlu0 %1408  ;;  %v1152_v26 = vpop.permute.xlu1 %1151  ;;  %2254 = vmatmul.mubr.f32.gmra.mxu1 %v1221_v36 }
 0x1ae   : >> { %v1479_v17 = vsel %vm227_vm0, %v9829_v5, %v1409_v4  ;;  %v1222_v27 = vsel %vm227_vm0, %v1030_v53, %v1152_v26  ;;  %v1947_v44 = vpop.f32.mrf.mxu0 }
 0x1af   : >> { %2258 = vmatprep.mubr.f32.mxu1 %v1479_v17 }
 0x1b0   : >> { %v9967_v6 = vpop.f32.mrf.mxu0 }
 0x1b1   : >> { %v1411_v23 = vpop.permute.xlu0 %1410  ;;  %v1154_v56 = vpop.permute.xlu1 %1153  ;;  %2259 = vmatmul.mubr.f32.gmra.mxu1 %v1222_v27  ;;  %v8327_v27 = vld [vmem:[%s9301_s10 + $0x2b8] sm:$0xff] }
 0x1b2   : >> { %v1480_v8 = vsel %vm227_vm0, %v9836_v20, %v1411_v23  ;;  %v1223_v48 = vsel %vm227_vm0, %v1031_v9, %v1154_v56  ;;  %v1952_v40 = vpop.f32.mrf.mxu0  ;;  %4012 = vmatpush1.msra.mxu1 %v8327_v27  ;;  %v8326_v9 = vld [vmem:[%s9301_s10 + $0x2b0] sm:$0xff]  ;;  %v8325_v56 = vld [vmem:[%s9301_s10 + $0x2a8] sm:$0xff] }
 0x1b3   : >> { %2263 = vmatprep.mubr.f32.mxu1 %v1480_v8  ;;  %4013 = vmatprep.subr.mxu1 %v13272_v31 }
 0x1b4   : >> { %v9972_v58 = vpop.f32.mrf.mxu0  ;;  %4014 = vmatpush1.msra.mxu1 %v8326_v9  ;;  %v8338_v9 = vld [vmem:[%s9301_s10 + $0x310] sm:$0xff] }
 0x1b5   : >> { %v1413_v5 = vpop.permute.xlu0 %1412  ;;  %v1156_v41 = vpop.permute.xlu1 %1155  ;;  %2264 = vmatmul.mubr.f32.gmra.mxu1 %v1223_v48  ;;  %4015 = vmatprep.subr.mxu1 %v13272_v31  ;;  %v8324_v48 = vld [vmem:[%s9301_s10 + $0x2a0] sm:$0xff] }
 0x1b6   : >> { %v1481_v28 = vsel %vm227_vm0, %v9849_v60, %v1413_v5  ;;  %v1224_v59 = vsel %vm227_vm0, %v1032_v46, %v1156_v41  ;;  %v1957_v57 = vpop.f32.mrf.mxu0  ;;  %4016 = vmatpush1.msra.mxu1 %v8325_v56  ;;  %v8323_v46 = vld [vmem:[%s9301_s10 + $0x298] sm:$0xff]  ;;  %v8322_v41 = vld [vmem:[%s9301_s10 + $0x290] sm:$0xff] }
 0x1b7   : >> { %2268 = vmatprep.mubr.f32.mxu1 %v1481_v28  ;;  %4017 = vmatprep.subr.mxu1 %v13272_v31 }
 0x1b8   : >> { %v9977_v20 = vpop.f32.mrf.mxu0  ;;  %4018 = vmatpush1.msra.mxu1 %v8324_v48  ;;  %v8337_v48 = vld [vmem:[%s9301_s10 + $0x308] sm:$0xff] }
 0x1b9   : >> { %v1415_v16 = vpop.permute.xlu0 %1414  ;;  %v1158_v22 = vpop.permute.xlu1 %1157  ;;  %2269 = vmatmul.mubr.f32.gmra.mxu1 %v1224_v59  ;;  %4019 = vmatprep.subr.mxu1 %v13272_v31  ;;  %v8321_v59 = vld [vmem:[%s9301_s10 + $0x288] sm:$0xff] }
 0x1ba   : >> { %v1482_v63 = vsel %vm227_vm0, %v1290_v34, %v1415_v16  ;;  %v1225_v15 = vsel %vm227_vm0, %v1033_v33, %v1158_v22  ;;  %v1962_v43 = vpop.f32.mrf.mxu0  ;;  %4020 = vmatpush1.msra.mxu1 %v8323_v46  ;;  %v8320_v34 = vld [vmem:[%s9301_s10 + $0x280] sm:$0xff]  ;;  %v8319_v16 = vld [vmem:[%s9301_s10 + $0x278] sm:$0xff] }
 0x1bb   : >> { %2273 = vmatprep.mubr.f32.mxu1 %v1482_v63  ;;  %4021 = vmatprep.subr.mxu1 %v13272_v31  ;;  %v8318_v63 = vld [vmem:[%s9301_s10 + $0x270] sm:$0xff]  ;;  %v8317_v43 = vld [vmem:[%s9301_s10 + $0x268] sm:$0xff] }
 0x1bc   : >> { %v9981_v60 = vpop.f32.mrf.mxu0  ;;  %4022 = vmatpush1.msra.mxu1 %v8322_v41  ;;  %v8336_v41 = vld [vmem:[%s9301_s10 + $0x300] sm:$0xff] }
 0x1bd   : >> { %v1417_v54 = vpop.permute.xlu0 %1416  ;;  %v1160_v32 = vpop.permute.xlu1 %1159  ;;  %2274 = vmatmul.mubr.f32.gmra.mxu1 %v1225_v15  ;;  %4023 = vmatprep.subr.mxu1 %v13272_v31 }
 0x1be   : >> { %v1483_v3 = vsel %vm227_vm0, %v1291_v25, %v1417_v54  ;;  %v1226_v18 = vsel %vm227_vm0, %v1034_v45, %v1160_v32  ;;  %v1967_v35 = vpop.f32.mrf.mxu0  ;;  %4024 = vmatpush1.msra.mxu1 %v8321_v59  ;;  %v8316_v45 = vld [vmem:[%s9301_s10 + $0x260] sm:$0xff]  ;;  %v8315_v32 = vld [vmem:[%s9301_s10 + $0x258] sm:$0xff] }
 0x1bf   : >> { %2278 = vmatprep.mubr.f32.mxu1 %v1483_v3  ;;  %4025 = vmatprep.subr.mxu1 %v13272_v31 }
 0x1c0   : >> { %v9985_v30 = vpop.f32.mrf.mxu0  ;;  %4026 = vmatpush1.msra.mxu1 %v8320_v34  ;;  %v8335_v34 = vld [vmem:[%s9301_s10 + $0x2f8] sm:$0xff] }
 0x1c1   : >> { %v1419_v7 = vpop.permute.xlu0 %1418  ;;  %v1162_v24 = vpop.permute.xlu1 %1161  ;;  %2279 = vmatmul.mubr.f32.gmra.mxu1 %v1226_v18  ;;  %4027 = vmatprep.subr.mxu1 %v13272_v31  ;;  %v8314_v18 = vld [vmem:[%s9301_s10 + $0x250] sm:$0xff] }
 0x1c2   : >> { %v1484_v47 = vsel %vm227_vm0, %v1292_v2, %v1419_v7  ;;  %v1227_v13 = vsel %vm227_vm0, %v1035_v51, %v1162_v24  ;;  %v1972_v62 = vpop.f32.mrf.mxu0  ;;  %4028 = vmatpush1.msra.mxu1 %v8319_v16  ;;  %v8313_v2 = vld [vmem:[%s9301_s10 + $0x248] sm:$0xff]  ;;  %v8312_v7 = vld [vmem:[%s9301_s10 + $0x240] sm:$0xff] }
 0x1c3   : >> { %2283 = vmatprep.mubr.f32.mxu1 %v1484_v47  ;;  %4029 = vmatprep.subr.mxu1 %v13272_v31  ;;  %v8343_v47 = vld [vmem:[%s9301_s10 + $0x338] sm:$0xff] }
 0x1c4   : >> { %v9989_v10 = vpop.f32.mrf.mxu0  ;;  %4030 = vmatpush1.msra.mxu1 %v8318_v63  ;;  %v8359_v62 = vld [vmem:[%s9301_s10 + $0x3b8] sm:$0xff]  ;;  %v8334_v63 = vld [vmem:[%s9301_s10 + $0x2f0] sm:$0xff] }
 0x1c5   : >> { %v1421_v38 = vpop.permute.xlu0 %1420  ;;  %v1164_v29 = vpop.permute.xlu1 %1163  ;;  %2284 = vmatmul.mubr.f32.gmra.mxu1 %v1227_v13  ;;  %4031 = vmatprep.subr.mxu1 %v13272_v31 }
 0x1c6   : >> { %v1485_v21 = vsel %vm227_vm0, %v1293_v0, %v1421_v38  ;;  %v1228_v19 = vsel %vm227_vm0, %v1036_v1, %v1164_v29  ;;  %v1977_v39 = vpop.f32.mrf.mxu0  ;;  %4032 = vmatpush1.msra.mxu1 %v8317_v43  ;;  %4237 = vmatpush1.msra.mxu0 %v8359_v62  ;;  %v8342_v0 = vld [vmem:[%s9301_s10 + $0x330] sm:$0xff]  ;;  %v8341_v29 = vld [vmem:[%s9301_s10 + $0x328] sm:$0xff] }
 0x1c7   : >> { %2288 = vmatprep.mubr.f32.mxu1 %v1485_v21  ;;  %4033 = vmatprep.subr.mxu1 %v13272_v31  ;;  %v8358_v38 = vld [vmem:[%s9301_s10 + $0x3b0] sm:$0xff]  ;;  %v8340_v39 = vld [vmem:[%s9301_s10 + $0x320] sm:$0xff] }
 0x1c8   : >> { %v9993_v14 = vpop.f32.mrf.mxu0  ;;  %4034 = vmatpush1.msra.mxu1 %v8316_v45  ;;  %4238 = vmatprep.subr.mxu0 %v13272_v31  ;;  %v8333_v45 = vld [vmem:[%s9301_s10 + $0x2e8] sm:$0xff] }
 0x1c9   : >> { %2289 = vmatmul.mubr.f32.gmra.mxu1 %v1228_v19  ;;  %4035 = vmatprep.subr.mxu1 %v13272_v31  ;;  %v8357_v19 = vld [vmem:[%s9301_s10 + $0x3a8] sm:$0xff] }
 0x1ca   : >> { %v1982_v36 = vpop.f32.mrf.mxu0  ;;  %4036 = vmatpush1.msra.mxu1 %v8315_v32  ;;  %4239 = vmatpush1.msra.mxu0 %v8358_v38 }
 0x1cb   : >> { %4037 = vmatprep.subr.mxu1 %v13272_v31  ;;  %4240 = vmatprep.subr.mxu0 %v13272_v31 }
 0x1cc   : >> { %v9995_v52 = vpop.f32.mrf.mxu0  ;;  %4038 = vmatpush1.msra.mxu1 %v8314_v18  ;;  %4241 = vmatpush1.msra.mxu0 %v8357_v19  ;;  %v8332_v18 = vld [vmem:[%s9301_s10 + $0x2e0] sm:$0xff] }
 0x1cd   : >> { %4039 = vmatprep.subr.mxu1 %v13272_v31  ;;  %4242 = vmatprep.subr.mxu0 %v13272_v31 }
 0x1ce   : >> { %v1987_v53 = vpop.f32.mrf.mxu0  ;;  %4040 = vmatpush1.msra.mxu1 %v8313_v2  ;;  %v10110_v2 = vld [vmem:[%s10101_s14] ss:$0 sm:$0xff] }
 0x1cf   : >> { %4041 = vmatprep.subr.mxu1 %v13272_v31  ;;  %v8356_v53 = vld [vmem:[%s9301_s10 + $0x3a0] sm:$0xff]  ;;  %v1911_v38 = vadd.f32 %v10110_v2, %v9931_v37  ;;  %v1916_v19 = vadd.f32 %v10110_v2, %v9935_v55  ;;  %v8329_v37 = vld [vmem:[%s9301_s10 + $0x2c8] sm:$0xff] }
 0x1d0   : >> { %v9997_v4 = vpop.f32.mrf.mxu0  ;;  %4042 = vmatpush1.msra.mxu1 %v8312_v7  ;;  %4243 = vmatpush1.msra.mxu0 %v8356_v53  ;;  %v8348_v7 = vld [vmem:[%s9301_s10 + $0x360] sm:$0xff]  ;;  %v8346_v53 = vld [vmem:[%s9301_s10 + $0x350] sm:$0xff]  ;;  %v8345_v55 = vld [vmem:[%s9301_s10 + $0x348] sm:$0xff] }
 0x1d1   : >> { %4043 = vmatprep.subr.mxu1 %v13272_v31  ;;  %4244 = vmatprep.subr.mxu0 %v13272_v31 }
 0x1d2   : >> { %v1992_v26 = vpop.f32.mrf.mxu0  ;;  %4044 = vmatpush2.msra.mxu1 %v8343_v47 }
 0x1d3   : >> { %4045 = vmatprep.subr.mxu1 %v13272_v31  ;;  %v8339_v26 = vld [vmem:[%s9301_s10 + $0x318] sm:$0xff] }
 0x1d4   : >> { %v9999_v17 = vpop.f32.mrf.mxu0  ;;  %4046 = vmatpush2.msra.mxu1 %v8342_v0  ;;  %v8347_v0 = vld [vmem:[%s9301_s10 + $0x358] sm:$0xff] }
 0x1d5   : >> { %4047 = vmatprep.subr.mxu1 %v13272_v31 }
 0x1d6   : >> { %v1997_v44 = vpop.f32.mrf.mxu0  ;;  %4048 = vmatpush2.msra.mxu1 %v8341_v29 }
 0x1d7   : >> { %4049 = vmatprep.subr.mxu1 %v13272_v31  ;;  %v8355_v44 = vld [vmem:[%s9301_s10 + $0x398] sm:$0xff] }
 0x1d8   : >> { %v10004_v23 = vpop.f32.mrf.mxu0  ;;  %4050 = vmatpush2.msra.mxu1 %v8340_v39  ;;  %4245 = vmatpush1.msra.mxu0 %v8355_v44 }
 0x1d9   : >> { %4051 = vmatprep.subr.mxu1 %v13272_v31  ;;  %4246 = vmatprep.subr.mxu0 %v13272_v31 }
 0x1da   : >> { %v2002_v8 = vpop.f32.mrf.mxu0  ;;  %4052 = vmatpush2.msra.mxu1 %v8339_v26 }
 0x1db   : >> { %4053 = vmatprep.subr.mxu1 %v13272_v31  ;;  %v8354_v8 = vld [vmem:[%s9301_s10 + $0x390] sm:$0xff] }
 0x1dc   : >> { %v10010_v40 = vpop.f32.mrf.mxu0  ;;  %4054 = vmatpush2.msra.mxu1 %v8338_v9  ;;  %4247 = vmatpush1.msra.mxu0 %v8354_v8 }
 0x1dd   : >> { %4055 = vmatprep.subr.mxu1 %v13272_v31  ;;  %4248 = vmatprep.subr.mxu0 %v13272_v31 }
 0x1de   : >> { %v2007_v5 = vpop.f32.mrf.mxu0  ;;  %4056 = vmatpush2.msra.mxu1 %v8337_v48 }
 0x1df   : >> { %v8353_v5 = vld [vmem:[%s9301_s10 + $0x388] sm:$0xff]  ;;  %4057 = vmatprep.subr.mxu1 %v13272_v31 }
 0x1e0   : >> { %v10016_v28 = vpop.f32.mrf.mxu0  ;;  %4249 = vmatpush1.msra.mxu0 %v8353_v5  ;;  %4058 = vmatpush2.msra.mxu1 %v8336_v41  ;;  %v2660_v5 = vld [vmem:[#allocation3 + $0x7] sm:$0xff] }
 0x1e1   : >> { %4250 = vmatprep.subr.mxu0 %v13272_v31  ;;  %4059 = vmatprep.subr.mxu1 %v13272_v31  ;;  %v8328_v41 = vld [vmem:[%s9301_s10 + $0x2c0] sm:$0xff] }
 0x1e2   : >> { %v2012_v57 = vpop.f32.mrf.mxu0  ;;  %4060 = vmatpush2.msra.mxu1 %v8335_v34 }
 0x1e3   : >> { %v8352_v57 = vld [vmem:[%s9301_s10 + $0x380] sm:$0xff]  ;;  %4061 = vmatprep.subr.mxu1 %v13272_v31 }
 0x1e4   : >> { %v10022_v33 = vpop.f32.mrf.mxu0  ;;  %4251 = vmatpush1.msra.mxu0 %v8352_v57  ;;  %4062 = vmatpush2.msra.mxu1 %v8334_v63  ;;  %v1921_v57 = vadd.f32 %v10110_v2, %v9939_v11  ;;  %v8344_v63 = vld [vmem:[%s9301_s10 + $0x340] sm:$0xff] }
 0x1e5   : >> { %4252 = vmatprep.subr.mxu0 %v13272_v31  ;;  %4063 = vmatprep.subr.mxu1 %v13272_v31 }
 0x1e6   : >> { %v2017_v22 = vpop.f32.mrf.mxu0  ;;  %4064 = vmatpush2.msra.mxu1 %v8333_v45 }
 0x1e7   : >> { %v8351_v22 = vld [vmem:[%s9301_s10 + $0x378] sm:$0xff]  ;;  %4065 = vmatprep.subr.mxu1 %v13272_v31 }
 0x1e8   : >> { %v10028_v15 = vpop.f32.mrf.mxu0  ;;  %4253 = vmatpush1.msra.mxu0 %v8351_v22  ;;  %4066 = vmatpush2.msra.mxu1 %v8332_v18 }
 0x1e9   : >> { %4254 = vmatprep.subr.mxu0 %v13272_v31  ;;  %4067 = vmatprep.subr.mxu1 %v13272_v31 }
 0x1ea   : >> { %v2022_v25 = vpop.f32.mrf.mxu0 }
 0x1eb   : >> { %v8350_v25 = vld [vmem:[%s9301_s10 + $0x370] sm:$0xff] }
 0x1ec   : >> { %v10034_v54 = vpop.f32.mrf.mxu0  ;;  %4255 = vmatpush1.msra.mxu0 %v8350_v25 }
 0x1ed   : >> { %4256 = vmatprep.subr.mxu0 %v13272_v31 }
 0x1ee   : >> { %v2027_v3 = vpop.f32.mrf.mxu0 }
 0x1ef   : >> { %v8349_v3 = vld [vmem:[%s9301_s10 + $0x368] sm:$0xff] }
 0x1f0   : >> { %v10040_v35 = vpop.f32.mrf.mxu0  ;;  %4257 = vmatpush1.msra.mxu0 %v8349_v3  ;;  %v2757_v44 = vpop.permute.xlu1 %2756 }
 0x1f1   : >> { %4258 = vmatprep.subr.mxu0 %v13272_v31  ;;  %v10137_v22 = vsel %vm227_vm0, %v2660_v5, %v2757_v44 }
 0x1f2   : >> { %v2032_v51 = vpop.f32.mrf.mxu0  ;;  %4259 = vmatpush1.msra.mxu0 %v8348_v7  ;;  %v8375_v7 = vld [vmem:[%s9301_s10 + $0x438] sm:$0xff] }
 0x1f3   : >> { %4260 = vmatprep.subr.mxu0 %v13272_v31 }
 0x1f4   : >> { %v10046_v24 = vpop.f32.mrf.mxu0  ;;  %4261 = vmatpush1.msra.mxu0 %v8347_v0 }
 0x1f5   : >> { %4262 = vmatprep.subr.mxu0 %v13272_v31 }
 0x1f6   : >> { %v2037_v13 = vpop.f32.mrf.mxu0  ;;  %4263 = vmatpush1.msra.mxu0 %v8346_v53 }
 0x1f7   : >> { %v8331_v13 = vld [vmem:[%s9301_s10 + $0x2d8] sm:$0xff]  ;;  %4264 = vmatprep.subr.mxu0 %v13272_v31 }
 0x1f8   : >> { %v10053_v1 = vpop.f32.mrf.mxu0  ;;  %4068 = vmatpush2.msra.mxu1 %v8331_v13  ;;  %4265 = vmatpush1.msra.mxu0 %v8345_v55  ;;  %v2759_v13 = vpop.permute.xlu1 %2758 }
 0x1f9   : >> { %4069 = vmatprep.subr.mxu1 %v13272_v31  ;;  %4266 = vmatprep.subr.mxu0 %v13272_v31 }
 0x1fa   : >> { %v2042_v21 = vpop.f32.mrf.mxu0  ;;  %4267 = vmatpush1.msra.mxu0 %v8344_v63  ;;  %v8371_v63 = vld [vmem:[%s9301_s10 + $0x418] sm:$0xff] }
 0x1fb   : >> { %v8330_v21 = vld [vmem:[%s9301_s10 + $0x2d0] sm:$0xff]  ;;  %4268 = vmatprep.subr.mxu0 %v13272_v31 }
 0x1fc   : >> { %v10063_v36 = vpop.f32.mrf.mxu0  ;;  %4070 = vmatpush2.msra.mxu1 %v8330_v21  ;;  %4269 = vmatpush2.msra.mxu0 %v8375_v7  ;;  %v8369_v7 = vld [vmem:[%s9301_s10 + $0x408] sm:$0xff] }
 0x1fd   : >> { %4071 = vmatprep.subr.mxu1 %v13272_v31  ;;  %4270 = vmatprep.subr.mxu0 %v13272_v31 }
 0x1fe   : >> { %v2047_v27 = vpop.f32.mrf.mxu0  ;;  %4072 = vmatpush2.msra.mxu1 %v8329_v37 }
 0x1ff   : >> { %4073 = vmatprep.subr.mxu1 %v13272_v31 }
 0x200   : >> { %v10073_v56 = vpop.f32.mrf.mxu0  ;;  %4074 = vmatpush2.msra.mxu1 %v8328_v41 }
 0x202   : >> { %v2052_v46 = vpop.f32.mrf.mxu0 }
 0x204   : >> { %v10083_v59 = vpop.f32.mrf.mxu0 }
 0x206   : >> { %v2057_v16 = vpop.f32.mrf.mxu0 }
 0x208   : >> { %v10094_v43 = vpop.f32.mrf.mxu0 }
 0x20a   : >> { %v2062_v32 = vpop.f32.mrf.mxu0 }
 0x20c   : >> { %v10112_v51 = vpop.f32.mrf.mxu0 }
 0x20d   : >> { %v2135_v47 = vpop.f32.mrf.mxu1 }
 0x20e   : >> { %v2067_v62 = vpop.f32.mrf.mxu0  ;;  %v2136_v26 = vadd.f32 %v2135_v47, %v1911_v38  ;;  %v2661_v47 = vld [vmem:[#allocation3 + $0xf] sm:$0xff] }
 0x20f   : >> { %v2137_v29 = vpop.f32.mrf.mxu1  ;;  %v1926_v62 = vadd.f32 %v10110_v2, %v9944_v42  ;;  %v10148_v38 = vsel %vm227_vm0, %v2661_v47, %v2759_v13  ;;  %v1931_v42 = vadd.f32 %v10110_v2, %v9949_v50  ;;  %v1936_v50 = vadd.f32 %v10110_v2, %v9953_v49 }
 0x210   : >> { %v8685_v39 = vpop.f32.mrf.mxu0 }
 0x211   : >> { %v2140_v27 = vpop.f32.mrf.mxu1 }
 0x212   : >> { %v2141_v9 = vadd.f32 %v2140_v27, %v1916_v19  ;;  %v2360_v8 = vpop.f32.mrf.mxu0  ;;  %v8374_v19 = vld [vmem:[%s9301_s10 + $0x430] sm:$0xff]  ;;  %v8373_v27 = vld [vmem:[%s9301_s10 + $0x428] sm:$0xff] }
 0x213   : >> { %v2361_v48 = vadd.f32 %v2360_v8, %v2136_v26  ;;  %v2142_v46 = vpop.f32.mrf.mxu1  ;;  %4271 = vmatpush2.msra.mxu0 %v8374_v19  ;;  %v8372_v8 = vld [vmem:[%s9301_s10 + $0x420] sm:$0xff] }
 0x214   : >> { %v2366_v34 = vadd.f32 %v8685_v39, %v2141_v9  ;;  %v8688_v16 = vpop.f32.mrf.mxu0  ;;  %4272 = vmatprep.subr.mxu0 %v13272_v31 }
 0x215   : >> { %v2519_v25 = vmax.f32 %v2361_v48, 0.0  ;;  %v2145_v45 = vpop.f32.mrf.mxu1  ;;  %4273 = vmatpush2.msra.mxu0 %v8373_v27  ;;  %v1946_v27 = vadd.f32 %v10110_v2, %v9962_v12 }
 0x216   : >> { %v2520_v32 = vmax.f32 %v2366_v34, 0.0  ;;  %v2146_v3 = vadd.f32 %v2145_v45, %v1921_v57  ;;  %v2370_v18 = vpop.f32.mrf.mxu0  ;;  %4274 = vmatprep.subr.mxu0 %v13272_v31 }
 0x217   : >> { %2551 = vst.msk [vmem:[#allocation3 + $0x28] sm:$0xff] %vm227_vm0, %v2519_v25  ;;  %v2147_v11 = vpop.f32.mrf.mxu1  ;;  %4275 = vmatpush2.msra.mxu0 %v8372_v8  ;;  %v8370_v25 = vld [vmem:[%s9301_s10 + $0x410] sm:$0xff] }
 0x218   : >> { %2552 = vst.msk [vmem:[#allocation3 + $0x30] sm:$0xff] %vm227_vm0, %v2520_v32  ;;  %v2371_v0 = vadd.f32 %v2370_v18, %v2146_v3  ;;  %v8691_v21 = vpop.f32.mrf.mxu0  ;;  %4276 = vmatprep.subr.mxu0 %v13272_v31  ;;  %v1941_v11 = vadd.f32 %v10110_v2, %v9957_v61 }
 0x219   : >> { %v2150_v29 = vpop.f32.mrf.mxu1  ;;  %4277 = vmatpush2.msra.mxu0 %v8371_v63 }
 0x21a   : >> { %v2521_v39 = vmax.f32 %v2371_v0, 0.0  ;;  %v2151_v53 = vadd.f32 %v2150_v29, %v1926_v62  ;;  %v2380_v9 = vpop.f32.mrf.mxu0  ;;  %4278 = vmatprep.subr.mxu0 %v13272_v31  ;;  %v8368_v0 = vld [vmem:[%s9301_s10 + $0x400] sm:$0xff] }
 0x21b   : >> { %v2152_v26 = vpop.f32.mrf.mxu1  ;;  %4279 = vmatpush2.msra.mxu0 %v8370_v25 }
 0x21c   : >> { %2553 = vst.msk [vmem:[#allocation3 + $0x48] sm:$0xff] %vm227_vm0, %v2521_v39  ;;  %v2376_v44 = vadd.f32 %v8688_v16, %v2151_v53  ;;  %v8694_v16 = vpop.f32.mrf.mxu0  ;;  %4280 = vmatprep.subr.mxu0 %v13272_v31 }
 0x21d   : >> { %v2155_v37 = vpop.f32.mrf.mxu1  ;;  %4281 = vmatpush2.msra.mxu0 %v8369_v7 }
 0x21e   : >> { %v2522_v55 = vmax.f32 %v2376_v44, 0.0  ;;  %v2156_v48 = vadd.f32 %v2155_v37, %v1931_v42  ;;  %v2948_v46 = vld [vmem:[#allocation3 + $0x27] sm:$0xff]  ;;  %v2390_v62 = vpop.f32.mrf.mxu0  ;;  %4282 = vmatprep.subr.mxu0 %v13272_v31 }
 0x21f   : >> { %v2157_v5 = vpop.f32.mrf.mxu1  ;;  %3012 = vrot.lane.b32.xlu0 %v2948_v46, %s8925_s6  ;;  %v10160_v41 = vld [vmem:[#allocation3 + $0x30] sm:$0xff]  ;;  %4283 = vmatpush2.msra.mxu0 %v8368_v0 }
 0x220   : >> { %2554 = vst.msk [vmem:[#allocation3 + $0x50] sm:$0xff] %vm227_vm0, %v2522_v55  ;;  %v2381_v57 = vadd.f32 %v2380_v9, %v2156_v48  ;;  %2762 = vrot.lane.b32.xlu1 %v10160_v41, %s8925_s6  ;;  %v10170_v3 = vld [vmem:[#allocation3 + $0x2f] sm:$0xff]  ;;  %v8697_v37 = vpop.f32.mrf.mxu0  ;;  %4284 = vmatprep.subr.mxu0 %v13272_v31  ;;  %v8367_v9 = vld [vmem:[%s9301_s10 + $0x3f8] sm:$0xff] }
 0x221   : >> { %v2160_v34 = vpop.f32.mrf.mxu1  ;;  %v3205_v49 = vld [vmem:[#allocation3 + $0x31] sm:$0xff]  ;;  %4285 = vmatpush2.msra.mxu0 %v8367_v9  ;;  %v10200_v5 = vld [vmem:[#allocation3 + $0x29] sm:$0xff] }
 0x222   : >> { %v2523_v45 = vmax.f32 %v2381_v57, 0.0  ;;  %v2161_v32 = vadd.f32 %v2160_v34, %v1936_v50  ;;  %v8366_v48 = vld [vmem:[%s9301_s10 + $0x3f0] sm:$0xff]  ;;  %4286 = vmatprep.subr.mxu0 %v13272_v31  ;;  %v8365_v50 = vld [vmem:[%s9301_s10 + $0x3e8] sm:$0xff]  ;;  %v1951_v57 = vadd.f32 %v10110_v2, %v9967_v6  ;;  %v2400_v25 = vpop.f32.mrf.mxu0 }
 0x223   : >> { %v2162_v18 = vpop.f32.mrf.mxu1  ;;  %3014 = vrot.lane.b32.xlu0 %v10170_v3, %s8925_s6  ;;  %v2950_v39 = vld [vmem:[#allocation3 + $0x47] sm:$0xff]  ;;  %4287 = vmatpush2.msra.mxu0 %v8366_v48 }
 0x224   : >> { %2555 = vst.msk [vmem:[#allocation3 + $0x68] sm:$0xff] %vm227_vm0, %v2523_v45  ;;  %v2386_v47 = vadd.f32 %v8691_v21, %v2161_v32  ;;  %3270 = vrot.lane.b32.xlu1 %v3205_v49, %s8925_s6  ;;  %v2694_v21 = vld [vmem:[#allocation3 + $0x28] sm:$0xff]  ;;  %4288 = vmatprep.subr.mxu0 %v13272_v31  ;;  %v8364_v45 = vld [vmem:[%s9301_s10 + $0x3e0] sm:$0xff]  ;;  %v8700_v0 = vpop.f32.mrf.mxu0 }
 0x225   : >> { %v2165_v13 = vpop.f32.mrf.mxu1  ;;  %4289 = vmatpush2.msra.mxu0 %v8365_v50 }
 0x226   : >> { %v2524_v29 = vmax.f32 %v2386_v47, 0.0  ;;  %v2166_v19 = vadd.f32 %v2165_v13, %v1941_v11  ;;  %4290 = vmatprep.subr.mxu0 %v13272_v31  ;;  %v1956_v47 = vadd.f32 %v10110_v2, %v9972_v58 }
 0x227   : >> { %v10182_v53 = vld [vmem:[#allocation3 + $0x49] sm:$0xff]  ;;  %v10184_v26 = vld [vmem:[#allocation3 + $0x51] sm:$0xff]  ;;  %v2167_v61 = vpop.f32.mrf.mxu1  ;;  %3016 = vrot.lane.b32.xlu0 %v2950_v39, %s8925_s6  ;;  %4291 = vmatpush2.msra.mxu0 %v8364_v45 }
 0x228   : >> { %3718 = vst.msk [vmem:[#allocation4 + $0x48] sm:$0xff] %vm227_vm0, %v10184_v26  ;;  %3717 = vst.msk [vmem:[#allocation4 + $0x20] sm:$0xff] %vm227_vm0, %v10182_v53  ;;  %v2391_v42 = vadd.f32 %v2390_v62, %v2166_v19  ;;  %2760 = vrot.lane.b32.xlu1 %v2694_v21, %s8925_s6  ;;  %v2951_v55 = vld [vmem:[#allocation3 + $0x4f] sm:$0xff]  ;;  %4292 = vmatprep.subr.mxu0 %v13272_v31 }
 0x229   : >> { %2556 = vst.msk [vmem:[#allocation3 + $0x70] sm:$0xff] %vm227_vm0, %v2524_v29  ;;  %v2170_v44 = vpop.f32.mrf.mxu1  ;;  %v2697_v11 = vld [vmem:[#allocation3 + $0x50] sm:$0xff]  ;;  %v8363_v29 = vld [vmem:[%s9301_s10 + $0x3d8] sm:$0xff] }
 0x22a   : >> { %v2525_v8 = vmax.f32 %v2391_v42, 0.0  ;;  %v2171_v12 = vadd.f32 %v2170_v44, %v1946_v27  ;;  %v8362_v19 = vld [vmem:[%s9301_s10 + $0x3d0] sm:$0xff]  ;;  %4293 = vmatpush2.msra.mxu0 %v8363_v29  ;;  %v8361_v27 = vld [vmem:[%s9301_s10 + $0x3c8] sm:$0xff]  ;;  %v1961_v42 = vadd.f32 %v10110_v2, %v9977_v20 }
 0x22b   : >> { %v2172_v46 = vpop.f32.mrf.mxu1  ;;  %3018 = vrot.lane.b32.xlu0 %v2951_v55, %s8925_s6  ;;  %v2952_v49 = vld [vmem:[#allocation3 + $0x67] sm:$0xff]  ;;  %4294 = vmatprep.subr.mxu0 %v13272_v31 }
 0x22c   : >> { %2557 = vst.msk [vmem:[#allocation3 + $0x88] sm:$0xff] %vm227_vm0, %v2525_v8  ;;  %v2396_v34 = vadd.f32 %v8694_v16, %v2171_v12  ;;  %3268 = vrot.lane.b32.xlu1 %v10200_v5, %s8925_s6  ;;  %4295 = vmatpush2.msra.mxu0 %v8362_v19  ;;  %v2410_v8 = vpop.f32.mrf.mxu0  ;;  %v8360_v12 = vld [vmem:[%s9301_s10 + $0x3c0] sm:$0xff] }
 0x22d   : >> { %v2175_v63 = vpop.f32.mrf.mxu1  ;;  %4296 = vmatprep.subr.mxu0 %v13272_v31 }
 0x22e   : >> { %v2526_v32 = vmax.f32 %v2396_v34, 0.0  ;;  %v2176_v18 = vadd.f32 %v2175_v63, %v1951_v57  ;;  %4297 = vmatpush2.msra.mxu0 %v8361_v27 }
 0x22f   : >> { %v2177_v16 = vpop.f32.mrf.mxu1  ;;  %3020 = vrot.lane.b32.xlu0 %v2952_v49, %s8925_s6  ;;  %4298 = vmatprep.subr.mxu0 %v13272_v31  ;;  %v1971_v49 = vadd.f32 %v10110_v2, %v9985_v30 }
 0x230   : >> { %v10211_v7 = vld [vmem:[#allocation3 + $0x69] sm:$0xff]  ;;  %v10213_v6 = vld [vmem:[#allocation3 + $0x71] sm:$0xff]  ;;  %2558 = vst.msk [vmem:[#allocation3 + $0x90] sm:$0xff] %vm227_vm0, %v2526_v32  ;;  %v2401_v13 = vadd.f32 %v2400_v25, %v2176_v18  ;;  %2766 = vrot.lane.b32.xlu1 %v2697_v11, %s8925_s6  ;;  %4299 = vmatpush2.msra.mxu0 %v8360_v12  ;;  %v8703_v25 = vpop.f32.mrf.mxu0 }
 0x231   : >> { %3719 = vst.msk [vmem:[#allocation4 + $0x70] sm:$0xff] %vm227_vm0, %v10211_v7  ;;  %3720 = vst.msk [vmem:[#allocation4 + $0x98] sm:$0xff] %vm227_vm0, %v10213_v6  ;;  %v2180_v62 = vpop.f32.mrf.mxu1  ;;  %v2953_v61 = vld [vmem:[#allocation3 + $0x6f] sm:$0xff] }
 0x232   : >> { %v2527_v58 = vmax.f32 %v2401_v13, 0.0  ;;  %v2181_v39 = vadd.f32 %v2180_v62, %v1956_v47 }
 0x233   : >> { %v2182_v21 = vpop.f32.mrf.mxu1  ;;  %3022 = vrot.lane.b32.xlu0 %v2953_v61, %s8925_s6  ;;  %v2954_v46 = vld [vmem:[#allocation3 + $0x87] sm:$0xff] }
 0x234   : >> { %2559 = vst.msk [vmem:[#allocation3 + $0xa8] sm:$0xff] %vm227_vm0, %v2527_v58  ;;  %v2406_v44 = vadd.f32 %v8697_v37, %v2181_v39  ;;  %3527 = vrot.lane.b32.xlu1 %v2697_v11, %s8925_s6  ;;  %v1966_v37 = vadd.f32 %v10110_v2, %v9981_v60  ;;  %v2696_v60 = vld [vmem:[#allocation3 + $0x48] sm:$0xff]  ;;  %v1976_v39 = vadd.f32 %v10110_v2, %v9989_v10 }
 0x235   : >> { %v2185_v9 = vpop.f32.mrf.mxu1  ;;  %v1981_v10 = vadd.f32 %v10110_v2, %v9993_v14  ;;  %v1986_v14 = vadd.f32 %v10110_v2, %v9995_v52  ;;  %v1991_v52 = vadd.f32 %v10110_v2, %v9997_v4 }
 0x236   : >> { %v2528_v55 = vmax.f32 %v2406_v44, 0.0  ;;  %v2186_v48 = vadd.f32 %v2185_v9, %v1961_v42 }
 0x237   : >> { %v10237_v50 = vld [vmem:[#allocation3 + $0x89] sm:$0xff]  ;;  %v10239_v57 = vld [vmem:[#allocation3 + $0x91] sm:$0xff]  ;;  %v2187_v20 = vpop.f32.mrf.mxu1  ;;  %3024 = vrot.lane.b32.xlu0 %v2954_v46, %s8925_s6 }
 0x238   : >> { %3721 = vst.msk [vmem:[#allocation4 + $0xc0] sm:$0xff] %vm227_vm0, %v10237_v50  ;;  %3722 = vst.msk [vmem:[#allocation4 + $0xe8] sm:$0xff] %vm227_vm0, %v10239_v57  ;;  %v2411_v34 = vadd.f32 %v2410_v8, %v2186_v48  ;;  %3274 = vrot.lane.b32.xlu1 %v10184_v26, %s8925_s6  ;;  %v2955_v32 = vld [vmem:[#allocation3 + $0x8f] sm:$0xff]  ;;  %v2420_v26 = vpop.f32.mrf.mxu0 }
 0x239   : >> { %2560 = vst.msk [vmem:[#allocation3 + $0xb0] sm:$0xff] %vm227_vm0, %v2528_v55  ;;  %v2190_v63 = vpop.f32.mrf.mxu1 }
 0x23a   : >> { %v2529_v45 = vmax.f32 %v2411_v34, 0.0  ;;  %v2191_v31 = vadd.f32 %v2190_v63, %v1966_v37  ;;  %v8706_v61 = vpop.f32.mrf.mxu0  ;;  %v2699_v63 = vld [vmem:[#allocation3 + $0x70] sm:$0xff] }
 0x23b   : >> { %v2192_v18 = vpop.f32.mrf.mxu1  ;;  %3026 = vrot.lane.b32.xlu0 %v2955_v32, %s8925_s6  ;;  %v2956_v62 = vld [vmem:[#allocation3 + $0xa7] sm:$0xff] }
 0x23c   : >> { %2561 = vst.msk [vmem:[#allocation3 + $0xc8] sm:$0xff] %vm227_vm0, %v2529_v45  ;;  %v2416_v16 = vadd.f32 %v8700_v0, %v2191_v31  ;;  %2764 = vrot.lane.b32.xlu1 %v2696_v60, %s8925_s6  ;;  %v2430_v12 = vpop.f32.mrf.mxu0 }
 0x23d   : >> { %v2195_v11 = vpop.f32.mrf.mxu1 }
 0x23e   : >> { %v2530_v47 = vmax.f32 %v2416_v16, 0.0  ;;  %v2196_v13 = vadd.f32 %v2195_v11, %v1971_v49  ;;  %v8709_v45 = vpop.f32.mrf.mxu0 }
 0x23f   : >> { %v2197_v58 = vpop.f32.mrf.mxu1  ;;  %3028 = vrot.lane.b32.xlu0 %v2956_v62, %s8925_s6 }
 0x240   : >> { %v10257_v29 = vld [vmem:[#allocation3 + $0xa9] sm:$0xff]  ;;  %v3692_v19 = vld [vmem:[#allocation3 + $0xb1] sm:$0xff]  ;;  %2562 = vst.msk [vmem:[#allocation3 + $0xd0] sm:$0xff] %vm227_vm0, %v2530_v47  ;;  %v2421_v30 = vadd.f32 %v2420_v26, %v2196_v13  ;;  %3525 = vrot.lane.b32.xlu1 %v2696_v60, %s8925_s6  ;;  %v2440_v11 = vpop.f32.mrf.mxu0 }
 0x241   : >> { %3723 = vst.msk [vmem:[#allocation4 + $0x110] sm:$0xff] %vm227_vm0, %v10257_v29  ;;  %3724 = vst.msk [vmem:[#allocation4 + $0x138] sm:$0xff] %vm227_vm0, %v3692_v19  ;;  %v2200_v0 = vpop.f32.mrf.mxu1  ;;  %v2957_v42 = vld [vmem:[#allocation3 + $0xaf] sm:$0xff] }
 0x242   : >> { %v2531_v21 = vmax.f32 %v2421_v30, 0.0  ;;  %v2201_v27 = vadd.f32 %v2200_v0, %v1976_v39  ;;  %v1996_v39 = vadd.f32 %v10110_v2, %v9999_v17  ;;  %v8712_v0 = vpop.f32.mrf.mxu0  ;;  %v2001_v17 = vadd.f32 %v10110_v2, %v10004_v23 }
 0x243   : >> { %v2202_v44 = vpop.f32.mrf.mxu1  ;;  %3030 = vrot.lane.b32.xlu0 %v2957_v42, %s8925_s6  ;;  %v2958_v46 = vld [vmem:[#allocation3 + $0xc7] sm:$0xff] }
 0x244   : >> { %2563 = vst.msk [vmem:[#allocation3 + $0xe8] sm:$0xff] %vm227_vm0, %v2531_v21  ;;  %v2426_v9 = vadd.f32 %v8703_v25, %v2201_v27  ;;  %3272 = vrot.lane.b32.xlu1 %v10182_v53, %s8925_s6  ;;  %v2698_v44 = vld [vmem:[#allocation3 + $0x68] sm:$0xff] }
 0x245   : >> { %v2205_v8 = vpop.f32.mrf.mxu1 }
 0x246   : >> { %v2532_v55 = vmax.f32 %v2426_v9, 0.0  ;;  %v2206_v48 = vadd.f32 %v2205_v8, %v1981_v10  ;;  %v2450_v8 = vpop.f32.mrf.mxu0 }
 0x247   : >> { %v3693_v20 = vld [vmem:[#allocation3 + $0xc9] sm:$0xff]  ;;  %v3694_v37 = vld [vmem:[#allocation3 + $0xd1] sm:$0xff]  ;;  %v2207_v34 = vpop.f32.mrf.mxu1  ;;  %3032 = vrot.lane.b32.xlu0 %v2958_v46, %s8925_s6 }
 0x248   : >> { %3725 = vst.msk [vmem:[#allocation4 + $0x160] sm:$0xff] %vm227_vm0, %v3693_v20  ;;  %3726 = vst.msk [vmem:[#allocation4 + $0x188] sm:$0xff] %vm227_vm0, %v3694_v37  ;;  %v2431_v53 = vadd.f32 %v2430_v12, %v2206_v48  ;;  %2770 = vrot.lane.b32.xlu1 %v2699_v63, %s8925_s6  ;;  %v2959_v18 = vld [vmem:[#allocation3 + $0xcf] sm:$0xff]  ;;  %v2006_v37 = vadd.f32 %v10110_v2, %v10010_v40  ;;  %v2011_v40 = vadd.f32 %v10110_v2, %v10016_v28 }
 0x249   : >> { %2564 = vst.msk [vmem:[#allocation3 + $0xf0] sm:$0xff] %vm227_vm0, %v2532_v55  ;;  %v2210_v25 = vpop.f32.mrf.mxu1 }
 0x24a   : >> { %v2533_v31 = vmax.f32 %v2431_v53, 0.0  ;;  %v2211_v32 = vadd.f32 %v2210_v25, %v1986_v14 }
 0x24b   : >> { %v2212_v60 = vpop.f32.mrf.mxu1  ;;  %3034 = vrot.lane.b32.xlu0 %v2959_v18, %s8925_s6  ;;  %v2960_v13 = vld [vmem:[#allocation3 + $0xe7] sm:$0xff] }
 0x24c   : >> { %2565 = vst.msk [vmem:[#allocation3 + $0x108] sm:$0xff] %vm227_vm0, %v2533_v31  ;;  %v2436_v49 = vadd.f32 %v8706_v61, %v2211_v32  ;;  %3531 = vrot.lane.b32.xlu1 %v2699_v63, %s8925_s6  ;;  %v8715_v63 = vpop.f32.mrf.mxu0  ;;  %v10312_v32 = vld [vmem:[%s9301_s10 + $0x478] sm:$0xff] }
 0x24d   : >> { %v2215_v16 = vpop.f32.mrf.mxu1  ;;  %8731 = vmatprep.subr.mxu1 %v10312_v32 }
 0x24e   : >> { %v2534_v26 = vmax.f32 %v2436_v49, 0.0  ;;  %v2216_v47 = vadd.f32 %v2215_v16, %v1991_v52  ;;  %v2460_v60 = vpop.f32.mrf.mxu0  ;;  %v2701_v16 = vld [vmem:[#allocation3 + $0x90] sm:$0xff] }
 0x24f   : >> { %v2217_v58 = vpop.f32.mrf.mxu1  ;;  %3036 = vrot.lane.b32.xlu0 %v2960_v13, %s8925_s6  ;;  %v2016_v13 = vadd.f32 %v10110_v2, %v10022_v33  ;;  %v2021_v33 = vadd.f32 %v10110_v2, %v10028_v15  ;;  %v2026_v15 = vadd.f32 %v10110_v2, %v10034_v54  ;;  %v2031_v54 = vadd.f32 %v10110_v2, %v10040_v35 }
 0x250   : >> { %v3695_v62 = vld [vmem:[#allocation3 + $0xe9] sm:$0xff]  ;;  %v3696_v19 = vld [vmem:[#allocation3 + $0xf1] sm:$0xff]  ;;  %2566 = vst.msk [vmem:[#allocation3 + $0x110] sm:$0xff] %vm227_vm0, %v2534_v26  ;;  %v2441_v4 = vadd.f32 %v2440_v11, %v2216_v47  ;;  %3278 = vrot.lane.b32.xlu1 %v10213_v6, %s8925_s6 }
 0x251   : >> { %3727 = vst.msk [vmem:[#allocation4 + $0x1b0] sm:$0xff] %vm227_vm0, %v3695_v62  ;;  %3728 = vst.msk [vmem:[#allocation4 + $0x1d8] sm:$0xff] %vm227_vm0, %v3696_v19  ;;  %v2220_v30 = vpop.f32.mrf.mxu1  ;;  %v2961_v27 = vld [vmem:[#allocation3 + $0xef] sm:$0xff]  ;;  %v8718_v19 = vpop.f32.mrf.mxu0 }
 0x252   : >> { %v2535_v61 = vmax.f32 %v2441_v4, 0.0  ;;  %v2221_v21 = vadd.f32 %v2220_v30, %v1996_v39 }
 0x253   : >> { %v2222_v42 = vpop.f32.mrf.mxu1  ;;  %3038 = vrot.lane.b32.xlu0 %v2961_v27, %s8925_s6  ;;  %v10322_v30 = vld [vmem:[#allocation3 + $0x108] sm:$0xff] }
 0x254   : >> { %2567 = vst.msk [vmem:[#allocation3 + $0x128] sm:$0xff] %vm227_vm0, %v2535_v61  ;;  %v2446_v10 = vadd.f32 %v8709_v45, %v2221_v21  ;;  %2768 = vrot.lane.b32.xlu1 %v2698_v44, %s8925_s6  ;;  %v2962_v45 = vld [vmem:[#allocation3 + $0x107] sm:$0xff]  ;;  %v2470_v21 = vpop.f32.mrf.mxu0 }
 0x255   : >> { %v2225_v9 = vpop.f32.mrf.mxu1 }
 0x256   : >> { %v2536_v6 = vmax.f32 %v2446_v10, 0.0  ;;  %v2226_v12 = vadd.f32 %v2225_v9, %v2001_v17 }
 0x257   : >> { %v3697_v55 = vld [vmem:[#allocation3 + $0x109] sm:$0xff]  ;;  %v3698_v48 = vld [vmem:[#allocation3 + $0x111] sm:$0xff]  ;;  %v2227_v46 = vpop.f32.mrf.mxu1 }
 0x258   : >> { %v2709_v20 = vld [vmem:[#allocation3 + $0x110] sm:$0xff]  ;;  %3729 = vst.msk [vmem:[#allocation4 + $0x200] sm:$0xff] %vm227_vm0, %v3697_v55  ;;  %3730 = vst.msk [vmem:[#allocation4 + $0x228] sm:$0xff] %vm227_vm0, %v3698_v48  ;;  %v2451_v23 = vadd.f32 %v2450_v8, %v2226_v12  ;;  %3529 = vrot.lane.b32.xlu1 %v2698_v44, %s8925_s6  ;;  %v2700_v44 = vld [vmem:[#allocation3 + $0x88] sm:$0xff]  ;;  %v8721_v55 = vpop.f32.mrf.mxu0 }
 0x259   : >> { %2568 = vst.msk [vmem:[#allocation3 + $0x130] sm:$0xff] %vm227_vm0, %v2536_v6  ;;  %2790 = vrot.lane.b32.xlu0 %v2709_v20, %s8925_s6  ;;  %v2230_v34 = vpop.f32.mrf.mxu1  ;;  %v2963_v47 = vld [vmem:[#allocation3 + $0x10f] sm:$0xff] }
 0x25a   : >> { %v2537_v14 = vmax.f32 %v2451_v23, 0.0  ;;  %v2231_v53 = vadd.f32 %v2230_v34, %v2006_v37 }
 0x25b   : >> { %v2232_v25 = vpop.f32.mrf.mxu1  ;;  %v2964_v37 = vld [vmem:[#allocation3 + $0x127] sm:$0xff] }
 0x25c   : >> { %2569 = vst.msk [vmem:[#allocation3 + $0x148] sm:$0xff] %vm227_vm0, %v2537_v14  ;;  %v2456_v31 = vadd.f32 %v8712_v0, %v2231_v53  ;;  %3276 = vrot.lane.b32.xlu1 %v10211_v7, %s8925_s6 }
 0x25d   : >> { %3040 = vrot.lane.b32.xlu0 %v2962_v45, %s8925_s6  ;;  %v2235_v18 = vpop.f32.mrf.mxu1 }
 0x25e   : >> { %v2538_v52 = vmax.f32 %v2456_v31, 0.0  ;;  %v2236_v49 = vadd.f32 %v2235_v18, %v2011_v40  ;;  %v2036_v18 = vadd.f32 %v10110_v2, %v10046_v24  ;;  %v2703_v24 = vld [vmem:[#allocation3 + $0xb0] sm:$0xff] }
 0x25f   : >> { %v2237_v28 = vpop.f32.mrf.mxu1 }
 0x260   : >> { %v3699_v11 = vld [vmem:[#allocation3 + $0x129] sm:$0xff]  ;;  %v3700_v26 = vld [vmem:[#allocation3 + $0x131] sm:$0xff]  ;;  %2570 = vst.msk [vmem:[#allocation3 + $0x150] sm:$0xff] %vm227_vm0, %v2538_v52  ;;  %v2461_v7 = vadd.f32 %v2460_v60, %v2236_v49  ;;  %2774 = vrot.lane.b32.xlu1 %v2701_v16, %s8925_s6  ;;  %v2041_v28 = vadd.f32 %v10110_v2, %v10053_v1 }
 0x261   : >> { %3731 = vst.msk [vmem:[#allocation4 + $0x250] sm:$0xff] %vm227_vm0, %v3699_v11  ;;  %3732 = vst.msk [vmem:[#allocation4 + $0x278] sm:$0xff] %vm227_vm0, %v3700_v26  ;;  %3042 = vrot.lane.b32.xlu0 %v2963_v47, %s8925_s6  ;;  %v2240_v62 = vpop.f32.mrf.mxu1  ;;  %v2711_v8 = vld [vmem:[#allocation3 + $0x130] sm:$0xff]  ;;  %v10350_v26 = vld [vmem:[#allocation3 + $0x128] sm:$0xff] }
 0x262   : >> { %v2539_v58 = vmax.f32 %v2461_v7, 0.0  ;;  %v2241_v39 = vadd.f32 %v2240_v62, %v2016_v13  ;;  %v2965_v31 = vld [vmem:[#allocation3 + $0x12f] sm:$0xff] }
 0x263   : >> { %v2242_v4 = vpop.f32.mrf.mxu1 }
 0x264   : >> { %2571 = vst.msk [vmem:[#allocation3 + $0x168] sm:$0xff] %vm227_vm0, %v2539_v58  ;;  %v2466_v0 = vadd.f32 %v8715_v63, %v2241_v39  ;;  %3535 = vrot.lane.b32.xlu1 %v2701_v16, %s8925_s6  ;;  %v2480_v63 = vpop.f32.mrf.mxu0 }
 0x265   : >> { %2788 = vrot.lane.b32.xlu0 %v10322_v30, %s8925_s6  ;;  %v2245_v61 = vpop.f32.mrf.mxu1 }
 0x266   : >> { %v2540_v27 = vmax.f32 %v2466_v0, 0.0  ;;  %v2246_v42 = vadd.f32 %v2245_v61, %v2021_v33  ;;  %v8724_v52 = vpop.f32.mrf.mxu0  ;;  %v2046_v33 = vadd.f32 %v10110_v2, %v10063_v36  ;;  %v2051_v36 = vadd.f32 %v10110_v2, %v10073_v56 }
 0x267   : >> { %v3701_v17 = vld [vmem:[#allocation3 + $0x149] sm:$0xff]  ;;  %v3702_v10 = vld [vmem:[#allocation3 + $0x151] sm:$0xff]  ;;  %v2247_v9 = vpop.f32.mrf.mxu1 }
 0x268   : >> { %3733 = vst.msk [vmem:[#allocation4 + $0x2a0] sm:$0xff] %vm227_vm0, %v3701_v17  ;;  %3734 = vst.msk [vmem:[#allocation4 + $0x2c8] sm:$0xff] %vm227_vm0, %v3702_v10  ;;  %v2471_v6 = vadd.f32 %v2470_v21, %v2246_v42  ;;  %2772 = vrot.lane.b32.xlu1 %v2700_v44, %s8925_s6  ;;  %v2490_v13 = vpop.f32.mrf.mxu0  ;;  %v2713_v4 = vld [vmem:[#allocation3 + $0x150] sm:$0xff]  ;;  %v2702_v17 = vld [vmem:[#allocation3 + $0xa8] sm:$0xff] }
 0x269   : >> { %2572 = vst.msk [vmem:[#allocation3 + $0x170] sm:$0xff] %vm227_vm0, %v2540_v27  ;;  %2794 = vrot.lane.b32.xlu0 %v2711_v8, %s8925_s6  ;;  %v2250_v12 = vpop.f32.mrf.mxu1 }
 0x26a   : >> { %v2541_v48 = vmax.f32 %v2471_v6, 0.0  ;;  %v2251_v46 = vadd.f32 %v2250_v12, %v2026_v15  ;;  %v8727_v61 = vpop.f32.mrf.mxu0 }
 0x26b   : >> { %v2252_v20 = vpop.f32.mrf.mxu1 }
 0x26c   : >> { %2573 = vst.msk [vmem:[#allocation3 + $0x188] sm:$0xff] %vm227_vm0, %v2541_v48  ;;  %v2476_v23 = vadd.f32 %v8718_v19, %v2251_v46  ;;  %3533 = vrot.lane.b32.xlu1 %v2700_v44, %s8925_s6  ;;  %v2966_v44 = vld [vmem:[#allocation3 + $0x147] sm:$0xff]  ;;  %v2500_v8 = vpop.f32.mrf.mxu0  ;;  %v2967_v46 = vld [vmem:[#allocation3 + $0x14f] sm:$0xff]  ;;  %v2056_v20 = vadd.f32 %v10110_v2, %v10083_v59  ;;  %v2061_v59 = vadd.f32 %v10110_v2, %v10094_v43 }
 0x26d   : >> { %3044 = vrot.lane.b32.xlu0 %v2964_v37, %s8925_s6  ;;  %v2255_v34 = vpop.f32.mrf.mxu1  ;;  %v2066_v43 = vadd.f32 %v10110_v2, %v10112_v51 }
 0x26e   : >> { %v2542_v14 = vmax.f32 %v2476_v23, 0.0  ;;  %v2256_v53 = vadd.f32 %v2255_v34, %v2031_v54  ;;  %v8730_v54 = vpop.f32.mrf.mxu0 }
 0x26f   : >> { %v2257_v40 = vpop.f32.mrf.mxu1 }
 0x270   : >> { %v3703_v25 = vld [vmem:[#allocation3 + $0x169] sm:$0xff]  ;;  %v3704_v45 = vld [vmem:[#allocation3 + $0x171] sm:$0xff]  ;;  %2574 = vst.msk [vmem:[#allocation3 + $0x190] sm:$0xff] %vm227_vm0, %v2542_v14  ;;  %v2481_v35 = vadd.f32 %v2480_v63, %v2256_v53  ;;  %3280 = vrot.lane.b32.xlu1 %v10237_v50, %s8925_s6  ;;  %v2510_v40 = vpop.f32.mrf.mxu0 }
 0x271   : >> { %3735 = vst.msk [vmem:[#allocation4 + $0x2f0] sm:$0xff] %vm227_vm0, %v3703_v25  ;;  %3736 = vst.msk [vmem:[#allocation4 + $0x318] sm:$0xff] %vm227_vm0, %v3704_v45  ;;  %3046 = vrot.lane.b32.xlu0 %v2965_v31, %s8925_s6  ;;  %v2260_v60 = vpop.f32.mrf.mxu1  ;;  %v10377_v14 = vld [vmem:[#allocation3 + $0x148] sm:$0xff]  ;;  %v10379_v53 = vld [vmem:[#allocation3 + $0xd0] sm:$0xff] }
 0x272   : >> { %v2543_v49 = vmax.f32 %v2481_v35, 0.0  ;;  %v2261_v16 = vadd.f32 %v2260_v60, %v2036_v18  ;;  %v2704_v35 = vld [vmem:[#allocation3 + $0xc8] sm:$0xff] }
 0x273   : >> { %v2262_v11 = vpop.f32.mrf.mxu1 }
 0x274   : >> { %2575 = vst.msk [vmem:[#allocation3 + $0x1a8] sm:$0xff] %vm227_vm0, %v2543_v49  ;;  %v2486_v47 = vadd.f32 %v8721_v55, %v2261_v16  ;;  %2778 = vrot.lane.b32.xlu1 %v2703_v24, %s8925_s6  ;;  %v10388_v16 = vld [vmem:[#allocation3 + $0x170] sm:$0xff] }
 0x275   : >> { %2792 = vrot.lane.b32.xlu0 %v10350_v26, %s8925_s6  ;;  %v2265_v50 = vpop.f32.mrf.mxu1 }
 0x276   : >> { %v2544_v7 = vmax.f32 %v2486_v47, 0.0  ;;  %v2266_v62 = vadd.f32 %v2265_v50, %v2041_v28  ;;  %v2968_v50 = vld [vmem:[#allocation3 + $0x167] sm:$0xff] }
 0x277   : >> { %v3705_v19 = vld [vmem:[#allocation3 + $0x189] sm:$0xff]  ;;  %v3706_v58 = vld [vmem:[#allocation3 + $0x191] sm:$0xff]  ;;  %v2267_v39 = vpop.f32.mrf.mxu1 }
 0x278   : >> { %3737 = vst.msk [vmem:[#allocation4 + $0x340] sm:$0xff] %vm227_vm0, %v3705_v19  ;;  %3738 = vst.msk [vmem:[#allocation4 + $0x368] sm:$0xff] %vm227_vm0, %v3706_v58  ;;  %v2491_v1 = vadd.f32 %v2490_v13, %v2266_v62  ;;  %3539 = vrot.lane.b32.xlu1 %v2703_v24, %s8925_s6  ;;  %v10398_v13 = vld [vmem:[#allocation3 + $0xf0] sm:$0xff]  ;;  %v10404_v62 = vld [vmem:[#allocation3 + $0xe8] sm:$0xff] }
 0x279   : >> { %2576 = vst.msk [vmem:[#allocation3 + $0x1b0] sm:$0xff] %vm227_vm0, %v2544_v7  ;;  %2798 = vrot.lane.b32.xlu0 %v2713_v4, %s8925_s6  ;;  %v2270_v0 = vpop.f32.mrf.mxu1  ;;  %v2916_v19 = vld [vmem:[#allocation3 + $0x9] sm:$0xff] }
 0x27a   : >> { %v2545_v21 = vmax.f32 %v2491_v1, 0.0  ;;  %v2271_v27 = vadd.f32 %v2270_v0, %v2046_v33  ;;  %v10406_v4 = vld [vmem:[#allocation3 + $0x16f] sm:$0xff] }
 0x27b   : >> { %v2272_v42 = vpop.f32.mrf.mxu1 }
 0x27c   : >> { %2577 = vst.msk [vmem:[#allocation3 + $0x1c8] sm:$0xff] %vm227_vm0, %v2545_v21  ;;  %v2496_v10 = vadd.f32 %v8724_v52, %v2271_v27  ;;  %2776 = vrot.lane.b32.xlu1 %v2702_v17, %s8925_s6  ;;  %v10418_v21 = vld [vmem:[#allocation3 + $0x168] sm:$0xff]  ;;  %v2917_v27 = vld [vmem:[#allocation3 + $0x11] sm:$0xff] }
 0x27d   : >> { %3048 = vrot.lane.b32.xlu0 %v2966_v44, %s8925_s6  ;;  %v2275_v9 = vpop.f32.mrf.mxu1  ;;  %v8382_v42 = vld [vmem:[%s9301_s10 + $0x470] sm:$0xff] }
 0x27e   : >> { %v2546_v15 = vmax.f32 %v2496_v10, 0.0  ;;  %v2276_v6 = vadd.f32 %v2275_v9, %v2051_v36 }
 0x27f   : >> { %v2277_v48 = vpop.f32.mrf.mxu1 }
 0x280   : >> { %v3707_v12 = vld [vmem:[#allocation3 + $0x1a9] sm:$0xff]  ;;  %v3708_v55 = vld [vmem:[#allocation3 + $0x1b1] sm:$0xff]  ;;  %2578 = vst.msk [vmem:[#allocation3 + $0x1d0] sm:$0xff] %vm227_vm0, %v2546_v15  ;;  %v2501_v56 = vadd.f32 %v2500_v8, %v2276_v6  ;;  %3537 = vrot.lane.b32.xlu1 %v2702_v17, %s8925_s6 }
 0x281   : >> { %3739 = vst.msk [vmem:[#allocation4 + $0x390] sm:$0xff] %vm227_vm0, %v3707_v12  ;;  %3740 = vst.msk [vmem:[#allocation4 + $0x3b8] sm:$0xff] %vm227_vm0, %v3708_v55  ;;  %3050 = vrot.lane.b32.xlu0 %v2967_v46, %s8925_s6  ;;  %v2280_v37 = vpop.f32.mrf.mxu1  ;;  %v10432_v8 = vld [vmem:[#allocation3 + $0x190] sm:$0xff]  ;;  %v2662_v15 = vld [vmem:[#allocation3 + $0x27] sm:$0xff] }
 0x282   : >> { %v2547_v23 = vmax.f32 %v2501_v56, 0.0  ;;  %v2281_v34 = vadd.f32 %v2280_v37, %v2056_v20  ;;  %v2970_v12 = vld [vmem:[#allocation3 + $0x187] sm:$0xff]  ;;  %v2919_v48 = vld [vmem:[#allocation3 + $0x31] sm:$0xff] }
 0x283   : >> { %v2282_v63 = vpop.f32.mrf.mxu1  ;;  %v8380_v55 = vld [vmem:[%s9301_s10 + $0x460] sm:$0xff]  ;;  %v3172_v46 = vld [vmem:[#allocation3 + $0x28] sm:$0xff] }
 0x284   : >> { %2579 = vst.msk [vmem:[#allocation3 + $0x1e8] sm:$0xff] %vm227_vm0, %v2547_v23  ;;  %v2506_v25 = vadd.f32 %v8727_v61, %v2281_v34  ;;  %2782 = vrot.lane.b32.xlu1 %v10379_v53, %s8925_s6  ;;  %v10452_v37 = vld [vmem:[#allocation3 + $0x18f] sm:$0xff] }
 0x285   : >> { %2796 = vrot.lane.b32.xlu0 %v10377_v14, %s8925_s6  ;;  %v2285_v45 = vpop.f32.mrf.mxu1  ;;  %v2665_v63 = vld [vmem:[#allocation3 + $0x4f] sm:$0xff] }
 0x286   : >> { %v2548_v31 = vmax.f32 %v2506_v25, 0.0  ;;  %v2286_v18 = vadd.f32 %v2285_v45, %v2061_v59  ;;  %v10461_v45 = vld [vmem:[#allocation3 + $0x188] sm:$0xff] }
 0x287   : >> { %v3709_v60 = vld [vmem:[#allocation3 + $0x1c9] sm:$0xff]  ;;  %v3710_v52 = vld [vmem:[#allocation3 + $0x1d1] sm:$0xff]  ;;  %v2287_v49 = vpop.f32.mrf.mxu1 }
 0x288   : >> { %3741 = vst.msk [vmem:[#allocation4 + $0x3e0] sm:$0xff] %vm227_vm0, %v3709_v60  ;;  %3742 = vst.msk [vmem:[#allocation4 + $0x408] sm:$0xff] %vm227_vm0, %v3710_v52  ;;  %v2511_v11 = vadd.f32 %v2510_v40, %v2286_v18  ;;  %2780 = vrot.lane.b32.xlu1 %v2704_v35, %s8925_s6  ;;  %v10463_v40 = vld [vmem:[#allocation3 + $0xb1] sm:$0xff]  ;;  %v10473_v49 = vld [vmem:[#allocation3 + $0xc9] sm:$0xff] }
 0x289   : >> { %2580 = vst.msk [vmem:[#allocation3 + $0x1f0] sm:$0xff] %vm227_vm0, %v2548_v31  ;;  %2802 = vrot.lane.b32.xlu0 %v10388_v16, %s8925_s6  ;;  %v2290_v24 = vpop.f32.mrf.mxu1  ;;  %v10471_v52 = vld [vmem:[#allocation3 + $0x1b0] sm:$0xff] }
 0x28a   : >> { %v2549_v28 = vmax.f32 %v2511_v11, 0.0  ;;  %v2291_v47 = vadd.f32 %v2290_v24, %v2066_v43  ;;  %v2922_v43 = vld [vmem:[#allocation3 + $0x69] sm:$0xff] }
 0x28b   : >> { %v2292_v7 = vpop.f32.mrf.mxu1 }
 0x28c   : >> { %2581 = vst.msk [vmem:[#allocation3 + $0x208] sm:$0xff] %vm227_vm0, %v2549_v28  ;;  %v2516_v2 = vadd.f32 %v8730_v54, %v2291_v47  ;;  %2786 = vrot.lane.b32.xlu1 %v10398_v13, %s8925_s6  ;;  %v2920_v54 = vld [vmem:[#allocation3 + $0x49] sm:$0xff] }
 0x28d   : >> { %3052 = vrot.lane.b32.xlu0 %v2968_v50, %s8925_s6  ;;  %v3175_v28 = vld [vmem:[#allocation3 + $0x50] sm:$0xff]  ;;  %v10483_v7 = vld [vmem:[#allocation3 + $0x1a7] sm:$0xff] }
 0x28e   : >> { %v2550_v51 = vmax.f32 %v2516_v2, 0.0  ;;  %v8378_v2 = vld [vmem:[%s9301_s10 + $0x450] sm:$0xff] }
 0x290   : >> { %v3711_v58 = vld [vmem:[#allocation3 + $0x1e9] sm:$0xff]  ;;  %v3712_v39 = vld [vmem:[#allocation3 + $0x1f1] sm:$0xff]  ;;  %2582 = vst.msk [vmem:[#allocation3 + $0x210] sm:$0xff] %vm227_vm0, %v2550_v51  ;;  %2784 = vrot.lane.b32.xlu1 %v10404_v62, %s8925_s6 }
 0x291   : >> { %3743 = vst.msk [vmem:[#allocation4 + $0x430] sm:$0xff] %vm227_vm0, %v3711_v58  ;;  %3744 = vst.msk [vmem:[#allocation4 + $0x458] sm:$0xff] %vm227_vm0, %v3712_v39  ;;  %3054 = vrot.lane.b32.xlu0 %v10406_v4, %s8925_s6  ;;  %v3013_v33 = vpop.permute.xlu0 %3012  ;;  %v2923_v51 = vld [vmem:[#allocation3 + $0x71] sm:$0xff]  ;;  %v2664_v39 = vld [vmem:[#allocation3 + $0x47] sm:$0xff] }
 0x292   : >> { %v3108_v1 = vsel %vm227_vm0, %v2916_v19, %v3013_v33  ;;  %v2763_v0 = vpop.permute.xlu1 %2762 }
 0x293   : >> { %v2855_v61 = vsel %vm227_vm0, %v10170_v3, %v2763_v0  ;;  %4075 = vmatprep.mubr.f32.mxu1 %v3108_v1  ;;  %v10494_v0 = vld [vmem:[#allocation3 + $0x1af] sm:$0xff] }
 0x294   : >> { %3282 = vrot.lane.b32.xlu1 %v10239_v57, %s8925_s6  ;;  %4076 = vmatmul.mubr.f32.vlgmr.msra.gmra.mxu1 %v10137_v22  ;;  %v8381_v22 = vld [vmem:[%s9301_s10 + $0x468] sm:$0xff] }
 0x295   : >> { %2800 = vrot.lane.b32.xlu0 %v10418_v21, %s8925_s6  ;;  %v3015_v44 = vpop.permute.xlu0 %3014  ;;  %8732 = vmatpush3.msra.mxu1 %v10312_v32 }
 0x296   : >> { %v3109_v17 = vsel %vm227_vm0, %v2917_v27, %v3015_v44  ;;  %v3271_v36 = vpop.permute.xlu1 %3270  ;;  %8733 = vmatprep.subr.mxu1 %v8382_v42 }
 0x297   : >> { %v3713_v3 = vld [vmem:[#allocation3 + $0x209] sm:$0xff]  ;;  %v3714_v10 = vld [vmem:[#allocation3 + $0x211] sm:$0xff]  ;;  %v10430_v9 = vsel %vm227_vm0, %v10160_v41, %v3271_v36  ;;  %4080 = vmatprep.mubr.f32.mxu1 %v3109_v17  ;;  %8734 = vmatpush3.msra.mxu1 %v8382_v42 }
 0x298   : >> { %3745 = vst.msk [vmem:[#allocation4 + $0x480] sm:$0xff] %vm227_vm0, %v3713_v3  ;;  %3746 = vst.msk [vmem:[#allocation4 + $0x4a8] sm:$0xff] %vm227_vm0, %v3714_v10  ;;  %3541 = vrot.lane.b32.xlu1 %v2704_v35, %s8925_s6  ;;  %4081 = vmatmul.mubr.f32.gmra.mxu1 %v10148_v38  ;;  %v10503_v36 = vld [vmem:[#allocation3 + $0x1a8] sm:$0xff]  ;;  %v10505_v3 = vld [vmem:[#allocation3 + $0xf1] sm:$0xff] }
 0x299   : >> { %2806 = vrot.lane.b32.xlu0 %v10432_v8, %s8925_s6  ;;  %v3017_v57 = vpop.permute.xlu0 %3016  ;;  %8735 = vmatprep.subr.mxu1 %v8381_v22  ;;  %v2925_v10 = vld [vmem:[#allocation3 + $0x91] sm:$0xff] }
 0x29a   : >> { %v3110_v41 = vsel %vm227_vm0, %v10200_v5, %v3017_v57  ;;  %v2761_v32 = vpop.permute.xlu1 %2760  ;;  %8736 = vmatpush3.msra.mxu1 %v8381_v22 }
 0x29b   : >> { %v2854_v6 = vsel %vm227_vm0, %v2662_v15, %v2761_v32  ;;  %4085 = vmatprep.mubr.f32.mxu1 %v3110_v41  ;;  %8737 = vmatprep.subr.mxu1 %v8380_v55  ;;  %v3174_v41 = vld [vmem:[#allocation3 + $0x48] sm:$0xff] }
 0x29c   : >> { %3284 = vrot.lane.b32.xlu1 %v10257_v29, %s8925_s6  ;;  %4086 = vmatmul.mubr.f32.gmra.mxu1 %v2854_v6  ;;  %v8379_v29 = vld [vmem:[%s9301_s10 + $0x458] sm:$0xff]  ;;  %v10516_v6 = vld [vmem:[#allocation3 + $0x1d0] sm:$0xff] }
 0x29d   : >> { %3056 = vrot.lane.b32.xlu0 %v2970_v12, %s8925_s6  ;;  %v3019_v38 = vpop.permute.xlu0 %3018  ;;  %8738 = vmatpush3.msra.mxu1 %v8380_v55  ;;  %v2926_v12 = vld [vmem:[#allocation3 + $0xa9] sm:$0xff] }
 0x29e   : >> { %v3111_v5 = vsel %vm227_vm0, %v2919_v48, %v3019_v38  ;;  %v3269_v20 = vpop.permute.xlu1 %3268  ;;  %8739 = vmatprep.subr.mxu1 %v8379_v29  ;;  %v2667_v38 = vld [vmem:[#allocation3 + $0x6f] sm:$0xff] }
 0x29f   : >> { %v10450_v56 = vsel %vm227_vm0, %v3172_v46, %v3269_v20  ;;  %4090 = vmatprep.mubr.f32.mxu1 %v3111_v5  ;;  %8740 = vmatpush3.msra.mxu1 %v8379_v29  ;;  %v10527_v20 = vld [vmem:[#allocation3 + $0x1c7] sm:$0xff] }
 0x2a0   : >> { %3543 = vrot.lane.b32.xlu1 %v10379_v53, %s8925_s6  ;;  %4091 = vmatmul.mubr.f32.gmra.mxu1 %v2855_v61  ;;  %v2921_v53 = vld [vmem:[#allocation3 + $0x51] sm:$0xff] }
 0x2a1   : >> { %3058 = vrot.lane.b32.xlu0 %v10452_v37, %s8925_s6  ;;  %v3021_v23 = vpop.permute.xlu0 %3020  ;;  %8741 = vmatprep.subr.mxu1 %v8378_v2  ;;  %v3215_v61 = vld [vmem:[#allocation3 + $0xd1] sm:$0xff] }
 0x2a2   : >> { %v3112_v34 = vsel %vm227_vm0, %v2920_v54, %v3021_v23  ;;  %v2767_v59 = vpop.permute.xlu1 %2766  ;;  %8742 = vmatpush3.msra.mxu1 %v8378_v2 }
 0x2a3   : >> { %v2857_v25 = vsel %vm227_vm0, %v2665_v63, %v2767_v59  ;;  %4095 = vmatprep.mubr.f32.mxu1 %v3112_v34  ;;  %v10538_v34 = vld [vmem:[#allocation3 + $0x1cf] sm:$0xff] }
 0x2a4   : >> { %3286 = vrot.lane.b32.xlu1 %v10463_v40, %s8925_s6 }
 0x2a5   : >> { %2804 = vrot.lane.b32.xlu0 %v10461_v45, %s8925_s6  ;;  %v3023_v31 = vpop.permute.xlu0 %3022 }
 0x2a6   : >> { %v3113_v18 = vsel %vm227_vm0, %v2921_v53, %v3023_v31  ;;  %v3528_v35 = vpop.permute.xlu1 %3527  ;;  %v3177_v53 = vld [vmem:[#allocation3 + $0x70] sm:$0xff] }
 0x2a7   : >> { %v3622_v60 = vsel %vm227_vm0, %v2665_v63, %v3528_v35  ;;  %v3474_v63 = vld [vmem:[#allocation3 + $0x110] sm:$0xff] }
 0x2a8   : >> { %3288 = vrot.lane.b32.xlu1 %v10473_v49, %s8925_s6 }
 0x2a9   : >> { %2810 = vrot.lane.b32.xlu0 %v10471_v52, %s8925_s6  ;;  %v3025_v11 = vpop.permute.xlu0 %3024 }
 0x2aa   : >> { %v3114_v24 = vsel %vm227_vm0, %v2922_v43, %v3025_v11  ;;  %v3275_v47 = vpop.permute.xlu1 %3274  ;;  %v2666_v43 = vld [vmem:[#allocation3 + $0x67] sm:$0xff] }
 0x2ab   : >> { %v10481_v50 = vsel %vm227_vm0, %v3175_v28, %v3275_v47  ;;  %v10562_v28 = vld [vmem:[#allocation3 + $0x109] sm:$0xff] }
 0x2ac   : >> { %3547 = vrot.lane.b32.xlu1 %v10398_v13, %s8925_s6  ;;  %v2924_v13 = vld [vmem:[#allocation3 + $0x89] sm:$0xff] }
 0x2ad   : >> { %3060 = vrot.lane.b32.xlu0 %v10483_v7, %s8925_s6  ;;  %v3027_v19 = vpop.permute.xlu0 %3026 }
 0x2ae   : >> { %v10491_v58 = vsel %vm227_vm0, %v2923_v51, %v3027_v19  ;;  %v2765_v33 = vpop.permute.xlu1 %2764 }
 0x2af   : >> { %v2856_v1 = vsel %vm227_vm0, %v2664_v39, %v2765_v33  ;;  %v8376_v33 = vld [vmem:[%s9301_s10 + $0x440] sm:$0xff] }
 0x2b0   : >> { %3290 = vrot.lane.b32.xlu1 %v3215_v61, %s8925_s6  ;;  %4096 = vmatmul.mubr.f32.gmra.mxu1 %v2856_v1 }
 0x2b1   : >> { %3062 = vrot.lane.b32.xlu0 %v10494_v0, %s8925_s6  ;;  %v3029_v27 = vpop.permute.xlu0 %3028  ;;  %4100 = vmatprep.mubr.f32.mxu1 %v3113_v18  ;;  %v10550_v18 = vld [vmem:[#allocation3 + $0x1c8] sm:$0xff] }
 0x2b2   : >> { %v10500_v42 = vsel %vm227_vm0, %v2924_v13, %v3029_v27  ;;  %v3526_v44 = vpop.permute.xlu1 %3525 }
 0x2b3   : >> { %v3621_v17 = vsel %vm227_vm0, %v2664_v39, %v3526_v44  ;;  %v10576_v39 = vld [vmem:[#allocation3 + $0x1e7] sm:$0xff]  ;;  %v10588_v44 = vld [vmem:[#allocation3 + $0x1ef] sm:$0xff] }
 0x2b4   : >> { %3294 = vrot.lane.b32.xlu1 %v10505_v3, %s8925_s6  ;;  %4101 = vmatmul.mubr.f32.gmra.mxu1 %v2857_v25 }
 0x2b5   : >> { %2808 = vrot.lane.b32.xlu0 %v10503_v36, %s8925_s6  ;;  %v3031_v22 = vpop.permute.xlu0 %3030  ;;  %4300 = vmatprep.mubr.f32.mxu0 %v3621_v17  ;;  %v10590_v17 = vld [vmem:[#allocation3 + $0x130] sm:$0xff] }
 0x2b6   : >> { %v10512_v57 = vsel %vm227_vm0, %v2925_v10, %v3031_v22  ;;  %v3273_v32 = vpop.permute.xlu1 %3272  ;;  %4105 = vmatprep.mubr.f32.mxu1 %v3114_v24  ;;  %4301 = vmatmul.mubr.f32.vlgmr.msra.gmra.mxu0 %v10450_v56  ;;  %v3216_v56 = vld [vmem:[#allocation3 + $0xe9] sm:$0xff] }
 0x2b7   : >> { %v3366_v15 = vsel %vm227_vm0, %v3174_v41, %v3273_v32  ;;  %4305 = vmatprep.mubr.f32.mxu0 %v3622_v60  ;;  %v10560_v24 = vld [vmem:[#allocation3 + $0x1f0] sm:$0xff]  ;;  %v10602_v32 = vld [vmem:[#allocation3 + $0x1e8] sm:$0xff] }
 0x2b8   : >> { %3545 = vrot.lane.b32.xlu1 %v10404_v62, %s8925_s6  ;;  %v8377_v62 = vld [vmem:[%s9301_s10 + $0x448] sm:$0xff] }
 0x2b9   : >> { %2814 = vrot.lane.b32.xlu0 %v10516_v6, %s8925_s6  ;;  %v3033_v55 = vpop.permute.xlu0 %3032  ;;  %8743 = vmatprep.subr.mxu1 %v8377_v62 }
 0x2ba   : >> { %v10523_v48 = vsel %vm227_vm0, %v2926_v12, %v3033_v55  ;;  %v2771_v5 = vpop.permute.xlu1 %2770  ;;  %4306 = vmatmul.mubr.f32.gmra.mxu0 %v10430_v9  ;;  %8744 = vmatpush3.msra.mxu1 %v8377_v62  ;;  %v10607_v12 = vld [vmem:[#allocation3 + $0x107] sm:$0xff] }
 0x2bb   : >> { %v2859_v46 = vsel %vm227_vm0, %v2667_v38, %v2771_v5  ;;  %8745 = vmatprep.subr.mxu1 %v8376_v33  ;;  %v2978_v5 = vld [vmem:[#allocation3 + $0x207] sm:$0xff] }
 0x2bc   : >> { %3292 = vrot.lane.b32.xlu1 %v3216_v56, %s8925_s6  ;;  %8746 = vmatpush3.msra.mxu1 %v8376_v33  ;;  %v10642_v33 = vld [vmem:[#allocation3 + $0x150] sm:$0xff] }
 0x2bd   : >> { %3064 = vrot.lane.b32.xlu0 %v10527_v20, %s8925_s6  ;;  %v3035_v29 = vpop.permute.xlu0 %3034 }
 0x2be   : >> { %v10535_v54 = vsel %vm227_vm0, %v10463_v40, %v3035_v29  ;;  %v3532_v23 = vpop.permute.xlu1 %3531  ;;  %v2668_v29 = vld [vmem:[#allocation3 + $0x87] sm:$0xff] }
 0x2bf   : >> { %v3624_v9 = vsel %vm227_vm0, %v2667_v38, %v3532_v23 }
 0x2c0   : >> { %3551 = vrot.lane.b32.xlu1 %v3474_v63, %s8925_s6 }
 0x2c1   : >> { %3066 = vrot.lane.b32.xlu0 %v10538_v34, %s8925_s6  ;;  %v3037_v59 = vpop.permute.xlu0 %3036 }
 0x2c2   : >> { %v10545_v25 = vsel %vm227_vm0, %v10473_v49, %v3037_v59  ;;  %v3279_v40 = vpop.permute.xlu1 %3278  ;;  %v2979_v59 = vld [vmem:[#allocation3 + $0x20f] sm:$0xff] }
 0x2c3   : >> { %v10548_v31 = vsel %vm227_vm0, %v3177_v53, %v3279_v40  ;;  %v3221_v53 = vld [vmem:[#allocation3 + $0x131] sm:$0xff] }
 0x2c4   : >> { %3549 = vrot.lane.b32.xlu1 %v10322_v30, %s8925_s6  ;;  %v10568_v30 = vld [vmem:[#allocation3 + $0x10f] sm:$0xff] }
 0x2c5   : >> { %2812 = vrot.lane.b32.xlu0 %v10550_v18, %s8925_s6  ;;  %v3039_v35 = vpop.permute.xlu0 %3038 }
 0x2c6   : >> { %v10557_v60 = vsel %vm227_vm0, %v3215_v61, %v3039_v35  ;;  %v2769_v49 = vpop.permute.xlu1 %2768  ;;  %v3176_v61 = vld [vmem:[#allocation3 + $0x68] sm:$0xff] }
 0x2c7   : >> { %v2858_v11 = vsel %vm227_vm0, %v2666_v43, %v2769_v49 }
 0x2c8   : >> { %3296 = vrot.lane.b32.xlu1 %v10562_v28, %s8925_s6  ;;  %4106 = vmatmul.mubr.f32.gmra.mxu1 %v2858_v11  ;;  %v10631_v11 = vld [vmem:[#allocation3 + $0x149] sm:$0xff] }
 0x2c9   : >> { %2818 = vrot.lane.b32.xlu0 %v10560_v24, %s8925_s6  ;;  %4110 = vmatprep.mubr.f32.mxu1 %v10491_v58 }
 0x2ca   : >> { %v3530_v2 = vpop.permute.xlu1 %3529 }
 0x2cb   : >> { %v2791_v47 = vpop.permute.xlu0 %2790  ;;  %v3623_v19 = vsel %vm227_vm0, %v2666_v43, %v3530_v2  ;;  %v3178_v2 = vld [vmem:[#allocation3 + $0x88] sm:$0xff] }
 0x2cc   : >> { %v10573_v51 = vsel %vm227_vm0, %v10568_v30, %v2791_v47  ;;  %3553 = vrot.lane.b32.xlu1 %v10350_v26, %s8925_s6  ;;  %4111 = vmatmul.mubr.f32.gmra.mxu1 %v2859_v46  ;;  %v3220_v46 = vld [vmem:[#allocation3 + $0x129] sm:$0xff] }
 0x2cd   : >> { %3068 = vrot.lane.b32.xlu0 %v10576_v39, %s8925_s6  ;;  %4310 = vmatprep.mubr.f32.mxu0 %v3623_v19 }
 0x2ce   : >> { %v3277_v58 = vpop.permute.xlu1 %3276  ;;  %4115 = vmatprep.mubr.f32.mxu1 %v10500_v42  ;;  %4311 = vmatmul.mubr.f32.gmra.mxu0 %v3366_v15  ;;  %v2669_v42 = vld [vmem:[#allocation3 + $0x8f] sm:$0xff] }
 0x2cf   : >> { %v3041_v1 = vpop.permute.xlu0 %3040  ;;  %v3368_v27 = vsel %vm227_vm0, %v3176_v61, %v3277_v58  ;;  %4315 = vmatprep.mubr.f32.mxu0 %v3624_v9  ;;  %v3219_v15 = vld [vmem:[#allocation3 + $0x111] sm:$0xff] }
 0x2d0   : >> { %v10585_v13 = vsel %vm227_vm0, %v3216_v56, %v3041_v1  ;;  %3555 = vrot.lane.b32.xlu1 %v10590_v17, %s8925_s6  ;;  %v10616_v56 = vld [vmem:[#allocation3 + $0x12f] sm:$0xff] }
 0x2d1   : >> { %3070 = vrot.lane.b32.xlu0 %v10588_v44, %s8925_s6  ;;  %v10644_v1 = vld [vmem:[#allocation3 + $0x151] sm:$0xff] }
 0x2d2   : >> { %v2775_v10 = vpop.permute.xlu1 %2774  ;;  %4316 = vmatmul.mubr.f32.gmra.mxu0 %v10481_v50  ;;  %v2671_v61 = vld [vmem:[#allocation3 + $0xaf] sm:$0xff] }
 0x2d3   : >> { %v3043_v26 = vpop.permute.xlu0 %3042  ;;  %v2861_v41 = vsel %vm227_vm0, %v2669_v42, %v2775_v10  ;;  %v10664_v10 = vld [vmem:[#allocation3 + $0x14f] sm:$0xff] }
 0x2d4   : >> { %v10599_v22 = vsel %vm227_vm0, %v10505_v3, %v3043_v26  ;;  %3298 = vrot.lane.b32.xlu1 %v3219_v15, %s8925_s6 }
 0x2d5   : >> { %2816 = vrot.lane.b32.xlu0 %v10602_v32, %s8925_s6 }
 0x2d6   : >> { %v3536_v38 = vpop.permute.xlu1 %3535 }
 0x2d7   : >> { %v2789_v55 = vpop.permute.xlu0 %2788  ;;  %v3626_v3 = vsel %vm227_vm0, %v2669_v42, %v3536_v38  ;;  %v10658_v42 = vld [vmem:[#allocation3 + $0x169] sm:$0xff]  ;;  %v10671_v38 = vld [vmem:[#allocation3 + $0x171] sm:$0xff] }
 0x2d8   : >> { %v10611_v50 = vsel %vm227_vm0, %v10607_v12, %v2789_v55  ;;  %3300 = vrot.lane.b32.xlu1 %v3220_v46, %s8925_s6 }
 0x2d9   : >> { %3072 = vrot.lane.b32.xlu0 %v2978_v5, %s8925_s6 }
 0x2da   : >> { %v2773_v23 = vpop.permute.xlu1 %2772 }
 0x2db   : >> { %v2795_v62 = vpop.permute.xlu0 %2794  ;;  %v2860_v63 = vsel %vm227_vm0, %v2668_v29, %v2773_v23  ;;  %v10681_v23 = vld [vmem:[#allocation3 + $0x189] sm:$0xff] }
 0x2dc   : >> { %v10620_v9 = vsel %vm227_vm0, %v10616_v56, %v2795_v62  ;;  %3302 = vrot.lane.b32.xlu1 %v3221_v53, %s8925_s6  ;;  %4116 = vmatmul.mubr.f32.gmra.mxu1 %v2860_v63 }
 0x2dd   : >> { %3074 = vrot.lane.b32.xlu0 %v2979_v59, %s8925_s6  ;;  %4120 = vmatprep.mubr.f32.mxu1 %v10512_v57 }
 0x2de   : >> { %v3534_v35 = vpop.permute.xlu1 %3533 }
 0x2df   : >> { %v3045_v40 = vpop.permute.xlu0 %3044  ;;  %v3625_v49 = vsel %vm227_vm0, %v2668_v29, %v3534_v35 }
 0x2e0   : >> { %v10628_v43 = vsel %vm227_vm0, %v10562_v28, %v3045_v40  ;;  %3304 = vrot.lane.b32.xlu1 %v10631_v11, %s8925_s6  ;;  %4121 = vmatmul.mubr.f32.gmra.mxu1 %v2861_v41  ;;  %v10692_v40 = vld [vmem:[#allocation3 + $0x191] sm:$0xff] }
 0x2e1   : >> { %3557 = vrot.lane.b32.xlu0 %v10377_v14, %s8925_s6  ;;  %4320 = vmatprep.mubr.f32.mxu0 %v3625_v49  ;;  %v10650_v14 = vld [vmem:[#allocation3 + $0x127] sm:$0xff]  ;;  %v10700_v49 = vld [vmem:[#allocation3 + $0xcf] sm:$0xff] }
 0x2e2   : >> { %v3281_v19 = vpop.permute.xlu1 %3280  ;;  %4125 = vmatprep.mubr.f32.mxu1 %v10523_v48  ;;  %4321 = vmatmul.mubr.f32.gmra.mxu0 %v3368_v27 }
 0x2e3   : >> { %v3047_v47 = vpop.permute.xlu0 %3046  ;;  %v3370_v28 = vsel %vm227_vm0, %v3178_v2, %v3281_v19  ;;  %4325 = vmatprep.mubr.f32.mxu0 %v3626_v3  ;;  %v2670_v3 = vld [vmem:[#allocation3 + $0xa7] sm:$0xff] }
 0x2e4   : >> { %v10639_v57 = vsel %vm227_vm0, %v3219_v15, %v3047_v47  ;;  %3306 = vrot.lane.b32.xlu1 %v10644_v1, %s8925_s6  ;;  %v10709_v47 = vld [vmem:[#allocation3 + $0x1a9] sm:$0xff] }
 0x2e5   : >> { %3559 = vrot.lane.b32.xlu0 %v10642_v33, %s8925_s6  ;;  %v2672_v19 = vld [vmem:[#allocation3 + $0xc7] sm:$0xff] }
 0x2e6   : >> { %v2779_v58 = vpop.permute.xlu1 %2778  ;;  %4326 = vmatmul.mubr.f32.gmra.mxu0 %v10548_v31 }
 0x2e7   : >> { %v2793_v48 = vpop.permute.xlu0 %2792  ;;  %v2863_v26 = vsel %vm227_vm0, %v2671_v61, %v2779_v58  ;;  %v10726_v58 = vld [vmem:[#allocation3 + $0xef] sm:$0xff] }
 0x2e8   : >> { %v10655_v27 = vsel %vm227_vm0, %v10650_v14, %v2793_v48  ;;  %3308 = vrot.lane.b32.xlu1 %v10658_v42, %s8925_s6 }
 0x2e9   : >> { %3561 = vrot.lane.b32.xlu0 %v10418_v21, %s8925_s6 }
 0x2ea   : >> { %v3540_v15 = vpop.permute.xlu1 %3539 }
 0x2eb   : >> { %v2799_v41 = vpop.permute.xlu0 %2798  ;;  %v3628_v55 = vsel %vm227_vm0, %v2671_v61, %v3540_v15  ;;  %v10720_v61 = vld [vmem:[#allocation3 + $0x1b1] sm:$0xff]  ;;  %v10735_v15 = vld [vmem:[#allocation3 + $0x1c9] sm:$0xff] }
 0x2ec   : >> { %v10668_v31 = vsel %vm227_vm0, %v10664_v10, %v2799_v41  ;;  %3310 = vrot.lane.b32.xlu1 %v10671_v38, %s8925_s6 }
 0x2ed   : >> { %3563 = vrot.lane.b32.xlu0 %v10388_v16, %s8925_s6 }
 0x2ee   : >> { %v2777_v5 = vpop.permute.xlu1 %2776 }
 0x2ef   : >> { %v3049_v21 = vpop.permute.xlu0 %3048  ;;  %v2862_v29 = vsel %vm227_vm0, %v2670_v3, %v2777_v5 }
 0x2f0   : >> { %v10678_v62 = vsel %vm227_vm0, %v3220_v46, %v3049_v21  ;;  %3312 = vrot.lane.b32.xlu1 %v10681_v23, %s8925_s6  ;;  %4126 = vmatmul.mubr.f32.gmra.mxu1 %v2862_v29 }
 0x2f1   : >> { %3565 = vrot.lane.b32.xlu0 %v10461_v45, %s8925_s6  ;;  %4130 = vmatprep.mubr.f32.mxu1 %v10535_v54  ;;  %v10698_v45 = vld [vmem:[#allocation3 + $0x147] sm:$0xff] }
 0x2f2   : >> { %v3538_v63 = vpop.permute.xlu1 %3537 }
 0x2f3   : >> { %v3051_v16 = vpop.permute.xlu0 %3050  ;;  %v3627_v46 = vsel %vm227_vm0, %v2670_v3, %v3538_v63  ;;  %v10750_v3 = vld [vmem:[#allocation3 + $0x1d1] sm:$0xff]  ;;  %v10764_v63 = vld [vmem:[#allocation3 + $0x1e9] sm:$0xff] }
 0x2f4   : >> { %v10689_v59 = vsel %vm227_vm0, %v3221_v53, %v3051_v16  ;;  %3314 = vrot.lane.b32.xlu1 %v10692_v40, %s8925_s6  ;;  %4131 = vmatmul.mubr.f32.gmra.mxu1 %v2863_v26 }
 0x2f5   : >> { %3567 = vrot.lane.b32.xlu0 %v10432_v8, %s8925_s6  ;;  %4330 = vmatprep.mubr.f32.mxu0 %v3627_v46 }
 0x2f6   : >> { %v2783_v54 = vpop.permute.xlu1 %2782  ;;  %4135 = vmatprep.mubr.f32.mxu1 %v10545_v25  ;;  %4331 = vmatmul.mubr.f32.gmra.mxu0 %v3370_v28 }
 0x2f7   : >> { %v2797_v35 = vpop.permute.xlu0 %2796  ;;  %v2865_v8 = vsel %vm227_vm0, %v10700_v49, %v2783_v54  ;;  %4335 = vmatprep.mubr.f32.mxu0 %v3628_v55  ;;  %v10741_v55 = vld [vmem:[#allocation3 + $0xe7] sm:$0xff]  ;;  %v10776_v54 = vld [vmem:[#allocation3 + $0x1f1] sm:$0xff] }
 0x2f8   : >> { %v10705_v53 = vsel %vm227_vm0, %v10698_v45, %v2797_v35  ;;  %3316 = vrot.lane.b32.xlu1 %v10709_v47, %s8925_s6 }
 0x2f9   : >> { %3569 = vrot.lane.b32.xlu0 %v10503_v36, %s8925_s6 }
 0x2fa   : >> { %v2781_v25 = vpop.permute.xlu1 %2780 }
 0x2fb   : >> { %v2803_v2 = vpop.permute.xlu0 %2802  ;;  %v2864_v48 = vsel %vm227_vm0, %v2672_v19, %v2781_v25  ;;  %v3234_v25 = vld [vmem:[#allocation3 + $0x209] sm:$0xff] }
 0x2fc   : >> { %v10717_v28 = vsel %vm227_vm0, %v10406_v4, %v2803_v2  ;;  %3318 = vrot.lane.b32.xlu1 %v10720_v61, %s8925_s6  ;;  %4136 = vmatmul.mubr.f32.gmra.mxu1 %v2864_v48  ;;  %v10798_v48 = vld [vmem:[#allocation3 + $0x210] sm:$0xff] }
 0x2fd   : >> { %3571 = vrot.lane.b32.xlu0 %v10471_v52, %s8925_s6  ;;  %4140 = vmatprep.mubr.f32.mxu1 %v10557_v60 }
 0x2fe   : >> { %v2787_v26 = vpop.permute.xlu1 %2786 }
 0x2ff   : >> { %v3053_v36 = vpop.permute.xlu0 %3052  ;;  %v2867_v41 = vsel %vm227_vm0, %v10726_v58, %v2787_v26  ;;  %v10804_v26 = vld [vmem:[#allocation3 + $0x187] sm:$0xff] }
 0x300   : >> { %v10731_v4 = vsel %vm227_vm0, %v10631_v11, %v3053_v36  ;;  %3320 = vrot.lane.b32.xlu1 %v10735_v15, %s8925_s6  ;;  %4141 = vmatmul.mubr.f32.gmra.mxu1 %v2865_v8  ;;  %v3180_v8 = vld [vmem:[#allocation3 + $0xa8] sm:$0xff]  ;;  %v3235_v36 = vld [vmem:[#allocation3 + $0x211] sm:$0xff] }
 0x301   : >> { %3573 = vrot.lane.b32.xlu0 %v10550_v18, %s8925_s6  ;;  %4145 = vmatprep.mubr.f32.mxu1 %v10585_v13  ;;  %v10756_v18 = vld [vmem:[#allocation3 + $0x167] sm:$0xff]  ;;  %v3179_v13 = vld [vmem:[#allocation3 + $0x90] sm:$0xff] }
 0x302   : >> { %v2785_v60 = vpop.permute.xlu1 %2784 }
 0x303   : >> { %v3055_v52 = vpop.permute.xlu0 %3054  ;;  %v2866_v21 = vsel %vm227_vm0, %v10741_v55, %v2785_v60  ;;  %v3492_v60 = vld [vmem:[#allocation3 + $0x230] sm:$0xff] }
 0x304   : >> { %v10746_v11 = vsel %vm227_vm0, %v10644_v1, %v3055_v52  ;;  %3322 = vrot.lane.b32.xlu1 %v10750_v3, %s8925_s6  ;;  %4146 = vmatmul.mubr.f32.gmra.mxu1 %v2866_v21  ;;  %v3182_v21 = vld [vmem:[#allocation3 + $0xc8] sm:$0xff] }
 0x305   : >> { %3575 = vrot.lane.b32.xlu0 %v10516_v6, %s8925_s6  ;;  %4150 = vmatprep.mubr.f32.mxu1 %v10599_v22 }
 0x306   : >> { %v3283_v29 = vpop.permute.xlu1 %3282 }
 0x307   : >> { %v2801_v5 = vpop.permute.xlu0 %2800  ;;  %v3371_v16 = vsel %vm227_vm0, %v3179_v13, %v3283_v29 }
 0x308   : >> { %v10761_v1 = vsel %vm227_vm0, %v10756_v18, %v2801_v5  ;;  %3324 = vrot.lane.b32.xlu1 %v10764_v63, %s8925_s6  ;;  %4151 = vmatmul.mubr.f32.gmra.mxu1 %v2867_v41  ;;  %v3181_v41 = vld [vmem:[#allocation3 + $0xb0] sm:$0xff] }
 0x309   : >> { %3577 = vrot.lane.b32.xlu0 %v10602_v32, %s8925_s6  ;;  %4336 = vmatmul.mubr.f32.gmra.mxu0 %v3371_v16 }
 0x30a   : >> { %v3542_v46 = vpop.permute.xlu1 %3541  ;;  %4155 = vmatprep.mubr.f32.mxu1 %v10628_v43 }
 0x30b   : >> { %v2807_v6 = vpop.permute.xlu0 %2806  ;;  %v3629_v35 = vsel %vm227_vm0, %v2672_v19, %v3542_v46  ;;  %v10787_v19 = vld [vmem:[#allocation3 + $0x208] sm:$0xff] }
 0x30c   : >> { %v10773_v22 = vsel %vm227_vm0, %v10452_v37, %v2807_v6  ;;  %3326 = vrot.lane.b32.xlu1 %v10776_v54, %s8925_s6  ;;  %4156 = vmatmul.mubr.f32.gmra.mxu1 %v10611_v50 }
 0x30d   : >> { %3579 = vrot.lane.b32.xlu0 %v10560_v24, %s8925_s6  ;;  %4340 = vmatprep.mubr.f32.mxu0 %v3629_v35 }
 0x30e   : >> { %v3285_v43 = vpop.permute.xlu1 %3284  ;;  %4160 = vmatprep.mubr.f32.mxu1 %v10639_v57 }
 0x30f   : >> { %v3057_v32 = vpop.permute.xlu0 %3056  ;;  %v3372_v2 = vsel %vm227_vm0, %v3180_v8, %v3285_v43 }
 0x310   : >> { %v3130_v37 = vsel %vm227_vm0, %v10658_v42, %v3057_v32  ;;  %3328 = vrot.lane.b32.xlu1 %v3234_v25, %s8925_s6  ;;  %4161 = vmatmul.mubr.f32.gmra.mxu1 %v10573_v51  ;;  %v3491_v51 = vld [vmem:[#allocation3 + $0x228] sm:$0xff]  ;;  %v3185_v32 = vld [vmem:[#allocation3 + $0xf0] sm:$0xff] }
 0x311   : >> { %3581 = vrot.lane.b32.xlu0 %v10787_v19, %s8925_s6  ;;  %4341 = vmatmul.mubr.f32.gmra.mxu0 %v3372_v2  ;;  %v3184_v2 = vld [vmem:[#allocation3 + $0xe8] sm:$0xff] }
 0x312   : >> { %v3544_v50 = vpop.permute.xlu1 %3543  ;;  %4165 = vmatprep.mubr.f32.mxu1 %v10678_v62 }
 0x313   : >> { %v3059_v24 = vpop.permute.xlu0 %3058  ;;  %v3630_v42 = vsel %vm227_vm0, %v10700_v49, %v3544_v50 }
 0x314   : >> { %v3131_v57 = vsel %vm227_vm0, %v10671_v38, %v3059_v24  ;;  %3330 = vrot.lane.b32.xlu1 %v3235_v36, %s8925_s6  ;;  %4166 = vmatmul.mubr.f32.gmra.mxu1 %v10655_v27 }
 0x315   : >> { %3583 = vrot.lane.b32.xlu0 %v10798_v48, %s8925_s6  ;;  %4345 = vmatprep.mubr.f32.mxu0 %v3630_v42 }
 0x316   : >> { %v3287_v38 = vpop.permute.xlu1 %3286  ;;  %4170 = vmatprep.mubr.f32.mxu1 %v10689_v59 }
 0x317   : >> { %v2805_v62 = vpop.permute.xlu0 %2804  ;;  %v3373_v52 = vsel %vm227_vm0, %v3181_v41, %v3287_v38 }
 0x318   : >> { %v2876_v49 = vsel %vm227_vm0, %v10804_v26, %v2805_v62  ;;  %4346 = vmatmul.mubr.f32.gmra.mxu0 %v3373_v52  ;;  %4171 = vmatmul.mubr.f32.gmra.mxu1 %v10620_v9 }
 0x319   : >> { %3585 = vrot.lane.b32.xlu0 %v3491_v51, %s8925_s6  ;;  %4175 = vmatprep.mubr.f32.mxu1 %v10731_v4  ;;  %v3186_v51 = vld [vmem:[#allocation3 + $0x108] sm:$0xff] }
 0x31a   : >> { %v3289_v5 = vpop.permute.xlu1 %3288 }
 0x31b   : >> { %v2811_v27 = vpop.permute.xlu0 %2810  ;;  %v3374_v59 = vsel %vm227_vm0, %v3182_v21, %v3289_v5 }
 0x31c   : >> { %v2879_v13 = vsel %vm227_vm0, %v10494_v0, %v2811_v27  ;;  %4176 = vmatmul.mubr.f32.gmra.mxu1 %v10705_v53  ;;  %v3183_v0 = vld [vmem:[#allocation3 + $0xd0] sm:$0xff] }
 0x31d   : >> { %3587 = vrot.lane.b32.xlu0 %v3492_v60, %s8925_s6  ;;  %4180 = vmatprep.mubr.f32.mxu1 %v10746_v11 }
 0x31e   : >> { %v3548_v16 = vpop.permute.xlu1 %3547 }
 0x31f   : >> { %v3061_v29 = vpop.permute.xlu0 %3060  ;;  %v3632_v6 = vsel %vm227_vm0, %v10726_v58, %v3548_v16 }
 0x320   : >> { %v3132_v9 = vsel %vm227_vm0, %v10681_v23, %v3061_v29  ;;  %4181 = vmatmul.mubr.f32.gmra.mxu1 %v10668_v31 }
 0x321   : >> { %4185 = vmatprep.mubr.f32.mxu1 %v3130_v37 }
 0x322   : >> { %v3291_v46 = vpop.permute.xlu1 %3290 }
 0x323   : >> { %v3063_v4 = vpop.permute.xlu0 %3062  ;;  %v3375_v53 = vsel %vm227_vm0, %v3183_v0, %v3291_v46  ;;  %v3190_v46 = vld [vmem:[#allocation3 + $0x148] sm:$0xff] }
 0x324   : >> { %v3133_v35 = vsel %vm227_vm0, %v10692_v40, %v3063_v4  ;;  %4186 = vmatmul.mubr.f32.gmra.mxu1 %v10761_v1  ;;  %v3753_v4 = vld [vmem:[#allocation4 + $0x20] sm:$0xff] }
 0x325   : >> { %4190 = vmatprep.mubr.f32.mxu1 %v3131_v57 }
 0x326   : >> { %v3295_v8 = vpop.permute.xlu1 %3294 }
 0x327   : >> { %v2809_v11 = vpop.permute.xlu0 %2808  ;;  %v3377_v31 = vsel %vm227_vm0, %v3185_v32, %v3295_v8 }
 0x328   : >> { %v2878_v23 = vsel %vm227_vm0, %v10483_v7, %v2809_v11  ;;  %4191 = vmatmul.mubr.f32.gmra.mxu1 %v10717_v28  ;;  %v3758_v11 = vld [vmem:[#allocation4 + $0x48] sm:$0xff] }
 0x329   : >> { %4195 = vmatprep.mubr.f32.mxu1 %v3132_v9 }
 0x32a   : >> { %v3546_v43 = vpop.permute.xlu1 %3545 }
 0x32b   : >> { %v2815_v58 = vpop.permute.xlu0 %2814  ;;  %v3631_v1 = vsel %vm227_vm0, %v10741_v55, %v3546_v43 }
 0x32c   : >> { %v2881_v40 = vsel %vm227_vm0, %v10538_v34, %v2815_v58  ;;  %4350 = vmatprep.mubr.f32.mxu0 %v3631_v1  ;;  %4196 = vmatmul.mubr.f32.gmra.mxu1 %v2876_v49  ;;  %v3768_v58 = vld [vmem:[#allocation4 + $0x98] sm:$0xff] }
 0x32d   : >> { %4351 = vmatmul.mubr.f32.gmra.mxu0 %v3374_v59  ;;  %4200 = vmatprep.mubr.f32.mxu1 %v3133_v35  ;;  %v3188_v59 = vld [vmem:[#allocation3 + $0x128] sm:$0xff] }
 0x32e   : >> { %v3293_v25 = vpop.permute.xlu1 %3292  ;;  %4355 = vmatprep.mubr.f32.mxu0 %v3632_v6 }
 0x32f   : >> { %v3065_v37 = vpop.permute.xlu0 %3064  ;;  %v3376_v28 = vsel %vm227_vm0, %v3184_v2, %v3293_v25 }
 0x330   : >> { %v3134_v7 = vsel %vm227_vm0, %v10709_v47, %v3065_v37  ;;  %4201 = vmatmul.mubr.f32.gmra.mxu1 %v10773_v22  ;;  %v3192_v37 = vld [vmem:[#allocation3 + $0x168] sm:$0xff] }
 0x331   : >> { %4356 = vmatmul.mubr.f32.gmra.mxu0 %v3375_v53  ;;  %4205 = vmatprep.mubr.f32.mxu1 %v3134_v7  ;;  %v3778_v7 = vld [vmem:[#allocation4 + $0xe8] sm:$0xff] }
 0x332   : >> { %v3552_v24 = vpop.permute.xlu1 %3551 }
 0x333   : >> { %v3067_v34 = vpop.permute.xlu0 %3066  ;;  %v3634_v50 = vsel %vm227_vm0, %v10568_v30, %v3552_v24  ;;  %v3448_v24 = vld [vmem:[#allocation3 + $0x16f] sm:$0xff] }
 0x334   : >> { %v3135_v55 = vsel %vm227_vm0, %v10720_v61, %v3067_v34  ;;  %4206 = vmatmul.mubr.f32.gmra.mxu1 %v2878_v23  ;;  %v3783_v34 = vld [vmem:[#allocation4 + $0x110] sm:$0xff] }
 0x335   : >> { %4210 = vmatprep.mubr.f32.mxu1 %v3135_v55 }
 0x336   : >> { %v3550_v42 = vpop.permute.xlu1 %3549 }
 0x337   : >> { %v2813_v57 = vpop.permute.xlu0 %2812  ;;  %v3633_v22 = vsel %vm227_vm0, %v10607_v12, %v3550_v42 }
 0x338   : >> { %v2880_v47 = vsel %vm227_vm0, %v10527_v20, %v2813_v57  ;;  %4360 = vmatprep.mubr.f32.mxu0 %v3633_v22  ;;  %4211 = vmatmul.mubr.f32.gmra.mxu1 %v2879_v13  ;;  %v3788_v22 = vld [vmem:[#allocation4 + $0x138] sm:$0xff] }
 0x339   : >> { %4361 = vmatmul.mubr.f32.gmra.mxu0 %v3376_v28 }
 0x33a   : >> { %v3297_v62 = vpop.permute.xlu1 %3296  ;;  %4365 = vmatprep.mubr.f32.mxu0 %v3634_v50  ;;  %v3193_v50 = vld [vmem:[#allocation3 + $0x170] sm:$0xff] }
 0x33b   : >> { %v2819_v36 = vpop.permute.xlu0 %2818  ;;  %v3378_v61 = vsel %vm227_vm0, %v3186_v51, %v3297_v62  ;;  %v3793_v51 = vld [vmem:[#allocation4 + $0x160] sm:$0xff] }
 0x33c   : >> { %v2883_v30 = vsel %vm227_vm0, %v10588_v44, %v2819_v36 }
 0x33d   : >> { %4366 = vmatmul.mubr.f32.gmra.mxu0 %v3377_v31 }
 0x33e   : >> { %v3554_v38 = vpop.permute.xlu1 %3553 }
 0x33f   : >> { %v3069_v41 = vpop.permute.xlu0 %3068  ;;  %v3635_v12 = vsel %vm227_vm0, %v10650_v14, %v3554_v38 }
 0x340   : >> { %v3136_v20 = vsel %vm227_vm0, %v10735_v15, %v3069_v41  ;;  %4370 = vmatprep.mubr.f32.mxu0 %v3635_v12  ;;  %v3187_v15 = vld [vmem:[#allocation3 + $0x110] sm:$0xff]  ;;  %v3798_v12 = vld [vmem:[#allocation4 + $0x188] sm:$0xff] }
 0x341   : >> { %4215 = vmatprep.mubr.f32.mxu1 %v3136_v20  ;;  %4371 = vmatmul.mubr.f32.gmra.mxu0 %v3378_v61 }
 0x342   : >> { %4216 = vmatmul.mubr.f32.gmra.mxu1 %v2880_v47  ;;  %v3556_v52 = vpop.permute.xlu1 %3555 }
 0x343   : >> { %v3071_v49 = vpop.permute.xlu0 %3070  ;;  %v3636_v60 = vsel %vm227_vm0, %v10616_v56, %v3556_v52  ;;  %v3450_v52 = vld [vmem:[#allocation3 + $0x18f] sm:$0xff] }
 0x344   : >> { %v3137_v44 = vsel %vm227_vm0, %v10750_v3, %v3071_v49  ;;  %4375 = vmatprep.mubr.f32.mxu0 %v3636_v60  ;;  %v3803_v49 = vld [vmem:[#allocation4 + $0x1b0] sm:$0xff] }
 0x345   : >> { %4220 = vmatprep.mubr.f32.mxu1 %v3137_v44  ;;  %v3195_v60 = vld [vmem:[#allocation3 + $0x190] sm:$0xff] }
 0x346   : >> { %4221 = vmatmul.mubr.f32.gmra.mxu1 %v2881_v40  ;;  %v3299_v21 = vpop.permute.xlu1 %3298  ;;  %v3773_v40 = vld [vmem:[#allocation4 + $0xc0] sm:$0xff] }
 0x347   : >> { %v2817_v27 = vpop.permute.xlu0 %2816  ;;  %v3379_v5 = vsel %vm227_vm0, %v3187_v15, %v3299_v21 }
 0x348   : >> { %v2882_v14 = vsel %vm227_vm0, %v10576_v39, %v2817_v27  ;;  %4376 = vmatmul.mubr.f32.gmra.mxu0 %v3379_v5  ;;  %v3451_v5 = vld [vmem:[#allocation3 + $0x1a7] sm:$0xff] }
 0x34a   : >> { %v3301_v29 = vpop.permute.xlu1 %3300 }
 0x34b   : >> { %v3073_v13 = vpop.permute.xlu0 %3072  ;;  %v3380_v56 = vsel %vm227_vm0, %v3188_v59, %v3301_v29  ;;  %v3196_v59 = vld [vmem:[#allocation3 + $0x1a8] sm:$0xff] }
 0x34c   : >> { %v3138_v3 = vsel %vm227_vm0, %v10764_v63, %v3073_v13 }
 0x34d   : >> { %4225 = vmatprep.mubr.f32.mxu1 %v3138_v3 }
 0x34e   : >> { %4226 = vmatmul.mubr.f32.gmra.mxu1 %v2882_v14  ;;  %v3303_v9 = vpop.permute.xlu1 %3302  ;;  %v3813_v14 = vld [vmem:[#allocation4 + $0x200] sm:$0xff] }
 0x34f   : >> { %v3075_v16 = vpop.permute.xlu0 %3074  ;;  %v3381_v39 = vsel %vm227_vm0, %v10590_v17, %v3303_v9  ;;  %v3763_v17 = vld [vmem:[#allocation4 + $0x70] sm:$0xff] }
 0x350   : >> { %v3139_v6 = vsel %vm227_vm0, %v10776_v54, %v3075_v16  ;;  %v3818_v16 = vld [vmem:[#allocation4 + $0x228] sm:$0xff]  ;;  %v3823_v9 = vld [vmem:[#allocation4 + $0x250] sm:$0xff] }
 0x351   : >> { %4230 = vmatprep.mubr.f32.mxu1 %v3139_v6  ;;  %v3452_v6 = vld [vmem:[#allocation3 + $0x1af] sm:$0xff] }
 0x352   : >> { %4231 = vmatmul.mubr.f32.gmra.mxu1 %v2883_v30  ;;  %v3305_v35 = vpop.permute.xlu1 %3304  ;;  %v3194_v30 = vld [vmem:[#allocation3 + $0x188] sm:$0xff] }
 0x353   : >> { %v3558_v0 = vpop.permute.xlu0 %3557  ;;  %8747 = vmatprep.mubr.msk.f32.mxu1 %vm227_vm0, %v3753_v4  ;;  %v3382_v53 = vsel %vm227_vm0, %v3190_v46, %v3305_v35  ;;  %v3197_v4 = vld [vmem:[#allocation3 + $0x1b0] sm:$0xff] }
 0x354   : >> { %v3637_v63 = vsel %vm227_vm0, %v10698_v45, %v3558_v0  ;;  %v10873_v32 = vpop.f32.mrf.mxu1 }
 0x355   : >> { %4380 = vmatprep.mubr.f32.mxu0 %v3637_v63  ;;  %v3828_v63 = vld [vmem:[#allocation4 + $0x278] sm:$0xff] }
 0x356   : >> { %4381 = vmatmul.mubr.f32.gmra.mxu0 %v3380_v56  ;;  %8748 = vmatmul.mubr.msk.f32.vlgmr.msra.gmra.mxu1 %vm227_vm0, %v3758_v11  ;;  %v3307_v8 = vpop.permute.xlu1 %3306  ;;  %v4079_v31 = vpop.f32.mrf.mxu1  ;;  %v3833_v11 = vld [vmem:[#allocation4 + $0x2a0] sm:$0xff] }
 0x357   : >> { %v3560_v54 = vpop.permute.xlu0 %3559  ;;  %8750 = vmatprep.mubr.msk.f32.mxu1 %vm227_vm0, %v3763_v17  ;;  %v3383_v45 = vsel %vm227_vm0, %v10642_v33, %v3307_v8  ;;  %v3453_v17 = vld [vmem:[#allocation3 + $0x1c7] sm:$0xff] }
 0x358   : >> { %v3638_v23 = vsel %vm227_vm0, %v10664_v10, %v3560_v54  ;;  %v10881_v43 = vpop.f32.mrf.mxu1  ;;  %v3198_v8 = vld [vmem:[#allocation3 + $0x1c8] sm:$0xff] }
 0x359   : >> { %4385 = vmatprep.mubr.f32.mxu0 %v3638_v23 }
 0x35a   : >> { %4386 = vmatmul.mubr.f32.gmra.mxu0 %v3381_v39  ;;  %8751 = vmatmul.mubr.msk.f32.gmra.mxu1 %vm227_vm0, %v3768_v58  ;;  %v3309_v2 = vpop.permute.xlu1 %3308  ;;  %v4084_v33 = vpop.f32.mrf.mxu1 }
 0x35b   : >> { %v3562_v1 = vpop.permute.xlu0 %3561  ;;  %8753 = vmatprep.mubr.msk.f32.mxu1 %vm227_vm0, %v3773_v40  ;;  %v3384_v25 = vsel %vm227_vm0, %v3192_v37, %v3309_v2  ;;  %v3843_v2 = vld [vmem:[#allocation4 + $0x2f0] sm:$0xff] }
 0x35c   : >> { %v3639_v10 = vsel %vm227_vm0, %v10756_v18, %v3562_v1  ;;  %v10888_v28 = vpop.f32.mrf.mxu1  ;;  %v3838_v1 = vld [vmem:[#allocation4 + $0x2c8] sm:$0xff] }
 0x35d   : >> { %4390 = vmatprep.mubr.f32.mxu0 %v3639_v10 }
 0x35e   : >> { %4391 = vmatmul.mubr.f32.gmra.mxu0 %v3382_v53  ;;  %8754 = vmatmul.mubr.msk.f32.gmra.mxu1 %vm227_vm0, %v3778_v7  ;;  %v3311_v57 = vpop.permute.xlu1 %3310  ;;  %v4089_v47 = vpop.f32.mrf.mxu1  ;;  %v3199_v7 = vld [vmem:[#allocation3 + $0x1d0] sm:$0xff] }
 0x35f   : >> { %v3564_v55 = vpop.permute.xlu0 %3563  ;;  %8756 = vmatprep.mubr.msk.f32.mxu1 %vm227_vm0, %v3783_v34  ;;  %v3385_v18 = vsel %vm227_vm0, %v3193_v50, %v3311_v57 }
 0x360   : >> { %v3640_v42 = vsel %vm227_vm0, %v3448_v24, %v3564_v55  ;;  %v10894_v36 = vpop.f32.mrf.mxu1 }
 0x361   : >> { %4395 = vmatprep.mubr.f32.mxu0 %v3640_v42 }
 0x362   : >> { %4396 = vmatmul.mubr.f32.gmra.mxu0 %v3383_v45  ;;  %8757 = vmatmul.mubr.msk.f32.gmra.mxu1 %vm227_vm0, %v3788_v22  ;;  %v3313_v61 = vpop.permute.xlu1 %3312  ;;  %v4094_v20 = vpop.f32.mrf.mxu1  ;;  %v10918_v45 = vld [vmem:[%s10101_s14 + $0x1] ss:$0 sm:$0xff] }
 0x363   : >> { %v3566_v62 = vpop.permute.xlu0 %3565  ;;  %8759 = vmatprep.mubr.msk.f32.mxu1 %vm227_vm0, %v3793_v51  ;;  %v3386_v38 = vsel %vm227_vm0, %v3194_v30, %v3313_v61  ;;  %v4078_v10 = vadd.f32 %v10918_v45, %v10873_v32  ;;  %v3853_v32 = vld [vmem:[#allocation4 + $0x340] sm:$0xff]  ;;  %v4083_v22 = vadd.f32 %v10918_v45, %v10881_v43  ;;  %v3200_v30 = vld [vmem:[#allocation3 + $0x1e8] sm:$0xff]  ;;  %v3863_v43 = vld [vmem:[#allocation4 + $0x390] sm:$0xff] }
 0x364   : >> { %v3641_v41 = vsel %vm227_vm0, %v10804_v26, %v3566_v62  ;;  %v3808_v26 = vld [vmem:[#allocation4 + $0x1d8] sm:$0xff]  ;;  %v3455_v51 = vld [vmem:[#allocation3 + $0x1e7] sm:$0xff] }
 0x365   : >> { %4400 = vmatprep.mubr.f32.mxu0 %v3641_v41 }
 0x366   : >> { %4401 = vmatmul.mubr.f32.gmra.mxu0 %v3384_v25  ;;  %8760 = vmatmul.mubr.msk.f32.gmra.mxu1 %vm227_vm0, %v3798_v12  ;;  %v3315_v27 = vpop.permute.xlu1 %3314  ;;  %v3454_v25 = vld [vmem:[#allocation3 + $0x1cf] sm:$0xff] }
 0x367   : >> { %v3568_v44 = vpop.permute.xlu0 %3567  ;;  %8762 = vmatprep.mubr.msk.f32.mxu1 %vm227_vm0, %v3803_v49  ;;  %v3387_v21 = vsel %vm227_vm0, %v3195_v60, %v3315_v27  ;;  %v3858_v49 = vld [vmem:[#allocation4 + $0x368] sm:$0xff]  ;;  %v3201_v27 = vld [vmem:[#allocation3 + $0x1f0] sm:$0xff] }
 0x368   : >> { %v3642_v15 = vsel %vm227_vm0, %v3450_v52, %v3568_v44  ;;  %v3456_v44 = vld [vmem:[#allocation3 + $0x1ef] sm:$0xff] }
 0x369   : >> { %4405 = vmatprep.mubr.f32.mxu0 %v3642_v15 }
 0x36a   : >> { %4406 = vmatmul.mubr.f32.gmra.mxu0 %v3385_v18  ;;  %8763 = vmatmul.mubr.msk.f32.gmra.mxu1 %vm227_vm0, %v3808_v26  ;;  %v3317_v29 = vpop.permute.xlu1 %3316  ;;  %v3848_v18 = vld [vmem:[#allocation4 + $0x318] sm:$0xff] }
 0x36b   : >> { %v3570_v13 = vpop.permute.xlu0 %3569  ;;  %8765 = vmatprep.mubr.msk.f32.mxu1 %vm227_vm0, %v3813_v14  ;;  %v3388_v56 = vsel %vm227_vm0, %v3196_v59, %v3317_v29  ;;  %v3868_v14 = vld [vmem:[#allocation4 + $0x3b8] sm:$0xff] }
 0x36c   : >> { %v3643_v3 = vsel %vm227_vm0, %v3451_v5, %v3570_v13  ;;  %v3873_v5 = vld [vmem:[#allocation4 + $0x3e0] sm:$0xff] }
 0x36d   : >> { %4410 = vmatprep.mubr.f32.mxu0 %v3643_v3  ;;  %v3457_v13 = vld [vmem:[#allocation3 + $0x207] sm:$0xff] }
 0x36e   : >> { %4411 = vmatmul.mubr.f32.gmra.mxu0 %v3386_v38  ;;  %8766 = vmatmul.mubr.msk.f32.gmra.mxu1 %vm227_vm0, %v3818_v16  ;;  %v3319_v0 = vpop.permute.xlu1 %3318  ;;  %v3878_v16 = vld [vmem:[#allocation4 + $0x408] sm:$0xff] }
 0x36f   : >> { %v3572_v39 = vpop.permute.xlu0 %3571  ;;  %8768 = vmatprep.mubr.msk.f32.mxu1 %vm227_vm0, %v3823_v9  ;;  %v3389_v35 = vsel %vm227_vm0, %v3197_v4, %v3319_v0  ;;  %v3883_v9 = vld [vmem:[#allocation4 + $0x430] sm:$0xff] }
 0x370   : >> { %v3644_v46 = vsel %vm227_vm0, %v3452_v6, %v3572_v39  ;;  %v10913_v53 = vpop.f32.mrf.mxu1  ;;  %v3458_v6 = vld [vmem:[#allocation3 + $0x20f] sm:$0xff] }
 0x371   : >> { %4415 = vmatprep.mubr.f32.mxu0 %v3644_v46 }
 0x372   : >> { %4416 = vmatmul.mubr.f32.gmra.mxu0 %v3387_v21  ;;  %8769 = vmatmul.mubr.msk.f32.gmra.mxu1 %vm227_vm0, %v3828_v63  ;;  %v3321_v23 = vpop.permute.xlu1 %3320  ;;  %v4099_v40 = vpop.f32.mrf.mxu1  ;;  %v3888_v63 = vld [vmem:[#allocation4 + $0x458] sm:$0xff] }
 0x373   : >> { %v3574_v54 = vpop.permute.xlu0 %3573  ;;  %8771 = vmatprep.mubr.msk.f32.mxu1 %vm227_vm0, %v3833_v11  ;;  %v3390_v58 = vsel %vm227_vm0, %v3198_v8, %v3321_v23  ;;  %v3893_v11 = vld [vmem:[#allocation4 + $0x480] sm:$0xff]  ;;  %v3903_v23 = vld [vmem:[#allocation4 + $0x4d0] sm:$0xff] }
 0x374   : >> { %v3645_v31 = vsel %vm227_vm0, %v3453_v17, %v3574_v54  ;;  %v10922_v37 = vpop.f32.mrf.mxu1 }
 0x375   : >> { %4420 = vmatprep.mubr.f32.mxu0 %v3645_v31  ;;  %v3460_v31 = vld [vmem:[#allocation3 + $0x22f] sm:$0xff] }
 0x376   : >> { %4421 = vmatmul.mubr.f32.gmra.mxu0 %v3388_v56  ;;  %8772 = vmatmul.mubr.msk.f32.gmra.mxu1 %vm227_vm0, %v3838_v1  ;;  %v3323_v34 = vpop.permute.xlu1 %3322  ;;  %v4302_v50 = vpop.f32.mrf.mxu0 }
 0x377   : >> { %v3576_v33 = vpop.permute.xlu0 %3575  ;;  %8774 = vmatprep.mubr.msk.f32.mxu1 %vm227_vm0, %v3843_v2  ;;  %v3391_v55 = vsel %vm227_vm0, %v3199_v7, %v3323_v34  ;;  %v4104_v57 = vpop.f32.mrf.mxu1  ;;  %v10930_v42 = vadd.f32 %v4302_v50, %v4078_v10  ;;  %v3908_v10 = vld [vmem:[#allocation4 + $0x4f8] sm:$0xff] }
 0x378   : >> { %v3646_v24 = vsel %vm227_vm0, %v3454_v25, %v3576_v33  ;;  %v4304_v47 = vpop.f32.mrf.mxu0 }
 0x379   : >> { %4425 = vmatprep.mubr.f32.mxu0 %v3646_v24  ;;  %v4093_v24 = vadd.f32 %v10918_v45, %v10894_v36  ;;  %v4098_v47 = vadd.f32 %v10918_v45, %v10913_v53  ;;  %v4103_v36 = vadd.f32 %v10918_v45, %v10922_v37 }
 0x37a   : >> { %4426 = vmatmul.mubr.f32.gmra.mxu0 %v3389_v35  ;;  %8775 = vmatmul.mubr.msk.f32.gmra.mxu1 %vm227_vm0, %v3848_v18  ;;  %v3325_v61 = vpop.permute.xlu1 %3324  ;;  %v4307_v20 = vpop.f32.mrf.mxu0  ;;  %v3459_v35 = vld [vmem:[#allocation3 + $0x227] sm:$0xff] }
 0x37b   : >> { %v3578_v62 = vpop.permute.xlu0 %3577  ;;  %8777 = vmatprep.mubr.msk.f32.mxu1 %vm227_vm0, %v3853_v32  ;;  %v3392_v38 = vsel %vm227_vm0, %v3200_v30, %v3325_v61  ;;  %v10938_v12 = vadd.f32 %v4307_v20, %v4083_v22 }
 0x37c   : >> { %v3647_v41 = vsel %vm227_vm0, %v3455_v51, %v3578_v62  ;;  %v4309_v52 = vpop.f32.mrf.mxu0 }
 0x37d   : >> { %4430 = vmatprep.mubr.f32.mxu0 %v3647_v41 }
 0x37e   : >> { %4431 = vmatmul.mubr.f32.gmra.mxu0 %v3390_v58  ;;  %8778 = vmatmul.mubr.msk.f32.gmra.mxu1 %vm227_vm0, %v3858_v49  ;;  %v3327_v15 = vpop.permute.xlu1 %3326  ;;  %v3898_v58 = vld [vmem:[#allocation4 + $0x4a8] sm:$0xff] }
 0x37f   : >> { %v3580_v60 = vpop.permute.xlu0 %3579  ;;  %8780 = vmatprep.mubr.msk.f32.mxu1 %vm227_vm0, %v3863_v43  ;;  %v3393_v26 = vsel %vm227_vm0, %v3201_v27, %v3327_v15 }
 0x380   : >> { %v3648_v21 = vsel %vm227_vm0, %v3456_v44, %v3580_v60 }
 0x381   : >> { %4435 = vmatprep.mubr.f32.mxu0 %v3648_v21 }
 0x382   : >> { %4436 = vmatmul.mubr.f32.gmra.mxu0 %v3391_v55  ;;  %8781 = vmatmul.mubr.msk.f32.gmra.mxu1 %vm227_vm0, %v3868_v14  ;;  %v3329_v29 = vpop.permute.xlu1 %3328 }
 0x383   : >> { %v3582_v59 = vpop.permute.xlu0 %3581  ;;  %8783 = vmatprep.mubr.msk.f32.mxu1 %vm227_vm0, %v3873_v5  ;;  %v3394_v56 = vsel %vm227_vm0, %v10787_v19, %v3329_v29 }
 0x384   : >> { %v3649_v3 = vsel %vm227_vm0, %v3457_v13, %v3582_v59 }
 0x385   : >> { %4440 = vmatprep.mubr.f32.mxu0 %v3649_v3 }
 0x386   : >> { %4441 = vmatmul.mubr.f32.gmra.mxu0 %v3392_v38  ;;  %8784 = vmatmul.mubr.msk.f32.gmra.mxu1 %vm227_vm0, %v3878_v16  ;;  %v3331_v4 = vpop.permute.xlu1 %3330 }
 0x387   : >> { %v3584_v39 = vpop.permute.xlu0 %3583  ;;  %8786 = vmatprep.mubr.msk.f32.mxu1 %vm227_vm0, %v3883_v9  ;;  %v3395_v46 = vsel %vm227_vm0, %v10798_v48, %v3331_v4  ;;  %v4088_v48 = vadd.f32 %v10918_v45, %v10888_v28 }
 0x388   : >> { %v3650_v0 = vsel %vm227_vm0, %v3458_v6, %v3584_v39  ;;  %v4107_v19 = vpop.f32.mrf.mxu1 }
 0x389   : >> { %4445 = vmatprep.mubr.f32.mxu0 %v3650_v0  ;;  %v4108_v52 = vadd.f32 %v10918_v45, %v4107_v19 }
 0x38a   : >> { %4446 = vmatmul.mubr.f32.gmra.mxu0 %v3393_v26  ;;  %8787 = vmatmul.mubr.msk.f32.gmra.mxu1 %vm227_vm0, %v3888_v63  ;;  %v4109_v8 = vpop.f32.mrf.mxu1 }
 0x38b   : >> { %v3586_v17 = vpop.permute.xlu0 %3585  ;;  %8789 = vmatprep.mubr.msk.f32.mxu1 %vm227_vm0, %v3893_v11 }
 0x38c   : >> { %v3651_v54 = vsel %vm227_vm0, %v3459_v35, %v3586_v17  ;;  %v4112_v40 = vpop.f32.mrf.mxu1 }
 0x38d   : >> { %4450 = vmatprep.mubr.f32.mxu0 %v3651_v54  ;;  %v4113_v13 = vadd.f32 %v10918_v45, %v4112_v40 }
 0x38e   : >> { %4451 = vmatmul.mubr.f32.gmra.mxu0 %v3394_v56  ;;  %8790 = vmatmul.mubr.msk.f32.gmra.mxu1 %vm227_vm0, %v3898_v58  ;;  %v4312_v2 = vpop.f32.mrf.mxu0  ;;  %v4114_v7 = vpop.f32.mrf.mxu1 }
 0x38f   : >> { %v3588_v1 = vpop.permute.xlu0 %3587  ;;  %8792 = vmatprep.mubr.msk.f32.mxu1 %vm227_vm0, %v3903_v23  ;;  %v10962_v33 = vadd.f32 %v4312_v2, %v4088_v48 }
 0x390   : >> { %v3652_v25 = vsel %vm227_vm0, %v3460_v31, %v3588_v1  ;;  %v4314_v34 = vpop.f32.mrf.mxu0 }
 0x391   : >> { %4455 = vmatprep.mubr.f32.mxu0 %v3652_v25 }
 0x392   : >> { %4456 = vmatmul.mubr.f32.gmra.mxu0 %v3395_v46  ;;  %8793 = vmatmul.mubr.msk.f32.gmra.mxu1 %vm227_vm0, %v3908_v10  ;;  %v4317_v28 = vpop.f32.mrf.mxu0 }
 0x393   : >> { %v10967_v55 = vadd.f32 %v4317_v28, %v4093_v24 }
 0x394   : >> { %v4319_v50 = vpop.f32.mrf.mxu0 }
 0x39c   : >> { %v4117_v57 = vpop.f32.mrf.mxu1 }
 0x39d   : >> { %v4118_v39 = vadd.f32 %v10918_v45, %v4117_v57 }
 0x39e   : >> { %v4119_v18 = vpop.f32.mrf.mxu1 }
 0x3a0   : >> { %v4122_v32 = vpop.f32.mrf.mxu1 }
 0x3a1   : >> { %v4123_v11 = vadd.f32 %v10918_v45, %v4122_v32 }
 0x3a2   : >> { %v4322_v22 = vpop.f32.mrf.mxu0  ;;  %v4124_v62 = vpop.f32.mrf.mxu1 }
 0x3a3   : >> { %v10971_v51 = vadd.f32 %v4322_v22, %v4098_v47 }
 0x3a4   : >> { %v4324_v30 = vpop.f32.mrf.mxu0 }
 0x3a6   : >> { %v4327_v61 = vpop.f32.mrf.mxu0 }
 0x3a7   : >> { %v10975_v41 = vadd.f32 %v4327_v61, %v4103_v36 }
 0x3a8   : >> { %v4329_v38 = vpop.f32.mrf.mxu0 }
 0x3b0   : >> { %v10977_v20 = vpop.f32.mrf.mxu1 }
 0x3b2   : >> { %v4129_v49 = vpop.f32.mrf.mxu1 }
 0x3b4   : >> { %v10980_v43 = vpop.f32.mrf.mxu1 }
 0x3b6   : >> { %v4332_v53 = vpop.f32.mrf.mxu0  ;;  %v4134_v60 = vpop.f32.mrf.mxu1 }
 0x3b7   : >> { %v10982_v44 = vadd.f32 %v4332_v53, %v4108_v52 }
 0x3b8   : >> { %v4334_v27 = vpop.f32.mrf.mxu0 }
 0x3bc   : >> { %v10984_v15 = vpop.f32.mrf.mxu1 }
 0x3be   : >> { %v4139_v21 = vpop.f32.mrf.mxu1 }
 0x3c0   : >> { %v10986_v37 = vpop.f32.mrf.mxu1 }
 0x3c2   : >> { %v4144_v26 = vpop.f32.mrf.mxu1 }
 0x3c4   : >> { %v10988_v14 = vpop.f32.mrf.mxu1 }
 0x3c6   : >> { %v4149_v5 = vpop.f32.mrf.mxu1 }
 0x3c8   : >> { %v10991_v59 = vpop.f32.mrf.mxu1 }
 0x3c9   : >> { %v4337_v29 = vpop.f32.mrf.mxu0 }
 0x3ca   : >> { %v10993_v3 = vadd.f32 %v4337_v29, %v4113_v13  ;;  %v4154_v56 = vpop.f32.mrf.mxu1 }
 0x3cb   : >> { %v4339_v16 = vpop.f32.mrf.mxu0 }
 0x3cc   : >> { %v10995_v9 = vpop.f32.mrf.mxu1 }
 0x3ce   : >> { %v4159_v6 = vpop.f32.mrf.mxu1 }
 0x3d0   : >> { %v10998_v4 = vpop.f32.mrf.mxu1 }
 0x3d1   : >> { %v4342_v0 = vpop.f32.mrf.mxu0 }
 0x3d2   : >> { %v11000_v46 = vadd.f32 %v4342_v0, %v4118_v39  ;;  %v4164_v35 = vpop.f32.mrf.mxu1 }
 0x3d3   : >> { %v4344_v63 = vpop.f32.mrf.mxu0 }
 0x3d4   : >> { %v11002_v19 = vpop.f32.mrf.mxu1 }
 0x3d6   : >> { %v4169_v17 = vpop.f32.mrf.mxu1 }
 0x3d8   : >> { %v4347_v54 = vpop.f32.mrf.mxu0  ;;  %v11005_v8 = vpop.f32.mrf.mxu1 }
 0x3d9   : >> { %v11007_v23 = vadd.f32 %v4347_v54, %v4123_v11 }
 0x3da   : >> { %v4349_v31 = vpop.f32.mrf.mxu0  ;;  %v4174_v58 = vpop.f32.mrf.mxu1 }
 0x3dc   : >> { %v11009_v48 = vpop.f32.mrf.mxu1 }
 0x3de   : >> { %v4179_v40 = vpop.f32.mrf.mxu1 }
 0x3e0   : >> { %v11011_v1 = vpop.f32.mrf.mxu1 }
 0x3e2   : >> { %v4184_v2 = vpop.f32.mrf.mxu1 }
 0x3e4   : >> { %v11013_v10 = vpop.f32.mrf.mxu1 }
 0x3e6   : >> { %v4189_v25 = vpop.f32.mrf.mxu1 }
 0x3e8   : >> { %v11015_v7 = vpop.f32.mrf.mxu1 }
 0x3ea   : >> { %v4194_v34 = vpop.f32.mrf.mxu1 }
 0x3ec   : >> { %v11017_v24 = vpop.f32.mrf.mxu1 }
 0x3ed   : >> { %v11019_v28 = vpop.f32.mrf.mxu0 }
 0x3ee   : >> { %v4199_v50 = vpop.f32.mrf.mxu1 }
 0x3ef   : >> { %v4354_v57 = vpop.f32.mrf.mxu0 }
 0x3f0   : >> { %v11021_v18 = vpop.f32.mrf.mxu1 }
 0x3f1   : >> { %v11023_v47 = vpop.f32.mrf.mxu0 }
 0x3f2   : >> { %v4204_v32 = vpop.f32.mrf.mxu1 }
 0x3f3   : >> { %v4359_v22 = vpop.f32.mrf.mxu0 }
 0x3f4   : >> { %v11025_v62 = vpop.f32.mrf.mxu1 }
 0x3f6   : >> { %v4209_v30 = vpop.f32.mrf.mxu1 }
 0x3f8   : >> { %v11027_v36 = vpop.f32.mrf.mxu1 }
 0x3f9   : >> { %v11029_v61 = vpop.f32.mrf.mxu0 }
 0x3fa   : >> { %v4214_v38 = vpop.f32.mrf.mxu1 }
 0x3fb   : >> { %v4364_v49 = vpop.f32.mrf.mxu0 }
 0x3fd   : >> { %v11031_v52 = vpop.f32.mrf.mxu0 }
 0x3ff   : >> { %v4369_v53 = vpop.f32.mrf.mxu0 }
 0x401   : >> { %v11035_v27 = vpop.f32.mrf.mxu0 }
 0x402   : >> { %v11033_v60 = vpop.f32.mrf.mxu1 }
 0x403   : >> { %v4374_v26 = vpop.f32.mrf.mxu0 }
 0x404   : >> { %v4219_v21 = vpop.f32.mrf.mxu1 }
 0x406   : >> { %v11037_v5 = vpop.f32.mrf.mxu1 }
 0x408   : >> { %v4224_v13 = vpop.f32.mrf.mxu1  ;;  %v11039_v29 = vpop.f32.mrf.mxu0 }
 0x40a   : >> { %v4379_v56 = vpop.f32.mrf.mxu0 }
 0x40e   : >> { %v11041_v16 = vpop.f32.mrf.mxu1 }
 0x410   : >> { %v4229_v6 = vpop.f32.mrf.mxu1 }
 0x412   : >> { %v11043_v39 = vpop.f32.mrf.mxu1 }
 0x414   : >> { %v4234_v0 = vpop.f32.mrf.mxu1 }
 0x416   : >> { %v11045_v35 = vpop.f32.mrf.mxu0  ;;  %v8749_v63 = vpop.f32.mrf.mxu1 }
 0x417   : >> { %v4533_v11 = vadd.f32 %v8749_v63, %v10938_v12 }
 0x418   : >> { %v4384_v17 = vpop.f32.mrf.mxu0  ;;  %v4527_v54 = vpop.f32.mrf.mxu1 }
 0x419   : >> { %v4687_v31 = vmax.f32 %v4533_v11, 0.0  ;;  %v4528_v58 = vadd.f32 %v4527_v54, %v10930_v42 }
 0x41a   : >> { %v11049_v40 = vpop.f32.mrf.mxu0  ;;  %v8752_v2 = vpop.f32.mrf.mxu1 }
 0x41b   : >> { %4719 = vst.msk [vmem:[#allocation2 + $0x30] sm:$0xff] %vm227_vm0, %v4687_v31  ;;  %v4686_v25 = vmax.f32 %v4528_v58, 0.0  ;;  %v4543_v34 = vadd.f32 %v8752_v2, %v10967_v55  ;;  %v4128_v2 = vadd.f32 %v10918_v45, %v10977_v20 }
 0x41c   : >> { %v4389_v50 = vpop.f32.mrf.mxu0  ;;  %v4537_v57 = vpop.f32.mrf.mxu1 }
 0x41d   : >> { %4718 = vst.msk [vmem:[#allocation2 + $0x28] sm:$0xff] %vm227_vm0, %v4686_v25  ;;  %v4689_v32 = vmax.f32 %v4543_v34, 0.0  ;;  %v4538_v12 = vadd.f32 %v4537_v57, %v10962_v33  ;;  %v4143_v57 = vadd.f32 %v10918_v45, %v10986_v37 }
 0x41e   : >> { %v11055_v22 = vpop.f32.mrf.mxu0  ;;  %v8755_v30 = vpop.f32.mrf.mxu1 }
 0x41f   : >> { %4721 = vst.msk [vmem:[#allocation2 + $0x50] sm:$0xff] %vm227_vm0, %v4689_v32  ;;  %v4688_v42 = vmax.f32 %v4538_v12, 0.0  ;;  %v4553_v38 = vadd.f32 %v8755_v30, %v10975_v41 }
 0x420   : >> { %v4394_v49 = vpop.f32.mrf.mxu0  ;;  %v4547_v53 = vpop.f32.mrf.mxu1 }
 0x421   : >> { %4720 = vst.msk [vmem:[#allocation2 + $0x48] sm:$0xff] %vm227_vm0, %v4688_v42  ;;  %v4691_v55 = vmax.f32 %v4553_v38, 0.0  ;;  %v4548_v21 = vadd.f32 %v4547_v53, %v10971_v51  ;;  %v4133_v51 = vadd.f32 %v10918_v45, %v10980_v43  ;;  %v4368_v42 = vadd.f32 %v11031_v52, %v4143_v57 }
 0x422   : >> { %v11061_v26 = vpop.f32.mrf.mxu0  ;;  %v8758_v13 = vpop.f32.mrf.mxu1  ;;  %v4148_v52 = vadd.f32 %v10918_v45, %v10988_v14  ;;  %v4158_v14 = vadd.f32 %v10918_v45, %v10995_v9  ;;  %v4168_v9 = vadd.f32 %v10918_v45, %v11002_v19  ;;  %v4178_v19 = vadd.f32 %v10918_v45, %v11009_v48 }
 0x423   : >> { %4723 = vst.msk [vmem:[#allocation2 + $0x70] sm:$0xff] %vm227_vm0, %v4691_v55  ;;  %v4690_v33 = vmax.f32 %v4548_v21, 0.0  ;;  %v4563_v56 = vadd.f32 %v8758_v13, %v10993_v3  ;;  %v4358_v25 = vadd.f32 %v11023_v47, %v4133_v51  ;;  %v4138_v47 = vadd.f32 %v10918_v45, %v10984_v15 }
 0x424   : >> { %v4399_v6 = vpop.f32.mrf.mxu0  ;;  %v4557_v0 = vpop.f32.mrf.mxu1  ;;  %v4188_v48 = vadd.f32 %v10918_v45, %v11013_v10  ;;  %v4198_v10 = vadd.f32 %v10918_v45, %v11017_v24  ;;  %v4208_v24 = vadd.f32 %v10918_v45, %v11025_v62  ;;  %v4218_v62 = vadd.f32 %v10918_v45, %v11033_v60 }
 0x425   : >> { %4722 = vst.msk [vmem:[#allocation2 + $0x68] sm:$0xff] %vm227_vm0, %v4690_v33  ;;  %v4693_v41 = vmax.f32 %v4563_v56, 0.0  ;;  %v4558_v63 = vadd.f32 %v4557_v0, %v10982_v44  ;;  %v4363_v53 = vadd.f32 %v11029_v61, %v4138_v47  ;;  %v4373_v61 = vadd.f32 %v11035_v27, %v4148_v52 }
 0x426   : >> { %v11067_v11 = vpop.f32.mrf.mxu0  ;;  %v8761_v17 = vpop.f32.mrf.mxu1  ;;  %v4383_v27 = vadd.f32 %v11045_v35, %v4158_v14  ;;  %v4393_v35 = vadd.f32 %v11055_v22, %v4168_v9  ;;  %v4233_v60 = vadd.f32 %v10918_v45, %v11043_v39  ;;  %v11163_v39 = vld [vmem:[#allocation2 + $0x2f] sm:$0xff] (%p412_p4) }
 0x427   : >> { %4725 = vst.msk [vmem:[#allocation2 + $0x90] sm:$0xff] %vm227_vm0, %v4693_v41  ;;  %v4692_v54 = vmax.f32 %v4558_v63, 0.0  ;;  %v4573_v31 = vadd.f32 %v8761_v17, %v11007_v23  ;;  %v4353_v23 = vadd.f32 %v11019_v28, %v4128_v2  ;;  %v4153_v28 = vadd.f32 %v10918_v45, %v10991_v59  ;;  %5179 = vrot.lane.b32.xlu1 (%p412_p4), %v11163_v39, %s8927_s15 }
 0x428   : >> { %v4404_v58 = vpop.f32.mrf.mxu0  ;;  %v4567_v3 = vpop.f32.mrf.mxu1  ;;  %v4163_v59 = vadd.f32 %v10918_v45, %v10998_v4  ;;  %v4173_v4 = vadd.f32 %v10918_v45, %v11005_v8  ;;  %v4183_v8 = vadd.f32 %v10918_v45, %v11011_v1  ;;  %v4193_v1 = vadd.f32 %v10918_v45, %v11015_v7 }
 0x429   : >> { %4724 = vst.msk [vmem:[#allocation2 + $0x88] sm:$0xff] %vm227_vm0, %v4692_v54  ;;  %v4695_v44 = vmax.f32 %v4573_v31, 0.0  ;;  %v4568_v34 = vadd.f32 %v4567_v3, %v11000_v46  ;;  %v4378_v33 = vadd.f32 %v11039_v29, %v4153_v28  ;;  %v4403_v22 = vadd.f32 %v11067_v11, %v4178_v19 }
 0x42a   : >> { %v11078_v50 = vpop.f32.mrf.mxu0  ;;  %v8764_v43 = vpop.f32.mrf.mxu1  ;;  %v4388_v29 = vadd.f32 %v11049_v40, %v4163_v59  ;;  %v4398_v40 = vadd.f32 %v11061_v26, %v4173_v4  ;;  %v4203_v7 = vadd.f32 %v10918_v45, %v11021_v18  ;;  %v4213_v18 = vadd.f32 %v10918_v45, %v11027_v36 }
 0x42b   : >> { %4727 = vst.msk [vmem:[#allocation2 + $0xb0] sm:$0xff] %vm227_vm0, %v4695_v44  ;;  %v4694_v32 = vmax.f32 %v4568_v34, 0.0  ;;  %v4583_v12 = vadd.f32 %v8764_v43, %v4358_v25  ;;  %v4408_v26 = vadd.f32 %v11078_v50, %v4183_v8  ;;  %v4223_v36 = vadd.f32 %v10918_v45, %v11037_v5 }
 0x42c   : >> { %v4409_v20 = vpop.f32.mrf.mxu0  ;;  %v4577_v30 = vpop.f32.mrf.mxu1 }
 0x42d   : >> { %4726 = vst.msk [vmem:[#allocation2 + $0xa8] sm:$0xff] %vm227_vm0, %v4694_v32  ;;  %v4697_v46 = vmax.f32 %v4583_v12, 0.0  ;;  %v4578_v38 = vadd.f32 %v4577_v30, %v4353_v23 }
 0x42e   : >> { %v11088_v49 = vpop.f32.mrf.mxu0  ;;  %v8767_v37 = vpop.f32.mrf.mxu1 }
 0x42f   : >> { %4729 = vst.msk [vmem:[#allocation2 + $0xd0] sm:$0xff] %vm227_vm0, %v4697_v46  ;;  %v4696_v55 = vmax.f32 %v4578_v38, 0.0  ;;  %v4593_v21 = vadd.f32 %v8767_v37, %v4368_v42  ;;  %v4413_v11 = vadd.f32 %v11088_v49, %v4188_v48  ;;  %v13273_v48 = vmov (%p412_p4), 0.0  }
 0x430   : >> { %v4414_v13 = vpop.f32.mrf.mxu0  ;;  %v4587_v15 = vpop.f32.mrf.mxu1  ;;  %6176 = vmatprep.subr.mxu0 (%p412_p4), %v13273_v48  ;;  %6401 = vmatprep.subr.mxu1 (%p412_p4), %v13273_v48 }
 0x431   : >> { %4728 = vst.msk [vmem:[#allocation2 + $0xc8] sm:$0xff] %vm227_vm0, %v4696_v55  ;;  %v4699_v56 = vmax.f32 %v4593_v21, 0.0  ;;  %v4588_v6 = vadd.f32 %v4587_v15, %v4363_v53 }
 0x432   : >> { %v4417_v0 = vpop.f32.mrf.mxu0  ;;  %v8770_v41 = vpop.f32.mrf.mxu1 }
 0x433   : >> { %4731 = vst.msk [vmem:[#allocation2 + $0xf0] sm:$0xff] %vm227_vm0, %v4699_v56  ;;  %v4698_v63 = vmax.f32 %v4588_v6, 0.0  ;;  %v4603_v17 = vadd.f32 %v8770_v41, %v4378_v33  ;;  %v4418_v50 = vadd.f32 %v4417_v0, %v4193_v1 }
 0x434   : >> { %v4419_v51 = vpop.f32.mrf.mxu0  ;;  %v4597_v54 = vpop.f32.mrf.mxu1 }
 0x435   : >> { %4730 = vst.msk [vmem:[#allocation2 + $0xe8] sm:$0xff] %vm227_vm0, %v4698_v63  ;;  %v4701_v31 = vmax.f32 %v4603_v17, 0.0  ;;  %v4598_v58 = vadd.f32 %v4597_v54, %v4373_v61 }
 0x436   : >> { %v4422_v3 = vpop.f32.mrf.mxu0  ;;  %v8773_v2 = vpop.f32.mrf.mxu1 }
 0x437   : >> { %4733 = vst.msk [vmem:[#allocation2 + $0x110] sm:$0xff] %vm227_vm0, %v4701_v31  ;;  %v4700_v25 = vmax.f32 %v4598_v58, 0.0  ;;  %v4613_v44 = vadd.f32 %v8773_v2, %v4388_v29  ;;  %v4423_v49 = vadd.f32 %v4422_v3, %v4198_v10  ;;  %v11205_v10 = vld [vmem:[#allocation2 + $0x4f] sm:$0xff] (%p412_p4) }
 0x438   : >> { %v4424_v34 = vpop.f32.mrf.mxu0  ;;  %v4607_v43 = vpop.f32.mrf.mxu1 }
 0x439   : >> { %4732 = vst.msk [vmem:[#allocation2 + $0x108] sm:$0xff] %vm227_vm0, %v4700_v25  ;;  %v4703_v57 = vmax.f32 %v4613_v44, 0.0  ;;  %v4608_v23 = vadd.f32 %v4607_v43, %v4383_v27 }
 0x43a   : >> { %v4427_v32 = vpop.f32.mrf.mxu0  ;;  %v8776_v12 = vpop.f32.mrf.mxu1 }
 0x43b   : >> { %4735 = vst.msk [vmem:[#allocation2 + $0x130] sm:$0xff] %vm227_vm0, %v4703_v57  ;;  %v4702_v20 = vmax.f32 %v4608_v23, 0.0  ;;  %v4623_v30 = vadd.f32 %v8776_v12, %v4398_v40  ;;  %v4428_v0 = vadd.f32 %v4427_v32, %v4203_v7  ;;  %v8433_v7 = vld [vmem:[%s13258_s1 + $0x970] sm:$0xff] (%p412_p4) }
 0x43c   : >> { %v4429_v47 = vpop.f32.mrf.mxu0  ;;  %v4617_v42 = vpop.f32.mrf.mxu1 }
 0x43d   : >> { %4734 = vst.msk [vmem:[#allocation2 + $0x128] sm:$0xff] %vm227_vm0, %v4702_v20  ;;  %v4705_v46 = vmax.f32 %v4623_v30, 0.0  ;;  %v4618_v38 = vadd.f32 %v4617_v42, %v4393_v35  ;;  %v4228_v42 = vadd.f32 %v10918_v45, %v11041_v16  ;;  %v11161_v45 = vld [vmem:[#allocation2 + $0x27] sm:$0xff] (%p412_p4) }
 0x43e   : >> { %v4432_v37 = vpop.f32.mrf.mxu0  ;;  %v8779_v28 = vpop.f32.mrf.mxu1  ;;  %5177 = vrot.lane.b32.xlu0 (%p412_p4), %v11161_v45, %s8927_s15 }
 0x43f   : >> { %4737 = vst.msk [vmem:[#allocation2 + $0x150] sm:$0xff] %vm227_vm0, %v4705_v46  ;;  %v4704_v53 = vmax.f32 %v4618_v38, 0.0  ;;  %v4633_v55 = vadd.f32 %v8779_v28, %v4408_v26  ;;  %v4433_v3 = vadd.f32 %v4432_v37, %v4208_v24  ;;  %v8461_v24 = vld [vmem:[%s13258_s1 + $0xa50] sm:$0xff] (%p412_p4) }
 0x440   : >> { %v4434_v21 = vpop.f32.mrf.mxu0  ;;  %v4627_v13 = vpop.f32.mrf.mxu1 }
 0x441   : >> { %4736 = vst.msk [vmem:[#allocation2 + $0x148] sm:$0xff] %vm227_vm0, %v4704_v53  ;;  %v4707_v15 = vmax.f32 %v4633_v55, 0.0  ;;  %v4628_v52 = vadd.f32 %v4627_v13, %v4403_v22 }
 0x442   : >> { %v4437_v33 = vpop.f32.mrf.mxu0  ;;  %v8782_v56 = vpop.f32.mrf.mxu1 }
 0x443   : >> { %4739 = vst.msk [vmem:[#allocation2 + $0x170] sm:$0xff] %vm227_vm0, %v4707_v15  ;;  %v4706_v6 = vmax.f32 %v4628_v52, 0.0  ;;  %v4643_v41 = vadd.f32 %v8782_v56, %v4418_v50  ;;  %v4438_v2 = vadd.f32 %v4437_v33, %v4213_v18  ;;  %v4857_v50 = vld [vmem:[#allocation2 + $0x8] sm:$0xff] (%p412_p4)  ;;  %v4858_v15 = vld [vmem:[#allocation2 + $0x10] sm:$0xff] (%p412_p4)  ;;  %v8434_v56 = vld [vmem:[%s13258_s1 + $0x978] sm:$0xff] (%p412_p4) }
 0x444   : >> { %v4439_v59 = vpop.f32.mrf.mxu0  ;;  %v4637_v61 = vpop.f32.mrf.mxu1  ;;  %4921 = vrot.lane.b32.xlu0 (%p412_p4), %v4857_v50, %s8927_s15  ;;  %4923 = vrot.lane.b32.xlu1 (%p412_p4), %v4858_v15, %s8927_s15  ;;  %v11173_v52 = vld [vmem:[#allocation2 + $0x47] sm:$0xff] (%p412_p4)  ;;  %v11227_v18 = vld [vmem:[#allocation2 + $0x31] sm:$0xff] (%p412_p4) }
 0x445   : >> { %4738 = vst.msk [vmem:[#allocation2 + $0x168] sm:$0xff] %vm227_vm0, %v4706_v6  ;;  %v4709_v63 = vmax.f32 %v4643_v41, 0.0  ;;  %v4638_v17 = vadd.f32 %v4637_v61, %v4413_v11  ;;  %v11175_v33 = vld [vmem:[#allocation2 + $0x28] sm:$0xff] (%p412_p4)  ;;  %6177 = vmatpush1.msra.mxu0 (%p412_p4), %v8434_v56  ;;  %v8466_v59 = vld [vmem:[%s13258_s1 + $0xa78] sm:$0xff] (%p412_p4)  ;;  %v8465_v61 = vld [vmem:[%s13258_s1 + $0xa70] sm:$0xff] (%p412_p4) }
 0x446   : >> { %v4442_v51 = vpop.f32.mrf.mxu0  ;;  %v8785_v54 = vpop.f32.mrf.mxu1  ;;  %v11187_v11 = vld [vmem:[#allocation2 + $0x48] sm:$0xff] (%p412_p4)  ;;  %6178 = vmatprep.subr.mxu0 (%p412_p4), %v13273_v48  ;;  %6402 = vmatpush1.msra.mxu1 (%p412_p4), %v8466_v59 }
 0x447   : >> { %4741 = vst.msk [vmem:[#allocation2 + $0x190] sm:$0xff] %vm227_vm0, %v4709_v63  ;;  %v4708_v14 = vmax.f32 %v4638_v17, 0.0  ;;  %v4653_v29 = vadd.f32 %v8785_v54, %v4428_v0  ;;  %v4443_v35 = vadd.f32 %v4442_v51, %v4218_v62  ;;  %v11189_v6 = vld [vmem:[#allocation2 + $0x29] sm:$0xff] (%p412_p4)  ;;  %6179 = vmatpush1.msra.mxu0 (%p412_p4), %v8433_v7  ;;  %v8431_v63 = vld [vmem:[%s13258_s1 + $0x960] sm:$0xff] (%p412_p4)  ;;  %6403 = vmatprep.subr.mxu1 (%p412_p4), %v13273_v48  ;;  %v8430_v51 = vld [vmem:[%s13258_s1 + $0x958] sm:$0xff] (%p412_p4) }
 0x448   : >> { %v4444_v31 = vpop.f32.mrf.mxu0  ;;  %v4647_v58 = vpop.f32.mrf.mxu1  ;;  %5181 = vrot.lane.b32.xlu0 (%p412_p4), %v11173_v52, %s8927_s15  ;;  %4925 = vrot.lane.b32.xlu1 (%p412_p4), %v11175_v33, %s8927_s15  ;;  %v8432_v41 = vld [vmem:[%s13258_s1 + $0x968] sm:$0xff] (%p412_p4)  ;;  %v11207_v0 = vld [vmem:[#allocation2 + $0x30] sm:$0xff] (%p412_p4)  ;;  %v8446_v7 = vld [vmem:[%s13258_s1 + $0x9d8] sm:$0xff] (%p412_p4) }
 0x449   : >> { %4740 = vst.msk [vmem:[#allocation2 + $0x188] sm:$0xff] %vm227_vm0, %v4708_v14  ;;  %v4711_v4 = vmax.f32 %v4653_v29, 0.0  ;;  %v4648_v27 = vadd.f32 %v4647_v58, %v4423_v49  ;;  %6180 = vmatprep.subr.mxu0 (%p412_p4), %v13273_v48  ;;  %6404 = vmatpush1.msra.mxu1 (%p412_p4), %v8465_v61  ;;  %v8464_v17 = vld [vmem:[%s13258_s1 + $0xa68] sm:$0xff] (%p412_p4)  ;;  %v11225_v54 = vld [vmem:[#allocation2 + $0x50] sm:$0xff] (%p412_p4)  ;;  %v8463_v49 = vld [vmem:[%s13258_s1 + $0xa60] sm:$0xff] (%p412_p4) }
 0x44a   : >> { %v4447_v25 = vpop.f32.mrf.mxu0  ;;  %v8788_v44 = vpop.f32.mrf.mxu1  ;;  %6181 = vmatpush1.msra.mxu0 (%p412_p4), %v8432_v41  ;;  %6405 = vmatprep.subr.mxu1 (%p412_p4), %v13273_v48  ;;  %v8429_v14 = vld [vmem:[%s13258_s1 + $0x950] sm:$0xff] (%p412_p4)  ;;  %v8462_v29 = vld [vmem:[%s13258_s1 + $0xa58] sm:$0xff] (%p412_p4)  ;;  %v11245_v31 = vld [vmem:[#allocation2 + $0x67] sm:$0xff] (%p412_p4) }
 0x44b   : >> { %4743 = vst.msk [vmem:[#allocation2 + $0x1b0] sm:$0xff] %vm227_vm0, %v4711_v4  ;;  %v4710_v34 = vmax.f32 %v4648_v27, 0.0  ;;  %v4663_v43 = vadd.f32 %v8788_v44, %v4438_v2  ;;  %v4448_v57 = vadd.f32 %v4447_v25, %v4223_v36  ;;  %6182 = vmatprep.subr.mxu0 (%p412_p4), %v13273_v48  ;;  %6406 = vmatpush1.msra.mxu1 (%p412_p4), %v8464_v17  ;;  %v8428_v58 = vld [vmem:[%s13258_s1 + $0x948] sm:$0xff] (%p412_p4)  ;;  %v8427_v2 = vld [vmem:[%s13258_s1 + $0x940] sm:$0xff] (%p412_p4)  ;;  %v8426_v44 = vld [vmem:[%s13258_s1 + $0x938] sm:$0xff] (%p412_p4) }
 0x44c   : >> { %v4449_v9 = vpop.f32.mrf.mxu0  ;;  %v4657_v40 = vpop.f32.mrf.mxu1  ;;  %5690 = vrot.lane.b32.xlu0 (%p412_p4), %v11187_v11, %s8927_s15  ;;  %5433 = vrot.lane.b32.xlu1 (%p412_p4), %v11189_v6, %s8927_s15  ;;  %v11263_v4 = vld [vmem:[#allocation2 + $0x68] sm:$0xff] (%p412_p4)  ;;  %v8459_v36 = vld [vmem:[%s13258_s1 + $0xa40] sm:$0xff] (%p412_p4)  ;;  %v11303_v62 = vld [vmem:[#allocation2 + $0x51] sm:$0xff] (%p412_p4) }
 0x44d   : >> { %4742 = vst.msk [vmem:[#allocation2 + $0x1a8] sm:$0xff] %vm227_vm0, %v4710_v34  ;;  %v4713_v23 = vmax.f32 %v4663_v43, 0.0  ;;  %v4658_v32 = vadd.f32 %v4657_v40, %v4433_v3  ;;  %6183 = vmatpush1.msra.mxu0 (%p412_p4), %v8431_v63  ;;  %6407 = vmatprep.subr.mxu1 (%p412_p4), %v13273_v48  ;;  %v11265_v27 = vld [vmem:[#allocation2 + $0x49] sm:$0xff] (%p412_p4)  ;;  %v8458_v43 = vld [vmem:[%s13258_s1 + $0xa38] sm:$0xff] (%p412_p4)  ;;  %v8479_v41 = vld [vmem:[%s13258_s1 + $0xae0] sm:$0xff] (%p412_p4) }
 0x44e   : >> { %v4452_v12 = vpop.f32.mrf.mxu0  ;;  %v8791_v8 = vpop.f32.mrf.mxu1  ;;  %6184 = vmatprep.subr.mxu0 (%p412_p4), %v13273_v48  ;;  %6408 = vmatpush1.msra.mxu1 (%p412_p4), %v8463_v49  ;;  %v8460_v25 = vld [vmem:[%s13258_s1 + $0xa48] sm:$0xff] (%p412_p4)  ;;  %v8425_v34 = vld [vmem:[%s13258_s1 + $0x930] sm:$0xff] (%p412_p4)  ;;  %v8478_v63 = vld [vmem:[%s13258_s1 + $0xad8] sm:$0xff] (%p412_p4) }
 0x44f   : >> { %4745 = vst.msk [vmem:[#allocation2 + $0x1d0] sm:$0xff] %vm227_vm0, %v4713_v23  ;;  %v4712_v5 = vmax.f32 %v4658_v32, 0.0  ;;  %v4673_v20 = vadd.f32 %v8791_v8, %v4448_v57  ;;  %v4453_v37 = vadd.f32 %v4452_v12, %v4228_v42  ;;  %6185 = vmatpush1.msra.mxu0 (%p412_p4), %v8430_v51  ;;  %6409 = vmatprep.subr.mxu1 (%p412_p4), %v13273_v48  ;;  %v11283_v3 = vld [vmem:[#allocation2 + $0x6f] sm:$0xff] (%p412_p4)  ;;  %v8423_v23 = vld [vmem:[%s13258_s1 + $0x920] sm:$0xff] (%p412_p4)  ;;  %v8422_v8 = vld [vmem:[%s13258_s1 + $0x918] sm:$0xff] (%p412_p4) }
 0x450   : >> { %v4454_v30 = vpop.f32.mrf.mxu0  ;;  %v4667_v47 = vpop.f32.mrf.mxu1  ;;  %5183 = vrot.lane.b32.xlu0 (%p412_p4), %v11205_v10, %s8927_s15  ;;  %4927 = vrot.lane.b32.xlu1 (%p412_p4), %v11207_v0, %s8927_s15  ;;  %v8424_v9 = vld [vmem:[%s13258_s1 + $0x928] sm:$0xff] (%p412_p4)  ;;  %v11301_v40 = vld [vmem:[#allocation2 + $0x70] sm:$0xff] (%p412_p4) }
 0x451   : >> { %4744 = vst.msk [vmem:[#allocation2 + $0x1c8] sm:$0xff] %vm227_vm0, %v4712_v5  ;;  %v4715_v19 = vmax.f32 %v4673_v20, 0.0  ;;  %v4668_v26 = vadd.f32 %v4667_v47, %v4443_v35  ;;  %6186 = vmatprep.subr.mxu0 (%p412_p4), %v13273_v48  ;;  %6410 = vmatpush1.msra.mxu1 (%p412_p4), %v8462_v29  ;;  %v8457_v57 = vld [vmem:[%s13258_s1 + $0xa30] sm:$0xff] (%p412_p4)  ;;  %v8456_v32 = vld [vmem:[%s13258_s1 + $0xa28] sm:$0xff] (%p412_p4)  ;;  %v8455_v35 = vld [vmem:[%s13258_s1 + $0xa20] sm:$0xff] (%p412_p4) }
 0x452   : >> { %v4457_v46 = vpop.f32.mrf.mxu0  ;;  %v8794_v38 = vpop.f32.mrf.mxu1  ;;  %6187 = vmatpush1.msra.mxu0 (%p412_p4), %v8429_v14  ;;  %6411 = vmatprep.subr.mxu1 (%p412_p4), %v13273_v48  ;;  %v11321_v12 = vld [vmem:[#allocation2 + $0x87] sm:$0xff] (%p412_p4)  ;;  %v8421_v5 = vld [vmem:[%s13258_s1 + $0x910] sm:$0xff] (%p412_p4)  ;;  %v8454_v47 = vld [vmem:[%s13258_s1 + $0xa18] sm:$0xff] (%p412_p4) }
 0x453   : >> { %4747 = vst.msk [vmem:[#allocation2 + $0x1f0] sm:$0xff] %vm227_vm0, %v4715_v19  ;;  %v4714_v28 = vmax.f32 %v4668_v26, 0.0  ;;  %v4458_v1 = vadd.f32 %v4457_v46, %v4233_v60  ;;  %6188 = vmatprep.subr.mxu0 (%p412_p4), %v13273_v48  ;;  %6412 = vmatpush1.msra.mxu1 (%p412_p4), %v8461_v24  ;;  %v11339_v20 = vld [vmem:[#allocation2 + $0x88] sm:$0xff] (%p412_p4)  ;;  %v8453_v60 = vld [vmem:[%s13258_s1 + $0xa10] sm:$0xff] (%p412_p4)  ;;  %v8419_v26 = vld [vmem:[%s13258_s1 + $0x900] sm:$0xff] (%p412_p4) }
 0x454   : >> { %v4459_v22 = vpop.f32.mrf.mxu0  ;;  %v4677_v53 = vpop.f32.mrf.mxu1  ;;  %5692 = vrot.lane.b32.xlu0 (%p412_p4), %v11225_v54, %s8927_s15  ;;  %5435 = vrot.lane.b32.xlu1 (%p412_p4), %v11227_v18, %s8927_s15  ;;  %v11341_v30 = vld [vmem:[#allocation2 + $0x69] sm:$0xff] (%p412_p4)  ;;  %v11446_v49 = vld [vmem:[#allocation2 + $0x91] sm:$0xff] (%p412_p4)  ;;  %v8443_v29 = vld [vmem:[%s13258_s1 + $0x9c0] sm:$0xff] (%p412_p4) }
 0x455   : >> { %4746 = vst.msk [vmem:[#allocation2 + $0x1e8] sm:$0xff] %vm227_vm0, %v4714_v28  ;;  %v4683_v55 = vadd.f32 %v8794_v38, %v4458_v1  ;;  %v4678_v16 = vadd.f32 %v4677_v53, %v4453_v37  ;;  %414 = sbr.rel (!%p412_p4) target bundleno = 86 (0x56), region = 99  ;;  %6189 = vmatpush1.msra.mxu0 (%p412_p4), %v8428_v58  ;;  %6413 = vmatprep.subr.mxu1 (%p412_p4), %v13273_v48  ;;  %v8420_v42 = vld [vmem:[%s13258_s1 + $0x908] sm:$0xff] (%p412_p4)  ;;  %v8450_v38 = vld [vmem:[%s13258_s1 + $0x9f8] sm:$0xff] (%p412_p4)  ;;  %v5631_v37 = vld [vmem:[#allocation2 + $0x90] sm:$0xff] (%p412_p4) }
 0x456   : > { %6190 = vmatprep.subr.mxu0 (%p412_p4), %v13273_v48  ;;  %6414 = vmatpush1.msra.mxu1 (%p412_p4), %v8460_v25  ;;  %v11359_v19 = vld [vmem:[#allocation2 + $0x8f] sm:$0xff] (%p412_p4)  ;;  %v8451_v1 = vld [vmem:[%s13258_s1 + $0xa00] sm:$0xff] (%p412_p4)  ;;  %v8482_v53 = vld [vmem:[%s13258_s1 + $0xaf8] sm:$0xff] (%p412_p4) }
 0x457   : >> { %v4717_v21 = vmax.f32 %v4683_v55, 0.0  ;;  %v4716_v13 = vmax.f32 %v4678_v16, 0.0  ;;  %6191 = vmatpush1.msra.mxu0 (%p412_p4), %v8427_v2  ;;  %6415 = vmatprep.subr.mxu1 (%p412_p4), %v13273_v48  ;;  %v8452_v46 = vld [vmem:[%s13258_s1 + $0xa08] sm:$0xff] (%p412_p4)  ;;  %v11377_v28 = vld [vmem:[#allocation2 + $0x71] sm:$0xff] (%p412_p4)  ;;  %v8475_v25 = vld [vmem:[%s13258_s1 + $0xac0] sm:$0xff] (%p412_p4) }
 0x458   : > { %5185 = vrot.lane.b32.xlu0 (%p412_p4), %v11245_v31, %s8927_s15  ;;  %4929 = vrot.lane.b32.xlu1 (%p412_p4), %v11187_v11, %s8927_s15  ;;  %v8449_v22 = vld [vmem:[%s13258_s1 + $0x9f0] sm:$0xff] (%p412_p4)  ;;  %v11394_v55 = vld [vmem:[#allocation2 + $0xa7] sm:$0xff] (%p412_p4)  ;;  %v8442_v2 = vld [vmem:[%s13258_s1 + $0x9b8] sm:$0xff] (%p412_p4) }
 0x459   : >> { %4749 = vst.msk [vmem:[#allocation2 + $0x210] sm:$0xff] %vm227_vm0, %v4717_v21  ;;  %4748 = vst.msk [vmem:[#allocation2 + $0x208] sm:$0xff] %vm227_vm0, %v4716_v13  ;;  %6192 = vmatprep.subr.mxu0 (%p412_p4), %v13273_v48  ;;  %6416 = vmatpush1.msra.mxu1 (%p412_p4), %v8459_v36  ;;  %v8448_v16 = vld [vmem:[%s13258_s1 + $0x9e8] sm:$0xff] (%p412_p4)  ;;  %v8481_v21 = vld [vmem:[%s13258_s1 + $0xaf0] sm:$0xff] (%p412_p4) }
 0x45a   : > { %6193 = vmatpush1.msra.mxu0 %v8426_v44  ;;  %6417 = vmatprep.subr.mxu1 %v13273_v48  ;;  %v8447_v13 = vld [vmem:[%s13258_s1 + $0x9e0] sm:$0xff]  ;;  %v5632_v50 = vld [vmem:[#allocation2 + $0xa8] sm:$0xff]  ;;  %v8445_v61 = vld [vmem:[%s13258_s1 + $0x9d0] sm:$0xff] }
 0x45b   : > { %6194 = vmatprep.subr.mxu0 %v13273_v48  ;;  %6418 = vmatpush1.msra.mxu1 %v8458_v43  ;;  %v11412_v15 = vld [vmem:[#allocation2 + $0x89] sm:$0xff]  ;;  %v8474_v43 = vld [vmem:[%s13258_s1 + $0xab8] sm:$0xff] }
 0x45c   : > { %5694 = vrot.lane.b32.xlu0 %v11263_v4, %s8927_s15  ;;  %5437 = vrot.lane.b32.xlu1 %v11265_v27, %s8927_s15  ;;  %v8480_v56 = vld [vmem:[%s13258_s1 + $0xae8] sm:$0xff]  ;;  %v5633_v51 = vld [vmem:[#allocation2 + $0xb0] sm:$0xff] }
 0x45d   : > { %6195 = vmatpush1.msra.mxu0 %v8425_v34  ;;  %6419 = vmatprep.subr.mxu1 %v13273_v48  ;;  %v11429_v59 = vld [vmem:[#allocation2 + $0xaf] sm:$0xff]  ;;  %v5123_v24 = vld [vmem:[#allocation2 + $0xc7] sm:$0xff] }
 0x45e   : > { %6196 = vmatprep.subr.mxu0 %v13273_v48  ;;  %6420 = vmatpush1.msra.mxu1 %v8457_v57  ;;  %v8444_v17 = vld [vmem:[%s13258_s1 + $0x9c8] sm:$0xff]  ;;  %v8477_v14 = vld [vmem:[%s13258_s1 + $0xad0] sm:$0xff] }
 0x45f   : > { %6197 = vmatpush1.msra.mxu0 %v8424_v9  ;;  %6421 = vmatprep.subr.mxu1 %v13273_v48  ;;  %v8476_v58 = vld [vmem:[%s13258_s1 + $0xac8] sm:$0xff]  ;;  %v8441_v44 = vld [vmem:[%s13258_s1 + $0x9b0] sm:$0xff] }
 0x460   : > { %5187 = vrot.lane.b32.xlu0 %v11283_v3, %s8927_s15  ;;  %4931 = vrot.lane.b32.xlu1 %v11225_v54, %s8927_s15  ;;  %v5634_v36 = vld [vmem:[#allocation2 + $0xc8] sm:$0xff]  ;;  %v8473_v57 = vld [vmem:[%s13258_s1 + $0xab0] sm:$0xff] }
 0x461   : > { %6198 = vmatprep.subr.mxu0 %v13273_v48  ;;  %6422 = vmatpush1.msra.mxu1 %v8456_v32  ;;  %v11477_v34 = vld [vmem:[#allocation2 + $0xa9] sm:$0xff]  ;;  %v8439_v32 = vld [vmem:[%s13258_s1 + $0x9a0] sm:$0xff] }
 0x462   : > { %6199 = vmatpush1.msra.mxu0 %v8423_v23  ;;  %6423 = vmatprep.subr.mxu1 %v13273_v48  ;;  %v8440_v9 = vld [vmem:[%s13258_s1 + $0x9a8] sm:$0xff] }
 0x463   : > { %6200 = vmatprep.subr.mxu0 %v13273_v48  ;;  %6424 = vmatpush1.msra.mxu1 %v8455_v35  ;;  %v5124_v23 = vld [vmem:[#allocation2 + $0xcf] sm:$0xff]  ;;  %v8438_v35 = vld [vmem:[%s13258_s1 + $0x998] sm:$0xff] }
 0x464   : > { %5696 = vrot.lane.b32.xlu0 %v11301_v40, %s8927_s15  ;;  %5439 = vrot.lane.b32.xlu1 %v11303_v62, %s8927_s15 }
 0x465   : > { %6201 = vmatpush1.msra.mxu0 %v8422_v8  ;;  %6425 = vmatprep.subr.mxu1 %v13273_v48  ;;  %v8472_v8 = vld [vmem:[%s13258_s1 + $0xaa8] sm:$0xff] }
 0x466   : > { %6202 = vmatprep.subr.mxu0 %v13273_v48  ;;  %6426 = vmatpush1.msra.mxu1 %v8454_v47  ;;  %v11508_v47 = vld [vmem:[#allocation2 + $0xb1] sm:$0xff] }
 0x467   : > { %6203 = vmatpush1.msra.mxu0 %v8421_v5  ;;  %6427 = vmatprep.subr.mxu1 %v13273_v48  ;;  %v5635_v5 = vld [vmem:[#allocation2 + $0xd0] sm:$0xff] }
 0x468   : > { %5189 = vrot.lane.b32.xlu0 %v11321_v12, %s8927_s15  ;;  %4933 = vrot.lane.b32.xlu1 %v11263_v4, %s8927_s15 }
 0x469   : > { %6204 = vmatprep.subr.mxu0 %v13273_v48  ;;  %6428 = vmatpush1.msra.mxu1 %v8453_v60  ;;  %v8437_v60 = vld [vmem:[%s13258_s1 + $0x990] sm:$0xff] }
 0x46a   : > { %6205 = vmatpush1.msra.mxu0 %v8420_v42  ;;  %6429 = vmatprep.subr.mxu1 %v13273_v48  ;;  %v8471_v42 = vld [vmem:[%s13258_s1 + $0xaa0] sm:$0xff] }
 0x46b   : > { %6206 = vmatprep.subr.mxu0 %v13273_v48  ;;  %6430 = vmatpush1.msra.mxu1 %v8452_v46  ;;  %v5125_v46 = vld [vmem:[#allocation2 + $0xe7] sm:$0xff] }
 0x46c   : > { %5698 = vrot.lane.b32.xlu0 %v11339_v20, %s8927_s15  ;;  %5441 = vrot.lane.b32.xlu1 %v11341_v30, %s8927_s15 }
 0x46d   : > { %6207 = vmatpush1.msra.mxu0 %v8419_v26  ;;  %6431 = vmatprep.subr.mxu1 %v13273_v48  ;;  %v8470_v26 = vld [vmem:[%s13258_s1 + $0xa98] sm:$0xff] }
 0x46e   : > { %6208 = vmatprep.subr.mxu0 %v13273_v48  ;;  %6432 = vmatpush1.msra.mxu1 %v8451_v1  ;;  %v8435_v1 = vld [vmem:[%s13258_s1 + $0x980] sm:$0xff] }
 0x46f   : > { %6209 = vmatpush2.msra.mxu0 %v8450_v38  ;;  %6433 = vmatprep.subr.mxu1 %v13273_v48  ;;  %v8436_v38 = vld [vmem:[%s13258_s1 + $0x988] sm:$0xff] }
 0x470   : > { %5191 = vrot.lane.b32.xlu0 %v11359_v19, %s8927_s15  ;;  %4935 = vrot.lane.b32.xlu1 %v11301_v40, %s8927_s15 }
 0x471   : > { %6210 = vmatprep.subr.mxu0 %v13273_v48  ;;  %6434 = vmatpush2.msra.mxu1 %v8482_v53  ;;  %v11539_v53 = vld [vmem:[#allocation2 + $0xc9] sm:$0xff] }
 0x472   : > { %6211 = vmatpush2.msra.mxu0 %v8449_v22  ;;  %6435 = vmatprep.subr.mxu1 %v13273_v48  ;;  %v5636_v22 = vld [vmem:[#allocation2 + $0xe8] sm:$0xff] }
 0x473   : > { %6212 = vmatprep.subr.mxu0 %v13273_v48  ;;  %6436 = vmatpush2.msra.mxu1 %v8481_v21  ;;  %v8467_v21 = vld [vmem:[%s13258_s1 + $0xa80] sm:$0xff] }
 0x474   : > { %5700 = vrot.lane.b32.xlu0 %v5631_v37, %s8927_s15  ;;  %5443 = vrot.lane.b32.xlu1 %v11377_v28, %s8927_s15 }
 0x475   : > { %6213 = vmatpush2.msra.mxu0 %v8448_v16  ;;  %6437 = vmatprep.subr.mxu1 %v13273_v48  ;;  %v8468_v16 = vld [vmem:[%s13258_s1 + $0xa88] sm:$0xff] }
 0x476   : > { %6214 = vmatprep.subr.mxu0 %v13273_v48  ;;  %6438 = vmatpush2.msra.mxu1 %v8480_v56  ;;  %v11556_v56 = vld [vmem:[#allocation2 + $0xd1] sm:$0xff] }
 0x477   : > { %6215 = vmatpush2.msra.mxu0 %v8447_v13  ;;  %6439 = vmatprep.subr.mxu1 %v13273_v48  ;;  %v5126_v13 = vld [vmem:[#allocation2 + $0xef] sm:$0xff] }
 0x478   : > { %5193 = vrot.lane.b32.xlu0 %v11394_v55, %s8927_s15  ;;  %4937 = vrot.lane.b32.xlu1 %v11339_v20, %s8927_s15 }
 0x479   : > { %6216 = vmatprep.subr.mxu0 %v13273_v48  ;;  %6440 = vmatpush2.msra.mxu1 %v8479_v41  ;;  %v5638_v41 = vld [vmem:[#allocation2 + $0x108] sm:$0xff] }
 0x47a   : > { %6217 = vmatpush2.msra.mxu0 %v8446_v7  ;;  %6441 = vmatprep.subr.mxu1 %v13273_v48  ;;  %v5127_v7 = vld [vmem:[#allocation2 + $0x107] sm:$0xff] }
 0x47b   : > { %6218 = vmatprep.subr.mxu0 %v13273_v48  ;;  %6442 = vmatpush2.msra.mxu1 %v8478_v63  ;;  %v5081_v63 = vld [vmem:[#allocation2 + $0x9] sm:$0xff] }
 0x47c   : > { %5702 = vrot.lane.b32.xlu0 %v5632_v50, %s8927_s15  ;;  %5445 = vrot.lane.b32.xlu1 %v11412_v15, %s8927_s15 }
 0x47d   : > { %6219 = vmatpush2.msra.mxu0 %v8445_v61  ;;  %6443 = vmatprep.subr.mxu1 %v13273_v48  ;;  %v5128_v61 = vld [vmem:[#allocation2 + $0x10f] sm:$0xff] }
 0x47e   : > { %6220 = vmatprep.subr.mxu0 %v13273_v48  ;;  %6444 = vmatpush2.msra.mxu1 %v8477_v14  ;;  %v11570_v14 = vld [vmem:[#allocation2 + $0xf1] sm:$0xff] }
 0x47f   : > { %6221 = vmatpush2.msra.mxu0 %v8444_v17  ;;  %6445 = vmatprep.subr.mxu1 %v13273_v48  ;;  %v5082_v17 = vld [vmem:[#allocation2 + $0x11] sm:$0xff] }
 0x480   : > { %5195 = vrot.lane.b32.xlu0 %v11429_v59, %s8927_s15  ;;  %4939 = vrot.lane.b32.xlu1 %v5631_v37, %s8927_s15  ;;  %v8469_v37 = vld [vmem:[%s13258_s1 + $0xa90] sm:$0xff] }
 0x481   : > { %6222 = vmatprep.subr.mxu0 %v13273_v48  ;;  %6446 = vmatpush2.msra.mxu1 %v8476_v58 }
 0x482   : > { %6223 = vmatpush2.msra.mxu0 %v8443_v29  ;;  %6447 = vmatprep.subr.mxu1 %v13273_v48 }
 0x483   : > { %6224 = vmatprep.subr.mxu0 %v13273_v48  ;;  %6448 = vmatpush2.msra.mxu1 %v8475_v25  ;;  %v4825_v25 = vld [vmem:[#allocation2 + $0x7] sm:$0xff] }
 0x484   : > { %5704 = vrot.lane.b32.xlu0 %v5633_v51, %s8927_s15  ;;  %5447 = vrot.lane.b32.xlu1 %v11446_v49, %s8927_s15 }
 0x485   : > { %6225 = vmatpush2.msra.mxu0 %v8442_v2  ;;  %6449 = vmatprep.subr.mxu1 %v13273_v48 }
 0x486   : > { %6226 = vmatprep.subr.mxu0 %v13273_v48  ;;  %6450 = vmatpush2.msra.mxu1 %v8474_v43 }
 0x487   : > { %6227 = vmatpush2.msra.mxu0 %v8441_v44  ;;  %6451 = vmatprep.subr.mxu1 %v13273_v48  ;;  %v4826_v44 = vld [vmem:[#allocation2 + $0xf] sm:$0xff] }
 0x488   : > { %5197 = vrot.lane.b32.xlu0 %v5123_v24, %s8927_s15  ;;  %4941 = vrot.lane.b32.xlu1 %v5632_v50, %s8927_s15  ;;  %v5637_v50 = vld [vmem:[#allocation2 + $0xf0] sm:$0xff] }
 0x489   : > { %6228 = vmatprep.subr.mxu0 %v13273_v48  ;;  %6452 = vmatpush2.msra.mxu1 %v8473_v57 }
 0x48a   : > { %6229 = vmatpush2.msra.mxu0 %v8440_v9  ;;  %6453 = vmatprep.subr.mxu1 %v13273_v48 }
 0x48b   : > { %6230 = vmatprep.subr.mxu0 %v13273_v48  ;;  %6454 = vmatpush2.msra.mxu1 %v8472_v8  ;;  %v11584_v8 = vld [vmem:[#allocation2 + $0x109] sm:$0xff] }
 0x48c   : > { %5706 = vrot.lane.b32.xlu0 %v5634_v36, %s8927_s15  ;;  %5449 = vrot.lane.b32.xlu1 %v11477_v34, %s8927_s15 }
 0x48d   : > { %6231 = vmatpush2.msra.mxu0 %v8439_v32  ;;  %6455 = vmatprep.subr.mxu1 %v13273_v48  ;;  %v5640_v32 = vld [vmem:[#allocation2 + $0x128] sm:$0xff] }
 0x48e   : > { %6232 = vmatprep.subr.mxu0 %v13273_v48  ;;  %6456 = vmatpush2.msra.mxu1 %v8471_v42 }
 0x48f   : > { %6233 = vmatpush2.msra.mxu0 %v8438_v35  ;;  %6457 = vmatprep.subr.mxu1 %v13273_v48 }
 0x490   : > { %5199 = vrot.lane.b32.xlu0 %v5124_v23, %s8927_s15  ;;  %4943 = vrot.lane.b32.xlu1 %v5633_v51, %s8927_s15  ;;  %v5639_v51 = vld [vmem:[#allocation2 + $0x110] sm:$0xff] }
 0x491   : > { %6234 = vmatprep.subr.mxu0 %v13273_v48  ;;  %6458 = vmatpush2.msra.mxu1 %v8470_v26  ;;  %v8490_v26 = vld [vmem:[%s13258_s1 + $0xb38] sm:$0xff] }
 0x492   : > { %6235 = vmatpush2.msra.mxu0 %v8437_v60  ;;  %6459 = vmatprep.subr.mxu1 %v13273_v48 }
 0x493   : > { %6236 = vmatprep.subr.mxu0 %v13273_v48  ;;  %6460 = vmatpush2.msra.mxu1 %v8469_v37 }
 0x494   : > { %5708 = vrot.lane.b32.xlu0 %v5635_v5, %s8927_s15  ;;  %5451 = vrot.lane.b32.xlu1 %v11508_v47, %s8927_s15 }
 0x495   : > { %6237 = vmatpush2.msra.mxu0 %v8436_v38  ;;  %6461 = vmatprep.subr.mxu1 %v13273_v48 }
 0x496   : > { %6238 = vmatprep.subr.mxu0 %v13273_v48  ;;  %6462 = vmatpush2.msra.mxu1 %v8468_v16 }
 0x497   : > { %6239 = vmatpush2.msra.mxu0 %v8435_v1  ;;  %6463 = vmatprep.subr.mxu1 %v13273_v48  ;;  %v11563_v48 = vld [vmem:[#allocation2 + $0xe9] sm:$0xff] }
 0x498   : > { %5201 = vrot.lane.b32.xlu0 %v5125_v46, %s8927_s15  ;;  %4945 = vrot.lane.b32.xlu1 %v5634_v36, %s8927_s15  ;;  %v11577_v36 = vld [vmem:[#allocation2 + $0x127] sm:$0xff]  ;;  %v11596_v46 = vld [vmem:[#allocation2 + $0x12f] sm:$0xff] }
 0x499   : > { %6464 = vmatpush2.msra.mxu1 %v8467_v21  ;;  %v5180_v58 = vpop.permute.xlu1 %5179  ;;  %8795 = vmatprep.subr.mxu0 %v8490_v26  ;;  %v5641_v1 = vld [vmem:[#allocation2 + $0x130] sm:$0xff] }
 0x49a   : > { %v5274_v2 = vsel %vm227_vm0, %v5082_v17, %v5180_v58  ;;  %8859 = vmatprep.subr.mxu1 %v8490_v26 }
 0x49c   : > { %5710 = vrot.lane.b32.xlu0 %v5636_v22, %s8927_s15  ;;  %5453 = vrot.lane.b32.xlu1 %v11539_v53, %s8927_s15 }
 0x4a0   : > { %5203 = vrot.lane.b32.xlu0 %v5126_v13, %s8927_s15  ;;  %4947 = vrot.lane.b32.xlu1 %v5635_v5, %s8927_s15 }
 0x4a4   : > { %5712 = vrot.lane.b32.xlu0 %v5637_v50, %s8927_s15  ;;  %5455 = vrot.lane.b32.xlu1 %v11556_v56, %s8927_s15 }
 0x4a8   : > { %5205 = vrot.lane.b32.xlu0 %v5127_v7, %s8927_s15  ;;  %4949 = vrot.lane.b32.xlu1 %v5636_v22, %s8927_s15  ;;  %v11605_v22 = vld [vmem:[#allocation2 + $0x111] sm:$0xff] }
 0x4ac   : > { %5714 = vrot.lane.b32.xlu0 %v5638_v41, %s8927_s15  ;;  %5457 = vrot.lane.b32.xlu1 %v11563_v48, %s8927_s15 }
 0x4b0   : > { %5207 = vrot.lane.b32.xlu0 %v5128_v61, %s8927_s15  ;;  %4951 = vrot.lane.b32.xlu1 %v5637_v50, %s8927_s15  ;;  %v5178_v29 = vpop.permute.xlu0 %5177  ;;  %v11614_v50 = vld [vmem:[#allocation2 + $0x147] sm:$0xff] }
 0x4b1   : > { %v5273_v24 = vsel %vm227_vm0, %v5081_v63, %v5178_v29  ;;  %v11623_v63 = vld [vmem:[#allocation2 + $0x129] sm:$0xff] }
 0x4b2   : > { %6240 = vmatprep.mubr.f32.mxu0 %v5273_v24  ;;  %v11635_v24 = vld [vmem:[#allocation2 + $0x14f] sm:$0xff] }
 0x4b4   : > { %5716 = vrot.lane.b32.xlu0 %v5639_v51, %s8927_s15  ;;  %5459 = vrot.lane.b32.xlu1 %v11570_v14, %s8927_s15 }
 0x4b6   : > { %v4922_v43 = vpop.permute.xlu0 %4921  ;;  %v4924_v9 = vpop.permute.xlu1 %4923 }
 0x4b7   : > { %v5017_v57 = vsel %vm227_vm0, %v4825_v25, %v4922_v43  ;;  %v5018_v23 = vsel %vm227_vm0, %v4826_v44, %v4924_v9  ;;  %v11644_v44 = vld [vmem:[#allocation2 + $0x150] sm:$0xff] }
 0x4b8   : > { %5209 = vrot.lane.b32.xlu0 %v11577_v36, %s8927_s15  ;;  %4953 = vrot.lane.b32.xlu1 %v5638_v41, %s8927_s15  ;;  %v11646_v43 = vld [vmem:[#allocation2 + $0x131] sm:$0xff] }
 0x4b9   : > { %6241 = vmatmul.mubr.f32.vlgmr.msra.gmra.mxu0 %v5017_v57 }
 0x4ba   : > { %v5182_v35 = vpop.permute.xlu0 %5181  ;;  %v4926_v5 = vpop.permute.xlu1 %4925  ;;  %6245 = vmatprep.mubr.f32.mxu0 %v5274_v2  ;;  %8796 = vmatpush3.msra.mxu0 %v8490_v26 }
 0x4bb   : > { %v5275_v42 = vsel %vm227_vm0, %v11189_v6, %v5182_v35  ;;  %v5019_v60 = vsel %vm227_vm0, %v11161_v45, %v4926_v5 }
 0x4bc   : > { %5718 = vrot.lane.b32.xlu0 %v5640_v32, %s8927_s15  ;;  %5461 = vrot.lane.b32.xlu1 %v11584_v8, %s8927_s15 }
 0x4bd   : > { %6246 = vmatmul.mubr.f32.gmra.mxu0 %v5018_v23 }
 0x4be   : > { %v5691_v38 = vpop.permute.xlu0 %5690  ;;  %v5434_v37 = vpop.permute.xlu1 %5433  ;;  %6250 = vmatprep.mubr.f32.mxu0 %v5275_v42 }
 0x4bf   : > { %v5786_v45 = vsel %vm227_vm0, %v11173_v52, %v5691_v38  ;;  %v5529_v6 = vsel %vm227_vm0, %v11175_v33, %v5434_v37 }
 0x4c0   : > { %5211 = vrot.lane.b32.xlu0 %v11596_v46, %s8927_s15  ;;  %4955 = vrot.lane.b32.xlu1 %v5639_v51, %s8927_s15 }
 0x4c1   : > { %6251 = vmatmul.mubr.f32.gmra.mxu0 %v5019_v60  ;;  %6465 = vmatprep.mubr.f32.mxu1 %v5786_v45  ;;  %v11667_v60 = vld [vmem:[#allocation2 + $0x149] sm:$0xff] }
 0x4c2   : > { %v5184_v16 = vpop.permute.xlu0 %5183  ;;  %v4928_v21 = vpop.permute.xlu1 %4927  ;;  %6466 = vmatmul.mubr.f32.vlgmr.msra.gmra.mxu1 %v5529_v6  ;;  %v11680_v6 = vld [vmem:[#allocation2 + $0x16f] sm:$0xff] }
 0x4c3   : > { %v5276_v13 = vsel %vm227_vm0, %v11227_v18, %v5184_v16  ;;  %v5020_v33 = vsel %vm227_vm0, %v11163_v39, %v4928_v21  ;;  %8867 = vmatpush3.msra.mxu1 %v8490_v26  ;;  %v5642_v39 = vld [vmem:[#allocation2 + $0x148] sm:$0xff]  ;;  %v11690_v21 = vld [vmem:[#allocation2 + $0x170] sm:$0xff] }
 0x4c4   : > { %5720 = vrot.lane.b32.xlu0 %v5641_v1, %s8927_s15  ;;  %5463 = vrot.lane.b32.xlu1 %v11605_v22, %s8927_s15 }
 0x4c5   : > { %6255 = vmatprep.mubr.f32.mxu0 %v5276_v13  ;;  %v11692_v13 = vld [vmem:[#allocation2 + $0x151] sm:$0xff] }
 0x4c6   : > { %v5693_v7 = vpop.permute.xlu0 %5692  ;;  %v5436_v41 = vpop.permute.xlu1 %5435  ;;  %6256 = vmatmul.mubr.f32.gmra.mxu0 %v5020_v33 }
 0x4c7   : > { %v5787_v61 = vsel %vm227_vm0, %v11205_v10, %v5693_v7  ;;  %v5530_v18 = vsel %vm227_vm0, %v11207_v0, %v5436_v41  ;;  %v8489_v0 = vld [vmem:[%s13258_s1 + $0xb30] sm:$0xff] }
 0x4c8   : > { %5213 = vrot.lane.b32.xlu0 %v11614_v50, %s8927_s15  ;;  %4957 = vrot.lane.b32.xlu1 %v5640_v32, %s8927_s15  ;;  %v11656_v32 = vld [vmem:[#allocation2 + $0x167] sm:$0xff] }
 0x4c9   : > { %6470 = vmatprep.mubr.f32.mxu1 %v5787_v61  ;;  %8797 = vmatprep.subr.mxu0 %v8489_v0  ;;  %v11702_v61 = vld [vmem:[#allocation2 + $0x187] sm:$0xff] }
 0x4ca   : > { %v5186_v17 = vpop.permute.xlu0 %5185  ;;  %v4930_v51 = vpop.permute.xlu1 %4929  ;;  %6471 = vmatmul.mubr.f32.gmra.mxu1 %v5530_v18  ;;  %8860 = vmatprep.subr.mxu1 %v8489_v0 }
 0x4cb   : > { %v5277_v29 = vsel %vm227_vm0, %v11265_v27, %v5186_v17  ;;  %v5021_v58 = vsel %vm227_vm0, %v11173_v52, %v4930_v51  ;;  %8798 = vmatpush3.msra.mxu0 %v8489_v0  ;;  %8868 = vmatpush3.msra.mxu1 %v8489_v0  ;;  %v11714_v51 = vld [vmem:[#allocation2 + $0x169] sm:$0xff]  ;;  %v8487_v0 = vld [vmem:[%s13258_s1 + $0xb20] sm:$0xff] }
 0x4cc   : > { %5722 = vrot.lane.b32.xlu0 %v5642_v39, %s8927_s15  ;;  %5465 = vrot.lane.b32.xlu1 %v11623_v63, %s8927_s15 }
 0x4cd   : > { %6260 = vmatprep.mubr.f32.mxu0 %v5277_v29 }
 0x4ce   : > { %v5695_v2 = vpop.permute.xlu0 %5694  ;;  %v5438_v25 = vpop.permute.xlu1 %5437  ;;  %6261 = vmatmul.mubr.f32.gmra.mxu0 %v5021_v58 }
 0x4cf   : > { %v5788_v52 = vsel %vm227_vm0, %v11245_v31, %v5695_v2  ;;  %v5531_v27 = vsel %vm227_vm0, %v11187_v11, %v5438_v25  ;;  %v11727_v2 = vld [vmem:[#allocation2 + $0x18f] sm:$0xff] }
 0x4d0   : > { %5215 = vrot.lane.b32.xlu0 %v11635_v24, %s8927_s15  ;;  %4959 = vrot.lane.b32.xlu1 %v5641_v1, %s8927_s15 }
 0x4d1   : > { %6475 = vmatprep.mubr.f32.mxu1 %v5788_v52 }
 0x4d2   : > { %v5188_v9 = vpop.permute.xlu0 %5187  ;;  %v4932_v57 = vpop.permute.xlu1 %4931  ;;  %6476 = vmatmul.mubr.f32.gmra.mxu1 %v5531_v27  ;;  %v4834_v27 = vld [vmem:[#allocation2 + $0x8f] sm:$0xff] }
 0x4d3   : > { %v5278_v23 = vsel %vm227_vm0, %v11303_v62, %v5188_v9  ;;  %v5022_v11 = vsel %vm227_vm0, %v11205_v10, %v4932_v57  ;;  %v11665_v10 = vld [vmem:[#allocation2 + $0x168] sm:$0xff]  ;;  %v11737_v9 = vld [vmem:[#allocation2 + $0x190] sm:$0xff] }
 0x4d4   : > { %5724 = vrot.lane.b32.xlu0 %v11644_v44, %s8927_s15  ;;  %5467 = vrot.lane.b32.xlu1 %v11646_v43, %s8927_s15  ;;  %v11739_v57 = vld [vmem:[#allocation2 + $0x171] sm:$0xff] }
 0x4d5   : > { %6265 = vmatprep.mubr.f32.mxu0 %v5278_v23 }
 0x4d6   : > { %v5697_v35 = vpop.permute.xlu0 %5696  ;;  %v5440_v5 = vpop.permute.xlu1 %5439  ;;  %6266 = vmatmul.mubr.f32.gmra.mxu0 %v5022_v11 }
 0x4d7   : > { %v5789_v42 = vsel %vm227_vm0, %v11283_v3, %v5697_v35  ;;  %v5532_v62 = vsel %vm227_vm0, %v11225_v54, %v5440_v5  ;;  %v8488_v54 = vld [vmem:[%s13258_s1 + $0xb28] sm:$0xff]  ;;  %v5344_v35 = vld [vmem:[#allocation2 + $0x90] sm:$0xff] }
 0x4d8   : > { %5217 = vrot.lane.b32.xlu0 %v11656_v32, %s8927_s15  ;;  %4961 = vrot.lane.b32.xlu1 %v5642_v39, %s8927_s15  ;;  %v11748_v5 = vld [vmem:[#allocation2 + $0x1a7] sm:$0xff] }
 0x4d9   : > { %6480 = vmatprep.mubr.f32.mxu1 %v5789_v42  ;;  %8799 = vmatprep.subr.mxu0 %v8488_v54 }
 0x4da   : > { %v5190_v26 = vpop.permute.xlu0 %5189  ;;  %v4934_v38 = vpop.permute.xlu1 %4933  ;;  %6481 = vmatmul.mubr.f32.gmra.mxu1 %v5532_v62  ;;  %8861 = vmatprep.subr.mxu1 %v8488_v54 }
 0x4db   : > { %v5279_v37 = vsel %vm227_vm0, %v11341_v30, %v5190_v26  ;;  %v5023_v45 = vsel %vm227_vm0, %v11245_v31, %v4934_v38  ;;  %8800 = vmatpush3.msra.mxu0 %v8488_v54  ;;  %8869 = vmatpush3.msra.mxu1 %v8488_v54  ;;  %v4835_v38 = vld [vmem:[#allocation2 + $0xa7] sm:$0xff] }
 0x4dc   : > { %5726 = vrot.lane.b32.xlu0 %v11665_v10, %s8927_s15  ;;  %5469 = vrot.lane.b32.xlu1 %v11667_v60, %s8927_s15 }
 0x4dd   : > { %6270 = vmatprep.mubr.f32.mxu0 %v5279_v37  ;;  %8801 = vmatprep.subr.mxu0 %v8487_v0  ;;  %v11757_v37 = vld [vmem:[#allocation2 + $0x1a8] sm:$0xff] }
 0x4de   : > { %v5699_v1 = vpop.permute.xlu0 %5698  ;;  %v5442_v16 = vpop.permute.xlu1 %5441  ;;  %6271 = vmatmul.mubr.f32.gmra.mxu0 %v5023_v45  ;;  %8862 = vmatprep.subr.mxu1 %v8487_v0  ;;  %v11759_v45 = vld [vmem:[#allocation2 + $0x189] sm:$0xff] }
 0x4df   : > { %v5790_v31 = vsel %vm227_vm0, %v11321_v12, %v5699_v1  ;;  %v5533_v30 = vsel %vm227_vm0, %v11263_v4, %v5442_v16  ;;  %8802 = vmatpush3.msra.mxu0 %v8487_v0  ;;  %8870 = vmatpush3.msra.mxu1 %v8487_v0  ;;  %v5603_v0 = vld [vmem:[#allocation2 + $0xcf] sm:$0xff] }
 0x4e0   : > { %5219 = vrot.lane.b32.xlu0 %v11680_v6, %s8927_s15  ;;  %4963 = vrot.lane.b32.xlu1 %v11644_v44, %s8927_s15 }
 0x4e1   : > { %6485 = vmatprep.mubr.f32.mxu1 %v5790_v31  ;;  %v5602_v31 = vld [vmem:[#allocation2 + $0xc7] sm:$0xff] }
 0x4e2   : > { %v5192_v33 = vpop.permute.xlu0 %5191  ;;  %v4936_v7 = vpop.permute.xlu1 %4935  ;;  %6486 = vmatmul.mubr.f32.gmra.mxu1 %v5533_v30  ;;  %v5345_v30 = vld [vmem:[#allocation2 + $0xa8] sm:$0xff] }
 0x4e3   : > { %v5280_v41 = vsel %vm227_vm0, %v11377_v28, %v5192_v33  ;;  %v5024_v4 = vsel %vm227_vm0, %v11283_v3, %v4936_v7  ;;  %v11712_v3 = vld [vmem:[#allocation2 + $0x188] sm:$0xff]  ;;  %v8486_v33 = vld [vmem:[%s13258_s1 + $0xb18] sm:$0xff] }
 0x4e4   : > { %5728 = vrot.lane.b32.xlu0 %v11690_v21, %s8927_s15  ;;  %5471 = vrot.lane.b32.xlu1 %v11692_v13, %s8927_s15  ;;  %v11771_v7 = vld [vmem:[#allocation2 + $0x1af] sm:$0xff] }
 0x4e5   : > { %6275 = vmatprep.mubr.f32.mxu0 %v5280_v41  ;;  %8803 = vmatprep.subr.mxu0 %v8486_v33 }
 0x4e6   : > { %v5701_v18 = vpop.permute.xlu0 %5700  ;;  %v5444_v39 = vpop.permute.xlu1 %5443  ;;  %6276 = vmatmul.mubr.f32.gmra.mxu0 %v5024_v4  ;;  %8863 = vmatprep.subr.mxu1 %v8486_v33 }
 0x4e7   : > { %v5791_v17 = vsel %vm227_vm0, %v11359_v19, %v5701_v18  ;;  %v5534_v28 = vsel %vm227_vm0, %v11301_v40, %v5444_v39  ;;  %8804 = vmatpush3.msra.mxu0 %v8486_v33  ;;  %8871 = vmatpush3.msra.mxu1 %v8486_v33  ;;  %v4836_v39 = vld [vmem:[#allocation2 + $0xaf] sm:$0xff] }
 0x4e8   : > { %5221 = vrot.lane.b32.xlu0 %v11702_v61, %s8927_s15  ;;  %4965 = vrot.lane.b32.xlu1 %v11665_v10, %s8927_s15 }
 0x4e9   : > { %6490 = vmatprep.mubr.f32.mxu1 %v5791_v17  ;;  %v11779_v17 = vld [vmem:[#allocation2 + $0x1b0] sm:$0xff] }
 0x4ea   : > { %v5194_v29 = vpop.permute.xlu0 %5193  ;;  %v4938_v58 = vpop.permute.xlu1 %4937  ;;  %6491 = vmatmul.mubr.f32.gmra.mxu1 %v5534_v28  ;;  %v11781_v28 = vld [vmem:[#allocation2 + $0x191] sm:$0xff] }
 0x4eb   : > { %v5281_v19 = vsel %vm227_vm0, %v11412_v15, %v5194_v29  ;;  %v5025_v40 = vsel %vm227_vm0, %v11321_v12, %v4938_v58 }
 0x4ec   : > { %5730 = vrot.lane.b32.xlu0 %v11712_v3, %s8927_s15  ;;  %5473 = vrot.lane.b32.xlu1 %v11714_v51, %s8927_s15 }
 0x4ed   : > { %6280 = vmatprep.mubr.f32.mxu0 %v5281_v19 }
 0x4ee   : > { %v5703_v25 = vpop.permute.xlu0 %5702  ;;  %v5446_v52 = vpop.permute.xlu1 %5445  ;;  %6281 = vmatmul.mubr.f32.gmra.mxu0 %v5025_v40 }
 0x4ef   : > { %v5792_v12 = vsel %vm227_vm0, %v11394_v55, %v5703_v25  ;;  %v5535_v15 = vsel %vm227_vm0, %v11339_v20, %v5446_v52  ;;  %v5346_v25 = vld [vmem:[#allocation2 + $0xb0] sm:$0xff]  ;;  %v11790_v52 = vld [vmem:[#allocation2 + $0x1c7] sm:$0xff] }
 0x4f0   : > { %5223 = vrot.lane.b32.xlu0 %v11727_v2, %s8927_s15  ;;  %4967 = vrot.lane.b32.xlu1 %v11690_v21, %s8927_s15 }
 0x4f1   : > { %6495 = vmatprep.mubr.f32.mxu1 %v5792_v12 }
 0x4f2   : > { %v5196_v23 = vpop.permute.xlu0 %5195  ;;  %v4940_v11 = vpop.permute.xlu1 %4939  ;;  %6496 = vmatmul.mubr.f32.gmra.mxu1 %v5535_v15 }
 0x4f3   : > { %v5282_v20 = vsel %vm227_vm0, %v11446_v49, %v5196_v23  ;;  %v5026_v55 = vsel %vm227_vm0, %v4834_v27, %v4940_v11  ;;  %v11798_v23 = vld [vmem:[#allocation2 + $0x1c8] sm:$0xff] }
 0x4f4   : > { %5732 = vrot.lane.b32.xlu0 %v11737_v9, %s8927_s15  ;;  %5475 = vrot.lane.b32.xlu1 %v11739_v57, %s8927_s15  ;;  %v11800_v11 = vld [vmem:[#allocation2 + $0x1a9] sm:$0xff] }
 0x4f5   : > { %6285 = vmatprep.mubr.f32.mxu0 %v5282_v20 }
 0x4f6   : > { %v5705_v42 = vpop.permute.xlu0 %5704  ;;  %v5448_v62 = vpop.permute.xlu1 %5447  ;;  %6286 = vmatmul.mubr.f32.gmra.mxu0 %v5026_v55 }
 0x4f7   : > { %v5793_v26 = vsel %vm227_vm0, %v11429_v59, %v5705_v42  ;;  %v5536_v49 = vsel %vm227_vm0, %v5344_v35, %v5448_v62  ;;  %v5604_v62 = vld [vmem:[#allocation2 + $0xe7] sm:$0xff] }
 0x4f8   : > { %5225 = vrot.lane.b32.xlu0 %v11748_v5, %s8927_s15  ;;  %4969 = vrot.lane.b32.xlu1 %v11712_v3, %s8927_s15 }
 0x4f9   : > { %6500 = vmatprep.mubr.f32.mxu1 %v5793_v26  ;;  %v5347_v26 = vld [vmem:[#allocation2 + $0xc8] sm:$0xff] }
 0x4fa   : > { %v5198_v54 = vpop.permute.xlu0 %5197  ;;  %v4942_v1 = vpop.permute.xlu1 %4941  ;;  %6501 = vmatmul.mubr.f32.gmra.mxu1 %v5536_v49  ;;  %v8485_v49 = vld [vmem:[%s13258_s1 + $0xb10] sm:$0xff] }
 0x4fb   : > { %v5283_v59 = vsel %vm227_vm0, %v11477_v34, %v5198_v54  ;;  %v5027_v16 = vsel %vm227_vm0, %v4835_v38, %v4942_v1  ;;  %v11812_v38 = vld [vmem:[#allocation2 + $0x1cf] sm:$0xff]  ;;  %8805 = vmatprep.subr.mxu0 %v8485_v49  ;;  %8864 = vmatprep.subr.mxu1 %v8485_v49 }
 0x4fc   : > { %5734 = vrot.lane.b32.xlu0 %v11757_v37, %s8927_s15  ;;  %5477 = vrot.lane.b32.xlu1 %v11759_v45, %s8927_s15 }
 0x4fd   : > { %6290 = vmatprep.mubr.f32.mxu0 %v5283_v59  ;;  %8806 = vmatpush3.msra.mxu0 %v8485_v49 }
 0x4fe   : > { %v5707_v41 = vpop.permute.xlu0 %5706  ;;  %v5450_v34 = vpop.permute.xlu1 %5449  ;;  %6291 = vmatmul.mubr.f32.gmra.mxu0 %v5027_v16  ;;  %8872 = vmatpush3.msra.mxu1 %v8485_v49  ;;  %v11820_v16 = vld [vmem:[#allocation2 + $0x1d0] sm:$0xff] }
 0x4ff   : > { %v5794_v4 = vsel %vm227_vm0, %v5602_v31, %v5707_v41  ;;  %v5537_v18 = vsel %vm227_vm0, %v5345_v30, %v5450_v34  ;;  %v11861_v49 = vld [vmem:[#allocation2 + $0x1f0] sm:$0xff] }
 0x500   : > { %5227 = vrot.lane.b32.xlu0 %v11771_v7, %s8927_s15  ;;  %4971 = vrot.lane.b32.xlu1 %v11737_v9, %s8927_s15 }
 0x501   : > { %6505 = vmatprep.mubr.f32.mxu1 %v5794_v4  ;;  %v5605_v4 = vld [vmem:[#allocation2 + $0xef] sm:$0xff] }
 0x502   : > { %v5200_v29 = vpop.permute.xlu0 %5199  ;;  %v4944_v58 = vpop.permute.xlu1 %4943  ;;  %6506 = vmatmul.mubr.f32.gmra.mxu1 %v5537_v18  ;;  %v5348_v18 = vld [vmem:[#allocation2 + $0xd0] sm:$0xff] }
 0x503   : > { %v5284_v19 = vsel %vm227_vm0, %v11508_v47, %v5200_v29  ;;  %v5028_v40 = vsel %vm227_vm0, %v4836_v39, %v4944_v58  ;;  %v11831_v39 = vld [vmem:[#allocation2 + $0x1e7] sm:$0xff] }
 0x504   : > { %5736 = vrot.lane.b32.xlu0 %v11779_v17, %s8927_s15  ;;  %5479 = vrot.lane.b32.xlu1 %v11781_v28, %s8927_s15 }
 0x505   : > { %6295 = vmatprep.mubr.f32.mxu0 %v5284_v19 }
 0x506   : > { %v5709_v12 = vpop.permute.xlu0 %5708  ;;  %v5452_v15 = vpop.permute.xlu1 %5451  ;;  %6296 = vmatmul.mubr.f32.gmra.mxu0 %v5028_v40  ;;  %v11839_v40 = vld [vmem:[#allocation2 + $0x1e8] sm:$0xff] }
 0x507   : > { %v5795_v27 = vsel %vm227_vm0, %v5603_v0, %v5709_v12  ;;  %v5538_v47 = vsel %vm227_vm0, %v5346_v25, %v5452_v15 }
 0x508   : > { %5229 = vrot.lane.b32.xlu0 %v11790_v52, %s8927_s15  ;;  %4973 = vrot.lane.b32.xlu1 %v11757_v37, %s8927_s15 }
 0x509   : > { %6510 = vmatprep.mubr.f32.mxu1 %v5795_v27 }
 0x50a   : > { %v5202_v20 = vpop.permute.xlu0 %5201  ;;  %v4946_v55 = vpop.permute.xlu1 %4945  ;;  %6511 = vmatmul.mubr.f32.gmra.mxu1 %v5538_v47  ;;  %v5606_v47 = vld [vmem:[#allocation2 + $0x107] sm:$0xff] }
 0x50b   : > { %v5285_v35 = vsel %vm227_vm0, %v11539_v53, %v5202_v20  ;;  %v5029_v42 = vsel %vm227_vm0, %v5602_v31, %v4946_v55  ;;  %v11822_v31 = vld [vmem:[#allocation2 + $0x1b1] sm:$0xff]  ;;  %v5349_v20 = vld [vmem:[#allocation2 + $0xe8] sm:$0xff] }
 0x50c   : > { %5738 = vrot.lane.b32.xlu0 %v11798_v23, %s8927_s15  ;;  %5481 = vrot.lane.b32.xlu1 %v11800_v11, %s8927_s15  ;;  %v8484_v55 = vld [vmem:[%s13258_s1 + $0xb08] sm:$0xff] }
 0x50d   : > { %6300 = vmatprep.mubr.f32.mxu0 %v5285_v35  ;;  %v11853_v35 = vld [vmem:[#allocation2 + $0x1ef] sm:$0xff]  ;;  %8807 = vmatprep.subr.mxu0 %v8484_v55 }
 0x50e   : > { %v5711_v54 = vpop.permute.xlu0 %5710  ;;  %v5454_v53 = vpop.permute.xlu1 %5453  ;;  %6301 = vmatmul.mubr.f32.gmra.mxu0 %v5029_v42  ;;  %8865 = vmatprep.subr.mxu1 %v8484_v55 }
 0x50f   : > { %v5796_v1 = vsel %vm227_vm0, %v5604_v62, %v5711_v54  ;;  %v5539_v59 = vsel %vm227_vm0, %v5347_v26, %v5454_v53  ;;  %8808 = vmatpush3.msra.mxu0 %v8484_v55  ;;  %8873 = vmatpush3.msra.mxu1 %v8484_v55  ;;  %v11863_v54 = vld [vmem:[#allocation2 + $0x1d1] sm:$0xff]  ;;  %v5850_v53 = vld [vmem:[#allocation2 + $0x49] sm:$0xff] }
 0x510   : > { %5231 = vrot.lane.b32.xlu0 %v11812_v38, %s8927_s15  ;;  %4975 = vrot.lane.b32.xlu1 %v11779_v17, %s8927_s15  ;;  %5882 = vst.msk [vmem:[#allocation4 + $0x20] sm:$0xff] %vm227_vm0, %v5850_v53  ;;  %v5351_v53 = vld [vmem:[#allocation2 + $0x108] sm:$0xff] }
 0x511   : > { %6515 = vmatprep.mubr.f32.mxu1 %v5796_v1 }
 0x512   : > { %v5204_v30 = vpop.permute.xlu0 %5203  ;;  %v4948_v33 = vpop.permute.xlu1 %4947  ;;  %6516 = vmatmul.mubr.f32.gmra.mxu1 %v5539_v59 }
 0x513   : > { %v5286_v41 = vsel %vm227_vm0, %v11556_v56, %v5204_v30  ;;  %v5030_v34 = vsel %vm227_vm0, %v5603_v0, %v4948_v33  ;;  %v11841_v0 = vld [vmem:[#allocation2 + $0x1c9] sm:$0xff]  ;;  %v5851_v30 = vld [vmem:[#allocation2 + $0x51] sm:$0xff] }
 0x514   : > { %5740 = vrot.lane.b32.xlu0 %v11820_v16, %s8927_s15  ;;  %5483 = vrot.lane.b32.xlu1 %v11822_v31, %s8927_s15  ;;  %5883 = vst.msk [vmem:[#allocation4 + $0x48] sm:$0xff] %vm227_vm0, %v5851_v30  ;;  %v5866_v30 = vld [vmem:[#allocation2 + $0x149] sm:$0xff] }
 0x515   : > { %6305 = vmatprep.mubr.f32.mxu0 %v5286_v41  ;;  %5898 = vst.msk [vmem:[#allocation4 + $0x2a0] sm:$0xff] %vm227_vm0, %v5866_v30 }
 0x516   : > { %v5713_v29 = vpop.permute.xlu0 %5712  ;;  %v5456_v58 = vpop.permute.xlu1 %5455  ;;  %6306 = vmatmul.mubr.f32.gmra.mxu0 %v5030_v34  ;;  %v11874_v34 = vld [vmem:[#allocation2 + $0x10f] sm:$0xff] }
 0x517   : > { %v5797_v19 = vsel %vm227_vm0, %v5605_v4, %v5713_v29  ;;  %v5540_v56 = vsel %vm227_vm0, %v5348_v18, %v5456_v58  ;;  %v5350_v18 = vld [vmem:[#allocation2 + $0xf0] sm:$0xff]  ;;  %v11876_v29 = vld [vmem:[#allocation2 + $0x207] sm:$0xff] }
 0x518   : > { %5233 = vrot.lane.b32.xlu0 %v11831_v39, %s8927_s15  ;;  %4977 = vrot.lane.b32.xlu1 %v11798_v23, %s8927_s15  ;;  %v5852_v58 = vld [vmem:[#allocation2 + $0x69] sm:$0xff] }
 0x519   : > { %6520 = vmatprep.mubr.f32.mxu1 %v5797_v19  ;;  %5884 = vst.msk [vmem:[#allocation4 + $0x70] sm:$0xff] %vm227_vm0, %v5852_v58 }
 0x51a   : > { %v5206_v25 = vpop.permute.xlu0 %5205  ;;  %v4950_v12 = vpop.permute.xlu1 %4949  ;;  %6521 = vmatmul.mubr.f32.gmra.mxu1 %v5540_v56 }
 0x51b   : > { %v5287_v15 = vsel %vm227_vm0, %v11563_v48, %v5206_v25  ;;  %v5031_v27 = vsel %vm227_vm0, %v5604_v62, %v4950_v12  ;;  %v8483_v12 = vld [vmem:[%s13258_s1 + $0xb00] sm:$0xff] }
 0x51c   : > { %5742 = vrot.lane.b32.xlu0 %v11839_v40, %s8927_s15  ;;  %5485 = vrot.lane.b32.xlu1 %v11841_v0, %s8927_s15 }
 0x51d   : > { %6310 = vmatprep.mubr.f32.mxu0 %v5287_v15  ;;  %v11890_v15 = vld [vmem:[#allocation2 + $0x208] sm:$0xff]  ;;  %8809 = vmatprep.subr.mxu0 %v8483_v12 }
 0x51e   : > { %v5715_v42 = vpop.permute.xlu0 %5714  ;;  %v5458_v48 = vpop.permute.xlu1 %5457  ;;  %6311 = vmatmul.mubr.f32.gmra.mxu0 %v5031_v27  ;;  %v11892_v27 = vld [vmem:[#allocation2 + $0x1e9] sm:$0xff]  ;;  %8866 = vmatprep.subr.mxu1 %v8483_v12 }
 0x51f   : > { %v5798_v62 = vsel %vm227_vm0, %v5606_v47, %v5715_v42  ;;  %v5541_v26 = vsel %vm227_vm0, %v5349_v20, %v5458_v48  ;;  %v5854_v20 = vld [vmem:[#allocation2 + $0x89] sm:$0xff]  ;;  %v5855_v48 = vld [vmem:[#allocation2 + $0x91] sm:$0xff]  ;;  %8810 = vmatpush3.msra.mxu0 %v8483_v12  ;;  %8874 = vmatpush3.msra.mxu1 %v8483_v12 }
 0x520   : > { %5235 = vrot.lane.b32.xlu0 %v11853_v35, %s8927_s15  ;;  %4979 = vrot.lane.b32.xlu1 %v11820_v16, %s8927_s15  ;;  %5886 = vst.msk [vmem:[#allocation4 + $0xc0] sm:$0xff] %vm227_vm0, %v5854_v20  ;;  %5887 = vst.msk [vmem:[#allocation4 + $0xe8] sm:$0xff] %vm227_vm0, %v5855_v48  ;;  %v5859_v12 = vld [vmem:[#allocation2 + $0xd1] sm:$0xff] }
 0x521   : > { %6525 = vmatprep.mubr.f32.mxu1 %v5798_v62  ;;  %v5869_v20 = vld [vmem:[#allocation2 + $0x171] sm:$0xff]  ;;  %5891 = vst.msk [vmem:[#allocation4 + $0x188] sm:$0xff] %vm227_vm0, %v5859_v12 }
 0x522   : > { %v5208_v1 = vpop.permute.xlu0 %5207  ;;  %v4952_v59 = vpop.permute.xlu1 %4951  ;;  %6526 = vmatmul.mubr.f32.gmra.mxu1 %v5541_v26  ;;  %5901 = vst.msk [vmem:[#allocation4 + $0x318] sm:$0xff] %vm227_vm0, %v5869_v20  ;;  %v5352_v48 = vld [vmem:[#allocation2 + $0x110] sm:$0xff] }
 0x523   : > { %v5288_v33 = vsel %vm227_vm0, %v11570_v14, %v5208_v1  ;;  %v5032_v41 = vsel %vm227_vm0, %v5605_v4, %v4952_v59  ;;  %v5853_v14 = vld [vmem:[#allocation2 + $0x71] sm:$0xff]  ;;  %v5856_v59 = vld [vmem:[#allocation2 + $0xa9] sm:$0xff] }
 0x524   : > { %5744 = vrot.lane.b32.xlu0 %v11861_v49, %s8927_s15  ;;  %5487 = vrot.lane.b32.xlu1 %v11863_v54, %s8927_s15  ;;  %5885 = vst.msk [vmem:[#allocation4 + $0x98] sm:$0xff] %vm227_vm0, %v5853_v14  ;;  %v11903_v1 = vld [vmem:[#allocation2 + $0x20f] sm:$0xff]  ;;  %5888 = vst.msk [vmem:[#allocation4 + $0x110] sm:$0xff] %vm227_vm0, %v5856_v59 }
 0x525   : > { %6315 = vmatprep.mubr.f32.mxu0 %v5288_v33  ;;  %v5858_v14 = vld [vmem:[#allocation2 + $0xc9] sm:$0xff]  ;;  %v5863_v20 = vld [vmem:[#allocation2 + $0x111] sm:$0xff] }
 0x526   : > { %v5717_v19 = vpop.permute.xlu0 %5716  ;;  %v5460_v56 = vpop.permute.xlu1 %5459  ;;  %6316 = vmatmul.mubr.f32.gmra.mxu0 %v5032_v41  ;;  %v5867_v41 = vld [vmem:[#allocation2 + $0x151] sm:$0xff]  ;;  %5890 = vst.msk [vmem:[#allocation4 + $0x160] sm:$0xff] %vm227_vm0, %v5858_v14  ;;  %v5862_v14 = vld [vmem:[#allocation2 + $0x109] sm:$0xff]  ;;  %5895 = vst.msk [vmem:[#allocation4 + $0x228] sm:$0xff] %vm227_vm0, %v5863_v20 }
 0x527   : > { %v5799_v4 = vsel %vm227_vm0, %v11874_v34, %v5717_v19  ;;  %v5542_v25 = vsel %vm227_vm0, %v5350_v18, %v5460_v56  ;;  %5899 = vst.msk [vmem:[#allocation4 + $0x2c8] sm:$0xff] %vm227_vm0, %v5867_v41  ;;  %v11916_v19 = vld [vmem:[#allocation2 + $0x210] sm:$0xff]  ;;  %v4843_v41 = vld [vmem:[#allocation2 + $0x127] sm:$0xff]  ;;  %5894 = vst.msk [vmem:[#allocation4 + $0x200] sm:$0xff] %vm227_vm0, %v5862_v14 }
 0x528   : > { %5237 = vrot.lane.b32.xlu0 %v11876_v29, %s8927_s15  ;;  %4981 = vrot.lane.b32.xlu1 %v11839_v40, %s8927_s15  ;;  %v11918_v56 = vld [vmem:[#allocation2 + $0x1f1] sm:$0xff]  ;;  %v5878_v14 = vld [vmem:[#allocation2 + $0x209] sm:$0xff] }
 0x529   : > { %6530 = vmatprep.mubr.f32.mxu1 %v5799_v4  ;;  %v5868_v4 = vld [vmem:[#allocation2 + $0x169] sm:$0xff]  ;;  %5910 = vst.msk [vmem:[#allocation4 + $0x480] sm:$0xff] %vm227_vm0, %v5878_v14 }
 0x52a   : > { %v5210_v55 = vpop.permute.xlu0 %5209  ;;  %v4954_v42 = vpop.permute.xlu1 %4953  ;;  %6531 = vmatmul.mubr.f32.gmra.mxu1 %v5542_v25  ;;  %5900 = vst.msk [vmem:[#allocation4 + $0x2f0] sm:$0xff] %vm227_vm0, %v5868_v4  ;;  %v5880_v20 = vld [vmem:[#allocation2 + $0x229] sm:$0xff] }
 0x52b   : > { %v5289_v62 = vsel %vm227_vm0, %v11584_v8, %v5210_v55  ;;  %v5033_v26 = vsel %vm227_vm0, %v5606_v47, %v4954_v42  ;;  %v5857_v47 = vld [vmem:[#allocation2 + $0xb1] sm:$0xff]  ;;  %5912 = vst.msk [vmem:[#allocation4 + $0x4d0] sm:$0xff] %vm227_vm0, %v5880_v20 }
 0x52c   : > { %5746 = vrot.lane.b32.xlu0 %v11890_v15, %s8927_s15  ;;  %5489 = vrot.lane.b32.xlu1 %v11892_v27, %s8927_s15  ;;  %5889 = vst.msk [vmem:[#allocation4 + $0x138] sm:$0xff] %vm227_vm0, %v5857_v47  ;;  %v5871_v47 = vld [vmem:[#allocation2 + $0x191] sm:$0xff] }
 0x52d   : > { %6320 = vmatprep.mubr.f32.mxu0 %v5289_v62  ;;  %v5656_v62 = vld [vmem:[#allocation2 + $0x228] sm:$0xff]  ;;  %5903 = vst.msk [vmem:[#allocation4 + $0x368] sm:$0xff] %vm227_vm0, %v5871_v47 }
 0x52e   : > { %v5719_v33 = vpop.permute.xlu0 %5718  ;;  %v5462_v8 = vpop.permute.xlu1 %5461  ;;  %6321 = vmatmul.mubr.f32.gmra.mxu0 %v5033_v26  ;;  %v5399_v26 = vld [vmem:[#allocation2 + $0x209] sm:$0xff] }
 0x52f   : > { %v5800_v18 = vsel %vm227_vm0, %v11577_v36, %v5719_v33  ;;  %v5543_v58 = vsel %vm227_vm0, %v5351_v53, %v5462_v8  ;;  %v5860_v53 = vld [vmem:[#allocation2 + $0xe9] sm:$0xff]  ;;  %v5861_v8 = vld [vmem:[#allocation2 + $0xf1] sm:$0xff] }
 0x530   : > { %5239 = vrot.lane.b32.xlu0 %v11903_v1, %s8927_s15  ;;  %4983 = vrot.lane.b32.xlu1 %v11861_v49, %s8927_s15  ;;  %5892 = vst.msk [vmem:[#allocation4 + $0x1b0] sm:$0xff] %vm227_vm0, %v5860_v53  ;;  %5893 = vst.msk [vmem:[#allocation4 + $0x1d8] sm:$0xff] %vm227_vm0, %v5861_v8  ;;  %v5865_v53 = vld [vmem:[#allocation2 + $0x131] sm:$0xff] }
 0x531   : > { %6535 = vmatprep.mubr.f32.mxu1 %v5800_v18  ;;  %v5657_v18 = vld [vmem:[#allocation2 + $0x230] sm:$0xff]  ;;  %5897 = vst.msk [vmem:[#allocation4 + $0x278] sm:$0xff] %vm227_vm0, %v5865_v53 }
 0x532   : > { %v5212_v36 = vpop.permute.xlu0 %5211  ;;  %v4956_v25 = vpop.permute.xlu1 %4955  ;;  %6536 = vmatmul.mubr.f32.gmra.mxu1 %v5543_v58  ;;  %v5400_v58 = vld [vmem:[#allocation2 + $0x211] sm:$0xff] }
 0x533   : > { %v5290_v55 = vsel %vm227_vm0, %v11605_v22, %v5212_v36  ;;  %v5034_v42 = vsel %vm227_vm0, %v11874_v34, %v4956_v25  ;;  %v5870_v34 = vld [vmem:[#allocation2 + $0x189] sm:$0xff] }
 0x534   : > { %5748 = vrot.lane.b32.xlu0 %v11916_v19, %s8927_s15  ;;  %5491 = vrot.lane.b32.xlu1 %v11918_v56, %s8927_s15  ;;  %5902 = vst.msk [vmem:[#allocation4 + $0x340] sm:$0xff] %vm227_vm0, %v5870_v34  ;;  %v5872_v36 = vld [vmem:[#allocation2 + $0x1a9] sm:$0xff] }
 0x535   : > { %6325 = vmatprep.mubr.f32.mxu0 %v5290_v55  ;;  %5904 = vst.msk [vmem:[#allocation4 + $0x390] sm:$0xff] %vm227_vm0, %v5872_v36  ;;  %v5873_v55 = vld [vmem:[#allocation2 + $0x1b1] sm:$0xff] }
 0x536   : > { %v5721_v59 = vpop.permute.xlu0 %5720  ;;  %v5464_v22 = vpop.permute.xlu1 %5463  ;;  %6326 = vmatmul.mubr.f32.gmra.mxu0 %v5034_v42  ;;  %v5353_v42 = vld [vmem:[#allocation2 + $0x128] sm:$0xff]  ;;  %5905 = vst.msk [vmem:[#allocation4 + $0x3b8] sm:$0xff] %vm227_vm0, %v5873_v55  ;;  %v5879_v36 = vld [vmem:[#allocation2 + $0x211] sm:$0xff] }
 0x537   : > { %v5801_v30 = vsel %vm227_vm0, %v11596_v46, %v5721_v59  ;;  %v5544_v33 = vsel %vm227_vm0, %v5352_v48, %v5464_v22  ;;  %v5864_v48 = vld [vmem:[#allocation2 + $0x129] sm:$0xff]  ;;  %v5875_v59 = vld [vmem:[#allocation2 + $0x1d1] sm:$0xff]  ;;  %5911 = vst.msk [vmem:[#allocation4 + $0x4a8] sm:$0xff] %vm227_vm0, %v5879_v36 }
 0x538   : > { %5750 = vrot.lane.b32.xlu0 %v5656_v62, %s8927_s15  ;;  %5493 = vrot.lane.b32.xlu1 %v5399_v26, %s8927_s15  ;;  %v5874_v62 = vld [vmem:[#allocation2 + $0x1c9] sm:$0xff]  ;;  %5896 = vst.msk [vmem:[#allocation4 + $0x250] sm:$0xff] %vm227_vm0, %v5864_v48  ;;  %5907 = vst.msk [vmem:[#allocation4 + $0x408] sm:$0xff] %vm227_vm0, %v5875_v59  ;;  %v5881_v48 = vld [vmem:[#allocation2 + $0x231] sm:$0xff] }
 0x539   : > { %6540 = vmatprep.mubr.f32.mxu1 %v5801_v30  ;;  %5906 = vst.msk [vmem:[#allocation4 + $0x3e0] sm:$0xff] %vm227_vm0, %v5874_v62  ;;  %v4844_v30 = vld [vmem:[#allocation2 + $0x12f] sm:$0xff]  ;;  %5913 = vst.msk [vmem:[#allocation4 + $0x4f8] sm:$0xff] %vm227_vm0, %v5881_v48 }
 0x53a   : > { %v5214_v46 = vpop.permute.xlu0 %5213  ;;  %v4958_v4 = vpop.permute.xlu1 %4957  ;;  %6541 = vmatmul.mubr.f32.gmra.mxu1 %v5544_v33  ;;  %v5876_v33 = vld [vmem:[#allocation2 + $0x1e9] sm:$0xff] }
 0x53b   : > { %v5291_v25 = vsel %vm227_vm0, %v11623_v63, %v5214_v46  ;;  %v5035_v12 = vsel %vm227_vm0, %v4843_v41, %v4958_v4  ;;  %5908 = vst.msk [vmem:[#allocation4 + $0x430] sm:$0xff] %vm227_vm0, %v5876_v33  ;;  %v5877_v41 = vld [vmem:[#allocation2 + $0x1f1] sm:$0xff] }
 0x53c   : > { %5752 = vrot.lane.b32.xlu0 %v5657_v18, %s8927_s15  ;;  %5495 = vrot.lane.b32.xlu1 %v5400_v58, %s8927_s15  ;;  %5909 = vst.msk [vmem:[#allocation4 + $0x458] sm:$0xff] %vm227_vm0, %v5877_v41  ;;  %v5354_v58 = vld [vmem:[#allocation2 + $0x130] sm:$0xff] }
 0x53d   : > { %6330 = vmatprep.mubr.f32.mxu0 %v5291_v25 }
 0x53e   : > { %v5723_v26 = vpop.permute.xlu0 %5722  ;;  %v5466_v63 = vpop.permute.xlu1 %5465  ;;  %6331 = vmatmul.mubr.f32.gmra.mxu0 %v5035_v12 }
 0x53f   : > { %v5802_v22 = vsel %vm227_vm0, %v11614_v50, %v5723_v26  ;;  %v5545_v34 = vsel %vm227_vm0, %v5353_v42, %v5466_v63 }
 0x540   : > { %6545 = vmatprep.mubr.f32.mxu1 %v5802_v22 }
 0x541   : > { %6546 = vmatmul.mubr.f32.gmra.mxu1 %v5545_v34  ;;  %v4846_v34 = vld [vmem:[#allocation2 + $0x14f] sm:$0xff] }
 0x542   : > { %v5216_v8 = vpop.permute.xlu0 %5215  ;;  %v4960_v47 = vpop.permute.xlu1 %4959 }
 0x543   : > { %v5292_v18 = vsel %vm227_vm0, %v11646_v43, %v5216_v8  ;;  %v5036_v50 = vsel %vm227_vm0, %v4844_v30, %v4960_v47  ;;  %v4845_v43 = vld [vmem:[#allocation2 + $0x147] sm:$0xff] }
 0x544   : > { %6335 = vmatprep.mubr.f32.mxu0 %v5292_v18 }
 0x545   : > { %6336 = vmatmul.mubr.f32.gmra.mxu0 %v5036_v50 }
 0x546   : > { %v5725_v46 = vpop.permute.xlu0 %5724  ;;  %v5468_v4 = vpop.permute.xlu1 %5467 }
 0x547   : > { %v5803_v25 = vsel %vm227_vm0, %v11635_v24, %v5725_v46  ;;  %v5546_v12 = vsel %vm227_vm0, %v5354_v58, %v5468_v4  ;;  %v5355_v24 = vld [vmem:[#allocation2 + $0x148] sm:$0xff] }
 0x548   : > { %6550 = vmatprep.mubr.f32.mxu1 %v5803_v25 }
 0x549   : > { %6551 = vmatmul.mubr.f32.gmra.mxu1 %v5546_v12 }
 0x54a   : > { %v5218_v55 = vpop.permute.xlu0 %5217  ;;  %v4962_v42 = vpop.permute.xlu1 %4961 }
 0x54b   : > { %v5293_v62 = vsel %vm227_vm0, %v11667_v60, %v5218_v55  ;;  %v5037_v26 = vsel %vm227_vm0, %v4845_v43, %v4962_v42 }
 0x54c   : > { %6340 = vmatprep.mubr.f32.mxu0 %v5293_v62 }
 0x54d   : > { %6341 = vmatmul.mubr.f32.gmra.mxu0 %v5037_v26 }
 0x54e   : > { %v5727_v63 = vpop.permute.xlu0 %5726  ;;  %v5470_v53 = vpop.permute.xlu1 %5469 }
 0x54f   : > { %v5804_v59 = vsel %vm227_vm0, %v11656_v32, %v5727_v63  ;;  %v5547_v22 = vsel %vm227_vm0, %v5355_v24, %v5470_v53 }
 0x550   : > { %6555 = vmatprep.mubr.f32.mxu1 %v5804_v59 }
 0x551   : > { %6556 = vmatmul.mubr.f32.gmra.mxu1 %v5547_v22 }
 0x552   : > { %v5220_v30 = vpop.permute.xlu0 %5219  ;;  %v4964_v33 = vpop.permute.xlu1 %4963 }
 0x553   : > { %v5294_v60 = vsel %vm227_vm0, %v11692_v13, %v5220_v30  ;;  %v5038_v8 = vsel %vm227_vm0, %v4846_v34, %v4964_v33 }
 0x554   : > { %6345 = vmatprep.mubr.f32.mxu0 %v5294_v60 }
 0x555   : > { %6346 = vmatmul.mubr.f32.gmra.mxu0 %v5038_v8 }
 0x556   : > { %v5729_v47 = vpop.permute.xlu0 %5728  ;;  %v5472_v41 = vpop.permute.xlu1 %5471 }
 0x557   : > { %v5805_v18 = vsel %vm227_vm0, %v11680_v6, %v5729_v47  ;;  %v5548_v50 = vsel %vm227_vm0, %v11644_v44, %v5472_v41 }
 0x558   : > { %6560 = vmatprep.mubr.f32.mxu1 %v5805_v18 }
 0x559   : > { %6561 = vmatmul.mubr.f32.gmra.mxu1 %v5548_v50 }
 0x55a   : > { %v5222_v58 = vpop.permute.xlu0 %5221  ;;  %v4966_v14 = vpop.permute.xlu1 %4965 }
 0x55b   : > { %v5295_v46 = vsel %vm227_vm0, %v11714_v51, %v5222_v58  ;;  %v5039_v13 = vsel %vm227_vm0, %v11656_v32, %v4966_v14  ;;  %v12025_v14 = vld [vmem:[%s13259_s2 + $0x4] ss:$0 sm:$0xff] }
 0x55c   : > { %6350 = vmatprep.mubr.f32.mxu0 %v5295_v46 }
 0x55d   : > { %6351 = vmatmul.mubr.f32.gmra.mxu0 %v5039_v13 }
 0x55e   : > { %v5731_v4 = vpop.permute.xlu0 %5730  ;;  %v5474_v36 = vpop.permute.xlu1 %5473 }
 0x55f   : > { %v5806_v25 = vsel %vm227_vm0, %v11702_v61, %v5731_v4  ;;  %v5549_v44 = vsel %vm227_vm0, %v11665_v10, %v5474_v36 }
 0x560   : > { %6565 = vmatprep.mubr.f32.mxu1 %v5806_v25 }
 0x561   : > { %6566 = vmatmul.mubr.f32.gmra.mxu1 %v5549_v44 }
 0x562   : > { %v5224_v12 = vpop.permute.xlu0 %5223  ;;  %v4968_v43 = vpop.permute.xlu1 %4967 }
 0x563   : > { %v5296_v51 = vsel %vm227_vm0, %v11739_v57, %v5224_v12  ;;  %v5040_v32 = vsel %vm227_vm0, %v11680_v6, %v4968_v43 }
 0x564   : > { %6355 = vmatprep.mubr.f32.mxu0 %v5296_v51 }
 0x565   : > { %6356 = vmatmul.mubr.f32.gmra.mxu0 %v5040_v32 }
 0x566   : > { %v5733_v20 = vpop.permute.xlu0 %5732  ;;  %v5476_v55 = vpop.permute.xlu1 %5475 }
 0x567   : > { %v5807_v42 = vsel %vm227_vm0, %v11727_v2, %v5733_v20  ;;  %v5550_v10 = vsel %vm227_vm0, %v11690_v21, %v5476_v55 }
 0x568   : > { %6570 = vmatprep.mubr.f32.mxu1 %v5807_v42 }
 0x569   : > { %6571 = vmatmul.mubr.f32.gmra.mxu1 %v5550_v10 }
 0x56a   : > { %v5226_v48 = vpop.permute.xlu0 %5225  ;;  %v4970_v62 = vpop.permute.xlu1 %4969 }
 0x56b   : > { %v5297_v57 = vsel %vm227_vm0, %v11759_v45, %v5226_v48  ;;  %v5041_v6 = vsel %vm227_vm0, %v11702_v61, %v4970_v62 }
 0x56c   : > { %6360 = vmatprep.mubr.f32.mxu0 %v5297_v57 }
 0x56d   : > { %6361 = vmatmul.mubr.f32.gmra.mxu0 %v5041_v6 }
 0x56e   : > { %v5735_v26 = vpop.permute.xlu0 %5734  ;;  %v5478_v24 = vpop.permute.xlu1 %5477 }
 0x56f   : > { %v5808_v63 = vsel %vm227_vm0, %v11748_v5, %v5735_v26  ;;  %v5551_v21 = vsel %vm227_vm0, %v11712_v3, %v5478_v24 }
 0x570   : > { %6575 = vmatprep.mubr.f32.mxu1 %v5808_v63 }
 0x571   : > { %6576 = vmatmul.mubr.f32.gmra.mxu1 %v5551_v21 }
 0x572   : > { %v5228_v53 = vpop.permute.xlu0 %5227  ;;  %v4972_v59 = vpop.permute.xlu1 %4971 }
 0x573   : > { %v5298_v45 = vsel %vm227_vm0, %v11781_v28, %v5228_v53  ;;  %v5042_v61 = vsel %vm227_vm0, %v11727_v2, %v4972_v59 }
 0x574   : > { %6365 = vmatprep.mubr.f32.mxu0 %v5298_v45 }
 0x575   : > { %6366 = vmatmul.mubr.f32.gmra.mxu0 %v5042_v61 }
 0x576   : > { %v5737_v22 = vpop.permute.xlu0 %5736  ;;  %v5480_v34 = vpop.permute.xlu1 %5479 }
 0x577   : > { %v5809_v30 = vsel %vm227_vm0, %v11771_v7, %v5737_v22  ;;  %v5552_v3 = vsel %vm227_vm0, %v11737_v9, %v5480_v34 }
 0x578   : > { %6580 = vmatprep.mubr.f32.mxu1 %v5809_v30 }
 0x579   : > { %v6242_v33 = vpop.f32.mrf.mxu0  ;;  %6581 = vmatmul.mubr.f32.gmra.mxu1 %v5552_v3 }
 0x57a   : > { %v5230_v60 = vpop.permute.xlu0 %5229  ;;  %v4974_v8 = vpop.permute.xlu1 %4973  ;;  %v6243_v46 = vadd.f32 %v12025_v14, %v6242_v33 }
 0x57b   : > { %v5299_v28 = vsel %vm227_vm0, %v11800_v11, %v5230_v60  ;;  %v5043_v2 = vsel %vm227_vm0, %v11748_v5, %v4974_v8  ;;  %v6244_v47 = vpop.f32.mrf.mxu0 }
 0x57c   : > { %6370 = vmatprep.mubr.f32.mxu0 %v5299_v28 }
 0x57d   : > { %v6247_v41 = vpop.f32.mrf.mxu0  ;;  %6371 = vmatmul.mubr.f32.gmra.mxu0 %v5043_v2 }
 0x57e   : > { %v5739_v18 = vpop.permute.xlu0 %5738  ;;  %v5482_v50 = vpop.permute.xlu1 %5481 }
 0x57f   : > { %v5810_v9 = vsel %vm227_vm0, %v11790_v52, %v5739_v18  ;;  %v5553_v58 = vsel %vm227_vm0, %v11757_v37, %v5482_v50  ;;  %v6249_v11 = vpop.f32.mrf.mxu0 }
 0x580   : > { %6585 = vmatprep.mubr.f32.mxu1 %v5810_v9 }
 0x581   : > { %v6252_v5 = vpop.f32.mrf.mxu0  ;;  %6586 = vmatmul.mubr.f32.gmra.mxu1 %v5553_v58 }
 0x582   : > { %v5232_v13 = vpop.permute.xlu0 %5231  ;;  %v4976_v4 = vpop.permute.xlu1 %4975 }
 0x583   : > { %v5300_v36 = vsel %vm227_vm0, %v11822_v31, %v5232_v13  ;;  %v5044_v25 = vsel %vm227_vm0, %v11771_v7, %v4976_v4  ;;  %v6467_v37 = vpop.f32.mrf.mxu1  ;;  %v6254_v44 = vpop.f32.mrf.mxu0  ;;  %v6248_v7 = vadd.f32 %v12025_v14, %v6247_v41 }
 0x584   : > { %v12032_v12 = vadd.f32 %v6467_v37, %v6243_v46  ;;  %6375 = vmatprep.mubr.f32.mxu0 %v5300_v36 }
 0x585   : > { %v6469_v43 = vpop.f32.mrf.mxu1  ;;  %6376 = vmatmul.mubr.f32.gmra.mxu0 %v5044_v25 }
 0x586   : > { %v5741_v51 = vpop.permute.xlu0 %5740  ;;  %v5484_v32 = vpop.permute.xlu1 %5483 }
 0x587   : > { %v5811_v20 = vsel %vm227_vm0, %v11812_v38, %v5741_v51  ;;  %v5554_v55 = vsel %vm227_vm0, %v11779_v17, %v5484_v32  ;;  %v6257_v42 = vpop.f32.mrf.mxu0  ;;  %v5918_v51 = vld [vmem:[#allocation4 + $0x20] sm:$0xff] }
 0x588   : > { %6590 = vmatprep.mubr.f32.mxu1 %v5811_v20 }
 0x589   : > { %v6259_v31 = vpop.f32.mrf.mxu0  ;;  %6591 = vmatmul.mubr.f32.gmra.mxu1 %v5554_v55  ;;  %v5923_v55 = vld [vmem:[#allocation4 + $0x48] sm:$0xff] }
 0x58a   : > { %v5234_v10 = vpop.permute.xlu0 %5233  ;;  %v4978_v48 = vpop.permute.xlu1 %4977 }
 0x58b   : > { %v5301_v62 = vsel %vm227_vm0, %v11841_v0, %v5234_v10  ;;  %v5045_v57 = vsel %vm227_vm0, %v11790_v52, %v4978_v48  ;;  %v6472_v6 = vpop.f32.mrf.mxu1  ;;  %v6253_v52 = vadd.f32 %v12025_v14, %v6252_v5 }
 0x58c   : > { %v12043_v26 = vadd.f32 %v6472_v6, %v6248_v7  ;;  %6380 = vmatprep.mubr.f32.mxu0 %v5301_v62  ;;  %v5624_v7 = vld [vmem:[#allocation2 + $0x227] sm:$0xff]  ;;  %v5933_v6 = vld [vmem:[#allocation4 + $0x98] sm:$0xff] }
 0x58d   : > { %v6474_v24 = vpop.f32.mrf.mxu1  ;;  %6381 = vmatmul.mubr.f32.gmra.mxu0 %v5045_v57 }
 0x58e   : > { %v5743_v17 = vpop.permute.xlu0 %5742  ;;  %v5486_v63 = vpop.permute.xlu1 %5485 }
 0x58f   : > { %v5812_v21 = vsel %vm227_vm0, %v11831_v39, %v5743_v17  ;;  %v5555_v53 = vsel %vm227_vm0, %v11798_v23, %v5486_v63  ;;  %v6262_v59 = vpop.f32.mrf.mxu0  ;;  %v5938_v17 = vld [vmem:[#allocation4 + $0xc0] sm:$0xff]  ;;  %v5625_v63 = vld [vmem:[#allocation2 + $0x22f] sm:$0xff] }
 0x590   : > { %6595 = vmatprep.mubr.f32.mxu1 %v5812_v21 }
 0x591   : > { %v6264_v0 = vpop.f32.mrf.mxu0  ;;  %6596 = vmatmul.mubr.f32.gmra.mxu1 %v5555_v53 }
 0x592   : > { %v5236_v45 = vpop.permute.xlu0 %5235  ;;  %v4980_v61 = vpop.permute.xlu1 %4979 }
 0x593   : > { %v5302_v22 = vsel %vm227_vm0, %v11863_v54, %v5236_v45  ;;  %v5046_v34 = vsel %vm227_vm0, %v11812_v38, %v4980_v61  ;;  %v6477_v30 = vpop.f32.mrf.mxu1  ;;  %v6258_v38 = vadd.f32 %v12025_v14, %v6257_v42 }
 0x594   : > { %v12054_v3 = vadd.f32 %v6477_v30, %v6253_v52  ;;  %6385 = vmatprep.mubr.f32.mxu0 %v5302_v22  ;;  %v5943_v52 = vld [vmem:[#allocation4 + $0xe8] sm:$0xff]  ;;  %v5948_v22 = vld [vmem:[#allocation4 + $0x110] sm:$0xff] }
 0x595   : > { %v6479_v33 = vpop.f32.mrf.mxu1  ;;  %6386 = vmatmul.mubr.f32.gmra.mxu0 %v5046_v34  ;;  %v5998_v34 = vld [vmem:[#allocation4 + $0x2a0] sm:$0xff] }
 0x596   : > { %v5745_v23 = vpop.permute.xlu0 %5744  ;;  %v5488_v60 = vpop.permute.xlu1 %5487 }
 0x597   : > { %v5813_v8 = vsel %vm227_vm0, %v11853_v35, %v5745_v23  ;;  %v5556_v28 = vsel %vm227_vm0, %v11820_v16, %v5488_v60  ;;  %v6267_v2 = vpop.f32.mrf.mxu0  ;;  %v5953_v60 = vld [vmem:[#allocation4 + $0x138] sm:$0xff] }
 0x598   : > { %6600 = vmatprep.mubr.f32.mxu1 %v5813_v8  ;;  %v6268_v48 = vadd.f32 %v12025_v14, %v6267_v2  ;;  %v6003_v8 = vld [vmem:[#allocation4 + $0x2c8] sm:$0xff]  ;;  %v6008_v2 = vld [vmem:[#allocation4 + $0x2f0] sm:$0xff] }
 0x599   : > { %v6269_v54 = vpop.f32.mrf.mxu0  ;;  %6601 = vmatmul.mubr.f32.gmra.mxu1 %v5556_v28 }
 0x59a   : > { %v5238_v47 = vpop.permute.xlu0 %5237  ;;  %v4982_v41 = vpop.permute.xlu1 %4981 }
 0x59b   : > { %v5303_v18 = vsel %vm227_vm0, %v11892_v27, %v5238_v47  ;;  %v5047_v50 = vsel %vm227_vm0, %v11831_v39, %v4982_v41  ;;  %v6482_v9 = vpop.f32.mrf.mxu1  ;;  %v6263_v39 = vadd.f32 %v12025_v14, %v6262_v59  ;;  %v5963_v47 = vld [vmem:[#allocation4 + $0x188] sm:$0xff]  ;;  %v6013_v41 = vld [vmem:[#allocation4 + $0x318] sm:$0xff] }
 0x59c   : > { %v12065_v58 = vadd.f32 %v6482_v9, %v6258_v38  ;;  %6390 = vmatprep.mubr.f32.mxu0 %v5303_v18  ;;  %v5968_v18 = vld [vmem:[#allocation4 + $0x1b0] sm:$0xff] }
 0x59d   : > { %v6484_v11 = vpop.f32.mrf.mxu1  ;;  %6391 = vmatmul.mubr.f32.gmra.mxu0 %v5047_v50  ;;  %v6018_v50 = vld [vmem:[#allocation4 + $0x340] sm:$0xff] }
 0x59e   : > { %v5747_v16 = vpop.permute.xlu0 %5746  ;;  %v5490_v5 = vpop.permute.xlu1 %5489 }
 0x59f   : > { %v5814_v46 = vsel %vm227_vm0, %v11876_v29, %v5747_v16  ;;  %v5557_v13 = vsel %vm227_vm0, %v11839_v40, %v5490_v5  ;;  %v6272_v4 = vpop.f32.mrf.mxu0  ;;  %v5973_v5 = vld [vmem:[#allocation4 + $0x1d8] sm:$0xff] }
 0x5a0   : > { %6605 = vmatprep.mubr.f32.mxu1 %v5814_v46  ;;  %v6273_v30 = vadd.f32 %v12025_v14, %v6272_v4  ;;  %v6023_v46 = vld [vmem:[#allocation4 + $0x368] sm:$0xff]  ;;  %v5978_v4 = vld [vmem:[#allocation4 + $0x200] sm:$0xff] }
 0x5a1   : > { %v6274_v27 = vpop.f32.mrf.mxu0  ;;  %6606 = vmatmul.mubr.f32.gmra.mxu1 %v5557_v13 }
 0x5a2   : > { %v5240_v36 = vpop.permute.xlu0 %5239  ;;  %v4984_v25 = vpop.permute.xlu1 %4983  ;;  %v6028_v27 = vld [vmem:[#allocation4 + $0x390] sm:$0xff] }
 0x5a3   : > { %v5304_v37 = vsel %vm227_vm0, %v11918_v56, %v5240_v36  ;;  %v5048_v44 = vsel %vm227_vm0, %v11853_v35, %v4984_v25  ;;  %v6487_v43 = vpop.f32.mrf.mxu1  ;;  %v5928_v35 = vld [vmem:[#allocation4 + $0x70] sm:$0xff]  ;;  %v5983_v25 = vld [vmem:[#allocation4 + $0x228] sm:$0xff] }
 0x5a4   : > { %v12076_v29 = vadd.f32 %v6487_v43, %v6263_v39  ;;  %6395 = vmatprep.mubr.f32.mxu0 %v5304_v37  ;;  %v6033_v37 = vld [vmem:[#allocation4 + $0x3b8] sm:$0xff]  ;;  %v6038_v43 = vld [vmem:[#allocation4 + $0x3e0] sm:$0xff] }
 0x5a5   : > { %v6489_v40 = vpop.f32.mrf.mxu1  ;;  %6396 = vmatmul.mubr.f32.gmra.mxu0 %v5048_v44  ;;  %v5988_v44 = vld [vmem:[#allocation4 + $0x250] sm:$0xff] }
 0x5a6   : > { %v5749_v32 = vpop.permute.xlu0 %5748  ;;  %v5492_v20 = vpop.permute.xlu1 %5491  ;;  %8811 = vmatprep.mubr.msk.f32.mxu0 %vm227_vm0, %v5918_v51 }
 0x5a7   : > { %v5815_v42 = vsel %vm227_vm0, %v11903_v1, %v5749_v32  ;;  %v5558_v56 = vsel %vm227_vm0, %v11861_v49, %v5492_v20  ;;  %v6277_v31 = vpop.f32.mrf.mxu0  ;;  %v5993_v20 = vld [vmem:[#allocation4 + $0x278] sm:$0xff] }
 0x5a8   : > { %6610 = vmatprep.mubr.f32.mxu1 %v5815_v42  ;;  %v6278_v11 = vadd.f32 %v12025_v14, %v6277_v31 }
 0x5a9   : > { %v6279_v10 = vpop.f32.mrf.mxu0  ;;  %6611 = vmatmul.mubr.f32.gmra.mxu1 %v5558_v56  ;;  %8812 = vmatmul.mubr.msk.f32.vlgmr.msra.gmra.mxu0 %vm227_vm0, %v5923_v55  ;;  %v6043_v55 = vld [vmem:[#allocation4 + $0x408] sm:$0xff]  ;;  %v6048_v56 = vld [vmem:[#allocation4 + $0x430] sm:$0xff] }
 0x5aa   : > { %v5751_v62 = vpop.permute.xlu0 %5750  ;;  %v5494_v57 = vpop.permute.xlu1 %5493  ;;  %8814 = vmatprep.mubr.msk.f32.mxu0 %vm227_vm0, %v5928_v35  ;;  %v6058_v10 = vld [vmem:[#allocation4 + $0x480] sm:$0xff] }
 0x5ab   : > { %v5816_v1 = vsel %vm227_vm0, %v5624_v7, %v5751_v62  ;;  %v5559_v49 = vsel %vm227_vm0, %v11890_v15, %v5494_v57  ;;  %v6492_v24 = vpop.f32.mrf.mxu1  ;;  %v6053_v7 = vld [vmem:[#allocation4 + $0x458] sm:$0xff] }
 0x5ac   : > { %v12089_v21 = vadd.f32 %v6492_v24, %v6268_v48  ;;  %6615 = vmatprep.mubr.f32.mxu1 %v5816_v1 }
 0x5ad   : > { %v6494_v53 = vpop.f32.mrf.mxu1  ;;  %6616 = vmatmul.mubr.f32.gmra.mxu1 %v5559_v49  ;;  %8815 = vmatmul.mubr.msk.f32.gmra.mxu0 %vm227_vm0, %v5933_v6  ;;  %v6063_v6 = vld [vmem:[#allocation4 + $0x4a8] sm:$0xff]  ;;  %v6068_v49 = vld [vmem:[#allocation4 + $0x4d0] sm:$0xff] }
 0x5ae   : > { %v5753_v59 = vpop.permute.xlu0 %5752  ;;  %v5496_v0 = vpop.permute.xlu1 %5495  ;;  %8817 = vmatprep.mubr.msk.f32.mxu0 %vm227_vm0, %v5938_v17 }
 0x5af   : > { %v5817_v45 = vsel %vm227_vm0, %v5625_v63, %v5753_v59  ;;  %v5560_v15 = vsel %vm227_vm0, %v11916_v19, %v5496_v0  ;;  %v6282_v61 = vpop.f32.mrf.mxu0  ;;  %v5958_v19 = vld [vmem:[#allocation4 + $0x160] sm:$0xff]  ;;  %v6073_v63 = vld [vmem:[#allocation4 + $0x4f8] sm:$0xff] }
 0x5b0   : > { %6620 = vmatprep.mubr.f32.mxu1 %v5817_v45  ;;  %v6283_v40 = vadd.f32 %v12025_v14, %v6282_v61 }
 0x5b1   : > { %v6284_v33 = vpop.f32.mrf.mxu0  ;;  %6621 = vmatmul.mubr.f32.gmra.mxu1 %v5560_v15  ;;  %8818 = vmatmul.mubr.msk.f32.gmra.mxu0 %vm227_vm0, %v5943_v52 }
 0x5b2   : > { %v6497_v23 = vpop.f32.mrf.mxu1  ;;  %8820 = vmatprep.mubr.msk.f32.mxu0 %vm227_vm0, %v5948_v22  ;;  %8835 = vmatprep.mubr.msk.f32.mxu1 %vm227_vm0, %v5998_v34 }
 0x5b3   : > { %v12100_v28 = vadd.f32 %v6497_v23, %v6273_v30 }
 0x5b4   : > { %v6499_v54 = vpop.f32.mrf.mxu1 }
 0x5b5   : > { %8821 = vmatmul.mubr.msk.f32.gmra.mxu0 %vm227_vm0, %v5953_v60  ;;  %8836 = vmatmul.mubr.msk.f32.vlgmr.msra.gmra.mxu1 %vm227_vm0, %v6003_v8 }
 0x5b6   : > { %v6287_v38 = vpop.f32.mrf.mxu0  ;;  %8823 = vmatprep.mubr.msk.f32.mxu0 %vm227_vm0, %v5958_v19  ;;  %8838 = vmatprep.mubr.msk.f32.mxu1 %vm227_vm0, %v6008_v2 }
 0x5b7   : > { %v6288_v62 = vadd.f32 %v12025_v14, %v6287_v38 }
 0x5b8   : > { %v6289_v9 = vpop.f32.mrf.mxu0 }
 0x5b9   : > { %8824 = vmatmul.mubr.msk.f32.gmra.mxu0 %vm227_vm0, %v5963_v47  ;;  %8839 = vmatmul.mubr.msk.f32.gmra.mxu1 %vm227_vm0, %v6013_v41 }
 0x5ba   : > { %v6502_v16 = vpop.f32.mrf.mxu1  ;;  %8826 = vmatprep.mubr.msk.f32.mxu0 %vm227_vm0, %v5968_v18  ;;  %8841 = vmatprep.mubr.msk.f32.mxu1 %vm227_vm0, %v6018_v50 }
 0x5bb   : > { %v12111_v13 = vadd.f32 %v6502_v16, %v6278_v11 }
 0x5bc   : > { %v6504_v39 = vpop.f32.mrf.mxu1 }
 0x5bd   : > { %8827 = vmatmul.mubr.msk.f32.gmra.mxu0 %vm227_vm0, %v5973_v5  ;;  %8842 = vmatmul.mubr.msk.f32.gmra.mxu1 %vm227_vm0, %v6023_v46 }
 0x5be   : > { %v6292_v36 = vpop.f32.mrf.mxu0  ;;  %8829 = vmatprep.mubr.msk.f32.mxu0 %vm227_vm0, %v5978_v4  ;;  %8844 = vmatprep.mubr.msk.f32.mxu1 %vm227_vm0, %v6028_v27 }
 0x5bf   : > { %v6293_v59 = vadd.f32 %v12025_v14, %v6292_v36 }
 0x5c0   : > { %v6294_v51 = vpop.f32.mrf.mxu0 }
 0x5c1   : > { %8830 = vmatmul.mubr.msk.f32.gmra.mxu0 %vm227_vm0, %v5983_v25  ;;  %8845 = vmatmul.mubr.msk.f32.gmra.mxu1 %vm227_vm0, %v6033_v37 }
 0x5c2   : > { %v6507_v32 = vpop.f32.mrf.mxu1  ;;  %8832 = vmatprep.mubr.msk.f32.mxu0 %vm227_vm0, %v5988_v44  ;;  %8847 = vmatprep.mubr.msk.f32.mxu1 %vm227_vm0, %v6038_v43 }
 0x5c3   : > { %v12122_v42 = vadd.f32 %v6507_v32, %v6283_v40 }
 0x5c4   : > { %v6509_v31 = vpop.f32.mrf.mxu1 }
 0x5c5   : > { %8833 = vmatmul.mubr.msk.f32.gmra.mxu0 %vm227_vm0, %v5993_v20  ;;  %8848 = vmatmul.mubr.msk.f32.gmra.mxu1 %vm227_vm0, %v6043_v55 }
 0x5c6   : > { %v6297_v35 = vpop.f32.mrf.mxu0  ;;  %8850 = vmatprep.mubr.msk.f32.mxu1 %vm227_vm0, %v6048_v56 }
 0x5c7   : > { %v6298_v22 = vadd.f32 %v12025_v14, %v6297_v35 }
 0x5c8   : > { %v6299_v48 = vpop.f32.mrf.mxu0 }
 0x5c9   : > { %8851 = vmatmul.mubr.msk.f32.gmra.mxu1 %vm227_vm0, %v6053_v7 }
 0x5ca   : > { %v6512_v57 = vpop.f32.mrf.mxu1  ;;  %8853 = vmatprep.mubr.msk.f32.mxu1 %vm227_vm0, %v6058_v10 }
 0x5cb   : > { %v12130_v1 = vadd.f32 %v6512_v57, %v6288_v62 }
 0x5cc   : > { %v6514_v24 = vpop.f32.mrf.mxu1 }
 0x5cd   : > { %8854 = vmatmul.mubr.msk.f32.gmra.mxu1 %vm227_vm0, %v6063_v6 }
 0x5ce   : > { %v6302_v17 = vpop.f32.mrf.mxu0  ;;  %8856 = vmatprep.mubr.msk.f32.mxu1 %vm227_vm0, %v6068_v49 }
 0x5cf   : > { %v6303_v8 = vadd.f32 %v12025_v14, %v6302_v17 }
 0x5d0   : > { %v6304_v53 = vpop.f32.mrf.mxu0 }
 0x5d1   : > { %8857 = vmatmul.mubr.msk.f32.gmra.mxu1 %vm227_vm0, %v6073_v63 }
 0x5d2   : > { %v6517_v0 = vpop.f32.mrf.mxu1 }
 0x5d3   : > { %v12136_v52 = vadd.f32 %v6517_v0, %v6293_v59 }
 0x5d4   : > { %v6519_v45 = vpop.f32.mrf.mxu1 }
 0x5d6   : > { %v6307_v15 = vpop.f32.mrf.mxu0 }
 0x5d7   : > { %v6308_v41 = vadd.f32 %v12025_v14, %v6307_v15 }
 0x5d8   : > { %v6309_v61 = vpop.f32.mrf.mxu0 }
 0x5da   : > { %v6522_v34 = vpop.f32.mrf.mxu1 }
 0x5db   : > { %v12139_v30 = vadd.f32 %v6522_v34, %v6298_v22 }
 0x5dc   : > { %v6524_v33 = vpop.f32.mrf.mxu1 }
 0x5de   : > { %v6312_v23 = vpop.f32.mrf.mxu0 }
 0x5df   : > { %v6313_v5 = vadd.f32 %v12025_v14, %v6312_v23 }
 0x5e0   : > { %v6314_v60 = vpop.f32.mrf.mxu0 }
 0x5e2   : > { %v6527_v19 = vpop.f32.mrf.mxu1 }
 0x5e3   : > { %v12142_v2 = vadd.f32 %v6527_v19, %v6303_v8 }
 0x5e4   : > { %v6529_v54 = vpop.f32.mrf.mxu1 }
 0x5e6   : > { %v6317_v38 = vpop.f32.mrf.mxu0 }
 0x5e7   : > { %v6318_v25 = vadd.f32 %v12025_v14, %v6317_v38 }
 0x5e8   : > { %v6319_v47 = vpop.f32.mrf.mxu0 }
 0x5ea   : > { %v6532_v18 = vpop.f32.mrf.mxu1 }
 0x5eb   : > { %v12145_v50 = vadd.f32 %v6532_v18, %v6308_v41 }
 0x5ec   : > { %v6534_v9 = vpop.f32.mrf.mxu1 }
 0x5ee   : > { %v6322_v11 = vpop.f32.mrf.mxu0 }
 0x5ef   : > { %v6323_v40 = vadd.f32 %v12025_v14, %v6322_v11 }
 0x5f0   : > { %v6324_v16 = vpop.f32.mrf.mxu0 }
 0x5f2   : > { %v6537_v46 = vpop.f32.mrf.mxu1 }
 0x5f3   : > { %v12148_v4 = vadd.f32 %v6537_v46, %v6313_v5 }
 0x5f4   : > { %v6539_v27 = vpop.f32.mrf.mxu1 }
 0x5f6   : > { %v6327_v39 = vpop.f32.mrf.mxu0 }
 0x5f7   : > { %v6328_v7 = vadd.f32 %v12025_v14, %v6327_v39 }
 0x5f8   : > { %v6329_v36 = vpop.f32.mrf.mxu0 }
 0x5fa   : > { %v6542_v37 = vpop.f32.mrf.mxu1 }
 0x5fb   : > { %v12151_v44 = vadd.f32 %v6542_v37, %v6318_v25 }
 0x5fc   : > { %v6544_v43 = vpop.f32.mrf.mxu1 }
 0x5fe   : > { %v6332_v51 = vpop.f32.mrf.mxu0 }
 0x5ff   : > { %v6333_v49 = vadd.f32 %v12025_v14, %v6332_v51 }
 0x600   : > { %v6334_v32 = vpop.f32.mrf.mxu0 }
 0x601   : > { %v6547_v20 = vpop.f32.mrf.mxu1 }
 0x602   : > { %v12154_v55 = vadd.f32 %v6547_v20, %v6323_v40 }
 0x603   : > { %v6549_v56 = vpop.f32.mrf.mxu1 }
 0x605   : > { %v6337_v31 = vpop.f32.mrf.mxu0 }
 0x606   : > { %v6338_v0 = vadd.f32 %v12025_v14, %v6337_v31 }
 0x607   : > { %v6339_v35 = vpop.f32.mrf.mxu0 }
 0x609   : > { %v6552_v10 = vpop.f32.mrf.mxu1 }
 0x60a   : > { %v12157_v48 = vadd.f32 %v6552_v10, %v6328_v7 }
 0x60b   : > { %v6554_v62 = vpop.f32.mrf.mxu1 }
 0x60d   : > { %v6342_v57 = vpop.f32.mrf.mxu0 }
 0x60e   : > { %v6343_v33 = vadd.f32 %v12025_v14, %v6342_v57 }
 0x60f   : > { %v6344_v6 = vpop.f32.mrf.mxu0 }
 0x611   : > { %v6557_v24 = vpop.f32.mrf.mxu1 }
 0x612   : > { %v12160_v17 = vadd.f32 %v6557_v24, %v6333_v49 }
 0x613   : > { %v6559_v63 = vpop.f32.mrf.mxu1 }
 0x615   : > { %v6347_v53 = vpop.f32.mrf.mxu0 }
 0x616   : > { %v6348_v38 = vadd.f32 %v12025_v14, %v6347_v53 }
 0x617   : > { %v6349_v59 = vpop.f32.mrf.mxu0 }
 0x619   : > { %v6562_v45 = vpop.f32.mrf.mxu1 }
 0x61a   : > { %v12163_v15 = vadd.f32 %v6562_v45, %v6338_v0 }
 0x61b   : > { %v6564_v61 = vpop.f32.mrf.mxu1 }
 0x61d   : > { %v6352_v22 = vpop.f32.mrf.mxu0 }
 0x61e   : > { %v6353_v16 = vadd.f32 %v12025_v14, %v6352_v22 }
 0x61f   : > { %v6354_v34 = vpop.f32.mrf.mxu0 }
 0x621   : > { %v6567_v23 = vpop.f32.mrf.mxu1 }
 0x622   : > { %v12166_v60 = vadd.f32 %v6567_v23, %v6343_v33 }
 0x623   : > { %v6569_v8 = vpop.f32.mrf.mxu1 }
 0x625   : > { %v6357_v19 = vpop.f32.mrf.mxu0 }
 0x626   : > { %v6358_v25 = vadd.f32 %v12025_v14, %v6357_v19  ;;  %v6916_v19 = vld [vmem:[#allocation3 + $0xf] sm:$0xff] }
 0x627   : > { %v6359_v54 = vpop.f32.mrf.mxu0 }
 0x628   : > { %v12205_v54 = vld [vmem:[%s13260_s3] ss:$0 sm:$0xff] }
 0x629   : > { %v6572_v47 = vpop.f32.mrf.mxu1 }
 0x62a   : > { %v12169_v41 = vadd.f32 %v6572_v47, %v6348_v38  ;;  %v7019_v38 = vld [vmem:[#allocation3 + $0x10] sm:$0xff]  ;;  %v12210_v47 = vld [vmem:[%s13260_s3 + $0x1] ss:$0 sm:$0xff] }
 0x62b   : > { %v6574_v18 = vpop.f32.mrf.mxu1 }
 0x62d   : > { %v6362_v9 = vpop.f32.mrf.mxu0 }
 0x62e   : > { %v6363_v20 = vadd.f32 %v12025_v14, %v6362_v9 }
 0x62f   : > { %v6364_v11 = vpop.f32.mrf.mxu0 }
 0x630   : > { %v6915_v11 = vld [vmem:[#allocation3 + $0x7] sm:$0xff] }
 0x631   : > { %v6577_v5 = vpop.f32.mrf.mxu1 }
 0x632   : > { %v12172_v46 = vadd.f32 %v6577_v5, %v6353_v16  ;;  %v7018_v16 = vld [vmem:[#allocation3 + $0x8] sm:$0xff] }
 0x633   : > { %v6579_v27 = vpop.f32.mrf.mxu1 }
 0x635   : > { %v12174_v39 = vpop.f32.mrf.mxu0 }
 0x637   : > { %v6369_v36 = vpop.f32.mrf.mxu0 }
 0x639   : > { %v6582_v37 = vpop.f32.mrf.mxu1 }
 0x63a   : > { %v12177_v43 = vadd.f32 %v6582_v37, %v6358_v25  ;;  %v6955_v25 = vmul.f32 %v12205_v54, %v6916_v19  ;;  %v7059_v37 = vmul.f32 %v12210_v47, %v7019_v38 }
 0x63b   : > { %v6584_v51 = vpop.f32.mrf.mxu1 }
 0x63d   : > { %v12179_v40 = vpop.f32.mrf.mxu0 }
 0x63f   : > { %v6374_v32 = vpop.f32.mrf.mxu0 }
 0x641   : > { %v6587_v56 = vpop.f32.mrf.mxu1 }
 0x642   : > { %v12182_v31 = vadd.f32 %v6587_v56, %v6363_v20  ;;  %v7123_v20 = vld [vmem:[#allocation3 + $0x11] sm:$0xff]  ;;  %v12221_v56 = vld [vmem:[%s13260_s3 + $0x2] ss:$0 sm:$0xff] }
 0x643   : > { %v6589_v35 = vpop.f32.mrf.mxu1 }
 0x644   : > { %v6954_v35 = vmul.f32 %v12205_v54, %v6915_v11 }
 0x645   : > { %v12184_v7 = vpop.f32.mrf.mxu0 }
 0x647   : > { %v6379_v10 = vpop.f32.mrf.mxu0 }
 0x648   : > { %v7058_v10 = vmul.f32 %v12210_v47, %v7018_v16 }
 0x649   : > { %v12186_v62 = vpop.f32.mrf.mxu1 }
 0x64a   : > { %v7090_v38 = vadd.f32 %v7058_v10, %v6954_v35 }
 0x64b   : > { %v6594_v57 = vpop.f32.mrf.mxu1 }
 0x64d   : > { %v12188_v6 = vpop.f32.mrf.mxu0 }
 0x64f   : > { %v6384_v49 = vpop.f32.mrf.mxu0 }
 0x650   : > { %v7122_v49 = vld [vmem:[#allocation3 + $0x9] sm:$0xff] }
 0x651   : > { %v12190_v24 = vpop.f32.mrf.mxu1 }
 0x653   : > { %v6599_v63 = vpop.f32.mrf.mxu1 }
 0x655   : > { %v12192_v53 = vpop.f32.mrf.mxu0 }
 0x657   : > { %v6389_v59 = vpop.f32.mrf.mxu0 }
 0x659   : > { %v12194_v0 = vpop.f32.mrf.mxu1 }
 0x65b   : > { %v6604_v45 = vpop.f32.mrf.mxu1 }
 0x65d   : > { %v12196_v61 = vpop.f32.mrf.mxu0 }
 0x65f   : > { %v6394_v22 = vpop.f32.mrf.mxu0 }
 0x660   : > { %v7091_v22 = vadd.f32 %v7059_v37, %v6955_v25 }
 0x661   : > { %v12198_v34 = vpop.f32.mrf.mxu1 }
 0x663   : > { %v6609_v33 = vpop.f32.mrf.mxu1 }
 0x664   : > { %v7163_v33 = vmul.f32 %v12221_v56, %v7123_v20  ;;  %v12246_v20 = vld [vmem:[%s13260_s3 + $0x4] ss:$0 sm:$0xff] }
 0x665   : > { %v12200_v23 = vpop.f32.mrf.mxu0 }
 0x667   : > { %v6399_v8 = vpop.f32.mrf.mxu0 }
 0x669   : > { %v12212_v18 = vpop.f32.mrf.mxu1  ;;  %v8813_v9 = vpop.f32.mrf.mxu0 }
 0x66a   : > { %v6698_v5 = vadd.f32 %v8813_v9, %v12043_v26  ;;  %v7162_v9 = vmul.f32 %v12221_v56, %v7122_v49 }
 0x66b   : > { %v6614_v27 = vpop.f32.mrf.mxu1  ;;  %v6692_v36 = vpop.f32.mrf.mxu0 }
 0x66c   : > { %v6852_v51 = vmax.f32 %v6698_v5, 0.0  ;;  %v6693_v32 = vadd.f32 %v6692_v36, %v12032_v12  ;;  %v6368_v27 = vadd.f32 %v12025_v14, %v12174_v39  ;;  %v6373_v36 = vadd.f32 %v12025_v14, %v12179_v40 }
 0x66d   : > { %v12225_v26 = vpop.f32.mrf.mxu1  ;;  %v8816_v57 = vpop.f32.mrf.mxu0  ;;  %v7194_v39 = vadd.f32 %v7162_v9, %v7090_v38  ;;  %v6378_v40 = vadd.f32 %v12025_v14, %v12184_v7 }
 0x66e   : > { %13274 = vst [vmem:[#allocation6_spill] sm:$0xff] %v12225_v26  ;;  %6884 = vst.msk [vmem:[#allocation3 + $0x30] sm:$0xff] %vm227_vm0, %v6852_v51  ;;  %v6851_v63 = vmax.f32 %v6693_v32, 0.0  ;;  %v6708_v59 = vadd.f32 %v8816_v57, %v12065_v58  ;;  %v7195_v32 = vadd.f32 %v7163_v33, %v7091_v22  ;;  %v12256_v35 = vadd.f32 %v12186_v62, %v6368_v27 }
 0x66f   : > { %v6619_v12 = vpop.f32.mrf.mxu1  ;;  %v6702_v45 = vpop.f32.mrf.mxu0  ;;  %v12263_v10 = vadd.f32 %v12190_v24, %v6373_v36  ;;  %v12279_v24 = vld [vmem:[%s13260_s3 + $0x3] ss:$0 sm:$0xff]  ;;  %v12291_v22 = vadd.f32 %v12025_v14, %v12196_v61 }
 0x670   : > { %6883 = vst.msk [vmem:[#allocation3 + $0x28] sm:$0xff] %vm227_vm0, %v6851_v63  ;;  %v6854_v8 = vmax.f32 %v6708_v59, 0.0  ;;  %v6703_v19 = vadd.f32 %v6702_v45, %v12054_v3  ;;  %v12271_v12 = vadd.f32 %v12025_v14, %v12192_v53  ;;  %v12284_v45 = vld [vmem:[%s13260_s3 + $0x7] ss:$0 sm:$0xff]  ;;  %v12287_v53 = vadd.f32 %v12194_v0, %v6378_v40 }
 0x671   : > { %v12233_v11 = vpop.f32.mrf.mxu1  ;;  %v8819_v16 = vpop.f32.mrf.mxu0  ;;  %13275 = vst [vmem:[#allocation7_spill] sm:$0xff] %v12291_v22 }
 0x672   : > { %6886 = vst.msk [vmem:[#allocation3 + $0x50] sm:$0xff] %vm227_vm0, %v6854_v8  ;;  %v6853_v5 = vmax.f32 %v6703_v19, 0.0  ;;  %v6718_v58 = vadd.f32 %v8819_v16, %v12089_v21  ;;  %v12251_v21 = vld [vmem:[%s13260_s3 + $0x5] ss:$0 sm:$0xff] }
 0x673   : > { %v6624_v25 = vpop.f32.mrf.mxu1  ;;  %v6712_v37 = vpop.f32.mrf.mxu0 }
 0x674   : > { %6885 = vst.msk [vmem:[#allocation3 + $0x48] sm:$0xff] %vm227_vm0, %v6853_v5  ;;  %v6856_v3 = vmax.f32 %v6718_v58, 0.0  ;;  %v6713_v51 = vadd.f32 %v6712_v37, %v12076_v29  ;;  %v12260_v29 = vadd.f32 %v12025_v14, %v12188_v6  ;;  %v12309_v5 = vld [vmem:[%s13260_s3 + $0x8] ss:$0 sm:$0xff] }
 0x675   : > { %v8822_v57 = vpop.f32.mrf.mxu0  ;;  %v8837_v49 = vpop.f32.mrf.mxu1  ;;  %v12265_v63 = vld [vmem:[#allocation3 + $0x30] sm:$0xff] }
 0x676   : > { %v12267_v59 = vld [vmem:[#allocation3 + $0x31] sm:$0xff]  ;;  %6888 = vst.msk [vmem:[#allocation3 + $0x70] sm:$0xff] %vm227_vm0, %v6856_v3  ;;  %v6855_v7 = vmax.f32 %v6713_v51, 0.0  ;;  %v6728_v62 = vadd.f32 %v8822_v57, %v12111_v13  ;;  %v6778_v6 = vadd.f32 %v8837_v49, %v12157_v48  ;;  %v7371_v8 = vmul.f32 %v12246_v20, %v12265_v63 }
 0x677   : > { %v6722_v13 = vpop.f32.mrf.mxu0  ;;  %v6772_v33 = vpop.f32.mrf.mxu1  ;;  %v12293_v48 = vld [vmem:[#allocation3 + $0x2f] sm:$0xff]  ;;  %v7475_v19 = vmul.f32 %v12251_v21, %v12267_v59  ;;  %v12299_v38 = vld [vmem:[#allocation3 + $0x27] sm:$0xff] }
 0x678   : > { %v12301_v9 = vld [vmem:[#allocation3 + $0x28] sm:$0xff]  ;;  %6887 = vst.msk [vmem:[#allocation3 + $0x68] sm:$0xff] %vm227_vm0, %v6855_v7  ;;  %v6858_v0 = vmax.f32 %v6728_v62, 0.0  ;;  %v6868_v16 = vmax.f32 %v6778_v6, 0.0  ;;  %v6723_v14 = vadd.f32 %v6722_v13, %v12100_v28  ;;  %v6773_v61 = vadd.f32 %v6772_v33, %v12154_v55  ;;  %v12332_v62 = vld [vmem:[%s13260_s3 + $0x6] ss:$0 sm:$0xff] }
 0x679   : > { %v12311_v58 = vld [vmem:[#allocation3 + $0x29] sm:$0xff]  ;;  %v8825_v27 = vpop.f32.mrf.mxu0  ;;  %v8840_v36 = vpop.f32.mrf.mxu1  ;;  %v7267_v25 = vmul.f32 %v12279_v24, %v12293_v48  ;;  %v12317_v3 = vld [vmem:[#allocation3 + $0x51] sm:$0xff]  ;;  %v7266_v28 = vmul.f32 %v12279_v24, %v12299_v38  ;;  %v7370_v55 = vmul.f32 %v12246_v20, %v12301_v9 }
 0x67a   : > { %v12315_v37 = vld [vmem:[#allocation3 + $0x50] sm:$0xff]  ;;  %13277 = vst [vmem:[#allocation9_spill] sm:$0xff] %v12317_v3  ;;  %v7474_v51 = vmul.f32 %v12251_v21, %v12311_v58  ;;  %6890 = vst.msk [vmem:[#allocation3 + $0x90] sm:$0xff] %vm227_vm0, %v6858_v0  ;;  %v6857_v40 = vmax.f32 %v6723_v14, 0.0  ;;  %v6867_v57 = vmax.f32 %v6773_v61, 0.0  ;;  %v6738_v49 = vadd.f32 %v8825_v27, %v12130_v1 }
 0x67b   : > { %13276 = vst [vmem:[#allocation8_spill] sm:$0xff] %v12315_v37  ;;  %6900 = vst.msk [vmem:[#allocation3 + $0x130] sm:$0xff] %vm227_vm0, %v6868_v16  ;;  %v6788_v7 = vadd.f32 %v8840_v36, %v12163_v15  ;;  %v6732_v6 = vpop.f32.mrf.mxu0  ;;  %v6782_v13 = vpop.f32.mrf.mxu1  ;;  %v7299_v33 = vadd.f32 %v7267_v25, %v7195_v32  ;;  %v12334_v26 = vld [vmem:[#allocation3 + $0x4f] sm:$0xff]  ;;  %v7684_v0 = vmul.f32 %v12284_v45, %v12315_v37  ;;  %v12340_v1 = vld [vmem:[#allocation3 + $0x47] sm:$0xff] }
 0x67c   : > { %v7788_v16 = vmul.f32 %v12309_v5, %v12317_v3  ;;  %v7298_v14 = vadd.f32 %v7266_v28, %v7194_v39  ;;  %6889 = vst.msk [vmem:[#allocation3 + $0x88] sm:$0xff] %vm227_vm0, %v6857_v40  ;;  %6899 = vst.msk [vmem:[#allocation3 + $0x128] sm:$0xff] %vm227_vm0, %v6867_v57  ;;  %v6860_v15 = vmax.f32 %v6738_v49, 0.0  ;;  %v6733_v27 = vadd.f32 %v6732_v6, %v12122_v42  ;;  %v12346_v36 = vld [vmem:[#allocation3 + $0x48] sm:$0xff] }
 0x67d   : > { %v6870_v61 = vmax.f32 %v6788_v7, 0.0  ;;  %v6783_v32 = vadd.f32 %v6782_v13, %v12160_v17  ;;  %v12348_v25 = vld [vmem:[#allocation3 + $0x49] sm:$0xff]  ;;  %v8828_v37 = vpop.f32.mrf.mxu0  ;;  %v8843_v22 = vpop.f32.mrf.mxu1  ;;  %v7403_v3 = vadd.f32 %v7371_v8, %v7299_v33  ;;  %v7580_v39 = vmul.f32 %v12332_v62, %v12334_v26 }
 0x67e   : > { %v7402_v28 = vadd.f32 %v7370_v55, %v7298_v14  ;;  %v7579_v40 = vmul.f32 %v12332_v62, %v12340_v1  ;;  %6892 = vst.msk [vmem:[#allocation3 + $0xb0] sm:$0xff] %vm227_vm0, %v6860_v15  ;;  %v6859_v42 = vmax.f32 %v6733_v27, 0.0  ;;  %v6748_v57 = vadd.f32 %v8828_v37, %v12139_v30 }
 0x67f   : > { %6902 = vst.msk [vmem:[#allocation3 + $0x150] sm:$0xff] %vm227_vm0, %v6870_v61  ;;  %v6869_v17 = vmax.f32 %v6783_v32, 0.0  ;;  %v6798_v49 = vadd.f32 %v8843_v22, %v12169_v41  ;;  %v6742_v7 = vpop.f32.mrf.mxu0  ;;  %v6792_v6 = vpop.f32.mrf.mxu1  ;;  %v7507_v8 = vadd.f32 %v7475_v19, %v7403_v3  ;;  %v7683_v55 = vmul.f32 %v12284_v45, %v12346_v36 }
 0x680   : > { %v7506_v13 = vadd.f32 %v7474_v51, %v7402_v28  ;;  %v7787_v33 = vmul.f32 %v12309_v5, %v12348_v25  ;;  %6891 = vst.msk [vmem:[#allocation3 + $0xa8] sm:$0xff] %vm227_vm0, %v6859_v42  ;;  %v6862_v14 = vmax.f32 %v6748_v57, 0.0  ;;  %v6743_v30 = vadd.f32 %v6742_v7, %v12136_v52 }
 0x681   : > { %6901 = vst.msk [vmem:[#allocation3 + $0x148] sm:$0xff] %vm227_vm0, %v6869_v17  ;;  %v6872_v15 = vmax.f32 %v6798_v49, 0.0  ;;  %v6793_v41 = vadd.f32 %v6792_v6, %v12166_v60  ;;  %v8831_v22 = vpop.f32.mrf.mxu0  ;;  %v8846_v37 = vpop.f32.mrf.mxu1  ;;  %v7612_v19 = vadd.f32 %v7580_v39, %v7507_v8  ;;  %v6956_v51 = vmul.f32 %v12205_v54, %v12299_v38 }
 0x682   : > { %v7611_v3 = vadd.f32 %v7579_v40, %v7506_v13  ;;  %v7060_v61 = vmul.f32 %v12210_v47, %v12301_v9  ;;  %6894 = vst.msk [vmem:[#allocation3 + $0xd0] sm:$0xff] %vm227_vm0, %v6862_v14  ;;  %v6861_v27 = vmax.f32 %v6743_v30, 0.0  ;;  %v6758_v52 = vadd.f32 %v8831_v22, %v12145_v50 }
 0x683   : > { %6904 = vst.msk [vmem:[#allocation3 + $0x170] sm:$0xff] %vm227_vm0, %v6872_v15  ;;  %v6871_v32 = vmax.f32 %v6793_v41, 0.0  ;;  %v6808_v60 = vadd.f32 %v8846_v37, %v12177_v43  ;;  %v6752_v28 = vpop.f32.mrf.mxu0  ;;  %v6802_v42 = vpop.f32.mrf.mxu1  ;;  %v7716_v39 = vadd.f32 %v7684_v0, %v7612_v19  ;;  %v7164_v38 = vmul.f32 %v12221_v56, %v12311_v58  ;;  %v12394_v19 = vld [vmem:[#allocation3 + $0x67] sm:$0xff] }
 0x684   : > { %v7715_v40 = vadd.f32 %v7683_v55, %v7611_v3  ;;  %v7092_v17 = vadd.f32 %v7060_v61, %v6956_v51  ;;  %6893 = vst.msk [vmem:[#allocation3 + $0xc8] sm:$0xff] %vm227_vm0, %v6861_v27  ;;  %v6864_v9 = vmax.f32 %v6758_v52, 0.0  ;;  %v6753_v49 = vadd.f32 %v6752_v28, %v12142_v2  ;;  %v8898_v51 = vld [vmem:[%s13259_s2 + $0x4] ss:$0 sm:$0xff] }
 0x685   : > { %6903 = vst.msk [vmem:[#allocation3 + $0x168] sm:$0xff] %vm227_vm0, %v6871_v32  ;;  %v6874_v57 = vmax.f32 %v6808_v60, 0.0  ;;  %v6803_v50 = vadd.f32 %v6802_v42, %v12172_v46  ;;  %v8834_v7 = vpop.f32.mrf.mxu0  ;;  %v8849_v43 = vpop.f32.mrf.mxu1  ;;  %v7820_v6 = vadd.f32 %v7788_v16, %v7716_v39  ;;  %v7268_v13 = vmul.f32 %v12279_v24, %v12340_v1  ;;  %v12409_v60 = vld [vmem:[#allocation3 + $0x68] sm:$0xff] }
 0x686   : > { %v7819_v8 = vadd.f32 %v7787_v33, %v7715_v40  ;;  %v7196_v0 = vadd.f32 %v7164_v38, %v7092_v17  ;;  %6896 = vst.msk [vmem:[#allocation3 + $0xf0] sm:$0xff] %vm227_vm0, %v6864_v9  ;;  %v6863_v58 = vmax.f32 %v6753_v49, 0.0  ;;  %v6768_v14 = vadd.f32 %v8834_v7, %v12151_v44  ;;  %v7036_v40 = vld [vmem:[#allocation3 + $0x128] sm:$0xff] }
 0x687   : > { %6906 = vst.msk [vmem:[#allocation3 + $0x190] sm:$0xff] %vm227_vm0, %v6874_v57  ;;  %v6873_v55 = vmax.f32 %v6803_v50, 0.0  ;;  %v6818_v2 = vadd.f32 %v8849_v43, %v12256_v35  ;;  %v6762_v15 = vpop.f32.mrf.mxu0  ;;  %v6812_v46 = vpop.f32.mrf.mxu1  ;;  %v7854_v30 = vsel %vm227_vm0, %v7820_v6, 0.0  ;;  %v7372_v41 = vmul.f32 %v12246_v20, %v12346_v36  ;;  %v12421_v9 = vld [vmem:[#allocation3 + $0x69] sm:$0xff] }
 0x688   : > { %v7851_v16 = vsel %vm227_vm0, %v7819_v8, 0.0  ;;  %v7300_v33 = vadd.f32 %v7268_v13, %v7196_v0  ;;  %6895 = vst.msk [vmem:[#allocation3 + $0xe8] sm:$0xff] %vm227_vm0, %v6863_v58  ;;  %v6866_v22 = vmax.f32 %v6768_v14, 0.0  ;;  %v6763_v44 = vadd.f32 %v6762_v15, %v12148_v4  ;;  %7855 = vadd.xlane.f32.xlu1 %v7854_v30  ;;  %v12429_v43 = vld [vmem:[#allocation3 + $0x147] sm:$0xff] }
 0x689   : > { %6905 = vst.msk [vmem:[#allocation3 + $0x188] sm:$0xff] %vm227_vm0, %v6873_v55  ;;  %v6876_v37 = vmax.f32 %v6818_v2, 0.0  ;;  %v6813_v35 = vadd.f32 %v6812_v46, %v12182_v31  ;;  %7852 = vadd.xlane.f32.xlu0 %v7851_v16  ;;  %v6608_v3 = vadd.f32 %v12198_v34, %v12260_v29  ;;  %v6398_v61 = vadd.f32 %v8898_v51, %v12200_v23  ;;  %v8852_v27 = vpop.f32.mrf.mxu1  ;;  %v12440_v16 = vld [vmem:[#allocation3 + $0x148] sm:$0xff]  ;;  %v13280_v51 = vld [vmem:[#allocation8_spill] sm:$0xff] }
 0x68a   : > { %v7404_v32 = vadd.f32 %v7372_v41, %v7300_v33  ;;  %v7476_v4 = vmul.f32 %v12251_v21, %v12348_v25  ;;  %v6613_v31 = vadd.f32 %v12212_v18, %v12271_v12  ;;  %6898 = vst.msk [vmem:[#allocation3 + $0x110] sm:$0xff] %vm227_vm0, %v6866_v22  ;;  %v6865_v52 = vmax.f32 %v6763_v44, 0.0  ;;  %v6933_v12 = vld [vmem:[#allocation3 + $0x127] sm:$0xff]  ;;  %v6934_v33 = vld [vmem:[#allocation3 + $0x12f] sm:$0xff] }
 0x68b   : > { %6908 = vst.msk [vmem:[#allocation3 + $0x1b0] sm:$0xff] %vm227_vm0, %v6876_v37  ;;  %v6875_v34 = vmax.f32 %v6813_v35, 0.0  ;;  %v6828_v29 = vadd.f32 %v8852_v27, %v12287_v53  ;;  %v6822_v28 = vpop.f32.mrf.mxu1  ;;  %v7581_v42 = vmul.f32 %v12332_v62, %v12394_v19  ;;  %v6957_v39 = vmul.f32 %v12205_v54, %v12293_v48  ;;  %v7140_v48 = vld [vmem:[#allocation3 + $0x129] sm:$0xff]  ;;  %v13279_v22 = vld [vmem:[#allocation6_spill] sm:$0xff] }
 0x68c   : > { %v7508_v23 = vadd.f32 %v7476_v4, %v7404_v32  ;;  %v7061_v18 = vmul.f32 %v12210_v47, %v12265_v63  ;;  %v6623_v17 = vadd.f32 %v12233_v11, %v6398_v61  ;;  %6897 = vst.msk [vmem:[#allocation3 + $0x108] sm:$0xff] %vm227_vm0, %v6865_v52  ;;  %v6823_v38 = vadd.f32 %v6822_v28, %v12263_v10  ;;  %v13278_v41 = vld [vmem:[#allocation7_spill] sm:$0xff]  ;;  %v13281_v4 = vld [vmem:[#allocation9_spill] sm:$0xff] }
 0x68d   : > { %6907 = vst.msk [vmem:[#allocation3 + $0x1a8] sm:$0xff] %vm227_vm0, %v6875_v34  ;;  %v6878_v53 = vmax.f32 %v6828_v29, 0.0  ;;  %v7165_v57 = vmul.f32 %v12221_v56, %v12267_v59  ;;  %v7685_v63 = vmul.f32 %v12284_v45, %v12409_v60  ;;  %v8855_v50 = vpop.f32.mrf.mxu1  ;;  %v7269_v11 = vmul.f32 %v12279_v24, %v12334_v26  ;;  %v7037_v32 = vld [vmem:[#allocation3 + $0x130] sm:$0xff] }
 0x68e   : > { %v7613_v49 = vadd.f32 %v7581_v42, %v7508_v23  ;;  %v7093_v7 = vadd.f32 %v7061_v18, %v6957_v39  ;;  %v6877_v10 = vmax.f32 %v6823_v38, 0.0  ;;  %v6838_v6 = vadd.f32 %v8855_v50, %v6613_v31  ;;  %v12449_v52 = vld [vmem:[#allocation3 + $0x6f] sm:$0xff] }
 0x68f   : > { %6910 = vst.msk [vmem:[#allocation3 + $0x1d0] sm:$0xff] %vm227_vm0, %v6878_v53  ;;  %v6972_v8 = vmul.f32 %v12205_v54, %v6933_v12  ;;  %v7076_v59 = vmul.f32 %v12210_v47, %v7036_v40  ;;  %v7789_v13 = vmul.f32 %v12309_v5, %v12421_v9  ;;  %v6832_v58 = vpop.f32.mrf.mxu1  ;;  %v7180_v14 = vmul.f32 %v12221_v56, %v7140_v48  ;;  %v12451_v28 = vld [vmem:[#allocation3 + $0x149] sm:$0xff]  ;;  %v7141_v23 = vld [vmem:[#allocation3 + $0x131] sm:$0xff] }
 0x690   : > { %v7717_v0 = vadd.f32 %v7685_v63, %v7613_v49  ;;  %v7197_v55 = vadd.f32 %v7165_v57, %v7093_v7  ;;  %6909 = vst.msk [vmem:[#allocation3 + $0x1c8] sm:$0xff] %vm227_vm0, %v6877_v10  ;;  %v6880_v2 = vmax.f32 %v6838_v6, 0.0  ;;  %v6833_v15 = vadd.f32 %v6832_v58, %v6608_v3  ;;  %v12457_v53 = vld [vmem:[#allocation3 + $0x14f] sm:$0xff]  ;;  %v12464_v63 = vld [vmem:[#allocation3 + $0x167] sm:$0xff] }
 0x691   : > { %v7108_v46 = vadd.f32 %v7076_v59, %v6972_v8  ;;  %v7284_v30 = vmul.f32 %v12279_v24, %v12429_v43  ;;  %v6618_v37 = vadd.f32 %v13279_v22, %v13278_v41  ;;  %v7373_v61 = vmul.f32 %v12246_v20, %v13280_v51  ;;  %v8858_v27 = vpop.f32.mrf.mxu1  ;;  %v12460_v38 = vld [vmem:[#allocation3 + $0x70] sm:$0xff] }
 0x692   : > { %v7821_v44 = vadd.f32 %v7789_v13, %v7717_v0  ;;  %v7301_v35 = vadd.f32 %v7269_v11, %v7197_v55  ;;  %6912 = vst.msk [vmem:[#allocation3 + $0x1f0] sm:$0xff] %vm227_vm0, %v6880_v2  ;;  %v6879_v3 = vmax.f32 %v6833_v15, 0.0  ;;  %v7477_v31 = vmul.f32 %v12251_v21, %v13281_v4  ;;  %v12473_v0 = vld [vmem:[#allocation3 + $0x168] sm:$0xff]  ;;  %v12477_v55 = vld [vmem:[#allocation3 + $0x150] sm:$0xff] }
 0x693   : > { %v6848_v34 = vadd.f32 %v8858_v27, %v6623_v17  ;;  %v7212_v29 = vadd.f32 %v7180_v14, %v7108_v46  ;;  %v6842_v18 = vpop.f32.mrf.mxu1  ;;  %v7388_v12 = vmul.f32 %v12246_v20, %v12440_v16  ;;  %v6973_v40 = vmul.f32 %v12205_v54, %v6934_v33  ;;  %v12462_v17 = vld [vmem:[#allocation3 + $0x71] sm:$0xff]  ;;  %v12486_v33 = vld [vmem:[#allocation3 + $0x169] sm:$0xff] }
 0x694   : > { %v7857_v42 = vsel %vm227_vm0, %v7821_v44, 0.0  ;;  %v7405_v39 = vadd.f32 %v7373_v61, %v7301_v35  ;;  %6911 = vst.msk [vmem:[#allocation3 + $0x1e8] sm:$0xff] %vm227_vm0, %v6879_v3  ;;  %v6843_v48 = vadd.f32 %v6842_v18, %v6618_v37  ;;  %v7077_v50 = vmul.f32 %v12210_v47, %v7037_v32  ;;  %v12488_v22 = vld [vmem:[#allocation3 + $0x151] sm:$0xff] }
 0x695   : > { %7858 = vadd.xlane.f32.xlu0 %v7857_v42  ;;  %v6882_v57 = vmax.f32 %v6848_v34, 0.0  ;;  %v7316_v49 = vadd.f32 %v7284_v30, %v7212_v29  ;;  %v7582_v11 = vmul.f32 %v12332_v62, %v12449_v52  ;;  %v7492_v10 = vmul.f32 %v12251_v21, %v12451_v28  ;;  %v12490_v37 = vld [vmem:[#allocation3 + $0x16f] sm:$0xff] }
 0x696   : > { %v7509_v7 = vadd.f32 %v7477_v31, %v7405_v39  ;;  %v7181_v6 = vmul.f32 %v12221_v56, %v7141_v23  ;;  %v6881_v8 = vmax.f32 %v6843_v48, 0.0  ;;  %v7109_v13 = vadd.f32 %v7077_v50, %v6973_v40  ;;  %v12502_v29 = vld [vmem:[#allocation3 + $0x170] sm:$0xff] }
 0x697   : > { %6914 = vst.msk [vmem:[#allocation3 + $0x210] sm:$0xff] %vm227_vm0, %v6882_v57  ;;  %v7420_v59 = vadd.f32 %v7388_v12, %v7316_v49  ;;  %v7285_v58 = vmul.f32 %v12279_v24, %v12457_v53  ;;  %v7686_v2 = vmul.f32 %v12284_v45, %v12460_v38  ;;  %v7790_v15 = vmul.f32 %v12309_v5, %v12462_v17  ;;  %v12504_v23 = vld [vmem:[#allocation3 + $0x171] sm:$0xff] }
 0x698   : > { %v7614_v14 = vadd.f32 %v7582_v11, %v7509_v7  ;;  %v7597_v46 = vmul.f32 %v12332_v62, %v12464_v63  ;;  %6913 = vst.msk [vmem:[#allocation3 + $0x208] sm:$0xff] %vm227_vm0, %v6881_v8  ;;  %v7213_v41 = vadd.f32 %v7181_v6, %v7109_v13  ;;  %v6958_v44 = vmul.f32 %v12205_v54, %v12340_v1  ;;  %v12521_v11 = vld [vmem:[#allocation3 + $0x87] sm:$0xff] }
 0x699   : > { %v7524_v30 = vadd.f32 %v7492_v10, %v7420_v59  ;;  %v7062_v35 = vmul.f32 %v12210_v47, %v12346_v36  ;;  %v7701_v27 = vmul.f32 %v12284_v45, %v12473_v0  ;;  %v7389_v32 = vmul.f32 %v12246_v20, %v12477_v55  ;;  %v12527_v13 = vld [vmem:[#allocation3 + $0x88] sm:$0xff] }
 0x69a   : > { %v7718_v61 = vadd.f32 %v7686_v2, %v7614_v14  ;;  %v7166_v3 = vmul.f32 %v12221_v56, %v12348_v25  ;;  %v7317_v34 = vadd.f32 %v7285_v58, %v7213_v41  ;;  %v7270_v36 = vmul.f32 %v12279_v24, %v12394_v19  ;;  %v12531_v14 = vld [vmem:[#allocation3 + $0x89] sm:$0xff] }
 0x69b   : > { %v7629_v31 = vadd.f32 %v7597_v46, %v7524_v30  ;;  %v7094_v1 = vadd.f32 %v7062_v35, %v6958_v44  ;;  %v7805_v39 = vmul.f32 %v12309_v5, %v12486_v33  ;;  %v7493_v18 = vmul.f32 %v12251_v21, %v12488_v22 }
 0x69c   : > { %v7822_v42 = vadd.f32 %v7790_v15, %v7718_v61  ;;  %v7598_v25 = vmul.f32 %v12332_v62, %v12490_v37  ;;  %v7421_v40 = vadd.f32 %v7389_v32, %v7317_v34  ;;  %v6959_v48 = vmul.f32 %v12205_v54, %v12334_v26 }
 0x69d   : > { %v7733_v12 = vadd.f32 %v7701_v27, %v7629_v31  ;;  %v7198_v57 = vadd.f32 %v7166_v3, %v7094_v1  ;;  %v7702_v50 = vmul.f32 %v12284_v45, %v12502_v29  ;;  %v7806_v7 = vmul.f32 %v12309_v5, %v12504_v23  ;;  %v12542_v27 = vld [vmem:[#allocation3 + $0x8f] sm:$0xff] }
 0x69e   : > { %v7860_v49 = vsel %vm227_vm0, %v7822_v42, 0.0  ;;  %v7063_v10 = vmul.f32 %v12210_v47, %v13280_v51  ;;  %v7525_v8 = vadd.f32 %v7493_v18, %v7421_v40  ;;  %v7374_v26 = vmul.f32 %v12246_v20, %v12409_v60 }
 0x69f   : > { %7861 = vadd.xlane.f32.xlu0 %v7860_v49  ;;  %v7837_v6 = vadd.f32 %v7805_v39, %v7733_v12  ;;  %v7302_v59 = vadd.f32 %v7270_v36, %v7198_v57  ;;  %v7478_v58 = vmul.f32 %v12251_v21, %v12421_v9  ;;  %v7167_v15 = vmul.f32 %v12221_v56, %v13281_v4  ;;  %v12560_v57 = vld [vmem:[#allocation3 + $0x90] sm:$0xff] }
 0x6a0   : > { %v7095_v2 = vadd.f32 %v7063_v10, %v6959_v48  ;;  %v7271_v51 = vmul.f32 %v12279_v24, %v12449_v52  ;;  %v7630_v30 = vadd.f32 %v7598_v25, %v7525_v8  ;;  %v7583_v44 = vmul.f32 %v12332_v62, %v12521_v11  ;;  %v12562_v48 = vld [vmem:[#allocation3 + $0x91] sm:$0xff]  ;;  %v12571_v8 = vld [vmem:[#allocation3 + $0x187] sm:$0xff] }
 0x6a1   : > { %v7905_v46 = vsel %vm227_vm0, %v7837_v6, 0.0  ;;  %v7406_v41 = vadd.f32 %v7374_v26, %v7302_v59  ;;  %v7687_v35 = vmul.f32 %v12284_v45, %v12527_v13  ;;  %v6974_v4 = vmul.f32 %v12205_v54, %v12429_v43 }
 0x6a2   : > { %7906 = vadd.xlane.f32.xlu1 %v7905_v46  ;;  %v7199_v61 = vadd.f32 %v7167_v15, %v7095_v2  ;;  %v7078_v32 = vmul.f32 %v12210_v47, %v12440_v16  ;;  %v7734_v3 = vadd.f32 %v7702_v50, %v7630_v30  ;;  %v7791_v34 = vmul.f32 %v12309_v5, %v12531_v14  ;;  %v12575_v2 = vld [vmem:[#allocation3 + $0x188] sm:$0xff] }
 0x6a3   : > { %v7510_v31 = vadd.f32 %v7478_v58, %v7406_v41  ;;  %v7375_v1 = vmul.f32 %v12246_v20, %v12460_v38  ;;  %v7182_v39 = vmul.f32 %v12221_v56, %v12451_v28  ;;  %v7286_v18 = vmul.f32 %v12279_v24, %v12464_v63 }
 0x6a4   : > { %v7303_v36 = vadd.f32 %v7271_v51, %v7199_v61  ;;  %v7110_v42 = vadd.f32 %v7078_v32, %v6974_v4  ;;  %v7838_v43 = vadd.f32 %v7806_v7, %v7734_v3  ;;  %v7479_v16 = vmul.f32 %v12251_v21, %v12462_v17 }
 0x6a5   : > { %v7615_v25 = vadd.f32 %v7583_v44, %v7510_v31  ;;  %v7584_v12 = vmul.f32 %v12332_v62, %v12542_v27  ;;  %v6975_v28 = vmul.f32 %v12205_v54, %v12457_v53  ;;  %v7079_v50 = vmul.f32 %v12210_v47, %v12477_v55 }
 0x6a6   : > { %v7407_v40 = vadd.f32 %v7375_v1, %v7303_v36  ;;  %v7214_v49 = vadd.f32 %v7182_v39, %v7110_v42  ;;  %v7908_v7 = vsel %vm227_vm0, %v7838_v43, 0.0  ;;  %v7390_v6 = vmul.f32 %v12246_v20, %v12473_v0  ;;  %v12598_v39 = vld [vmem:[#allocation3 + $0x18f] sm:$0xff] }
 0x6a7   : > { %v7719_v10 = vadd.f32 %v7687_v35, %v7615_v25  ;;  %v7183_v59 = vmul.f32 %v12221_v56, %v12488_v22  ;;  %7909 = vadd.xlane.f32.xlu0 %v7908_v7  ;;  %v7111_v53 = vadd.f32 %v7079_v50, %v6975_v28  ;;  %v7287_v55 = vmul.f32 %v12279_v24, %v12490_v37  ;;  %v12587_v35 = vld [vmem:[#allocation3 + $0x189] sm:$0xff]  ;;  %v12612_v50 = vld [vmem:[#allocation3 + $0x191] sm:$0xff] }
 0x6a8   : > { %v7511_v26 = vadd.f32 %v7479_v16, %v7407_v40  ;;  %v7318_v58 = vadd.f32 %v7286_v18, %v7214_v49  ;;  %v7688_v51 = vmul.f32 %v12284_v45, %v12560_v57  ;;  %v7792_v46 = vmul.f32 %v12309_v5, %v12562_v48  ;;  %v12610_v28 = vld [vmem:[#allocation3 + $0x190] sm:$0xff] }
 0x6a9   : > { %v7823_v15 = vadd.f32 %v7791_v34, %v7719_v10  ;;  %v7494_v30 = vmul.f32 %v12251_v21, %v12486_v33  ;;  %v7599_v44 = vmul.f32 %v12332_v62, %v12571_v8  ;;  %v7215_v61 = vadd.f32 %v7183_v59, %v7111_v53  ;;  %v12621_v53 = vld [vmem:[#allocation3 + $0xa7] sm:$0xff] }
 0x6aa   : > { %v7616_v22 = vadd.f32 %v7584_v12, %v7511_v26  ;;  %v7422_v41 = vadd.f32 %v7390_v6, %v7318_v58  ;;  %v7703_v32 = vmul.f32 %v12284_v45, %v12575_v2  ;;  %v6960_v3 = vmul.f32 %v12205_v54, %v12394_v19 }
 0x6ab   : > { %v7863_v4 = vsel %vm227_vm0, %v7823_v15, 0.0  ;;  %v7064_v31 = vmul.f32 %v12210_v47, %v12409_v60  ;;  %v7319_v36 = vadd.f32 %v7287_v55, %v7215_v61  ;;  %v7391_v42 = vmul.f32 %v12246_v20, %v12502_v29 }
 0x6ac   : > { %7864 = vadd.xlane.f32.xlu1 %v7863_v4  ;;  %v7720_v34 = vadd.f32 %v7688_v51, %v7616_v22  ;;  %v7526_v1 = vadd.f32 %v7494_v30, %v7422_v41  ;;  %v7807_v18 = vmul.f32 %v12309_v5, %v12587_v35  ;;  %v7168_v25 = vmul.f32 %v12221_v56, %v12421_v9  ;;  %v12631_v41 = vld [vmem:[#allocation3 + $0xa8] sm:$0xff] }
 0x6ad   : > { %v7096_v43 = vadd.f32 %v7064_v31, %v6960_v3  ;;  %v7272_v19 = vmul.f32 %v12279_v24, %v12521_v11  ;;  %v7423_v12 = vadd.f32 %v7391_v42, %v7319_v36  ;;  %v7495_v40 = vmul.f32 %v12251_v21, %v12504_v23  ;;  %v12638_v31 = vld [vmem:[#allocation3 + $0xa9] sm:$0xff] }
 0x6ae   : > { %v7824_v60 = vadd.f32 %v7792_v46, %v7720_v34  ;;  %v7631_v16 = vadd.f32 %v7599_v44, %v7526_v1  ;;  %v7600_v49 = vmul.f32 %v12332_v62, %v12598_v39  ;;  %v6961_v9 = vmul.f32 %v12205_v54, %v12449_v52 }
 0x6af   : > { %v7200_v7 = vadd.f32 %v7168_v25, %v7096_v43  ;;  %v7065_v10 = vmul.f32 %v12210_v47, %v12460_v38  ;;  %v7527_v26 = vadd.f32 %v7495_v40, %v7423_v12  ;;  %v7376_v58 = vmul.f32 %v12246_v20, %v12527_v13  ;;  %v12648_v25 = vld [vmem:[#allocation3 + $0xaf] sm:$0xff] }
 0x6b0   : > { %v7866_v6 = vsel %vm227_vm0, %v7824_v60, 0.0  ;;  %v7735_v59 = vadd.f32 %v7703_v32, %v7631_v16  ;;  %v7169_v51 = vmul.f32 %v12221_v56, %v12462_v17  ;;  %v7273_v52 = vmul.f32 %v12279_v24, %v12542_v27  ;;  %v12650_v60 = vld [vmem:[#allocation3 + $0xb0] sm:$0xff] }
 0x6b1   : > { %7867 = vadd.xlane.f32.xlu0 %v7866_v6  ;;  %v7304_v55 = vadd.f32 %v7272_v19, %v7200_v7  ;;  %v7097_v15 = vadd.f32 %v7065_v10, %v6961_v9  ;;  %v7632_v38 = vadd.f32 %v7600_v49, %v7527_v26  ;;  %v7704_v30 = vmul.f32 %v12284_v45, %v12610_v28  ;;  %v12660_v9 = vld [vmem:[#allocation3 + $0xb1] sm:$0xff] }
 0x6b2   : > { %v7839_v46 = vadd.f32 %v7807_v18, %v7735_v59  ;;  %v7808_v22 = vmul.f32 %v12309_v5, %v12612_v50  ;;  %v7480_v61 = vmul.f32 %v12251_v21, %v12531_v14  ;;  %v7585_v17 = vmul.f32 %v12332_v62, %v12621_v53 }
 0x6b3   : > { %v7408_v44 = vadd.f32 %v7376_v58, %v7304_v55  ;;  %v7201_v4 = vadd.f32 %v7169_v51, %v7097_v15  ;;  %v7736_v3 = vadd.f32 %v7704_v30, %v7632_v38  ;;  %v6976_v34 = vmul.f32 %v12205_v54, %v12464_v63  ;;  %v12669_v15 = vld [vmem:[#allocation3 + $0x1a7] sm:$0xff] }
 0x6b4   : > { %v7911_v32 = vsel %vm227_vm0, %v7839_v46, 0.0  ;;  %v7080_v1 = vmul.f32 %v12210_v47, %v12473_v0  ;;  %v7689_v42 = vmul.f32 %v12284_v45, %v12631_v41  ;;  %v7377_v43 = vmul.f32 %v12246_v20, %v12560_v57 }
 0x6b5   : > { %7912 = vadd.xlane.f32.xlu1 %v7911_v32  ;;  %v7512_v36 = vadd.f32 %v7480_v61, %v7408_v44  ;;  %v7305_v18 = vadd.f32 %v7273_v52, %v7201_v4  ;;  %v7840_v19 = vadd.f32 %v7808_v22, %v7736_v3  ;;  %v7184_v63 = vmul.f32 %v12221_v56, %v12486_v33  ;;  %v12679_v44 = vld [vmem:[#allocation3 + $0x1a8] sm:$0xff] }
 0x6b6   : > { %v7112_v16 = vadd.f32 %v7080_v1, %v6976_v34  ;;  %v7288_v0 = vmul.f32 %v12279_v24, %v12571_v8  ;;  %v7793_v40 = vmul.f32 %v12309_v5, %v12638_v31  ;;  %v7481_v7 = vmul.f32 %v12251_v21, %v12562_v48  ;;  %v12690_v1 = vld [vmem:[#allocation3 + $0x1a9] sm:$0xff] }
 0x6b7   : > { %v7617_v12 = vadd.f32 %v7585_v17, %v7512_v36  ;;  %v7409_v49 = vadd.f32 %v7377_v43, %v7305_v18  ;;  %v7914_v10 = vsel %vm227_vm0, %v7840_v19, 0.0  ;;  %v7586_v6 = vmul.f32 %v12332_v62, %v12648_v25 }
 0x6b8   : > { %v7216_v59 = vadd.f32 %v7184_v63, %v7112_v16  ;;  %v6977_v33 = vmul.f32 %v12205_v54, %v12490_v37  ;;  %7915 = vadd.xlane.f32.xlu0 %v7914_v10  ;;  %v7690_v55 = vmul.f32 %v12284_v45, %v12650_v60  ;;  %v7081_v51 = vmul.f32 %v12210_v47, %v12502_v29 }
 0x6b9   : > { %v7721_v26 = vadd.f32 %v7689_v42, %v7617_v12  ;;  %v7513_v58 = vadd.f32 %v7481_v7, %v7409_v49  ;;  %v7794_v52 = vmul.f32 %v12309_v5, %v12660_v9  ;;  %v7392_v38 = vmul.f32 %v12246_v20, %v12575_v2  ;;  %v12692_v42 = vld [vmem:[#allocation3 + $0x1af] sm:$0xff] }
 0x6ba   : > { %v7320_v46 = vadd.f32 %v7288_v0, %v7216_v59  ;;  %v7185_v37 = vmul.f32 %v12221_v56, %v12504_v23  ;;  %v7113_v61 = vadd.f32 %v7081_v51, %v6977_v33  ;;  %v7289_v17 = vmul.f32 %v12279_v24, %v12598_v39  ;;  %v12702_v12 = vld [vmem:[#allocation3 + $0x1b0] sm:$0xff] }
 0x6bb   : > { %v7825_v30 = vadd.f32 %v7793_v40, %v7721_v26  ;;  %v7618_v22 = vadd.f32 %v7586_v6, %v7513_v58  ;;  %v7496_v29 = vmul.f32 %v12251_v21, %v12587_v35  ;;  %v7601_v32 = vmul.f32 %v12332_v62, %v12669_v15  ;;  %v12704_v40 = vld [vmem:[#allocation3 + $0x1b1] sm:$0xff] }
 0x6bc   : > { %v7424_v4 = vadd.f32 %v7392_v38, %v7320_v46  ;;  %v6962_v3 = vmul.f32 %v12205_v54, %v12521_v11  ;;  %v7217_v36 = vadd.f32 %v7185_v37, %v7113_v61  ;;  %v7066_v18 = vmul.f32 %v12210_v47, %v12527_v13  ;;  %v12721_v46 = vld [vmem:[#allocation3 + $0xc7] sm:$0xff] }
 0x6bd   : > { %v7869_v23 = vsel %vm227_vm0, %v7825_v30, 0.0  ;;  %v7722_v34 = vadd.f32 %v7690_v55, %v7618_v22  ;;  %v7705_v19 = vmul.f32 %v12284_v45, %v12679_v44  ;;  %v7393_v16 = vmul.f32 %v12246_v20, %v12610_v28  ;;  %v12729_v61 = vld [vmem:[#allocation3 + $0xc8] sm:$0xff] }
 0x6be   : > { %7870 = vadd.xlane.f32.xlu1 %v7869_v23  ;;  %v7528_v43 = vadd.f32 %v7496_v29, %v7424_v4  ;;  %v7170_v11 = vmul.f32 %v12221_v56, %v12531_v14  ;;  %v7321_v0 = vadd.f32 %v7289_v17, %v7217_v36  ;;  %v7098_v49 = vadd.f32 %v7066_v18, %v6962_v3  ;;  %v12731_v4 = vld [vmem:[#allocation3 + $0xc9] sm:$0xff] }
 0x6bf   : > { %v7826_v63 = vadd.f32 %v7794_v52, %v7722_v34  ;;  %v7274_v13 = vmul.f32 %v12279_v24, %v12621_v53  ;;  %v7809_v10 = vmul.f32 %v12309_v5, %v12690_v1  ;;  %v7497_v6 = vmul.f32 %v12251_v21, %v12612_v50 }
 0x6c0   : > { %v7633_v7 = vadd.f32 %v7601_v32, %v7528_v43  ;;  %v7602_v14 = vmul.f32 %v12332_v62, %v12692_v42  ;;  %v7425_v33 = vadd.f32 %v7393_v16, %v7321_v0  ;;  %v7202_v26 = vadd.f32 %v7170_v11, %v7098_v49  ;;  %v12744_v16 = vld [vmem:[#allocation3 + $0xcf] sm:$0xff] }
 0x6c1   : > { %v7872_v59 = vsel %vm227_vm0, %v7826_v63, 0.0  ;;  %v6963_v58 = vmul.f32 %v12205_v54, %v12542_v27  ;;  %v7706_v51 = vmul.f32 %v12284_v45, %v12702_v12  ;;  %v7810_v52 = vmul.f32 %v12309_v5, %v12704_v40 }
 0x6c2   : > { %7873 = vadd.xlane.f32.xlu0 %v7872_v59  ;;  %v7737_v55 = vadd.f32 %v7705_v19, %v7633_v7  ;;  %v7067_v38 = vmul.f32 %v12210_v47, %v12560_v57  ;;  %v7529_v37 = vadd.f32 %v7497_v6, %v7425_v33  ;;  %v7306_v30 = vadd.f32 %v7274_v13, %v7202_v26  ;;  %v12760_v59 = vld [vmem:[#allocation3 + $0xd0] sm:$0xff] }
 0x6c3   : > { %v7378_v22 = vmul.f32 %v12246_v20, %v12631_v41  ;;  %v7482_v27 = vmul.f32 %v12251_v21, %v12638_v31  ;;  %v7171_v32 = vmul.f32 %v12221_v56, %v12562_v48  ;;  %v7275_v57 = vmul.f32 %v12279_v24, %v12648_v25  ;;  %v12762_v33 = vld [vmem:[#allocation3 + $0xd1] sm:$0xff] }
 0x6c4   : > { %v7841_v17 = vadd.f32 %v7809_v10, %v7737_v55  ;;  %v7099_v29 = vadd.f32 %v7067_v38, %v6963_v58  ;;  %v7634_v3 = vadd.f32 %v7602_v14, %v7529_v37  ;;  %v7587_v34 = vmul.f32 %v12332_v62, %v12721_v46  ;;  %v12774_v58 = vld [vmem:[%s13260_s3 + $0x1] ss:$0 sm:$0xff]  ;;  %v12781_v37 = vld [vmem:[#allocation3 + $0x1c7] sm:$0xff] }
 0x6c5   : > { %v7410_v23 = vadd.f32 %v7378_v22, %v7306_v30  ;;  %v6978_v36 = vmul.f32 %v12205_v54, %v12571_v8  ;;  %v7691_v43 = vmul.f32 %v12284_v45, %v12729_v61  ;;  %v7082_v48 = vmul.f32 %v12210_v47, %v12575_v2 }
 0x6c6   : > { %v7917_v18 = vsel %vm227_vm0, %v7841_v17, 0.0  ;;  %v7203_v19 = vadd.f32 %v7171_v32, %v7099_v29  ;;  %v7738_v11 = vadd.f32 %v7706_v51, %v7634_v3  ;;  %v7795_v0 = vmul.f32 %v12309_v5, %v12731_v4 }
 0x6c7   : > { %7918 = vadd.xlane.f32.xlu1 %v7917_v18  ;;  %v7514_v63 = vadd.f32 %v7482_v27, %v7410_v23  ;;  %v7379_v54 = vmul.f32 %v12246_v20, %v12650_v60  ;;  %v7114_v49 = vadd.f32 %v7082_v48, %v6978_v36  ;;  %v7186_v13 = vmul.f32 %v12221_v56, %v12587_v35  ;;  %v12767_v56 = vld [vmem:[%s13260_s3] ss:$0 sm:$0xff]  ;;  %v12802_v18 = vld [vmem:[#allocation3 + $0x1c9] sm:$0xff] }
 0x6c8   : > { %v7307_v8 = vadd.f32 %v7275_v57, %v7203_v19  ;;  %v7290_v7 = vmul.f32 %v12279_v24, %v12669_v15  ;;  %v7842_v10 = vadd.f32 %v7810_v52, %v7738_v11  ;;  %v7483_v47 = vmul.f32 %v12251_v21, %v12660_v9 }
 0x6c9   : > { %v7619_v6 = vadd.f32 %v7587_v34, %v7514_v63  ;;  %v7588_v2 = vmul.f32 %v12332_v62, %v12744_v16  ;;  %v7218_v26 = vadd.f32 %v7186_v13, %v7114_v49  ;;  %v6979_v35 = vmul.f32 %v12767_v56, %v12598_v39  ;;  %v12786_v39 = vld [vmem:[%s13260_s3 + $0x2] ss:$0 sm:$0xff]  ;;  %v12813_v49 = vld [vmem:[#allocation3 + $0x1cf] sm:$0xff] }
 0x6ca   : > { %v7411_v14 = vadd.f32 %v7379_v54, %v7307_v8  ;;  %v7083_v55 = vmul.f32 %v12774_v58, %v12610_v28  ;;  %v7920_v51 = vsel %vm227_vm0, %v7842_v10, 0.0  ;;  %v7394_v38 = vmul.f32 %v12246_v20, %v12679_v44  ;;  %v12790_v28 = vld [vmem:[#allocation3 + $0x1c8] sm:$0xff] }
 0x6cb   : > { %v7723_v52 = vadd.f32 %v7691_v43, %v7619_v6  ;;  %v7187_v30 = vmul.f32 %v12786_v39, %v12612_v50  ;;  %7921 = vadd.xlane.f32.xlu0 %v7920_v51  ;;  %v7322_v27 = vadd.f32 %v7290_v7, %v7218_v26  ;;  %v7291_v29 = vmul.f32 %v12279_v24, %v12692_v42 }
 0x6cc   : > { %v7515_v22 = vadd.f32 %v7483_v47, %v7411_v14  ;;  %v7115_v17 = vadd.f32 %v7083_v55, %v6979_v35  ;;  %v7692_v57 = vmul.f32 %v12284_v45, %v12760_v59  ;;  %v7796_v3 = vmul.f32 %v12309_v5, %v12762_v33  ;;  %v12824_v47 = vld [vmem:[%s13260_s3 + $0x5] ss:$0 sm:$0xff]  ;;  %v12830_v14 = vld [vmem:[#allocation3 + $0x1d0] sm:$0xff] }
 0x6cd   : > { %v7827_v32 = vadd.f32 %v7795_v0, %v7723_v52  ;;  %v7498_v23 = vmul.f32 %v12251_v21, %v12690_v1  ;;  %v7426_v34 = vadd.f32 %v7394_v38, %v7322_v27  ;;  %v7603_v36 = vmul.f32 %v12332_v62, %v12781_v37  ;;  %v12842_v38 = vld [vmem:[%s13260_s3 + $0x4] ss:$0 sm:$0xff] }
 0x6ce   : > { %v7620_v50 = vadd.f32 %v7588_v2, %v7515_v22  ;;  %v7219_v43 = vadd.f32 %v7187_v30, %v7115_v17  ;;  %v7707_v48 = vmul.f32 %v12284_v45, %v12790_v28  ;;  %v6964_v11 = vmul.f32 %v12767_v56, %v12621_v53  ;;  %v12846_v22 = vld [vmem:[#allocation3 + $0xe7] sm:$0xff]  ;;  %v12853_v17 = vld [vmem:[%s13260_s3 + $0x3] ss:$0 sm:$0xff] }
 0x6cf   : > { %v7875_v19 = vsel %vm227_vm0, %v7827_v32, 0.0  ;;  %v7068_v63 = vmul.f32 %v12774_v58, %v12631_v41  ;;  %v7530_v0 = vadd.f32 %v7498_v23, %v7426_v34  ;;  %v7395_v8 = vmul.f32 %v12246_v20, %v12702_v12 }
 0x6d0   : > { %7876 = vadd.xlane.f32.xlu1 %v7875_v19  ;;  %v7724_v21 = vadd.f32 %v7692_v57, %v7620_v50  ;;  %v7323_v54 = vadd.f32 %v7291_v29, %v7219_v43  ;;  %v7811_v13 = vmul.f32 %v12309_v5, %v12802_v18  ;;  %v7172_v45 = vmul.f32 %v12786_v39, %v12638_v31  ;;  %v12832_v31 = vld [vmem:[#allocation3 + $0x1d1] sm:$0xff]  ;;  %v12866_v50 = vld [vmem:[#allocation3 + $0xe8] sm:$0xff] }
 0x6d1   : > { %v7100_v7 = vadd.f32 %v7068_v63, %v6964_v11  ;;  %v7276_v53 = vmul.f32 %v12279_v24, %v12721_v46  ;;  %v7635_v10 = vadd.f32 %v7603_v36, %v7530_v0  ;;  %v7499_v20 = vmul.f32 %v12824_v47, %v12704_v40  ;;  %v12873_v63 = vld [vmem:[#allocation3 + $0xe9] sm:$0xff] }
 0x6d2   : > { %v7828_v41 = vadd.f32 %v7796_v3, %v7724_v21  ;;  %v7427_v6 = vadd.f32 %v7395_v8, %v7323_v54  ;;  %v7604_v2 = vmul.f32 %v12332_v62, %v12813_v49  ;;  %v6965_v24 = vmul.f32 %v12767_v56, %v12648_v25  ;;  %v12860_v3 = vld [vmem:[%s13260_s3 + $0x7] ss:$0 sm:$0xff] }
 0x6d3   : > { %v7204_v26 = vadd.f32 %v7172_v45, %v7100_v7  ;;  %v7069_v35 = vmul.f32 %v12774_v58, %v12650_v60  ;;  %v7739_v51 = vadd.f32 %v7707_v48, %v7635_v10  ;;  %v7380_v30 = vmul.f32 %v12842_v38, %v12729_v61  ;;  %v12885_v45 = vld [vmem:[#allocation3 + $0xf0] sm:$0xff]  ;;  %v12894_v10 = vld [vmem:[%s13260_s3 + $0x8] ss:$0 sm:$0xff] }
 0x6d4   : > { %v7878_v55 = vsel %vm227_vm0, %v7828_v41, 0.0  ;;  %v7531_v52 = vadd.f32 %v7499_v20, %v7427_v6  ;;  %v7173_v60 = vmul.f32 %v12786_v39, %v12660_v9  ;;  %v7277_v29 = vmul.f32 %v12853_v17, %v12744_v16 }
 0x6d5   : > { %7879 = vadd.xlane.f32.xlu0 %v7878_v55  ;;  %v7308_v27 = vadd.f32 %v7276_v53, %v7204_v26  ;;  %v7101_v25 = vadd.f32 %v7069_v35, %v6965_v24  ;;  %v7843_v32 = vadd.f32 %v7811_v13, %v7739_v51  ;;  %v7708_v23 = vmul.f32 %v12860_v3, %v12830_v14  ;;  %v12883_v13 = vld [vmem:[#allocation3 + $0xef] sm:$0xff]  ;;  %v12906_v24 = vld [vmem:[%s13260_s3 + $0x6] ss:$0 sm:$0xff] }
 0x6d6   : > { %v7636_v57 = vadd.f32 %v7604_v2, %v7531_v52  ;;  %v7812_v9 = vmul.f32 %v12309_v5, %v12832_v31  ;;  %v7484_v36 = vmul.f32 %v12824_v47, %v12731_v4  ;;  %v7589_v43 = vmul.f32 %v12332_v62, %v12846_v22  ;;  %v12900_v26 = vld [vmem:[#allocation3 + $0xf1] sm:$0xff] }
 0x6d7   : > { %v7412_v34 = vadd.f32 %v7380_v30, %v7308_v27  ;;  %v7205_v19 = vadd.f32 %v7173_v60, %v7101_v25  ;;  %v7923_v48 = vsel %vm227_vm0, %v7843_v32, 0.0  ;;  %v6980_v21 = vmul.f32 %v12767_v56, %v12669_v15  ;;  %v12914_v25 = vld [vmem:[#allocation3 + $0x1e7] sm:$0xff] }
 0x6d8   : > { %v7740_v11 = vadd.f32 %v7708_v23, %v7636_v57  ;;  %v7084_v5 = vmul.f32 %v12774_v58, %v12679_v44  ;;  %7924 = vadd.xlane.f32.xlu1 %v7923_v48  ;;  %v7693_v54 = vmul.f32 %v12860_v3, %v12866_v50  ;;  %v7381_v62 = vmul.f32 %v12842_v38, %v12760_v59 }
 0x6d9   : > { %v7516_v0 = vadd.f32 %v7484_v36, %v7412_v34  ;;  %v7309_v8 = vadd.f32 %v7277_v29, %v7205_v19  ;;  %v7188_v15 = vmul.f32 %v12786_v39, %v12690_v1  ;;  %v7292_v44 = vmul.f32 %v12853_v17, %v12781_v37  ;;  %v12924_v34 = vld [vmem:[#allocation3 + $0x1e8] sm:$0xff] }
 0x6da   : > { %v7844_v7 = vadd.f32 %v7812_v9, %v7740_v11  ;;  %v7116_v53 = vadd.f32 %v7084_v5, %v6980_v21  ;;  %v7797_v6 = vmul.f32 %v12894_v10, %v12873_v63  ;;  %v7485_v2 = vmul.f32 %v12824_v47, %v12762_v33  ;;  %v12935_v5 = vld [vmem:[#allocation3 + $0x1e9] sm:$0xff] }
 0x6db   : > { %v7621_v41 = vadd.f32 %v7589_v43, %v7516_v0  ;;  %v7413_v20 = vadd.f32 %v7381_v62, %v7309_v8  ;;  %v7590_v35 = vmul.f32 %v12906_v24, %v12883_v13  ;;  %v6981_v51 = vmul.f32 %v12767_v56, %v12692_v42 }
 0x6dc   : > { %v7926_v1 = vsel %vm227_vm0, %v7844_v7, 0.0  ;;  %v7220_v55 = vadd.f32 %v7188_v15, %v7116_v53  ;;  %v7694_v27 = vmul.f32 %v12860_v3, %v12885_v45  ;;  %v7085_v60 = vmul.f32 %v12774_v58, %v12702_v12 }
 0x6dd   : > { %7927 = vadd.xlane.f32.xlu0 %v7926_v1  ;;  %v7725_v52 = vadd.f32 %v7693_v54, %v7621_v41  ;;  %v7517_v30 = vadd.f32 %v7485_v2, %v7413_v20  ;;  %v7798_v29 = vmul.f32 %v12894_v10, %v12900_v26  ;;  %v7396_v57 = vmul.f32 %v12842_v38, %v12790_v28  ;;  %v12937_v54 = vld [vmem:[#allocation3 + $0x1ef] sm:$0xff] }
 0x6de   : > { %v7324_v32 = vadd.f32 %v7292_v44, %v7220_v55  ;;  %v7189_v42 = vmul.f32 %v12786_v39, %v12704_v40  ;;  %v7117_v36 = vadd.f32 %v7085_v60, %v6981_v51  ;;  %v7293_v43 = vmul.f32 %v12853_v17, %v12813_v49  ;;  %v12947_v41 = vld [vmem:[#allocation3 + $0x1f0] sm:$0xff] }
 0x6df   : > { %v7829_v23 = vadd.f32 %v7797_v6, %v7725_v52  ;;  %v7622_v9 = vadd.f32 %v7590_v35, %v7517_v30  ;;  %v7500_v12 = vmul.f32 %v12824_v47, %v12802_v18  ;;  %v7605_v48 = vmul.f32 %v12906_v24, %v12914_v25  ;;  %v12949_v6 = vld [vmem:[#allocation3 + $0x1f1] sm:$0xff] }
 0x6e0   : > { %v7428_v19 = vadd.f32 %v7396_v57, %v7324_v32  ;;  %v6966_v11 = vmul.f32 %v12767_v56, %v12721_v46  ;;  %v7221_v0 = vadd.f32 %v7189_v42, %v7117_v36  ;;  %v7070_v8 = vmul.f32 %v12774_v58, %v12729_v61  ;;  %v12966_v32 = vld [vmem:[#allocation3 + $0x107] sm:$0xff] }
 0x6e1   : > { %v7881_v40 = vsel %vm227_vm0, %v7829_v23, 0.0  ;;  %v7726_v21 = vadd.f32 %v7694_v27, %v7622_v9  ;;  %v7709_v7 = vmul.f32 %v12860_v3, %v12924_v34  ;;  %v7397_v53 = vmul.f32 %v12842_v38, %v12830_v14  ;;  %v12974_v36 = vld [vmem:[#allocation3 + $0x108] sm:$0xff] }
 0x6e2   : > { %7882 = vadd.xlane.f32.xlu1 %v7881_v40  ;;  %v7532_v62 = vadd.f32 %v7500_v12, %v7428_v19  ;;  %v7174_v46 = vmul.f32 %v12786_v39, %v12731_v4  ;;  %v7325_v44 = vadd.f32 %v7293_v43, %v7221_v0  ;;  %v7102_v20 = vadd.f32 %v7070_v8, %v6966_v11  ;;  %v12976_v19 = vld [vmem:[#allocation3 + $0x109] sm:$0xff] }
 0x6e3   : > { %v7830_v15 = vadd.f32 %v7798_v29, %v7726_v21  ;;  %v7278_v61 = vmul.f32 %v12853_v17, %v12846_v22  ;;  %v7813_v1 = vmul.f32 %v12894_v10, %v12935_v5  ;;  %v7501_v35 = vmul.f32 %v12824_v47, %v12832_v31 }
 0x6e4   : > { %v7637_v2 = vadd.f32 %v7605_v48, %v7532_v62  ;;  %v7606_v4 = vmul.f32 %v12906_v24, %v12937_v54  ;;  %v7429_v51 = vadd.f32 %v7397_v53, %v7325_v44  ;;  %v7206_v52 = vadd.f32 %v7174_v46, %v7102_v20  ;;  %v12989_v53 = vld [vmem:[#allocation3 + $0x10f] sm:$0xff] }
 0x6e5   : > { %v7884_v55 = vsel %vm227_vm0, %v7830_v15, 0.0  ;;  %v6967_v30 = vmul.f32 %v12767_v56, %v12744_v16  ;;  %v7710_v60 = vmul.f32 %v12860_v3, %v12947_v41  ;;  %v7814_v29 = vmul.f32 %v12894_v10, %v12949_v6 }
 0x6e6   : > { %7885 = vadd.xlane.f32.xlu0 %v7884_v55  ;;  %v7741_v27 = vadd.f32 %v7709_v7, %v7637_v2  ;;  %v7071_v57 = vmul.f32 %v12774_v58, %v12760_v59  ;;  %v7533_v42 = vadd.f32 %v7501_v35, %v7429_v51  ;;  %v7310_v23 = vadd.f32 %v7278_v61, %v7206_v52  ;;  %v13005_v52 = vld [vmem:[#allocation3 + $0x110] sm:$0xff] }
 0x6e7   : > { %v7382_v9 = vmul.f32 %v12842_v38, %v12866_v50  ;;  %v7486_v16 = vmul.f32 %v12824_v47, %v12873_v63  ;;  %v7175_v48 = vmul.f32 %v12786_v39, %v12762_v33  ;;  %v7279_v59 = vmul.f32 %v12853_v17, %v12883_v13 }
 0x6e8   : > { %v7845_v43 = vadd.f32 %v7813_v1, %v7741_v27  ;;  %v7103_v12 = vadd.f32 %v7071_v57, %v6967_v30  ;;  %v7638_v11 = vadd.f32 %v7606_v4, %v7533_v42  ;;  %v7591_v21 = vmul.f32 %v12906_v24, %v12966_v32  ;;  %v13007_v30 = vld [vmem:[#allocation3 + $0x111] sm:$0xff] }
 0x6e9   : > { %v7414_v40 = vadd.f32 %v7382_v9, %v7310_v23  ;;  %v6982_v0 = vmul.f32 %v12767_v56, %v12781_v37  ;;  %v7695_v62 = vmul.f32 %v12860_v3, %v12974_v36  ;;  %v7086_v33 = vmul.f32 %v12774_v58, %v12790_v28 }
 0x6ea   : > { %v7929_v8 = vsel %vm227_vm0, %v7845_v43, 0.0  ;;  %v7207_v7 = vadd.f32 %v7175_v48, %v7103_v12  ;;  %v7742_v46 = vadd.f32 %v7710_v60, %v7638_v11  ;;  %v7799_v44 = vmul.f32 %v12894_v10, %v12976_v19  ;;  %v13018_v43 = vld [vmem:[#allocation3 + $0x207] sm:$0xff] }
 0x6eb   : > { %7930 = vadd.xlane.f32.xlu1 %v7929_v8  ;;  %v7518_v15 = vadd.f32 %v7486_v16, %v7414_v40  ;;  %v7383_v37 = vmul.f32 %v12842_v38, %v12885_v45  ;;  %v7118_v61 = vadd.f32 %v7086_v33, %v6982_v0  ;;  %v7190_v2 = vmul.f32 %v12786_v39, %v12802_v18 }
 0x6ec   : > { %v7311_v20 = vadd.f32 %v7279_v59, %v7207_v7  ;;  %v7294_v1 = vmul.f32 %v12853_v17, %v12914_v25  ;;  %v7846_v35 = vadd.f32 %v7814_v29, %v7742_v46  ;;  %v7487_v28 = vmul.f32 %v12824_v47, %v12900_v26 }
 0x6ed   : > { %v7623_v4 = vadd.f32 %v7591_v21, %v7518_v15  ;;  %v7592_v55 = vmul.f32 %v12906_v24, %v12989_v53  ;;  %v7222_v27 = vadd.f32 %v7190_v2, %v7118_v61  ;;  %v6983_v18 = vmul.f32 %v12767_v56, %v12813_v49  ;;  %v13028_v21 = vld [vmem:[#allocation3 + $0x208] sm:$0xff] }
 0x6ee   : > { %v7415_v51 = vadd.f32 %v7383_v37, %v7311_v20  ;;  %v7087_v60 = vmul.f32 %v12774_v58, %v12830_v14  ;;  %v7932_v29 = vsel %vm227_vm0, %v7846_v35, 0.0  ;;  %v7398_v42 = vmul.f32 %v12842_v38, %v12924_v34  ;;  %v13043_v2 = vld [vmem:[#allocation3 + $0x20f] sm:$0xff] }
 0x6ef   : > { %v7727_v57 = vadd.f32 %v7695_v62, %v7623_v4  ;;  %v7191_v23 = vmul.f32 %v12786_v39, %v12832_v31  ;;  %7933 = vadd.xlane.f32.xlu0 %v7932_v29  ;;  %v7326_v16 = vadd.f32 %v7294_v1, %v7222_v27  ;;  %v7295_v49 = vmul.f32 %v12853_v17, %v12937_v54  ;;  %v13053_v27 = vld [vmem:[#allocation3 + $0x210] sm:$0xff] }
 0x6f0   : > { %v7519_v9 = vadd.f32 %v7487_v28, %v7415_v51  ;;  %v7119_v12 = vadd.f32 %v7087_v60, %v6983_v18  ;;  %v7696_v14 = vmul.f32 %v12860_v3, %v13005_v52  ;;  %v7800_v59 = vmul.f32 %v12894_v10, %v13007_v30  ;;  %v13055_v18 = vld [vmem:[#allocation3 + $0x211] sm:$0xff] }
 0x6f1   : > { %v7831_v48 = vadd.f32 %v7799_v44, %v7727_v57  ;;  %v7430_v40 = vadd.f32 %v7398_v42, %v7326_v16  ;;  %v7502_v31 = vmul.f32 %v12824_v47, %v12935_v5  ;;  %v7607_v62 = vmul.f32 %v12906_v24, %v13018_v43  ;;  %v13037_v44 = vld [vmem:[#allocation3 + $0x209] sm:$0xff] }
 0x6f2   : > { %v7624_v11 = vadd.f32 %v7592_v55, %v7519_v9  ;;  %v7223_v0 = vadd.f32 %v7191_v23, %v7119_v12  ;;  %v6968_v7 = vmul.f32 %v12767_v56, %v12846_v22  ;;  %v7072_v33 = vmul.f32 %v12774_v58, %v12866_v50  ;;  %v13064_v16 = vld [vmem:[#allocation3 + $0x12f] sm:$0xff] }
 0x6f3   : > { %v7887_v8 = vsel %vm227_vm0, %v7831_v48, 0.0  ;;  %v7534_v15 = vadd.f32 %v7502_v31, %v7430_v40  ;;  %v7399_v20 = vmul.f32 %v12842_v38, %v12947_v41  ;;  %v7711_v61 = vmul.f32 %v12860_v3, %v13028_v21 }
 0x6f4   : > { %7888 = vadd.xlane.f32.xlu1 %v7887_v8  ;;  %v7728_v46 = vadd.f32 %v7696_v14, %v7624_v11  ;;  %v7327_v37 = vadd.f32 %v7295_v49, %v7223_v0  ;;  %v7104_v1 = vadd.f32 %v7072_v33, %v6968_v7  ;;  %v7176_v22 = vmul.f32 %v12786_v39, %v12873_v63  ;;  %v7553_v0 = vld [vmem:[#allocation3 + $0x127] sm:$0xff]  ;;  %v13074_v8 = vld [vmem:[#allocation3 + $0x130] sm:$0xff] }
 0x6f5   : > { %v7280_v50 = vmul.f32 %v12853_v17, %v12966_v32  ;;  %v7639_v4 = vadd.f32 %v7607_v62, %v7534_v15  ;;  %v7503_v55 = vmul.f32 %v12824_v47, %v12949_v6  ;;  %v7815_v51 = vmul.f32 %v12894_v10, %v13037_v44  ;;  %v7657_v33 = vld [vmem:[#allocation3 + $0x128] sm:$0xff] }
 0x6f6   : > { %v7832_v35 = vadd.f32 %v7800_v59, %v7728_v46  ;;  %v7431_v28 = vadd.f32 %v7399_v20, %v7327_v37  ;;  %v7208_v60 = vadd.f32 %v7176_v22, %v7104_v1  ;;  %v6971_v63 = vmul.f32 %v12767_v56, %v12989_v53  ;;  %v13081_v1 = vld [vmem:[#allocation3 + $0x131] sm:$0xff] }
 0x6f7   : > { %v7075_v29 = vmul.f32 %v12774_v58, %v13005_v52  ;;  %v7743_v42 = vadd.f32 %v7711_v61, %v7639_v4  ;;  %v7608_v9 = vmul.f32 %v12906_v24, %v13043_v2  ;;  %v7384_v49 = vmul.f32 %v12842_v38, %v12974_v36  ;;  %v7761_v61 = vld [vmem:[#allocation3 + $0x129] sm:$0xff] }
 0x6f8   : > { %v7890_v57 = vsel %vm227_vm0, %v7832_v35, 0.0  ;;  %v7535_v23 = vadd.f32 %v7503_v55, %v7431_v28  ;;  %v7312_v12 = vadd.f32 %v7280_v50, %v7208_v60  ;;  %v7179_v14 = vmul.f32 %v12786_v39, %v13007_v30 }
 0x6f9   : > { %7891 = vadd.xlane.f32.xlu0 %v7890_v57  ;;  %v7107_v48 = vadd.f32 %v7075_v29, %v6971_v63  ;;  %v7847_v59 = vadd.f32 %v7815_v51, %v7743_v42  ;;  %v7712_v40 = vmul.f32 %v12860_v3, %v13053_v27  ;;  %v7816_v31 = vmul.f32 %v12894_v10, %v13055_v18  ;;  %v7556_v63 = vld [vmem:[#allocation3 + $0x14f] sm:$0xff] }
 0x6fa   : > { %v7640_v11 = vadd.f32 %v7608_v9, %v7535_v23  ;;  %v7416_v62 = vadd.f32 %v7384_v49, %v7312_v12  ;;  %v7488_v7 = vmul.f32 %v12824_v47, %v12976_v19  ;;  %v7283_v15 = vmul.f32 %v12853_v17, %v13064_v16  ;;  %v7660_v9 = vld [vmem:[#allocation3 + $0x150] sm:$0xff] }
 0x6fb   : > { %v7211_v46 = vadd.f32 %v7179_v14, %v7107_v48  ;;  %v7935_v37 = vsel %vm227_vm0, %v7847_v59, 0.0  ;;  %v6970_v22 = vmul.f32 %v12767_v56, %v12966_v32  ;;  %v7074_v50 = vmul.f32 %v12774_v58, %v12974_v36 }
 0x6fc   : > { %v7744_v20 = vadd.f32 %v7712_v40, %v7640_v11  ;;  %7936 = vadd.xlane.f32.xlu1 %v7935_v37  ;;  %v7520_v35 = vadd.f32 %v7488_v7, %v7416_v62  ;;  %v7593_v4 = vmul.f32 %v12906_v24, %v7553_v0  ;;  %v7387_v55 = vmul.f32 %v12842_v38, %v13074_v8  ;;  %v7764_v40 = vld [vmem:[#allocation3 + $0x151] sm:$0xff] }
 0x6fd   : > { %v7315_v28 = vadd.f32 %v7283_v15, %v7211_v46  ;;  %v7697_v60 = vmul.f32 %v12860_v3, %v7657_v33  ;;  %v7106_v29 = vadd.f32 %v7074_v50, %v6970_v22  ;;  %v7178_v57 = vmul.f32 %v12786_v39, %v12976_v19 }
 0x6fe   : > { %v7848_v51 = vadd.f32 %v7816_v31, %v7744_v20  ;;  %v7625_v32 = vadd.f32 %v7593_v4, %v7520_v35  ;;  %v7801_v42 = vmul.f32 %v12894_v10, %v7761_v61  ;;  %v7491_v23 = vmul.f32 %v12824_v47, %v13081_v1 }
 0x6ff   : > { %v7419_v36 = vadd.f32 %v7387_v55, %v7315_v28  ;;  %v7210_v49 = vadd.f32 %v7178_v57, %v7106_v29  ;;  %v7282_v48 = vmul.f32 %v12853_v17, %v7553_v0  ;;  %v6969_v14 = vmul.f32 %v12767_v56, %v12883_v13  ;;  %v7555_v13 = vld [vmem:[#allocation3 + $0x147] sm:$0xff] }
 0x700   : > { %v7938_v12 = vsel %vm227_vm0, %v7848_v51, 0.0  ;;  %v7729_v59 = vadd.f32 %v7697_v60, %v7625_v32  ;;  %v7596_v19 = vmul.f32 %v12906_v24, %v7556_v63  ;;  %v7073_v31 = vmul.f32 %v12774_v58, %v12885_v45  ;;  %v7659_v55 = vld [vmem:[#allocation3 + $0x148] sm:$0xff] }
 0x701   : > { %7939 = vadd.xlane.f32.xlu0 %v7938_v12  ;;  %v7523_v11 = vadd.f32 %v7491_v23, %v7419_v36  ;;  %v7700_v62 = vmul.f32 %v12860_v3, %v7660_v9  ;;  %v7314_v7 = vadd.f32 %v7282_v48, %v7210_v49  ;;  %v7386_v46 = vmul.f32 %v12842_v38, %v7657_v33 }
 0x702   : > { %v7177_v0 = vmul.f32 %v12786_v39, %v12900_v26  ;;  %v7833_v15 = vadd.f32 %v7801_v42, %v7729_v59  ;;  %v7105_v20 = vadd.f32 %v7073_v31, %v6969_v14  ;;  %v7281_v22 = vmul.f32 %v12853_v17, %v12989_v53  ;;  %v7763_v26 = vld [vmem:[#allocation3 + $0x149] sm:$0xff] }
 0x703   : > { %v7628_v37 = vadd.f32 %v7596_v19, %v7523_v11  ;;  %v7804_v50 = vmul.f32 %v12894_v10, %v7764_v40  ;;  %v7418_v35 = vadd.f32 %v7386_v46, %v7314_v7  ;;  %v7490_v45 = vmul.f32 %v12824_v47, %v7761_v61  ;;  %v7569_v59 = vld [vmem:[#allocation3 + $0x227] sm:$0xff] }
 0x704   : > { %v6984_v4 = vmul.f32 %v12767_v56, %v12914_v25  ;;  %v7893_v33 = vsel %vm227_vm0, %v7833_v15, 0.0  ;;  %v7209_v51 = vadd.f32 %v7177_v0, %v7105_v20  ;;  %v7088_v60 = vmul.f32 %v12774_v58, %v12924_v34  ;;  %v7673_v31 = vld [vmem:[#allocation3 + $0x228] sm:$0xff] }
 0x705   : > { %v7732_v28 = vadd.f32 %v7700_v62, %v7628_v37  ;;  %7894 = vadd.xlane.f32.xlu1 %v7893_v33  ;;  %v7522_v63 = vadd.f32 %v7490_v45, %v7418_v35  ;;  %v7595_v53 = vmul.f32 %v12906_v24, %v7555_v13  ;;  %v7385_v29 = vmul.f32 %v12842_v38, %v13005_v52  ;;  %v7777_v0 = vld [vmem:[#allocation3 + $0x229] sm:$0xff] }
 0x706   : > { %v7192_v61 = vmul.f32 %v12786_v39, %v12935_v5  ;;  %v7313_v57 = vadd.f32 %v7281_v22, %v7209_v51  ;;  %v7120_v32 = vadd.f32 %v7088_v60, %v6984_v4  ;;  %v7296_v42 = vmul.f32 %v12853_v17, %v13018_v43  ;;  %v7674_v35 = vld [vmem:[#allocation3 + $0x230] sm:$0xff] }
 0x707   : > { %v7836_v25 = vadd.f32 %v7804_v50, %v7732_v28  ;;  %v7627_v36 = vadd.f32 %v7595_v53, %v7522_v63  ;;  %v7699_v23 = vmul.f32 %v12860_v3, %v7659_v55  ;;  %v7803_v34 = vmul.f32 %v12894_v10, %v7763_v26  ;;  %v7778_v55 = vld [vmem:[#allocation3 + $0x231] sm:$0xff] }
 0x708   : > { %v7489_v9 = vmul.f32 %v12824_v47, %v13007_v30  ;;  %v7417_v52 = vadd.f32 %v7385_v29, %v7313_v57  ;;  %v7224_v49 = vadd.f32 %v7192_v61, %v7120_v32  ;;  %v6985_v5 = vmul.f32 %v12767_v56, %v12937_v54 }
 0x709   : > { %v7902_v12 = vsel %vm227_vm0, %v7836_v25, 0.0  ;;  %v7731_v48 = vadd.f32 %v7699_v23, %v7627_v36  ;;  %v7594_v43 = vmul.f32 %v12906_v24, %v13064_v16  ;;  %v7698_v14 = vmul.f32 %v12860_v3, %v13074_v8 }
 0x70a   : > { %7903 = vadd.xlane.f32.xlu0 %v7902_v12  ;;  %v7089_v11 = vmul.f32 %v12774_v58, %v12947_v41  ;;  %v7521_v30 = vadd.f32 %v7489_v9, %v7417_v52  ;;  %v7328_v19 = vadd.f32 %v7296_v42, %v7224_v49  ;;  %v7400_v40 = vmul.f32 %v12842_v38, %v13028_v21 }
 0x70b   : > { %v7504_v56 = vmul.f32 %v12824_v47, %v13037_v44  ;;  %v7835_v54 = vadd.f32 %v7803_v34, %v7731_v48  ;;  %v7193_v16 = vmul.f32 %v12786_v39, %v12949_v6  ;;  %v7297_v8 = vmul.f32 %v12853_v17, %v13043_v2  ;;  %v7570_v17 = vld [vmem:[#allocation3 + $0x22f] sm:$0xff] }
 0x70c   : > { %v7121_v62 = vadd.f32 %v7089_v11, %v6985_v5  ;;  %v7626_v7 = vadd.f32 %v7594_v43, %v7521_v30  ;;  %v7432_v46 = vadd.f32 %v7400_v40, %v7328_v19  ;;  %v7609_v58 = vmul.f32 %v12906_v24, %v7569_v59 }
 0x70d   : > { %v7899_v41 = vsel %vm227_vm0, %v7835_v54, 0.0  ;;  %v8928_v15 = vmov 0   ;;  %v7802_v37 = vmul.f32 %v12894_v10, %v13081_v1  ;;  %v7713_v6 = vmul.f32 %v12860_v3, %v7673_v31 }
 0x70e   : > { %v7225_v21 = vadd.f32 %v7193_v16, %v7121_v62  ;;  %8896 = vset.pattern.permute.xlu1 %v8928_v15  ;;  %8897 = vset.pattern.permute.xlu0 %v8928_v15  ;;  %v7730_v44 = vadd.f32 %v7698_v14, %v7626_v7  ;;  %v7536_v39 = vadd.f32 %v7504_v56, %v7432_v46  ;;  %v8021_v62 = vlaneseq }
 0x70f   : > { %7900 = vadd.xlane.f32.xlu1 %v7899_v41  ;;  %v7401_v13 = vmul.f32 %v12842_v38, %v13053_v27  ;;  %v7817_v50 = vmul.f32 %v12894_v10, %v7777_v0  ;;  %v7505_v4 = vmul.f32 %v12824_v47, %v13055_v18  ;;  %v7610_v33 = vmul.f32 %v12906_v24, %v7570_v17  ;;  %v8542_v24 = vld [vmem:[#allocation5] ss:$0 sm:$0xff] }
 0x710   : > { %v7329_v2 = vadd.f32 %v7297_v8, %v7225_v21  ;;  %v7834_v20 = vadd.f32 %v7802_v37, %v7730_v44  ;;  %v7641_v22 = vadd.f32 %v7609_v58, %v7536_v39  ;;  %v7714_v51 = vmul.f32 %v12860_v3, %v7674_v35 }
 0x711   : > { %v7818_v60 = vmul.f32 %v12894_v10, %v7778_v55  ;;  %v7856_v18 = vpop.xlane.xlu1 %7855  ;;  %v8022_v8 = vand.u32 127, %v8021_v62  ;;  %v8024_v46 = vshrl.u32 %v8021_v62, 7 }
 0x712   : > { %v7433_v45 = vadd.f32 %v7401_v13, %v7329_v2  ;;  %v7896_v1 = vsel %vm227_vm0, %v7834_v20, 0.0  ;;  %v7745_v28 = vadd.f32 %v7713_v6, %v7641_v22  ;;  %v7853_v61 = vpop.xlane.xlu0 %7852 }
 0x713   : > { %7897 = vadd.xlane.f32.xlu0 %v7896_v1  ;;  %v8027_v58 = vadd.s32 4294967288, %v8022_v8  ;;  %v13160_v21 = vsub.s32 %v8022_v8, %v8024_v46 }
 0x714   : > { %v7537_v26 = vadd.f32 %v7505_v4, %v7433_v45  ;;  %v7849_v38 = vadd.f32 %v7817_v50, %v7745_v28 }
 0x715   : > { %v13162_v15 = vsub.s32 %v8027_v58, %v8024_v46 }
 0x716   : > { %v7642_v27 = vadd.f32 %v7610_v33, %v7537_v26  ;;  %v7941_v63 = vsel %vm227_vm0, %v7849_v38, 0.0 }
 0x717   : > { %7942 = vadd.xlane.f32.xlu1 %v7941_v63 }
 0x718   : > { %v7746_v53 = vadd.f32 %v7714_v51, %v7642_v27 }
 0x71a   : > { %v7850_v29 = vadd.f32 %v7818_v60, %v7746_v53 }
 0x71c   : > { %v7944_v47 = vsel %vm227_vm0, %v7850_v29, 0.0 }
 0x71d   : > { %7945 = vadd.xlane.f32.xlu0 %v7944_v47 }
 0x71e   : > { %v7859_v57 = vpop.xlane.xlu0 %7858 }
 0x728   : > { %7954 = vperm.xlu1 %8896, %v8542_v24   ;;  %v7862_v3 = vpop.xlane.xlu0 %7861 }
 0x72b   : > { %v7907_v25 = vpop.xlane.xlu1 %7906 }
 0x730   : > { %v7910_v36 = vpop.xlane.xlu0 %7909 }
 0x735   : > { %v7865_v32 = vpop.xlane.xlu1 %7864 }
 0x73a   : > { %v7868_v10 = vpop.xlane.xlu0 %7867 }
 0x73e   : > { %v7913_v42 = vpop.xlane.xlu1 %7912 }
 0x741   : > { %v7916_v9 = vpop.xlane.xlu0 %7915 }
 0x747   : > { %v7871_v23 = vpop.xlane.xlu1 %7870 }
 0x74b   : > { %v7874_v52 = vpop.xlane.xlu0 %7873 }
 0x750   : > { %v7919_v34 = vpop.xlane.xlu1 %7918 }
 0x754   : > { %v7922_v5 = vpop.xlane.xlu0 %7921 }
 0x759   : > { %v7877_v12 = vpop.xlane.xlu1 %7876 }
 0x75e   : > { %v7880_v43 = vpop.xlane.xlu0 %7879 }
 0x761   : > { %v7925_v49 = vpop.xlane.xlu1 %7924 }
 0x766   : > { %v7928_v59 = vpop.xlane.xlu0 %7927 }
 0x76b   : > { %v7883_v48 = vpop.xlane.xlu1 %7882 }
 0x76f   : > { %v7886_v30 = vpop.xlane.xlu0 %7885 }
 0x774   : > { %v7931_v14 = vpop.xlane.xlu1 %7930 }
 0x778   : > { %v7934_v40 = vpop.xlane.xlu0 %7933 }
 0x77d   : > { %v7889_v11 = vpop.xlane.xlu1 %7888 }
 0x782   : > { %v7892_v54 = vpop.xlane.xlu0 %7891 }
 0x785   : > { %v7937_v19 = vpop.xlane.xlu1 %7936 }
 0x78a   : > { %v7940_v16 = vpop.xlane.xlu0 %7939 }
 0x78e   : > { %v7895_v56 = vpop.xlane.xlu1 %7894 }
 0x793   : > { %v7904_v41 = vpop.xlane.xlu0 %7903 }
 0x798   : > { %v7901_v31 = vpop.xlane.xlu1 %7900 }
 0x79c   : > { %v7898_v22 = vpop.xlane.xlu0 %7897 }
 0x7a0   : > { %v7943_v7 = vpop.xlane.xlu1 %7942 }
 0x7a4   : > { %v7955_v0 = vpop.permute.xlu1 %7954 }
 0x7a5   : > { %v7957_v44 = vadd.f32 %v7955_v0, %v7853_v61  ;;  %v7958_v37 = vadd.f32 %v7955_v0, %v7856_v18  ;;  %v7959_v39 = vadd.f32 %v7955_v0, %v7859_v57  ;;  %v7960_v6 = vadd.f32 %v7955_v0, %v7862_v3 }
 0x7a6   : > { %v7961_v17 = vadd.f32 %v7955_v0, %v7865_v32  ;;  %v7962_v2 = vadd.f32 %v7955_v0, %v7868_v10  ;;  %v7963_v13 = vadd.f32 %v7955_v0, %v7871_v23  ;;  %v7964_v20 = vadd.f32 %v7955_v0, %v7874_v52 }
 0x7a7   : > { %v13164_v50 = vadd.f32 %v7955_v0, %v7877_v12  ;;  %v13166_v35 = vadd.f32 %v7955_v0, %v7880_v43  ;;  %v13168_v45 = vadd.f32 %v7955_v0, %v7883_v48  ;;  %v13170_v4 = vadd.f32 %v7955_v0, %v7886_v30 }
 0x7a8   : > { %v13172_v33 = vadd.f32 %v7955_v0, %v7889_v11  ;;  %v13174_v1 = vadd.f32 %v7955_v0, %v7892_v54  ;;  %v13176_v28 = vadd.f32 %v7955_v0, %v7895_v56  ;;  %v13178_v55 = vadd.f32 %v7955_v0, %v7898_v22 }
 0x7a9   : > { %v7973_v26 = vadd.f32 %v7955_v0, %v7901_v31  ;;  %v7974_v51 = vadd.f32 %v7955_v0, %v7904_v41  ;;  %v7975_v38 = vadd.f32 %v7955_v0, %v7907_v25  ;;  %v7976_v27 = vadd.f32 %v7955_v0, %v7910_v36 }
 0x7aa   : > { %v7977_v60 = vadd.f32 %v7955_v0, %v7913_v42  ;;  %v7978_v63 = vadd.f32 %v7955_v0, %v7916_v9  ;;  %v7979_v53 = vadd.f32 %v7955_v0, %v7919_v34  ;;  %v7980_v29 = vadd.f32 %v7955_v0, %v7922_v5  ;;  %v7946_v42 = vpop.xlane.xlu0 %7945 }
 0x7ab   : > { %v8026_v47 = vrot.slane %v7957_v44, %v13160_v21  ;;  %v8031_v24 = vrot.slane %v7958_v37, %v13162_v15  ;;  %v8037_v18 = vrot.slane %v7959_v39, %v13160_v21  ;;  %v8041_v61 = vrot.slane %v7960_v6, %v13162_v15 }
 0x7ac   : > { %v8046_v57 = vrot.slane %v7961_v17, %v13160_v21  ;;  %v8050_v32 = vrot.slane %v7962_v2, %v13162_v15  ;;  %v8055_v25 = vrot.slane %v7963_v13, %v13160_v21  ;;  %v8059_v3 = vrot.slane %v7964_v20, %v13162_v15 }
 0x7ad   : > { %v7981_v36 = vadd.f32 %v7955_v0, %v7925_v49  ;;  %v7982_v23 = vadd.f32 %v7955_v0, %v7928_v59  ;;  %v7983_v10 = vadd.f32 %v7955_v0, %v7931_v14  ;;  %v7984_v34 = vadd.f32 %v7955_v0, %v7934_v40 }
 0x7ae   : > { %v7985_v9 = vadd.f32 %v7955_v0, %v7937_v19  ;;  %v7986_v12 = vadd.f32 %v7955_v0, %v7940_v16  ;;  %v7987_v52 = vadd.f32 %v7955_v0, %v7943_v7  ;;  %v7988_v5 = vadd.f32 %v7955_v0, %v7946_v42 }
 0x7af   : > { %v8033_v48 = vsel %vm8032_vm3, %v8031_v24, %v8026_v47  ;;  %v8042_v43 = vsel %vm8032_vm3, %v8041_v61, %v8037_v18  ;;  %v8064_v11 = vrot.slane %v13164_v50, %v13160_v21  ;;  %v8068_v30 = vrot.slane %v13166_v35, %v13162_v15 }
 0x7b0   : > { %v8051_v49 = vsel %vm8032_vm3, %v8050_v32, %v8046_v57  ;;  %v8060_v14 = vsel %vm8032_vm3, %v8059_v3, %v8055_v25  ;;  %v8100_v59 = vrot.slane %v7973_v26, %v13160_v21  ;;  %v8104_v19 = vrot.slane %v7974_v51, %v13162_v15 }
 0x7b1   : > { %v8073_v40 = vrot.slane %v13168_v45, %v13160_v21  ;;  %v8109_v56 = vrot.slane %v7975_v38, %v13160_v21  ;;  %v8113_v54 = vrot.slane %v7976_v27, %v13162_v15  ;;  %v8118_v31 = vrot.slane %v7977_v60, %v13160_v21 }
 0x7b2   : > { %v8077_v62 = vrot.slane %v13170_v4, %v13162_v15  ;;  %v8082_v16 = vrot.slane %v13172_v33, %v13160_v21  ;;  %v8122_v8 = vrot.slane %v7978_v63, %v13162_v15  ;;  %v8127_v7 = vrot.slane %v7979_v53, %v13160_v21 }
 0x7b3   : > { %v8086_v46 = vrot.slane %v13174_v1, %v13162_v15  ;;  %v8105_v58 = vsel %vm8032_vm3, %v8104_v19, %v8100_v59  ;;  %v8114_v41 = vsel %vm8032_vm3, %v8113_v54, %v8109_v56  ;;  %v8131_v0 = vrot.slane %v7980_v29, %v13162_v15 }
 0x7b4   : > { %v8091_v44 = vrot.slane %v13176_v28, %v13160_v21  ;;  %v8123_v37 = vsel %vm8032_vm3, %v8122_v8, %v8118_v31  ;;  %v8136_v39 = vrot.slane %v7981_v36, %v13160_v21  ;;  %v8140_v6 = vrot.slane %v7982_v23, %v13162_v15 }
 0x7b5   : > { %v8095_v17 = vrot.slane %v13178_v55, %v13162_v15  ;;  %v8145_v2 = vrot.slane %v7983_v10, %v13160_v21  ;;  %v8149_v13 = vrot.slane %v7984_v34, %v13162_v15  ;;  %v8154_v20 = vrot.slane %v7985_v9, %v13160_v21 }
 0x7b6   : > { %v8132_v22 = vsel %vm8032_vm3, %v8131_v0, %v8127_v7  ;;  %v8158_v50 = vrot.slane %v7986_v12, %v13162_v15  ;;  %v8170_v35 = vsel %vm8169_vm4, %v8042_v43, %v8033_v48  ;;  %v8183_v45 = vsel %vm8169_vm4, %v8114_v41, %v8105_v58 }
 0x7b7   : > { %v8163_v4 = vrot.slane %v7987_v52, %v13160_v21  ;;  %v8167_v33 = vrot.slane %v7988_v5, %v13162_v15  ;;  %v8172_v1 = vsel %vm8171_vm5, %v8051_v49, %v8170_v35  ;;  %v8184_v28 = vsel %vm8171_vm5, %v8123_v37, %v8183_v45 }
 0x7b8   : > { %v8069_v55 = vsel %vm8032_vm3, %v8068_v30, %v8064_v11  ;;  %v8141_v26 = vsel %vm8032_vm3, %v8140_v6, %v8136_v39  ;;  %v8174_v51 = vsel %vm8173_vm6, %v8060_v14, %v8172_v1  ;;  %v8185_v38 = vsel %vm8173_vm6, %v8132_v22, %v8184_v28 }
 0x7b9   : > { %v8078_v27 = vsel %vm8032_vm3, %v8077_v62, %v8073_v40  ;;  %v8150_v21 = vsel %vm8032_vm3, %v8149_v13, %v8145_v2  ;;  %v8176_v15 = vsel %vm8175_vm7, %v8069_v55, %v8174_v51  ;;  %v8186_v60 = vsel %vm8175_vm7, %v8141_v26, %v8185_v38 }
 0x7ba   : > { %v8087_v63 = vsel %vm8032_vm3, %v8086_v46, %v8082_v16  ;;  %v8159_v53 = vsel %vm8032_vm3, %v8158_v50, %v8154_v20  ;;  %v8178_v29 = vsel %vm8177_vm8, %v8078_v27, %v8176_v15  ;;  %v8187_v47 = vsel %vm8177_vm8, %v8150_v21, %v8186_v60 }
 0x7bb   : > { %v8096_v24 = vsel %vm8032_vm3, %v8095_v17, %v8091_v44  ;;  %v8168_v18 = vsel %vm8032_vm3, %v8167_v33, %v8163_v4  ;;  %v8180_v61 = vsel %vm8179_vm9, %v8087_v63, %v8178_v29  ;;  %v8188_v57 = vsel %vm8179_vm9, %v8159_v53, %v8187_v47 }
 0x7bc   : > { %v8182_v32 = vsel %vm8181_vm10, %v8096_v24, %v8180_v61  ;;  %v8189_v25 = vsel %vm8181_vm10, %v8168_v18, %v8188_v57 }
 0x7bd   : > { %8193 = vst.msk [vmem:[%s9212_s29] sm:$0xff] %vm8192_vm11, %v8182_v32  ;;  %8194 = vst.msk [vmem:[%s9212_s29 + $0x8] sm:$0xff] %vm8192_vm11, %v8189_v25 }
 0x7be PF: > { %s17_s20 = sadd.s32 1, %s8918_s20  }
 0x7bf   : > { %p14_p5 = scmp.ge.s32.totalorder %s17_s20, 6  }
 0x7c1   :  { %16 = sbr.rel (!%p14_p5) target bundleno = 3 (0x3), region = 110 }

</bundles_post_ra>
